<compile_context>
chip_gen: v7x
topology: tpu7x:2x2x1
jax: 0.10.0
libtpu: 0.0.40
codegen_flags: <defaults>
</compile_context>

<pallas_src>
import math
from functools import partial

import jax
import jax.numpy as jnp
from jax import lax
from jax.experimental import pallas as pl
from jax.experimental.pallas import tpu as pltpu

H_IN = 768     # linear10 in_features
H_FFN = 3072   # linear10 out_features / linear11 in_features
H_OUT = 768    # linear11 out_features

_INV_SQRT2 = 1.0 / math.sqrt(2.0)


def _ffn_kernel(x_ref, w1_ref, b1_ref, w2_ref, b2_ref, o_ref):
    """Grid step (i, j): row tile i, FFN-dim tile j (reduction axis, innermost).

    h_j   = gelu(x_i @ W1[:, j] + b1[j])     (exact erf GELU == torch default)
    o_i  += h_j @ W2[j, :]                   (o_i seeded with b2 at j == 0)
    """
    j = pl.program_id(1)

    # Output block index is constant across j, so o_ref stays VMEM-resident:
    # seed it with the second bias, then accumulate into it (no extra scratch,
    # no separate bias-add pass).
    @pl.when(j == 0)
    def _():
        o_ref[...] = jnp.broadcast_to(b2_ref[...], o_ref.shape).astype(o_ref.dtype)

    # First matmul slice: bf16 operands on the MXU, f32 accumulation.
    h = jnp.dot(x_ref[...], w1_ref[...], preferred_element_type=jnp.float32)
    h = h + b1_ref[...]  # (1, tf) broadcasts over rows

    # Exact GELU: 0.5 * x * (1 + erf(x / sqrt(2))) -- matches torch._C._nn.gelu default.
    h = 0.5 * h * (1.0 + lax.erf(h * _INV_SQRT2))

    # Second matmul slice, accumulated directly into the f32 output tile.
    o_ref[...] += jnp.dot(
        h.astype(jnp.bfloat16), w2_ref[...], preferred_element_type=jnp.float32
    )


def _choose_tm(m):
    """Row-tile size.

    For the row counts this module sees (M = B*S up to a few thousand), use a single
    row tile so W1/W2 are DMA'd from HBM exactly once (the kernel is weight-streaming
    bound).  Only tile rows for very large M, where the weight re-stream is amortized.
    """
    if m <= 2048:
        return m           # single tile; full-extent block is always layout-legal
    return 1024            # multiple of 256: full MXU rows on v6e/v7x
    # TODO(synk): for very large M, keep W1/W2 fully VMEM-resident (constant index_map)
    # and grid only over row tiles so weights are read once regardless of M.


@partial(jax.jit, static_argnames=("tm", "tf"))
def ffn_forward(x, w1_bf16, b1, w2_bf16, b2, *, tm=None, tf=1536):
    """x: (B, S, H_IN) float32.  w1_bf16/w2_bf16 must already be bf16 (cast once at
    init time, NOT per call).  Returns (B, S, H_OUT) float32."""
    B, S, H = x.shape
    assert H == H_IN
    assert w1_bf16.dtype == jnp.bfloat16 and w2_bf16.dtype == jnp.bfloat16, (
        "convert weights to bf16 once at parameter-init time")
    assert H_FFN % tf == 0, "tf must divide 3072 (reduction grid uses exact tiles)"

    M = B * S
    if tm is None:
        tm = _choose_tm(M)

    # Pre-cast x to bf16 (tiny: ~0.6 MiB at M=384) so the kernel's resident x tile is
    # bf16 and there is no per-j VPU cast inside the kernel.
    x2 = x.reshape(M, H).astype(jnp.bfloat16)
    b1_2 = b1.reshape(1, H_FFN)
    b2_2 = b2.reshape(1, H_OUT)

    grid = (pl.cdiv(M, tm), H_FFN // tf)

    cost = pl.CostEstimate(
        flops=4 * M * H_IN * H_FFN,                 # two (M,768)x(768,3072)-class matmuls
        transcendentals=M * H_FFN,                  # erf per FFN activation
        bytes_accessed=(x2.size * 2                 # x bf16
                        + w1_bf16.size * 2 + w2_bf16.size * 2   # weights read once
                        + b1.size * 4 + b2.size * 4
                        + M * H_OUT * 4),           # f32 output
    )

    out2 = pl.pallas_call(
        _ffn_kernel,
        out_shape=jax.ShapeDtypeStruct((M, H_OUT), jnp.float32),
        grid_spec=pltpu.PrefetchScalarGridSpec(
            num_scalar_prefetch=0,
            grid=grid,
            in_specs=[
                pl.BlockSpec((tm, H_IN), lambda i, j: (i, 0)),    # x row tile (resident over j)
                pl.BlockSpec((H_IN, tf), lambda i, j: (0, j)),    # W1 column slice (bf16)
                pl.BlockSpec((1, tf), lambda i, j: (0, j)),       # b1 slice (matches W1 tile)
                pl.BlockSpec((tf, H_OUT), lambda i, j: (j, 0)),   # W2 row slice (bf16)
                pl.BlockSpec((1, H_OUT), lambda i, j: (0, 0)),    # b2 (full, loaded once)
            ],
            out_specs=pl.BlockSpec((tm, H_OUT), lambda i, j: (i, 0)),
        ),
        compiler_params=pltpu.CompilerParams(
            dimension_semantics=("parallel", "arbitrary"),
            # Honest budget: ~9.4 MiB double-buffered weight tiles + ~2 MiB x/out tiles
            # + biases + internal scratch for the (tm, tf) f32 intermediate.
            vmem_limit_bytes=20 * 1024 * 1024,
        ),
        cost_estimate=cost,
    )(x2, w1_bf16, b1_2, w2_bf16, b2_2)

    return out2.reshape(B, S, H_OUT).astype(x.dtype)


def reference(x, w1, b1, w2, b2):
    h = jnp.einsum("bsh,hf->bsf", x, w1) + b1
    h = 0.5 * h * (1.0 + lax.erf(h / math.sqrt(2.0)))
    o = jnp.einsum("bsf,fh->bsh", h, w2) + b2
    return o  # dropout = identity at eval


if __name__ == "__main__":
    key = jax.random.PRNGKey(0)
    k_x, k_w1, k_b1, k_w2, k_b2 = jax.random.split(key, 5)

    # Small, module-consistent shapes: batch=1, seq=128, hidden dims fixed by the
    # Linear layers (768 / 3072).  The original module uses seq=384.
    B, S = 1, 128
    x = jax.random.normal(k_x, (B, S, H_IN), dtype=jnp.float32)

    # Deterministic parameter init (uniform ~ PyTorch Linear default scale).
    lim1 = 1.0 / math.sqrt(H_IN)
    lim2 = 1.0 / math.sqrt(H_FFN)
    w1 = jax.random.uniform(k_w1, (H_IN, H_FFN), jnp.float32, -lim1, lim1)
    b1 = jax.random.uniform(k_b1, (H_FFN,), jnp.float32, -lim1, lim1)
    w2 = jax.random.uniform(k_w2, (H_FFN, H_OUT), jnp.float32, -lim2, lim2)
    b2 = jax.random.uniform(k_b2, (H_OUT,), jnp.float32, -lim2, lim2)

    # One-time weight conversion (parameter-init time, outside the jitted forward).
    w1_bf = jax.block_until_ready(w1.astype(jnp.bfloat16))
    w2_bf = jax.block_until_ready(w2.astype(jnp.bfloat16))

    out = ffn_forward(x, w1_bf, b1, w2_bf, b2)
    out = jax.block_until_ready(out)

    ref = reference(x, w1, b1, w2, b2)
    assert out.shape == (B, S, H_OUT)
    # bf16 MXU operands (f32 accumulation) vs. full-f32 reference -> loosened tolerance.
    assert jnp.allclose(out, ref, atol=2e-2, rtol=2e-2), "mismatch vs reference"

    print("KERNEL_OK")
</pallas_src>

<mosaic_0001>
module attributes {stable_mosaic.version = 11 : i64} {
  func.func @_ffn_kernel(%arg0: i32, %arg1: i32, %arg2: memref<128x768xbf16, #tpu.memory_space<vmem>>, %arg3: memref<768x1536xbf16, #tpu.memory_space<vmem>>, %arg4: memref<1x1536xf32, #tpu.memory_space<vmem>>, %arg5: memref<1536x768xbf16, #tpu.memory_space<vmem>>, %arg6: memref<1x768xf32, #tpu.memory_space<vmem>>, %arg7: memref<128x768xf32, #tpu.memory_space<vmem>>) attributes {dimension_semantics = [#tpu.dimension_semantics<parallel>, #tpu.dimension_semantics<arbitrary>], iteration_bounds = array<i64: 1, 2>, scalar_prefetch = 0 : i64, scratch_operands = 0 : i64, tpu.core_type = #tpu.core_type<tc>, window_params = [{transform_indices = @transform_0, window_bounds = array<i64: 128, 768>}, {transform_indices = @transform_1, window_bounds = array<i64: 768, 1536>}, {transform_indices = @transform_2, window_bounds = array<i64: 1, 1536>}, {transform_indices = @transform_3, window_bounds = array<i64: 1536, 768>}, {pipeline_mode = #tpu.pipeline_mode<synchronous>, transform_indices = @transform_4, window_bounds = array<i64: 1, 768>}, {transform_indices = @transform_5, window_bounds = array<i64: 128, 768>}]} {
    %c0_i32 = arith.constant 0 : i32
    %0 = arith.cmpi eq, %arg1, %c0_i32 : i32
    %1 = arith.extui %0 : i1 to i32
    %c0_i32_0 = arith.constant 0 : i32
    %2 = arith.cmpi ne, %1, %c0_i32_0 : i32
    scf.if %2 {
      %c0_16 = arith.constant 0 : index
      %c0_17 = arith.constant 0 : index
      %23 = vector.load %arg6[%c0_16, %c0_17] : memref<1x768xf32, #tpu.memory_space<vmem>>, vector<1x768xf32>
      %24 = vector.shape_cast %23 : vector<1x768xf32> to vector<1x768xf32>
      %25 = vector.broadcast %24 : vector<1x768xf32> to vector<128x768xf32>
      %c0_18 = arith.constant 0 : index
      %c0_19 = arith.constant 0 : index
      %26 = vector.load %arg7[%c0_18, %c0_19] : memref<128x768xf32, #tpu.memory_space<vmem>>, vector<128x768xf32>
      tpu.vector_store %arg7[%c0_18, %c0_19], %25 {strides = array<i32>} : memref<128x768xf32, #tpu.memory_space<vmem>>, vector<128x768xf32>,
    } else {
    }
    %c0 = arith.constant 0 : index
    %c0_1 = arith.constant 0 : index
    %3 = vector.load %arg2[%c0, %c0_1] : memref<128x768xbf16, #tpu.memory_space<vmem>>, vector<128x768xbf16>
    %c0_2 = arith.constant 0 : index
    %c0_3 = arith.constant 0 : index
    %4 = vector.load %arg3[%c0_2, %c0_3] : memref<768x1536xbf16, #tpu.memory_space<vmem>>, vector<768x1536xbf16>
    %cst = arith.constant dense<0.000000e+00> : vector<128x1536xf32>
    %5 = tpu.matmul %3, %4, %cst {dimension_numbers = #tpu.dot_dimension_numbers<[1], [0], [0], [1], [0, 0, 1, 1], [], []>} : vector<128x768xbf16>, vector<768x1536xbf16>, vector<128x1536xf32> -> vector<128x1536xf32>
    %c0_4 = arith.constant 0 : index
    %c0_5 = arith.constant 0 : index
    %6 = vector.load %arg4[%c0_4, %c0_5] : memref<1x1536xf32, #tpu.memory_space<vmem>>, vector<1x1536xf32>
    %7 = vector.broadcast %6 : vector<1x1536xf32> to vector<128x1536xf32>
    %8 = arith.addf %5, %7 : vector<128x1536xf32>
    %cst_6 = arith.constant 5.000000e-01 : f32
    %9 = vector.broadcast %cst_6 : f32 to vector<128x1536xf32>
    %10 = arith.mulf %9, %8 : vector<128x1536xf32>
    %cst_7 = arith.constant 0.707106769 : f32
    %11 = vector.broadcast %cst_7 : f32 to vector<128x1536xf32>
    %12 = arith.mulf %8, %11 : vector<128x1536xf32>
    %13 = math.erf %12 : vector<128x1536xf32>
    %cst_8 = arith.constant 1.000000e+00 : f32
    %14 = vector.broadcast %cst_8 : f32 to vector<128x1536xf32>
    %15 = arith.addf %14, %13 : vector<128x1536xf32>
    %16 = arith.mulf %10, %15 : vector<128x1536xf32>
    %c0_9 = arith.constant 0 : index
    %c0_10 = arith.constant 0 : index
    %17 = vector.load %arg7[%c0_9, %c0_10] : memref<128x768xf32, #tpu.memory_space<vmem>>, vector<128x768xf32>
    %18 = arith.truncf %16 : vector<128x1536xf32> to vector<128x1536xbf16>
    %c0_11 = arith.constant 0 : index
    %c0_12 = arith.constant 0 : index
    %19 = vector.load %arg5[%c0_11, %c0_12] : memref<1536x768xbf16, #tpu.memory_space<vmem>>, vector<1536x768xbf16>
    %cst_13 = arith.constant dense<0.000000e+00> : vector<128x768xf32>
    %20 = tpu.matmul %18, %19, %cst_13 {dimension_numbers = #tpu.dot_dimension_numbers<[1], [0], [0], [1], [0, 0, 1, 1], [], []>} : vector<128x1536xbf16>, vector<1536x768xbf16>, vector<128x768xf32> -> vector<128x768xf32>
    %21 = arith.addf %17, %20 : vector<128x768xf32>
    %c0_14 = arith.constant 0 : index
    %c0_15 = arith.constant 0 : index
    %22 = vector.load %arg7[%c0_14, %c0_15] : memref<128x768xf32, #tpu.memory_space<vmem>>, vector<128x768xf32>
    tpu.vector_store %arg7[%c0_14, %c0_15], %21 {strides = array<i32>} : memref<128x768xf32, #tpu.memory_space<vmem>>, vector<128x768xf32>,
    return
  }
  func.func @transform_0(%arg0: i32, %arg1: i32) -> (i32, i32) {
    %c0_i32 = arith.constant 0 : i32
    %c0_i32_0 = arith.constant 0 : i32
    return %arg0, %c0_i32 : i32, i32
  }
  func.func @transform_1(%arg0: i32, %arg1: i32) -> (i32, i32) {
    %c0_i32 = arith.constant 0 : i32
    %c0_i32_0 = arith.constant 0 : i32
    return %c0_i32, %arg1 : i32, i32
  }
  func.func @transform_2(%arg0: i32, %arg1: i32) -> (i32, i32) {
    %c0_i32 = arith.constant 0 : i32
    %c0_i32_0 = arith.constant 0 : i32
    return %c0_i32, %arg1 : i32, i32
  }
  func.func @transform_3(%arg0: i32, %arg1: i32) -> (i32, i32) {
    %c0_i32 = arith.constant 0 : i32
    %c0_i32_0 = arith.constant 0 : i32
    return %arg1, %c0_i32 : i32, i32
  }
  func.func @transform_4(%arg0: i32, %arg1: i32) -> (i32, i32) {
    %c0_i32 = arith.constant 0 : i32
    %c0_i32_0 = arith.constant 0 : i32
    %c0_i32_1 = arith.constant 0 : i32
    return %c0_i32, %c0_i32_0 : i32, i32
  }
  func.func @transform_5(%arg0: i32, %arg1: i32) -> (i32, i32) {
    %c0_i32 = arith.constant 0 : i32
    %c0_i32_0 = arith.constant 0 : i32
    return %arg0, %c0_i32 : i32, i32
  }
}

</mosaic_0001>

<bundles_post_ra>
// kernel: ffn_forward.1
= control target key start
LH: loop header
LB: loop body
LE: loop exit
PB: predicated region body
PF: predicated region fallthrough
CT: control target
= control target key end

     0   :  { %s22028_s0 = inlined_call_operand.vmem [shape: bf16[128,768], index: 0, kind: input, shape index: {}]   ;;  %s22029_s1 = inlined_call_operand.hbm [shape: bf16[768,3072], index: 1, kind: input, shape index: {}]   ;;  %s22030_s2 = inlined_call_operand.hbm [shape: f32[1,3072], index: 2, kind: input, shape index: {}]   ;;  %s22031_s3 = inlined_call_operand.hbm [shape: bf16[3072,768], index: 3, kind: input, shape index: {}]   ;;  %s22032_s4 = inlined_call_operand.vmem [shape: f32[1,768], index: 4, kind: input, shape index: {}]   ;;  %s22033_s5 = inlined_call_operand.hbm [shape: f32[128,768], index: 5, kind: output, shape index: {}]  }
   0x1   :  { %22170 = sst [smem:[#allocation77_spill]] %s22030_s2 }
   0x2   :  { %10 = vsyncpa [#allocation3], 0 }
   0x3   :  { %12 = vsyncpa [#allocation3 + $0x1], 0 }
   0x4   :  { %13 = vsyncpa [#allocation6], 0 }
   0x5   :  { %15 = vsyncpa [#allocation6 + $0x1], 0 }
   0x6   :  { %16 = vsyncpa [#allocation4], 0  ;;  %s18198_s18 = smov 0   ;;  %s18200_s19 = smov 0  }
   0x7   :  { %s18202_s20 = smov 0   ;;  %s18204_s21 = smov 0  }
   0x8   :  { %s18206_s22 = smov 0   ;;  %s18208_s23 = smov 0  }
   0x9 LB: > { %s18227_s24 = sadd.s32 4294967295, %s18155_s23   ;;  %s31_s25 = sadd.s32 1, %s18151_s22  ;;  %s18155_s23 = sphi %s18208_s23, %s22_s23   ;;  %s18151_s22 = sphi %s18206_s22, %s22398_s22   ;;  %s18147_s21 = sphi %s18204_s21, %s22397_s21   ;;  %s18143_s20 = sphi %s18202_s20, %s22396_s20   ;;  %s18139_s19 = sphi %s18200_s19, %s22395_s19   ;;  %s18135_s18 = sphi %s18198_s18, %s22394_s18  }
   0xa   : > { %p32_p0 = scmp.ge.s32.totalorder %s31_s25, 2  ;;  %s67_s26 = sadd.s32 1, %s18143_s20 }
   0xb   : > { %p74_p1 = scmp.ne.s32.totalorder %s18143_s20, %s18139_s19  ;;  %p75_p2 = scmp.eq.s32.totalorder %s18155_s23, 0 }
   0xc   : > { %s22400_s25 = smov (%p32_p0, %s31_s25), 0  ;;  %p80_p4 = scmp.ne.s32.totalorder %s18139_s19, %s18135_s18 }
   0xd   : > { %22171 = sst [smem:[#allocation12_spill]] %s22400_s25  ;;  %p76_p3 = por %p75_p2, %p74_p1 }
   0xe   : > { %s64_s27 = ssub.s32 %s18151_s22, %s22400_s25  ;;  %p81_p5 = scmp.eq.s32.totalorder %s18227_s24, 0 }
   0xf   : > { %p65_p6 = scmp.eq.s32.totalorder %s64_s27, 0  ;;  %p15590_p8 = scmp.lt.s32.totalorder %s18155_s23, 2 }
  0x10   : > { %p18240_p7 = por %p81_p5, %p80_p4  ;;  %s18249_s30 = sand.u32 1, %s18143_s20  }
  0x11   : > { %s18246_s29 = scalar_select %p65_p6, %s18143_s20, %s67_s26  }
  0x12   : > { %s22172_s28 = scalar_select %p18240_p7, 1, 0 }
  0x13   : > { %22173 = sst [smem:[#allocation13_spill]] %s18246_s29  ;;  %p18251_p9 = pnand %p15590_p8, %p76_p3 }
  0x14   : > { %s15564_s7 = smul.u32 4608, %s18249_s30  ;;  %s237_s8 = sand.u32 1, %s18155_s23  }
  0x15   : > { %s15565_s11 = smul.u32 12, %s18249_s30  ;;  %s22175_s2 = sld [smem:[#allocation77_spill]] }
  0x16   : > { %s220_s9 = scalar_lea.vmem [#allocation2], %s15564_s7  ;;  %s14507_s12 = smul.u32 192, %s18151_s22 }
  0x17   : > { %s227_s10 = sshll.u32 %s220_s9, 4  ;;  %s241_s16 = scalar_lea.vmem [#allocation5], %s15565_s11  ;;  %s18258_s10 = int_to_ptr.vmem [resolvable:$true] %s227_s10 }
  0x18   : > { %s249_s17 = sshll.u32 %s241_s16, 4  ;;  %s18268_s18 = scalar_lea.vmem [#allocation7], %s15564_s7  ;;  %s18266_s17 = int_to_ptr.vmem [resolvable:$true] %s249_s17 }
  0x19   : > { %s268_s26 = sshll.u32 %s18268_s18, 4  ;;  %s18271_s27 = scalar_lea.sflag [#allocation6], %s237_s8  ;;  %s18303_s26 = int_to_ptr.vmem [resolvable:$true] %s268_s26 }
  0x1a   : > { %p18277_p11 = pneg %p18251_p9 }
  0x1b   : > { %s18264_s15 = scalar_lea.hbm %s22175_s2, %s14507_s12  ;;  %s17986_s7 = scalar_lea.hbm %s22175_s2, 384 }
  0x1c   : > { %s17981_s9 = scalar_lea.hbm %s18264_s15, 192  ;;  %p17987_p0 = scmp.lt.u32.totalorder %s18264_s15, %s22175_s2 }
  0x1d   : > { %p17982_p10 = scmp.ne.s32.totalorder %s18264_s15, %s17981_s9  ;;  %p17988_p1 = scmp.lt.u32.totalorder %s17986_s7, %s17981_s9 }
  0x1e   : > { %p17990_p3 = scmp.lt.u32.totalorder %s17981_s9, %s18264_s15 }
  0x1f   : > { %p17984_p12 = pnand %p18277_p11, %p17982_p10  ;;  %p17989_p2 = por %p17988_p1, %p17987_p0 }
  0x21   : > { %p17985_p13 = pneg %p17984_p12  ;;  %p17991_p4 = por %p17990_p3, %p17989_p2 }
  0x23   : > { %p17992_p5 = pnand %p17991_p4, %p17985_p13 }
  0x25   : > { %17995 = shalt.err (!%p17992_p5)
}
  0x26   : > { %s17996_s8 = scalar_lea.vmem %s18266_s17, 192  ;;  %s18157_s11 = smov [#allocation5]  }
  0x27   : > { %p17997_p6 = scmp.ne.s32.totalorder %s18266_s17, %s17996_s8  ;;  %s18001_s13 = sshll.u32 %s18157_s11, 4  ;;  %s18002_s13 = int_to_ptr.vmem [resolvable:$false] %s18001_s13 }
  0x28   : > { %s18003_s14 = scalar_lea.vmem %s18002_s13, 384  ;;  %p18004_p12 = scmp.lt.s32.totalorder %s18266_s17, %s18002_s13 }
  0x29   : > { %p17999_p8 = pnand %p17997_p6, %p18277_p11  ;;  %p18005_p7 = scmp.lt.s32.totalorder %s18003_s14, %s17996_s8 }
  0x2b   : > { %p18000_p10 = pneg %p17999_p8  ;;  %p18006_p0 = por %p18005_p7, %p18004_p12 }
  0x2d   : > { %p18007_p1 = pnand %p18006_p0, %p18000_p10 }
  0x2f   : > { %18010 = shalt.err (!%p18007_p1)
}
  0x30   : > { %15586 = dma.hbm_to_vmem [thread:$0]  (!%p18251_p9), %s18264_s15, 192, %s18266_s17, %s18271_s27  }
  0x31   : > { %p13300_p13 = scmp.ge.s32.totalorder %s18155_s23, 1  ;;  %p276_p7 = scmp.lt.s32.totalorder %s18155_s23, 3 }
  0x32   : > { %s14506_s9 = smul.u32 768, %s18151_s22  ;;  %s217_s17 = scalar_lea.sflag [#allocation3], %s18249_s30 }
  0x33   : > { %p18308_p2 = pnand %p13300_p13, %p276_p7  ;;  %s15591_s15 = smul.u32 73728, %s18151_s22 }
  0x34   : > { %s18315_s11 = scalar_lea.hbm %s22029_s1, %s14506_s9  ;;  %s18016_s2 = scalar_lea.hbm %s22029_s1, 147456 }
  0x35   : > { %s22177_s7 = scalar_select %p18308_p2, 1, 0 }
  0x36   : > { %s18011_s18 = scalar_lea.hbm %s18315_s11, 73728  ;;  %p18017_p6 = scmp.lt.u32.totalorder %s18315_s11, %s22029_s1 }
  0x37   : > { %p18012_p3 = scmp.ne.s32.totalorder %s18315_s11, %s18011_s18  ;;  %p18018_p8 = scmp.lt.u32.totalorder %s18016_s2, %s18011_s18 }
  0x38   : > { %p18020_p12 = scmp.lt.u32.totalorder %s18011_s18, %s18315_s11 }
  0x39   : > { %p18014_p4 = pnand %p18012_p3, %p18277_p11  ;;  %p18019_p10 = por %p18018_p8, %p18017_p6 }
  0x3b   : > { %p18015_p5 = pneg %p18014_p4  ;;  %p18021_p0 = por %p18020_p12, %p18019_p10 }
  0x3d   : > { %p18022_p1 = pnand %p18021_p0, %p18015_p5 }
  0x3f   : > { %18025 = shalt.err (!%p18022_p1)
}
  0x40   : > { %s18026_s9 = scalar_lea.vmem %s18258_s10, 73728  ;;  %s18158_s16 = smov [#allocation2]  }
  0x41   : > { %p18027_p13 = scmp.ne.s32.totalorder %s18258_s10, %s18026_s9  ;;  %s18031_s8 = sshll.u32 %s18158_s16, 4  ;;  %s18032_s8 = int_to_ptr.vmem [resolvable:$false] %s18031_s8 }
  0x42   : > { %s18033_s25 = scalar_lea.vmem %s18032_s8, 147456  ;;  %p18034_p4 = scmp.lt.s32.totalorder %s18258_s10, %s18032_s8 }
  0x43   : > { %p18029_p7 = pnand %p18027_p13, %p18277_p11  ;;  %p18035_p2 = scmp.lt.s32.totalorder %s18033_s25, %s18026_s9 }
  0x45   : > { %p18030_p3 = pneg %p18029_p7  ;;  %p18036_p6 = por %p18035_p2, %p18034_p4 }
  0x47   : > { %p18037_p8 = pnand %p18036_p6, %p18030_p3 }
  0x49   : > { %18040 = shalt.err (!%p18037_p8)
}
  0x4a   : > { %s18159_s2 = smov 1536   ;;  %s18160_s29 = smov 768  }
  0x4b   : > { %s18161_s18 = smov 48   ;;  %s18347_s9 = scalar_lea.hbm %s22031_s3, %s15591_s15 }
  0x4c   : > { %15583 = dma.hbm_to_vmem [thread:$0]  (!%p18251_p9), %s18315_s11, 73728, %s18258_s10, %s217_s17, %s18159_s2, %s18160_s29, %s18161_s18  }
  0x4d   : > { %s18041_s16 = scalar_lea.hbm %s18347_s9, 73728  ;;  %s18046_s30 = scalar_lea.hbm %s22031_s3, 147456 }
  0x4e   : > { %p18042_p2 = scmp.ne.s32.totalorder %s18347_s9, %s18041_s16  ;;  %p18047_p12 = scmp.lt.u32.totalorder %s18347_s9, %s22031_s3 }
  0x4f   : > { %p18048_p0 = scmp.lt.u32.totalorder %s18046_s30, %s18041_s16  ;;  %p18050_p13 = scmp.lt.u32.totalorder %s18041_s16, %s18347_s9 }
  0x50   : > { %p18044_p5 = pnand %p18042_p2, %p18277_p11 }
  0x51   : > { %p18049_p1 = por %p18048_p0, %p18047_p12 }
  0x52   : > { %p18045_p10 = pneg %p18044_p5 }
  0x53   : > { %p18051_p7 = por %p18050_p13, %p18049_p1 }
  0x55   : > { %p18052_p3 = pnand %p18051_p7, %p18045_p10 }
  0x57   : > { %18055 = shalt.err (!%p18052_p3)
}
  0x58   : > { %s18056_s15 = scalar_lea.vmem %s18303_s26, 73728  ;;  %s18162_s17 = smov [#allocation7]  }
  0x59   : > { %p18057_p4 = scmp.ne.s32.totalorder %s18303_s26, %s18056_s15  ;;  %s18061_s2 = sshll.u32 %s18162_s17, 4  ;;  %s18062_s2 = int_to_ptr.vmem [resolvable:$false] %s18061_s2 }
  0x5a   : > { %s18063_s29 = scalar_lea.vmem %s18062_s2, 147456  ;;  %p18064_p2 = scmp.lt.s32.totalorder %s18303_s26, %s18062_s2 }
  0x5b   : > { %p18059_p6 = pnand %p18057_p4, %p18277_p11  ;;  %p18065_p5 = scmp.lt.s32.totalorder %s18063_s29, %s18056_s15 }
  0x5d   : > { %p18060_p8 = pneg %p18059_p6  ;;  %p18066_p12 = por %p18065_p5, %p18064_p2 }
  0x5f   : > { %p18067_p0 = pnand %p18066_p12, %p18060_p8 }
  0x61   : > { %18070 = shalt.err (!%p18067_p0)
}
  0x62   : > { %s18163_s18 = smov 384   ;;  %s18164_s13 = smov 24  }
  0x63   : > { %15589 = dma.hbm_to_vmem [thread:$0]  (!%p18251_p9), %s18347_s9, 73728, %s18303_s26, %s18271_s27, %s18163_s18, %s18163_s18, %s18164_s13  }
  0x64   : > { %p22178_p11 = scmp.ne.s32.totalorder %s22177_s7, 0 }
  0x66   : > { %280 = sbr.rel (%p22178_p11) target bundleno = 1861 (0x745), region = 40 }
  0x6d   : > { %s282_s12 = sand.u32 1, %s18139_s19   ;;  %p22179_p10 = scmp.ne.s32.totalorder %s22172_s28, 0 }
  0x6e   : > { %s15568_s14 = smul.u32 4608, %s282_s12  ;;  %s283_s16 = scalar_lea.sflag [#allocation3], %s282_s12 }
  0x70   : > { %s18374_s8 = scalar_lea.vmem [#allocation2], %s15568_s14 }
  0x71   : > { %18122 = dma.done.wait (%p22179_p10), %s283_s16, 73728  }
  0x72   : > { %18124 = vsyncadd (%p22179_p10), %s283_s16, 4294893568  ;;  %s291_s25 = sand.u32 1, %s18227_s24   ;;  %s15569_s6 = smul.u32 12, %s282_s12 }
  0x73   : > { %s292_s26 = scalar_lea.sflag [#allocation6], %s291_s25 }
  0x74   : > { %s18381_s27 = scalar_lea.vmem [#allocation5], %s15569_s6 }
  0x75   : > { %18126 = dma.done.wait (%p22179_p10), %s292_s26, 73920  }
  0x76   : > { %18128 = vsyncadd (%p22179_p10), %s292_s26, 4294893376  ;;  %s18387_s7 = scalar_lea.vmem [#allocation7], %s15568_s14  ;;  %p13301_p9 = scmp.ne.s32.totalorder %s18147_s21, 0 }
  0x77   : > { %v359_v0 = vlaneseq (!%p13301_p9)  ;;  %v357_v2 = vld [vmem:[%s22032_s4] sm:$0x3f] (!%p13301_p9) }
  0x78   : > { %356 = sbr.rel (%p13301_p9) target bundleno = 175 (0xaf), region = 56 }
  0x79   : > { %v360_v1 = vshrl.u32 (!%p13301_p9), %v359_v0, 7 }
  0x7b   : > { %v361_v3 = vsub.s32 (!%p13301_p9), 0, %v360_v1  ;;  %v365_v4 = vsub.s32 (!%p13301_p9), 1, %v360_v1  ;;  %v369_v5 = vsub.s32 (!%p13301_p9), 2, %v360_v1  ;;  %v373_v6 = vsub.s32 (!%p13301_p9), 3, %v360_v1 }
  0x7c   : > { %v377_v7 = vsub.s32 (!%p13301_p9), 4, %v360_v1  ;;  %v381_v8 = vsub.s32 (!%p13301_p9), 5, %v360_v1 }
  0x7d   : > { %v362_v9 = vrot.slane (!%p13301_p9), %v357_v2, %v361_v3  ;;  %v366_v10 = vrot.slane (!%p13301_p9), %v357_v2, %v365_v4  ;;  %v370_v11 = vrot.slane (!%p13301_p9), %v357_v2, %v369_v5  ;;  %v18393_v12 = vrot.slane (!%p13301_p9), %v357_v2, %v373_v6 }
  0x7e   : > { %v18395_v13 = vrot.slane (!%p13301_p9), %v357_v2, %v377_v7  ;;  %v18397_v14 = vrot.slane (!%p13301_p9), %v357_v2, %v381_v8 }
  0x7f   : > { %389 = vst [vmem:[#allocation8] sm:$0xff] %v362_v9  ;;  %395 = vst [vmem:[#allocation8 + $0x30] sm:$0xff] %v362_v9 }
  0x80   : > { %401 = vst [vmem:[#allocation8 + $0x60] sm:$0xff] %v362_v9  ;;  %407 = vst [vmem:[#allocation8 + $0x90] sm:$0xff] %v362_v9 }
  0x81   : > { %413 = vst [vmem:[#allocation8 + $0xc0] sm:$0xff] %v362_v9  ;;  %419 = vst [vmem:[#allocation8 + $0xf0] sm:$0xff] %v362_v9 }
  0x82   : > { %425 = vst [vmem:[#allocation8 + $0x120] sm:$0xff] %v362_v9  ;;  %431 = vst [vmem:[#allocation8 + $0x150] sm:$0xff] %v362_v9 }
  0x83   : > { %437 = vst [vmem:[#allocation8 + $0x180] sm:$0xff] %v362_v9  ;;  %443 = vst [vmem:[#allocation8 + $0x1b0] sm:$0xff] %v362_v9 }
  0x84   : > { %449 = vst [vmem:[#allocation8 + $0x1e0] sm:$0xff] %v362_v9  ;;  %455 = vst [vmem:[#allocation8 + $0x210] sm:$0xff] %v362_v9 }
  0x85   : > { %461 = vst [vmem:[#allocation8 + $0x240] sm:$0xff] %v362_v9  ;;  %467 = vst [vmem:[#allocation8 + $0x270] sm:$0xff] %v362_v9 }
  0x86   : > { %473 = vst [vmem:[#allocation8 + $0x2a0] sm:$0xff] %v362_v9  ;;  %479 = vst [vmem:[#allocation8 + $0x2d0] sm:$0xff] %v362_v9 }
  0x87   : > { %390 = vst [vmem:[#allocation8 + $0x8] sm:$0xff] %v366_v10  ;;  %396 = vst [vmem:[#allocation8 + $0x38] sm:$0xff] %v366_v10 }
  0x88   : > { %402 = vst [vmem:[#allocation8 + $0x68] sm:$0xff] %v366_v10  ;;  %408 = vst [vmem:[#allocation8 + $0x98] sm:$0xff] %v366_v10 }
  0x89   : > { %414 = vst [vmem:[#allocation8 + $0xc8] sm:$0xff] %v366_v10  ;;  %420 = vst [vmem:[#allocation8 + $0xf8] sm:$0xff] %v366_v10 }
  0x8a   : > { %426 = vst [vmem:[#allocation8 + $0x128] sm:$0xff] %v366_v10  ;;  %432 = vst [vmem:[#allocation8 + $0x158] sm:$0xff] %v366_v10 }
  0x8b   : > { %438 = vst [vmem:[#allocation8 + $0x188] sm:$0xff] %v366_v10  ;;  %444 = vst [vmem:[#allocation8 + $0x1b8] sm:$0xff] %v366_v10 }
  0x8c   : > { %450 = vst [vmem:[#allocation8 + $0x1e8] sm:$0xff] %v366_v10  ;;  %456 = vst [vmem:[#allocation8 + $0x218] sm:$0xff] %v366_v10 }
  0x8d   : > { %462 = vst [vmem:[#allocation8 + $0x248] sm:$0xff] %v366_v10  ;;  %468 = vst [vmem:[#allocation8 + $0x278] sm:$0xff] %v366_v10 }
  0x8e   : > { %474 = vst [vmem:[#allocation8 + $0x2a8] sm:$0xff] %v366_v10  ;;  %480 = vst [vmem:[#allocation8 + $0x2d8] sm:$0xff] %v366_v10 }
  0x8f   : > { %391 = vst [vmem:[#allocation8 + $0x10] sm:$0xff] %v370_v11  ;;  %397 = vst [vmem:[#allocation8 + $0x40] sm:$0xff] %v370_v11 }
  0x90   : > { %403 = vst [vmem:[#allocation8 + $0x70] sm:$0xff] %v370_v11  ;;  %409 = vst [vmem:[#allocation8 + $0xa0] sm:$0xff] %v370_v11 }
  0x91   : > { %415 = vst [vmem:[#allocation8 + $0xd0] sm:$0xff] %v370_v11  ;;  %421 = vst [vmem:[#allocation8 + $0x100] sm:$0xff] %v370_v11 }
  0x92   : > { %427 = vst [vmem:[#allocation8 + $0x130] sm:$0xff] %v370_v11  ;;  %433 = vst [vmem:[#allocation8 + $0x160] sm:$0xff] %v370_v11 }
  0x93   : > { %439 = vst [vmem:[#allocation8 + $0x190] sm:$0xff] %v370_v11  ;;  %445 = vst [vmem:[#allocation8 + $0x1c0] sm:$0xff] %v370_v11 }
  0x94   : > { %451 = vst [vmem:[#allocation8 + $0x1f0] sm:$0xff] %v370_v11  ;;  %457 = vst [vmem:[#allocation8 + $0x220] sm:$0xff] %v370_v11 }
  0x95   : > { %463 = vst [vmem:[#allocation8 + $0x250] sm:$0xff] %v370_v11  ;;  %469 = vst [vmem:[#allocation8 + $0x280] sm:$0xff] %v370_v11 }
  0x96   : > { %475 = vst [vmem:[#allocation8 + $0x2b0] sm:$0xff] %v370_v11  ;;  %481 = vst [vmem:[#allocation8 + $0x2e0] sm:$0xff] %v370_v11 }
  0x97   : > { %392 = vst [vmem:[#allocation8 + $0x18] sm:$0xff] %v18393_v12  ;;  %398 = vst [vmem:[#allocation8 + $0x48] sm:$0xff] %v18393_v12 }
  0x98   : > { %404 = vst [vmem:[#allocation8 + $0x78] sm:$0xff] %v18393_v12  ;;  %410 = vst [vmem:[#allocation8 + $0xa8] sm:$0xff] %v18393_v12 }
  0x99   : > { %416 = vst [vmem:[#allocation8 + $0xd8] sm:$0xff] %v18393_v12  ;;  %422 = vst [vmem:[#allocation8 + $0x108] sm:$0xff] %v18393_v12 }
  0x9a   : > { %428 = vst [vmem:[#allocation8 + $0x138] sm:$0xff] %v18393_v12  ;;  %434 = vst [vmem:[#allocation8 + $0x168] sm:$0xff] %v18393_v12 }
  0x9b   : > { %440 = vst [vmem:[#allocation8 + $0x198] sm:$0xff] %v18393_v12  ;;  %446 = vst [vmem:[#allocation8 + $0x1c8] sm:$0xff] %v18393_v12 }
  0x9c   : > { %452 = vst [vmem:[#allocation8 + $0x1f8] sm:$0xff] %v18393_v12  ;;  %458 = vst [vmem:[#allocation8 + $0x228] sm:$0xff] %v18393_v12 }
  0x9d   : > { %464 = vst [vmem:[#allocation8 + $0x258] sm:$0xff] %v18393_v12  ;;  %470 = vst [vmem:[#allocation8 + $0x288] sm:$0xff] %v18393_v12 }
  0x9e   : > { %476 = vst [vmem:[#allocation8 + $0x2b8] sm:$0xff] %v18393_v12  ;;  %482 = vst [vmem:[#allocation8 + $0x2e8] sm:$0xff] %v18393_v12 }
  0x9f   : > { %393 = vst [vmem:[#allocation8 + $0x20] sm:$0xff] %v18395_v13  ;;  %399 = vst [vmem:[#allocation8 + $0x50] sm:$0xff] %v18395_v13 }
  0xa0   : > { %405 = vst [vmem:[#allocation8 + $0x80] sm:$0xff] %v18395_v13  ;;  %411 = vst [vmem:[#allocation8 + $0xb0] sm:$0xff] %v18395_v13 }
  0xa1   : > { %417 = vst [vmem:[#allocation8 + $0xe0] sm:$0xff] %v18395_v13  ;;  %423 = vst [vmem:[#allocation8 + $0x110] sm:$0xff] %v18395_v13 }
  0xa2   : > { %429 = vst [vmem:[#allocation8 + $0x140] sm:$0xff] %v18395_v13  ;;  %435 = vst [vmem:[#allocation8 + $0x170] sm:$0xff] %v18395_v13 }
  0xa3   : > { %441 = vst [vmem:[#allocation8 + $0x1a0] sm:$0xff] %v18395_v13  ;;  %447 = vst [vmem:[#allocation8 + $0x1d0] sm:$0xff] %v18395_v13 }
  0xa4   : > { %453 = vst [vmem:[#allocation8 + $0x200] sm:$0xff] %v18395_v13  ;;  %459 = vst [vmem:[#allocation8 + $0x230] sm:$0xff] %v18395_v13 }
  0xa5   : > { %465 = vst [vmem:[#allocation8 + $0x260] sm:$0xff] %v18395_v13  ;;  %471 = vst [vmem:[#allocation8 + $0x290] sm:$0xff] %v18395_v13 }
  0xa6   : > { %477 = vst [vmem:[#allocation8 + $0x2c0] sm:$0xff] %v18395_v13  ;;  %483 = vst [vmem:[#allocation8 + $0x2f0] sm:$0xff] %v18395_v13 }
  0xa7   : > { %394 = vst [vmem:[#allocation8 + $0x28] sm:$0xff] %v18397_v14  ;;  %400 = vst [vmem:[#allocation8 + $0x58] sm:$0xff] %v18397_v14 }
  0xa8   : > { %406 = vst [vmem:[#allocation8 + $0x88] sm:$0xff] %v18397_v14  ;;  %412 = vst [vmem:[#allocation8 + $0xb8] sm:$0xff] %v18397_v14 }
  0xa9   : > { %418 = vst [vmem:[#allocation8 + $0xe8] sm:$0xff] %v18397_v14  ;;  %424 = vst [vmem:[#allocation8 + $0x118] sm:$0xff] %v18397_v14 }
  0xaa   : > { %430 = vst [vmem:[#allocation8 + $0x148] sm:$0xff] %v18397_v14  ;;  %436 = vst [vmem:[#allocation8 + $0x178] sm:$0xff] %v18397_v14 }
  0xab   : > { %442 = vst [vmem:[#allocation8 + $0x1a8] sm:$0xff] %v18397_v14  ;;  %448 = vst [vmem:[#allocation8 + $0x1d8] sm:$0xff] %v18397_v14 }
  0xac   : > { %454 = vst [vmem:[#allocation8 + $0x208] sm:$0xff] %v18397_v14  ;;  %460 = vst [vmem:[#allocation8 + $0x238] sm:$0xff] %v18397_v14 }
  0xad   : > { %466 = vst [vmem:[#allocation8 + $0x268] sm:$0xff] %v18397_v14  ;;  %472 = vst [vmem:[#allocation8 + $0x298] sm:$0xff] %v18397_v14 }
  0xae   : > { %478 = vst [vmem:[#allocation8 + $0x2c8] sm:$0xff] %v18397_v14  ;;  %484 = vst [vmem:[#allocation8 + $0x2f8] sm:$0xff] %v18397_v14 }
  0xaf PF: > { %v15650_v15 = vld [vmem:[%s18374_s8 + $0x4] ss:$48 sps:$4 sm:$0xff]   ;;  %v15654_v17 = vld [vmem:[%s18374_s8] ss:$48 sps:$4 sm:$0xff]   ;;  %p15592_p1 = scmp.eq.s32.totalorder %s18227_s24, 1 }
  0xb0   : > { %v15652_v16 = vld [vmem:[%s18374_s8 + $0x14] ss:$48 sps:$4 sm:$0xff]   ;;  %4293 = vmatprep.subr.bf16.mxu1 %v15650_v15  ;;  %v15655_v18 = vld [vmem:[%s18374_s8 + $0x10] ss:$48 sps:$4 sm:$0xff]  }
  0xb1   : > { %4971 = vmatprep.subr.bf16.mxu0 %v15652_v16  ;;  %v15656_v19 = vld [vmem:[%s18374_s8 + $0x64] ss:$48 sps:$4 sm:$0xff]   ;;  %4294 = vmatpush1.bf16.msra.mxu1 %v15654_v17  ;;  %v15660_v21 = vld [vmem:[%s18374_s8 + $0x60] ss:$48 sps:$4 sm:$0xff]  }
  0xb2   : > { %4972 = vmatpush1.bf16.msra.mxu0 %v15655_v18  ;;  %v15658_v20 = vld [vmem:[%s18374_s8 + $0x74] ss:$48 sps:$4 sm:$0xff]   ;;  %4295 = vmatprep.subr.bf16.mxu1 %v15656_v19  ;;  %v15661_v22 = vld [vmem:[%s18374_s8 + $0x70] ss:$48 sps:$4 sm:$0xff]  }
  0xb3   : > { %4973 = vmatprep.subr.bf16.mxu0 %v15658_v20  ;;  %v15662_v23 = vld [vmem:[%s18374_s8 + $0xc4] ss:$48 sps:$4 sm:$0xff]   ;;  %v15666_v25 = vld [vmem:[%s18374_s8 + $0xc0] ss:$48 sps:$4 sm:$0xff]  }
  0xb4   : > { %v15664_v24 = vld [vmem:[%s18374_s8 + $0xd4] ss:$48 sps:$4 sm:$0xff]   ;;  %v15667_v26 = vld [vmem:[%s18374_s8 + $0xd0] ss:$48 sps:$4 sm:$0xff]  }
  0xb5   : > { %4296 = vmatpush1.bf16.msra.mxu1 %v15660_v21  ;;  %v15668_v27 = vld [vmem:[%s18374_s8 + $0x124] ss:$48 sps:$4 sm:$0xff]   ;;  %v15672_v29 = vld [vmem:[%s18374_s8 + $0x120] ss:$48 sps:$4 sm:$0xff]  }
  0xb6   : > { %4974 = vmatpush1.bf16.msra.mxu0 %v15661_v22  ;;  %4297 = vmatprep.subr.bf16.mxu1 %v15662_v23  ;;  %v15670_v28 = vld [vmem:[%s18374_s8 + $0x134] ss:$48 sps:$4 sm:$0xff]   ;;  %v15673_v30 = vld [vmem:[%s18374_s8 + $0x130] ss:$48 sps:$4 sm:$0xff]  }
  0xb7   : > { %4975 = vmatprep.subr.bf16.mxu0 %v15664_v24  ;;  %v15674_v31 = vld [vmem:[%s18374_s8 + $0x184] ss:$48 sps:$4 sm:$0xff]   ;;  %v15678_v33 = vld [vmem:[%s18374_s8 + $0x180] ss:$48 sps:$4 sm:$0xff]  }
  0xb8   : > { %v15676_v32 = vld [vmem:[%s18374_s8 + $0x194] ss:$48 sps:$4 sm:$0xff]   ;;  %v15679_v34 = vld [vmem:[%s18374_s8 + $0x190] ss:$48 sps:$4 sm:$0xff]  }
  0xb9   : > { %4298 = vmatpush1.bf16.msra.mxu1 %v15666_v25  ;;  %v15680_v35 = vld [vmem:[%s18374_s8 + $0x1e4] ss:$48 sps:$4 sm:$0xff]   ;;  %v15684_v37 = vld [vmem:[%s18374_s8 + $0x1e0] ss:$48 sps:$4 sm:$0xff]  }
  0xba   : > { %4976 = vmatpush1.bf16.msra.mxu0 %v15667_v26  ;;  %4299 = vmatprep.subr.bf16.mxu1 %v15668_v27  ;;  %v15682_v36 = vld [vmem:[%s18374_s8 + $0x1f4] ss:$48 sps:$4 sm:$0xff]   ;;  %v15685_v38 = vld [vmem:[%s18374_s8 + $0x1f0] ss:$48 sps:$4 sm:$0xff]  }
  0xbb   : > { %4977 = vmatprep.subr.bf16.mxu0 %v15670_v28  ;;  %v15686_v39 = vld [vmem:[%s18374_s8 + $0x244] ss:$48 sps:$4 sm:$0xff]   ;;  %v15690_v41 = vld [vmem:[%s18374_s8 + $0x240] ss:$48 sps:$4 sm:$0xff]  }
  0xbc   : > { %v15688_v40 = vld [vmem:[%s18374_s8 + $0x254] ss:$48 sps:$4 sm:$0xff]   ;;  %v15691_v42 = vld [vmem:[%s18374_s8 + $0x250] ss:$48 sps:$4 sm:$0xff]  }
  0xbd   : > { %4300 = vmatpush1.bf16.msra.mxu1 %v15672_v29  ;;  %v15692_v43 = vld [vmem:[%s18374_s8 + $0x2a4] ss:$48 sps:$4 sm:$0xff]   ;;  %v15696_v45 = vld [vmem:[%s18374_s8 + $0x2a0] ss:$48 sps:$4 sm:$0xff]  }
  0xbe   : > { %4978 = vmatpush1.bf16.msra.mxu0 %v15673_v30  ;;  %4301 = vmatprep.subr.bf16.mxu1 %v15674_v31  ;;  %v15694_v44 = vld [vmem:[%s18374_s8 + $0x2b4] ss:$48 sps:$4 sm:$0xff]   ;;  %v15697_v46 = vld [vmem:[%s18374_s8 + $0x2b0] ss:$48 sps:$4 sm:$0xff]  }
  0xbf   : > { %4979 = vmatprep.subr.bf16.mxu0 %v15676_v32  ;;  %v15698_v47 = vld [vmem:[%s18374_s8 + $0x304] ss:$48 sps:$4 sm:$0xff]   ;;  %v15702_v49 = vld [vmem:[%s18374_s8 + $0x300] ss:$48 sps:$4 sm:$0xff]  }
  0xc0   : > { %v15700_v48 = vld [vmem:[%s18374_s8 + $0x314] ss:$48 sps:$4 sm:$0xff]   ;;  %v15703_v50 = vld [vmem:[%s18374_s8 + $0x310] ss:$48 sps:$4 sm:$0xff]  }
  0xc1   : > { %4302 = vmatpush1.bf16.msra.mxu1 %v15678_v33  ;;  %v15704_v51 = vld [vmem:[%s18374_s8 + $0x364] ss:$48 sps:$4 sm:$0xff]   ;;  %v15708_v53 = vld [vmem:[%s18374_s8 + $0x360] ss:$48 sps:$4 sm:$0xff]  }
  0xc2   : > { %4980 = vmatpush1.bf16.msra.mxu0 %v15679_v34  ;;  %4303 = vmatprep.subr.bf16.mxu1 %v15680_v35  ;;  %v15706_v52 = vld [vmem:[%s18374_s8 + $0x374] ss:$48 sps:$4 sm:$0xff]   ;;  %v15709_v54 = vld [vmem:[%s18374_s8 + $0x370] ss:$48 sps:$4 sm:$0xff]  }
  0xc3   : > { %4981 = vmatprep.subr.bf16.mxu0 %v15682_v36  ;;  %v15710_v55 = vld [vmem:[%s18374_s8 + $0x3c4] ss:$48 sps:$4 sm:$0xff]   ;;  %v15714_v57 = vld [vmem:[%s18374_s8 + $0x3c0] ss:$48 sps:$4 sm:$0xff]  }
  0xc4   : > { %v15712_v56 = vld [vmem:[%s18374_s8 + $0x3d4] ss:$48 sps:$4 sm:$0xff]   ;;  %v15715_v58 = vld [vmem:[%s18374_s8 + $0x3d0] ss:$48 sps:$4 sm:$0xff]  }
  0xc5   : > { %4304 = vmatpush1.bf16.msra.mxu1 %v15684_v37  ;;  %v15716_v59 = vld [vmem:[%s18374_s8 + $0x424] ss:$48 sps:$4 sm:$0xff]   ;;  %v15720_v61 = vld [vmem:[%s18374_s8 + $0x420] ss:$48 sps:$4 sm:$0xff]  }
  0xc6   : > { %4982 = vmatpush1.bf16.msra.mxu0 %v15685_v38  ;;  %4305 = vmatprep.subr.bf16.mxu1 %v15686_v39  ;;  %v15718_v60 = vld [vmem:[%s18374_s8 + $0x434] ss:$48 sps:$4 sm:$0xff]   ;;  %v15721_v62 = vld [vmem:[%s18374_s8 + $0x430] ss:$48 sps:$4 sm:$0xff]  }
  0xc7   : > { %4983 = vmatprep.subr.bf16.mxu0 %v15688_v40  ;;  %v15746_v63 = vld [vmem:[%s22028_s0 + $0x4] ss:$24 sps:$4 sm:$0xff]   ;;  %v15726_v2 = vld [vmem:[%s18374_s8 + $0x480] ss:$48 sps:$4 sm:$0xff]   ;;  %v15761_v23 = vld [vmem:[%s22028_s0 + $0x34] ss:$24 sps:$4 sm:$0xff]  }
  0xc8   : > { %v15722_v0 = vld [vmem:[%s18374_s8 + $0x484] ss:$48 sps:$4 sm:$0xff]   ;;  %4325 = vmatprep.mubr.bf16.mxu1 %v15746_v63  ;;  %5003 = vmatprep.mubr.bf16.mxu0 %v15746_v63  ;;  %v15727_v3 = vld [vmem:[%s18374_s8 + $0x490] ss:$48 sps:$4 sm:$0xff]  }
  0xc9   : > { %4306 = vmatpush1.bf16.msra.mxu1 %v15690_v41  ;;  %v15724_v1 = vld [vmem:[%s18374_s8 + $0x494] ss:$48 sps:$4 sm:$0xff]   ;;  %v15732_v6 = vld [vmem:[%s18374_s8 + $0x4e0] ss:$48 sps:$4 sm:$0xff]  }
  0xca   : > { %4984 = vmatpush1.bf16.msra.mxu0 %v15691_v42  ;;  %4307 = vmatprep.subr.bf16.mxu1 %v15692_v43  ;;  %v15728_v4 = vld [vmem:[%s18374_s8 + $0x4e4] ss:$48 sps:$4 sm:$0xff]   ;;  %v15733_v7 = vld [vmem:[%s18374_s8 + $0x4f0] ss:$48 sps:$4 sm:$0xff]  }
  0xcb   : > { %4985 = vmatprep.subr.bf16.mxu0 %v15694_v44  ;;  %v15730_v5 = vld [vmem:[%s18374_s8 + $0x4f4] ss:$48 sps:$4 sm:$0xff]   ;;  %v15738_v10 = vld [vmem:[%s18374_s8 + $0x540] ss:$48 sps:$4 sm:$0xff]  }
  0xcc   : > { %v15734_v8 = vld [vmem:[%s18374_s8 + $0x544] ss:$48 sps:$4 sm:$0xff]   ;;  %v15739_v11 = vld [vmem:[%s18374_s8 + $0x550] ss:$48 sps:$4 sm:$0xff]  }
  0xcd   : > { %4308 = vmatpush1.bf16.msra.mxu1 %v15696_v45  ;;  %v15736_v9 = vld [vmem:[%s18374_s8 + $0x554] ss:$48 sps:$4 sm:$0xff]   ;;  %v15744_v14 = vld [vmem:[%s18374_s8 + $0x5a0] ss:$48 sps:$4 sm:$0xff]  }
  0xce   : > { %4986 = vmatpush1.bf16.msra.mxu0 %v15697_v46  ;;  %4309 = vmatprep.subr.bf16.mxu1 %v15698_v47  ;;  %v15740_v12 = vld [vmem:[%s18374_s8 + $0x5a4] ss:$48 sps:$4 sm:$0xff]   ;;  %v15745_v15 = vld [vmem:[%s18374_s8 + $0x5b0] ss:$48 sps:$4 sm:$0xff]  }
  0xcf   : > { %4987 = vmatprep.subr.bf16.mxu0 %v15700_v48  ;;  %v15742_v13 = vld [vmem:[%s18374_s8 + $0x5b4] ss:$48 sps:$4 sm:$0xff]   ;;  %v15748_v18 = vld [vmem:[%s22028_s0] ss:$24 sps:$4 sm:$0xff]   ;;  %v15763_v28 = vld [vmem:[%s22028_s0 + $0x30] ss:$24 sps:$4 sm:$0xff]  }
  0xd0   : > { %v15751_v16 = vld [vmem:[%s18374_s8 + $0x604] ss:$48 sps:$4 sm:$0xff]   ;;  %v15749_v19 = vld [vmem:[%s18374_s8 + $0x600] ss:$48 sps:$4 sm:$0xff]  }
  0xd1   : > { %4310 = vmatpush1.bf16.msra.mxu1 %v15702_v49  ;;  %v15754_v17 = vld [vmem:[%s18374_s8 + $0x614] ss:$48 sps:$4 sm:$0xff]   ;;  %v15752_v20 = vld [vmem:[%s18374_s8 + $0x610] ss:$48 sps:$4 sm:$0xff]  }
  0xd2   : > { %4988 = vmatpush1.bf16.msra.mxu0 %v15703_v50  ;;  %4311 = vmatprep.subr.bf16.mxu1 %v15704_v51  ;;  %v15757_v21 = vld [vmem:[%s18374_s8 + $0x664] ss:$48 sps:$4 sm:$0xff]   ;;  %v15755_v24 = vld [vmem:[%s18374_s8 + $0x660] ss:$48 sps:$4 sm:$0xff]  }
  0xd3   : > { %4989 = vmatprep.subr.bf16.mxu0 %v15706_v52  ;;  %v15760_v22 = vld [vmem:[%s18374_s8 + $0x674] ss:$48 sps:$4 sm:$0xff]   ;;  %v15758_v25 = vld [vmem:[%s18374_s8 + $0x670] ss:$48 sps:$4 sm:$0xff]  }
  0xd4   : > { %v15766_v26 = vld [vmem:[%s18374_s8 + $0x6c4] ss:$48 sps:$4 sm:$0xff]   ;;  %v15764_v29 = vld [vmem:[%s18374_s8 + $0x6c0] ss:$48 sps:$4 sm:$0xff]  }
  0xd5   : > { %4312 = vmatpush1.bf16.msra.mxu1 %v15708_v53  ;;  %v15769_v27 = vld [vmem:[%s18374_s8 + $0x6d4] ss:$48 sps:$4 sm:$0xff]   ;;  %v15767_v30 = vld [vmem:[%s18374_s8 + $0x6d0] ss:$48 sps:$4 sm:$0xff]  }
  0xd6   : > { %4990 = vmatpush1.bf16.msra.mxu0 %v15709_v54  ;;  %4313 = vmatprep.subr.bf16.mxu1 %v15710_v55  ;;  %v15772_v31 = vld [vmem:[%s18374_s8 + $0x724] ss:$48 sps:$4 sm:$0xff]   ;;  %v15770_v34 = vld [vmem:[%s18374_s8 + $0x720] ss:$48 sps:$4 sm:$0xff]  }
  0xd7   : > { %4991 = vmatprep.subr.bf16.mxu0 %v15712_v56  ;;  %v15775_v32 = vld [vmem:[%s18374_s8 + $0x734] ss:$48 sps:$4 sm:$0xff]   ;;  %v15773_v35 = vld [vmem:[%s18374_s8 + $0x730] ss:$48 sps:$4 sm:$0xff]  }
  0xd8   : > { %v15776_v33 = vld [vmem:[%s22028_s0 + $0x64] ss:$24 sps:$4 sm:$0xff]   ;;  %v15778_v38 = vld [vmem:[%s22028_s0 + $0x60] ss:$24 sps:$4 sm:$0xff]   ;;  %v15791_v43 = vld [vmem:[%s22028_s0 + $0x94] ss:$24 sps:$4 sm:$0xff]  }
  0xd9   : > { %4314 = vmatpush1.bf16.msra.mxu1 %v15714_v57  ;;  %v15781_v36 = vld [vmem:[%s18374_s8 + $0x784] ss:$48 sps:$4 sm:$0xff]   ;;  %v15779_v39 = vld [vmem:[%s18374_s8 + $0x780] ss:$48 sps:$4 sm:$0xff]  }
  0xda   : > { %4992 = vmatpush1.bf16.msra.mxu0 %v15715_v58  ;;  %4315 = vmatprep.subr.bf16.mxu1 %v15716_v59  ;;  %v15784_v37 = vld [vmem:[%s18374_s8 + $0x794] ss:$48 sps:$4 sm:$0xff]   ;;  %v15782_v40 = vld [vmem:[%s18374_s8 + $0x790] ss:$48 sps:$4 sm:$0xff]  }
  0xdb   : > { %4993 = vmatprep.subr.bf16.mxu0 %v15718_v60  ;;  %v15787_v41 = vld [vmem:[%s18374_s8 + $0x7e4] ss:$48 sps:$4 sm:$0xff]   ;;  %v15785_v44 = vld [vmem:[%s18374_s8 + $0x7e0] ss:$48 sps:$4 sm:$0xff]  }
  0xdc   : > { %v15790_v42 = vld [vmem:[%s18374_s8 + $0x7f4] ss:$48 sps:$4 sm:$0xff]   ;;  %v15788_v45 = vld [vmem:[%s18374_s8 + $0x7f0] ss:$48 sps:$4 sm:$0xff]  }
  0xdd   : > { %4316 = vmatpush1.bf16.msra.mxu1 %v15720_v61  ;;  %v15796_v46 = vld [vmem:[%s18374_s8 + $0x844] ss:$48 sps:$4 sm:$0xff]   ;;  %v15793_v48 = vld [vmem:[%s22028_s0 + $0x90] ss:$24 sps:$4 sm:$0xff]   ;;  %v15808_v58 = vld [vmem:[%s22028_s0 + $0xc0] ss:$24 sps:$4 sm:$0xff]  }
  0xde   : > { %4994 = vmatpush1.bf16.msra.mxu0 %v15721_v62  ;;  %4317 = vmatprep.subr.bf16.mxu1 %v15722_v0  ;;  %v15799_v47 = vld [vmem:[%s18374_s8 + $0x854] ss:$48 sps:$4 sm:$0xff]   ;;  %v15794_v49 = vld [vmem:[%s18374_s8 + $0x840] ss:$48 sps:$4 sm:$0xff]  }
  0xdf   : > { %4995 = vmatprep.subr.bf16.mxu0 %v15724_v1  ;;  %v15797_v50 = vld [vmem:[%s18374_s8 + $0x850] ss:$48 sps:$4 sm:$0xff]   ;;  %v15802_v51 = vld [vmem:[%s18374_s8 + $0x8a4] ss:$48 sps:$4 sm:$0xff]  }
  0xe0   : > { %v15805_v52 = vld [vmem:[%s18374_s8 + $0x8b4] ss:$48 sps:$4 sm:$0xff]   ;;  %v15800_v54 = vld [vmem:[%s18374_s8 + $0x8a0] ss:$48 sps:$4 sm:$0xff]  }
  0xe1   : > { %4318 = vmatpush1.bf16.msra.mxu1 %v15726_v2  ;;  %v15806_v53 = vld [vmem:[%s22028_s0 + $0xc4] ss:$24 sps:$4 sm:$0xff]   ;;  %v15803_v55 = vld [vmem:[%s18374_s8 + $0x8b0] ss:$48 sps:$4 sm:$0xff]   ;;  %v15821_v63 = vld [vmem:[%s22028_s0 + $0xf4] ss:$24 sps:$4 sm:$0xff]  }
  0xe2   : > { %4996 = vmatpush1.bf16.msra.mxu0 %v15727_v3  ;;  %4319 = vmatprep.subr.bf16.mxu1 %v15728_v4  ;;  %v15811_v56 = vld [vmem:[%s18374_s8 + $0x904] ss:$48 sps:$4 sm:$0xff]   ;;  %v15809_v59 = vld [vmem:[%s18374_s8 + $0x900] ss:$48 sps:$4 sm:$0xff]  }
  0xe3   : > { %4997 = vmatprep.subr.bf16.mxu0 %v15730_v5  ;;  %v15814_v57 = vld [vmem:[%s18374_s8 + $0x914] ss:$48 sps:$4 sm:$0xff]   ;;  %v15812_v60 = vld [vmem:[%s18374_s8 + $0x910] ss:$48 sps:$4 sm:$0xff]  }
  0xe4   : > { %v15817_v61 = vld [vmem:[%s18374_s8 + $0x964] ss:$48 sps:$4 sm:$0xff]   ;;  %v15815_v0 = vld [vmem:[%s18374_s8 + $0x960] ss:$48 sps:$4 sm:$0xff]  }
  0xe5   : > { %4320 = vmatpush1.bf16.msra.mxu1 %v15732_v6  ;;  %v15820_v62 = vld [vmem:[%s18374_s8 + $0x974] ss:$48 sps:$4 sm:$0xff]   ;;  %v15818_v1 = vld [vmem:[%s18374_s8 + $0x970] ss:$48 sps:$4 sm:$0xff]  }
  0xe6   : > { %4998 = vmatpush1.bf16.msra.mxu0 %v15733_v7  ;;  %4321 = vmatprep.subr.bf16.mxu1 %v15734_v8  ;;  %v15826_v2 = vld [vmem:[%s18374_s8 + $0x9c4] ss:$48 sps:$4 sm:$0xff]   ;;  %v15823_v4 = vld [vmem:[%s22028_s0 + $0xf0] ss:$24 sps:$4 sm:$0xff]  }
  0xe7   : > { %4999 = vmatprep.subr.bf16.mxu0 %v15736_v9  ;;  %v15829_v3 = vld [vmem:[%s18374_s8 + $0x9d4] ss:$48 sps:$4 sm:$0xff]   ;;  %v15824_v5 = vld [vmem:[%s18374_s8 + $0x9c0] ss:$48 sps:$4 sm:$0xff]  }
  0xe8   : > { %v15827_v6 = vld [vmem:[%s18374_s8 + $0x9d0] ss:$48 sps:$4 sm:$0xff]   ;;  %v15832_v7 = vld [vmem:[%s18374_s8 + $0xa24] ss:$48 sps:$4 sm:$0xff]  }
  0xe9   : > { %4322 = vmatpush1.bf16.msra.mxu1 %v15738_v10  ;;  %v15835_v8 = vld [vmem:[%s18374_s8 + $0xa34] ss:$48 sps:$4 sm:$0xff]   ;;  %v15830_v10 = vld [vmem:[%s18374_s8 + $0xa20] ss:$48 sps:$4 sm:$0xff]  }
  0xea   : > { %5000 = vmatpush1.bf16.msra.mxu0 %v15739_v11  ;;  %4323 = vmatprep.subr.bf16.mxu1 %v15740_v12  ;;  %v15836_v9 = vld [vmem:[%s22028_s0 + $0x124] ss:$24 sps:$4 sm:$0xff]   ;;  %v15833_v11 = vld [vmem:[%s18374_s8 + $0xa30] ss:$48 sps:$4 sm:$0xff]  }
  0xeb   : > { %5001 = vmatprep.subr.bf16.mxu0 %v15742_v13  ;;  %v15841_v12 = vld [vmem:[%s18374_s8 + $0xa84] ss:$48 sps:$4 sm:$0xff]  }
  0xec   : > { %v15844_v13 = vld [vmem:[%s18374_s8 + $0xa94] ss:$48 sps:$4 sm:$0xff]  }
  0xed   : > { %4324 = vmatpush1.bf16.msra.mxu1 %v15744_v14  ;;  %v15838_v14 = vld [vmem:[%s22028_s0 + $0x120] ss:$24 sps:$4 sm:$0xff]  }
  0xee   : > { %5002 = vmatpush1.bf16.msra.mxu0 %v15745_v15  ;;  %4406 = vmatprep.subr.bf16.mxu1 %v15751_v16  ;;  %v15839_v15 = vld [vmem:[%s18374_s8 + $0xa80] ss:$48 sps:$4 sm:$0xff]  }
  0xef   : > { %5084 = vmatprep.subr.bf16.mxu0 %v15754_v17  ;;  %v15842_v16 = vld [vmem:[%s18374_s8 + $0xa90] ss:$48 sps:$4 sm:$0xff]   ;;  %v15847_v17 = vld [vmem:[%s18374_s8 + $0xae4] ss:$48 sps:$4 sm:$0xff]  }
  0xf0   : > { %4326 = vmatmul.mubr.bf16.vlgmr.msra.gmra.mrb[0].mxu1 %v15748_v18 }
  0xf1   : > { %5004 = vmatmul.mubr.bf16.vlgmr.msra.gmra.mrb[0].mxu0 %v15748_v18  ;;  %4407 = vmatpush1.bf16.msra.mxu1 %v15749_v19  ;;  %v15850_v18 = vld [vmem:[%s18374_s8 + $0xaf4] ss:$48 sps:$4 sm:$0xff]  }
  0xf2   : > { %5085 = vmatpush1.bf16.msra.mxu0 %v15752_v20  ;;  %4408 = vmatprep.subr.bf16.mxu1 %v15757_v21  ;;  %v15851_v19 = vld [vmem:[%s22028_s0 + $0x154] ss:$24 sps:$4 sm:$0xff]   ;;  %v15845_v20 = vld [vmem:[%s18374_s8 + $0xae0] ss:$48 sps:$4 sm:$0xff]  }
  0xf3   : > { %5086 = vmatprep.subr.bf16.mxu0 %v15760_v22  ;;  %4335 = vmatprep.mubr.bf16.mxu1 %v15761_v23  ;;  %v15848_v21 = vld [vmem:[%s18374_s8 + $0xaf0] ss:$48 sps:$4 sm:$0xff]   ;;  %v15856_v22 = vld [vmem:[%s18374_s8 + $0xb44] ss:$48 sps:$4 sm:$0xff]  }
  0xf4   : > { %5013 = vmatprep.mubr.bf16.mxu0 %v15761_v23  ;;  %v15859_v23 = vld [vmem:[%s18374_s8 + $0xb54] ss:$48 sps:$4 sm:$0xff]  }
  0xf5   : > { %4409 = vmatpush1.bf16.msra.mxu1 %v15755_v24  ;;  %v15853_v24 = vld [vmem:[%s22028_s0 + $0x150] ss:$24 sps:$4 sm:$0xff]  }
  0xf6   : > { %5087 = vmatpush1.bf16.msra.mxu0 %v15758_v25  ;;  %4410 = vmatprep.subr.bf16.mxu1 %v15766_v26  ;;  %v15854_v25 = vld [vmem:[%s18374_s8 + $0xb40] ss:$48 sps:$4 sm:$0xff]  }
  0xf7   : > { %5088 = vmatprep.subr.bf16.mxu0 %v15769_v27  ;;  %v15857_v26 = vld [vmem:[%s18374_s8 + $0xb50] ss:$48 sps:$4 sm:$0xff]   ;;  %v15862_v27 = vld [vmem:[%s18374_s8 + $0xba4] ss:$48 sps:$4 sm:$0xff]  }
  0xf8   : > { %4336 = vmatmul.mubr.bf16.gmra.mrb[4].mxu1 %v15763_v28 }
  0xf9   : > { %5014 = vmatmul.mubr.bf16.gmra.mrb[4].mxu0 %v15763_v28  ;;  %4411 = vmatpush1.bf16.msra.mxu1 %v15764_v29  ;;  %v15865_v28 = vld [vmem:[%s18374_s8 + $0xbb4] ss:$48 sps:$4 sm:$0xff]  }
  0xfa   : > { %5089 = vmatpush1.bf16.msra.mxu0 %v15767_v30  ;;  %4412 = vmatprep.subr.bf16.mxu1 %v15772_v31  ;;  %v15866_v29 = vld [vmem:[%s22028_s0 + $0xc] ss:$24 sps:$4 sm:$0xff]   ;;  %v15860_v30 = vld [vmem:[%s18374_s8 + $0xba0] ss:$48 sps:$4 sm:$0xff]  }
  0xfb   : > { %5090 = vmatprep.subr.bf16.mxu0 %v15775_v32  ;;  %4345 = vmatprep.mubr.bf16.mxu1 %v15776_v33  ;;  %v15863_v31 = vld [vmem:[%s18374_s8 + $0xbb0] ss:$48 sps:$4 sm:$0xff]   ;;  %v15871_v32 = vld [vmem:[%s18374_s8 + $0xc04] ss:$48 sps:$4 sm:$0xff]  }
  0xfc   : > { %5023 = vmatprep.mubr.bf16.mxu0 %v15776_v33  ;;  %v15874_v33 = vld [vmem:[%s18374_s8 + $0xc14] ss:$48 sps:$4 sm:$0xff]  }
  0xfd   : > { %4413 = vmatpush1.bf16.msra.mxu1 %v15770_v34  ;;  %v15868_v34 = vld [vmem:[%s22028_s0 + $0x8] ss:$24 sps:$4 sm:$0xff]  }
  0xfe   : > { %5091 = vmatpush1.bf16.msra.mxu0 %v15773_v35  ;;  %4414 = vmatprep.subr.bf16.mxu1 %v15781_v36  ;;  %v15869_v35 = vld [vmem:[%s18374_s8 + $0xc00] ss:$48 sps:$4 sm:$0xff]  }
  0xff   : > { %5092 = vmatprep.subr.bf16.mxu0 %v15784_v37  ;;  %v15872_v36 = vld [vmem:[%s18374_s8 + $0xc10] ss:$48 sps:$4 sm:$0xff]   ;;  %v15877_v37 = vld [vmem:[%s18374_s8 + $0xc64] ss:$48 sps:$4 sm:$0xff]  }
 0x100   : > { %4346 = vmatmul.mubr.bf16.gmra.mrb[8].mxu1 %v15778_v38 }
 0x101   : > { %5024 = vmatmul.mubr.bf16.gmra.mrb[8].mxu0 %v15778_v38  ;;  %4415 = vmatpush1.bf16.msra.mxu1 %v15779_v39  ;;  %v15880_v38 = vld [vmem:[%s18374_s8 + $0xc74] ss:$48 sps:$4 sm:$0xff]  }
 0x102   : > { %5093 = vmatpush1.bf16.msra.mxu0 %v15782_v40  ;;  %4416 = vmatprep.subr.bf16.mxu1 %v15787_v41  ;;  %v15881_v39 = vld [vmem:[%s22028_s0 + $0x3c] ss:$24 sps:$4 sm:$0xff]   ;;  %v15875_v40 = vld [vmem:[%s18374_s8 + $0xc60] ss:$48 sps:$4 sm:$0xff]  }
 0x103   : > { %5094 = vmatprep.subr.bf16.mxu0 %v15790_v42  ;;  %4355 = vmatprep.mubr.bf16.mxu1 %v15791_v43  ;;  %v15878_v41 = vld [vmem:[%s18374_s8 + $0xc70] ss:$48 sps:$4 sm:$0xff]   ;;  %v15886_v42 = vld [vmem:[%s18374_s8 + $0xcc4] ss:$48 sps:$4 sm:$0xff]  }
 0x104   : > { %5033 = vmatprep.mubr.bf16.mxu0 %v15791_v43  ;;  %v15889_v43 = vld [vmem:[%s18374_s8 + $0xcd4] ss:$48 sps:$4 sm:$0xff]  }
 0x105   : > { %4417 = vmatpush1.bf16.msra.mxu1 %v15785_v44  ;;  %v15883_v44 = vld [vmem:[%s22028_s0 + $0x38] ss:$24 sps:$4 sm:$0xff]  }
 0x106   : > { %5095 = vmatpush1.bf16.msra.mxu0 %v15788_v45  ;;  %4418 = vmatprep.subr.bf16.mxu1 %v15796_v46  ;;  %v15884_v45 = vld [vmem:[%s18374_s8 + $0xcc0] ss:$48 sps:$4 sm:$0xff]  }
 0x107   : > { %5096 = vmatprep.subr.bf16.mxu0 %v15799_v47  ;;  %v15887_v46 = vld [vmem:[%s18374_s8 + $0xcd0] ss:$48 sps:$4 sm:$0xff]   ;;  %v15892_v47 = vld [vmem:[%s18374_s8 + $0xd24] ss:$48 sps:$4 sm:$0xff]  }
 0x108   : > { %4356 = vmatmul.mubr.bf16.gmra.mrb[12].mxu1 %v15793_v48 }
 0x109   : > { %5034 = vmatmul.mubr.bf16.gmra.mrb[12].mxu0 %v15793_v48  ;;  %4419 = vmatpush1.bf16.msra.mxu1 %v15794_v49  ;;  %v15895_v48 = vld [vmem:[%s18374_s8 + $0xd34] ss:$48 sps:$4 sm:$0xff]  }
 0x10a   : > { %5097 = vmatpush1.bf16.msra.mxu0 %v15797_v50  ;;  %4420 = vmatprep.subr.bf16.mxu1 %v15802_v51  ;;  %v15896_v49 = vld [vmem:[%s22028_s0 + $0x6c] ss:$24 sps:$4 sm:$0xff]   ;;  %v15890_v50 = vld [vmem:[%s18374_s8 + $0xd20] ss:$48 sps:$4 sm:$0xff]  }
 0x10b   : > { %5098 = vmatprep.subr.bf16.mxu0 %v15805_v52  ;;  %4365 = vmatprep.mubr.bf16.mxu1 %v15806_v53  ;;  %v15893_v51 = vld [vmem:[%s18374_s8 + $0xd30] ss:$48 sps:$4 sm:$0xff]   ;;  %v15901_v52 = vld [vmem:[%s18374_s8 + $0xd84] ss:$48 sps:$4 sm:$0xff]  }
 0x10c   : > { %5043 = vmatprep.mubr.bf16.mxu0 %v15806_v53  ;;  %v15904_v53 = vld [vmem:[%s18374_s8 + $0xd94] ss:$48 sps:$4 sm:$0xff]  }
 0x10d   : > { %4421 = vmatpush1.bf16.msra.mxu1 %v15800_v54  ;;  %v15898_v54 = vld [vmem:[%s22028_s0 + $0x68] ss:$24 sps:$4 sm:$0xff]  }
 0x10e   : > { %5099 = vmatpush1.bf16.msra.mxu0 %v15803_v55  ;;  %4422 = vmatprep.subr.bf16.mxu1 %v15811_v56  ;;  %v15899_v55 = vld [vmem:[%s18374_s8 + $0xd80] ss:$48 sps:$4 sm:$0xff]  }
 0x10f   : > { %5100 = vmatprep.subr.bf16.mxu0 %v15814_v57  ;;  %v15902_v56 = vld [vmem:[%s18374_s8 + $0xd90] ss:$48 sps:$4 sm:$0xff]   ;;  %v15907_v57 = vld [vmem:[%s18374_s8 + $0xde4] ss:$48 sps:$4 sm:$0xff]  }
 0x110   : > { %4366 = vmatmul.mubr.bf16.gmra.mrb[16].mxu1 %v15808_v58 }
 0x111   : > { %5044 = vmatmul.mubr.bf16.gmra.mrb[16].mxu0 %v15808_v58  ;;  %4423 = vmatpush1.bf16.msra.mxu1 %v15809_v59  ;;  %v15910_v58 = vld [vmem:[%s18374_s8 + $0xdf4] ss:$48 sps:$4 sm:$0xff]  }
 0x112   : > { %5101 = vmatpush1.bf16.msra.mxu0 %v15812_v60  ;;  %4424 = vmatprep.subr.bf16.mxu1 %v15817_v61  ;;  %v15911_v59 = vld [vmem:[%s22028_s0 + $0x9c] ss:$24 sps:$4 sm:$0xff]   ;;  %v15905_v60 = vld [vmem:[%s18374_s8 + $0xde0] ss:$48 sps:$4 sm:$0xff]  }
 0x113   : > { %5102 = vmatprep.subr.bf16.mxu0 %v15820_v62  ;;  %4375 = vmatprep.mubr.bf16.mxu1 %v15821_v63  ;;  %v15908_v61 = vld [vmem:[%s18374_s8 + $0xdf0] ss:$48 sps:$4 sm:$0xff]   ;;  %v15916_v62 = vld [vmem:[%s18374_s8 + $0xe44] ss:$48 sps:$4 sm:$0xff]  }
 0x114   : > { %5053 = vmatprep.mubr.bf16.mxu0 %v15821_v63  ;;  %v15919_v63 = vld [vmem:[%s18374_s8 + $0xe54] ss:$48 sps:$4 sm:$0xff]  }
 0x115   : > { %4425 = vmatpush1.bf16.msra.mxu1 %v15815_v0  ;;  %v15913_v0 = vld [vmem:[%s22028_s0 + $0x98] ss:$24 sps:$4 sm:$0xff]  }
 0x116   : > { %5103 = vmatpush1.bf16.msra.mxu0 %v15818_v1  ;;  %4426 = vmatprep.subr.bf16.mxu1 %v15826_v2  ;;  %v15914_v1 = vld [vmem:[%s18374_s8 + $0xe40] ss:$48 sps:$4 sm:$0xff]  }
 0x117   : > { %5104 = vmatprep.subr.bf16.mxu0 %v15829_v3  ;;  %v15917_v2 = vld [vmem:[%s18374_s8 + $0xe50] ss:$48 sps:$4 sm:$0xff]   ;;  %v15922_v3 = vld [vmem:[%s18374_s8 + $0xea4] ss:$48 sps:$4 sm:$0xff]  }
 0x118   : > { %4376 = vmatmul.mubr.bf16.gmra.mrb[20].mxu1 %v15823_v4 }
 0x119   : > { %5054 = vmatmul.mubr.bf16.gmra.mrb[20].mxu0 %v15823_v4  ;;  %4427 = vmatpush1.bf16.msra.mxu1 %v15824_v5  ;;  %v15925_v4 = vld [vmem:[%s18374_s8 + $0xeb4] ss:$48 sps:$4 sm:$0xff]  }
 0x11a   : > { %5105 = vmatpush1.bf16.msra.mxu0 %v15827_v6  ;;  %4428 = vmatprep.subr.bf16.mxu1 %v15832_v7  ;;  %v15926_v5 = vld [vmem:[%s22028_s0 + $0xcc] ss:$24 sps:$4 sm:$0xff]   ;;  %v15920_v6 = vld [vmem:[%s18374_s8 + $0xea0] ss:$48 sps:$4 sm:$0xff]  }
 0x11b   : > { %5106 = vmatprep.subr.bf16.mxu0 %v15835_v8  ;;  %4385 = vmatprep.mubr.bf16.mxu1 %v15836_v9  ;;  %v15923_v7 = vld [vmem:[%s18374_s8 + $0xeb0] ss:$48 sps:$4 sm:$0xff]   ;;  %v15931_v8 = vld [vmem:[%s18374_s8 + $0xf04] ss:$48 sps:$4 sm:$0xff]  }
 0x11c   : > { %5063 = vmatprep.mubr.bf16.mxu0 %v15836_v9  ;;  %v15934_v9 = vld [vmem:[%s18374_s8 + $0xf14] ss:$48 sps:$4 sm:$0xff]  }
 0x11d   : > { %4429 = vmatpush1.bf16.msra.mxu1 %v15830_v10  ;;  %v15928_v10 = vld [vmem:[%s22028_s0 + $0xc8] ss:$24 sps:$4 sm:$0xff]  }
 0x11e   : > { %5107 = vmatpush1.bf16.msra.mxu0 %v15833_v11  ;;  %4430 = vmatprep.subr.bf16.mxu1 %v15841_v12  ;;  %v15929_v11 = vld [vmem:[%s18374_s8 + $0xf00] ss:$48 sps:$4 sm:$0xff]  }
 0x11f   : > { %5108 = vmatprep.subr.bf16.mxu0 %v15844_v13  ;;  %v15932_v12 = vld [vmem:[%s18374_s8 + $0xf10] ss:$48 sps:$4 sm:$0xff]   ;;  %v15937_v13 = vld [vmem:[%s18374_s8 + $0xf64] ss:$48 sps:$4 sm:$0xff]  }
 0x120   : > { %4386 = vmatmul.mubr.bf16.gmra.mrb[24].mxu1 %v15838_v14 }
 0x121   : > { %5064 = vmatmul.mubr.bf16.gmra.mrb[24].mxu0 %v15838_v14  ;;  %4431 = vmatpush1.bf16.msra.mxu1 %v15839_v15  ;;  %v15940_v14 = vld [vmem:[%s18374_s8 + $0xf74] ss:$48 sps:$4 sm:$0xff]  }
 0x122   : > { %5109 = vmatpush1.bf16.msra.mxu0 %v15842_v16  ;;  %4432 = vmatprep.subr.bf16.mxu1 %v15847_v17  ;;  %v15941_v15 = vld [vmem:[%s22028_s0 + $0xfc] ss:$24 sps:$4 sm:$0xff]   ;;  %v15935_v16 = vld [vmem:[%s18374_s8 + $0xf60] ss:$48 sps:$4 sm:$0xff]  }
 0x123   : > { %5110 = vmatprep.subr.bf16.mxu0 %v15850_v18  ;;  %4395 = vmatprep.mubr.bf16.mxu1 %v15851_v19  ;;  %v15938_v17 = vld [vmem:[%s18374_s8 + $0xf70] ss:$48 sps:$4 sm:$0xff]   ;;  %v15946_v18 = vld [vmem:[%s18374_s8 + $0xfc4] ss:$48 sps:$4 sm:$0xff]  }
 0x124   : > { %5073 = vmatprep.mubr.bf16.mxu0 %v15851_v19  ;;  %v15949_v19 = vld [vmem:[%s18374_s8 + $0xfd4] ss:$48 sps:$4 sm:$0xff]  }
 0x125   : > { %4433 = vmatpush1.bf16.msra.mxu1 %v15845_v20  ;;  %v15943_v20 = vld [vmem:[%s22028_s0 + $0xf8] ss:$24 sps:$4 sm:$0xff]  }
 0x126   : > { %5111 = vmatpush1.bf16.msra.mxu0 %v15848_v21  ;;  %4434 = vmatprep.subr.bf16.mxu1 %v15856_v22  ;;  %v15944_v21 = vld [vmem:[%s18374_s8 + $0xfc0] ss:$48 sps:$4 sm:$0xff]  }
 0x127   : > { %5112 = vmatprep.subr.bf16.mxu0 %v15859_v23  ;;  %v15947_v22 = vld [vmem:[%s18374_s8 + $0xfd0] ss:$48 sps:$4 sm:$0xff]   ;;  %v15952_v23 = vld [vmem:[%s18374_s8 + $0x1024] ss:$48 sps:$4 sm:$0xff]  }
 0x128   : > { %4396 = vmatmul.mubr.bf16.gmra.mrb[28].mxu1 %v15853_v24 }
 0x129   : > { %5074 = vmatmul.mubr.bf16.gmra.mrb[28].mxu0 %v15853_v24  ;;  %4435 = vmatpush1.bf16.msra.mxu1 %v15854_v25  ;;  %v15955_v24 = vld [vmem:[%s18374_s8 + $0x1034] ss:$48 sps:$4 sm:$0xff]  }
 0x12a   : > { %5113 = vmatpush1.bf16.msra.mxu0 %v15857_v26  ;;  %4436 = vmatprep.subr.bf16.mxu1 %v15862_v27  ;;  %v15956_v25 = vld [vmem:[%s22028_s0 + $0x12c] ss:$24 sps:$4 sm:$0xff]   ;;  %v15950_v26 = vld [vmem:[%s18374_s8 + $0x1020] ss:$48 sps:$4 sm:$0xff]  }
 0x12b   : > { %5114 = vmatprep.subr.bf16.mxu0 %v15865_v28  ;;  %4438 = vmatprep.mubr.bf16.mxu1 %v15866_v29  ;;  %v15953_v27 = vld [vmem:[%s18374_s8 + $0x1030] ss:$48 sps:$4 sm:$0xff]   ;;  %v15961_v28 = vld [vmem:[%s18374_s8 + $0x1084] ss:$48 sps:$4 sm:$0xff]  }
 0x12c   : > { %5116 = vmatprep.mubr.bf16.mxu0 %v15866_v29  ;;  %v15964_v29 = vld [vmem:[%s18374_s8 + $0x1094] ss:$48 sps:$4 sm:$0xff]  }
 0x12d   : > { %4437 = vmatpush1.bf16.msra.mxu1 %v15860_v30  ;;  %v15958_v30 = vld [vmem:[%s22028_s0 + $0x128] ss:$24 sps:$4 sm:$0xff]  }
 0x12e   : > { %5115 = vmatpush1.bf16.msra.mxu0 %v15863_v31  ;;  %4519 = vmatprep.subr.bf16.mxu1 %v15871_v32  ;;  %v15959_v31 = vld [vmem:[%s18374_s8 + $0x1080] ss:$48 sps:$4 sm:$0xff]  }
 0x12f   : > { %5197 = vmatprep.subr.bf16.mxu0 %v15874_v33  ;;  %v15962_v32 = vld [vmem:[%s18374_s8 + $0x1090] ss:$48 sps:$4 sm:$0xff]   ;;  %v15967_v33 = vld [vmem:[%s18374_s8 + $0x10e4] ss:$48 sps:$4 sm:$0xff]  }
 0x130   : > { %4439 = vmatmul.mubr.bf16.vlgmr.msra.gmra.mrb[0].mxu1 %v15868_v34 }
 0x131   : > { %5117 = vmatmul.mubr.bf16.vlgmr.msra.gmra.mrb[0].mxu0 %v15868_v34  ;;  %4520 = vmatpush1.bf16.msra.mxu1 %v15869_v35  ;;  %v15970_v34 = vld [vmem:[%s18374_s8 + $0x10f4] ss:$48 sps:$4 sm:$0xff]  }
 0x132   : > { %5198 = vmatpush1.bf16.msra.mxu0 %v15872_v36  ;;  %4521 = vmatprep.subr.bf16.mxu1 %v15877_v37  ;;  %v15971_v35 = vld [vmem:[%s22028_s0 + $0x15c] ss:$24 sps:$4 sm:$0xff]   ;;  %v15965_v36 = vld [vmem:[%s18374_s8 + $0x10e0] ss:$48 sps:$4 sm:$0xff]  }
 0x133   : > { %5199 = vmatprep.subr.bf16.mxu0 %v15880_v38  ;;  %4448 = vmatprep.mubr.bf16.mxu1 %v15881_v39  ;;  %v15968_v37 = vld [vmem:[%s18374_s8 + $0x10f0] ss:$48 sps:$4 sm:$0xff]   ;;  %v15976_v38 = vld [vmem:[%s18374_s8 + $0x1144] ss:$48 sps:$4 sm:$0xff]  }
 0x134   : > { %5126 = vmatprep.mubr.bf16.mxu0 %v15881_v39  ;;  %v15979_v39 = vld [vmem:[%s18374_s8 + $0x1154] ss:$48 sps:$4 sm:$0xff]  }
 0x135   : > { %4522 = vmatpush1.bf16.msra.mxu1 %v15875_v40  ;;  %v15973_v40 = vld [vmem:[%s22028_s0 + $0x158] ss:$24 sps:$4 sm:$0xff]  }
 0x136   : > { %5200 = vmatpush1.bf16.msra.mxu0 %v15878_v41  ;;  %4523 = vmatprep.subr.bf16.mxu1 %v15886_v42  ;;  %v15974_v41 = vld [vmem:[%s18374_s8 + $0x1140] ss:$48 sps:$4 sm:$0xff]  }
 0x137   : > { %5201 = vmatprep.subr.bf16.mxu0 %v15889_v43  ;;  %v15977_v42 = vld [vmem:[%s18374_s8 + $0x1150] ss:$48 sps:$4 sm:$0xff]   ;;  %v15982_v43 = vld [vmem:[%s18374_s8 + $0x11a4] ss:$48 sps:$4 sm:$0xff]  }
 0x138   : > { %4449 = vmatmul.mubr.bf16.gmra.mrb[4].mxu1 %v15883_v44 }
 0x139   : > { %5127 = vmatmul.mubr.bf16.gmra.mrb[4].mxu0 %v15883_v44  ;;  %4524 = vmatpush1.bf16.msra.mxu1 %v15884_v45  ;;  %v15985_v44 = vld [vmem:[%s18374_s8 + $0x11b4] ss:$48 sps:$4 sm:$0xff]  }
 0x13a   : > { %5202 = vmatpush1.bf16.msra.mxu0 %v15887_v46  ;;  %4525 = vmatprep.subr.bf16.mxu1 %v15892_v47  ;;  %v15986_v45 = vld [vmem:[%s22028_s0 + $0x14] ss:$24 sps:$4 sm:$0xff]   ;;  %v15980_v46 = vld [vmem:[%s18374_s8 + $0x11a0] ss:$48 sps:$4 sm:$0xff]  }
 0x13b   : > { %5203 = vmatprep.subr.bf16.mxu0 %v15895_v48  ;;  %4458 = vmatprep.mubr.bf16.mxu1 %v15896_v49  ;;  %v15983_v47 = vld [vmem:[%s18374_s8 + $0x11b0] ss:$48 sps:$4 sm:$0xff]   ;;  %v15991_v48 = vld [vmem:[%s18374_s8 + $0xc] ss:$48 sps:$4 sm:$0xff]  }
 0x13c   : > { %5136 = vmatprep.mubr.bf16.mxu0 %v15896_v49  ;;  %v15994_v49 = vld [vmem:[%s18374_s8 + $0x24] ss:$48 sps:$4 sm:$0xff]  }
 0x13d   : > { %4526 = vmatpush1.bf16.msra.mxu1 %v15890_v50  ;;  %v15988_v50 = vld [vmem:[%s22028_s0 + $0x10] ss:$24 sps:$4 sm:$0xff]  }
 0x13e   : > { %5204 = vmatpush1.bf16.msra.mxu0 %v15893_v51  ;;  %4527 = vmatprep.subr.bf16.mxu1 %v15901_v52  ;;  %v15989_v51 = vld [vmem:[%s18374_s8 + $0x8] ss:$48 sps:$4 sm:$0xff]   ;;  %v15992_v52 = vld [vmem:[%s18374_s8 + $0x20] ss:$48 sps:$4 sm:$0xff]  }
 0x13f   : > { %5205 = vmatprep.subr.bf16.mxu0 %v15904_v53  ;;  %v15997_v53 = vld [vmem:[%s18374_s8 + $0x6c] ss:$48 sps:$4 sm:$0xff]  }
 0x140   : > { %4459 = vmatmul.mubr.bf16.gmra.mrb[8].mxu1 %v15898_v54 }
 0x141   : > { %5137 = vmatmul.mubr.bf16.gmra.mrb[8].mxu0 %v15898_v54  ;;  %4528 = vmatpush1.bf16.msra.mxu1 %v15899_v55  ;;  %v16000_v54 = vld [vmem:[%s18374_s8 + $0x84] ss:$48 sps:$4 sm:$0xff]  }
 0x142   : > { %5206 = vmatpush1.bf16.msra.mxu0 %v15902_v56  ;;  %4529 = vmatprep.subr.bf16.mxu1 %v15907_v57  ;;  %v16001_v55 = vld [vmem:[%s22028_s0 + $0x44] ss:$24 sps:$4 sm:$0xff]   ;;  %v15995_v56 = vld [vmem:[%s18374_s8 + $0x68] ss:$48 sps:$4 sm:$0xff]   ;;  %v15998_v57 = vld [vmem:[%s18374_s8 + $0x80] ss:$48 sps:$4 sm:$0xff]  }
 0x143   : > { %5207 = vmatprep.subr.bf16.mxu0 %v15910_v58  ;;  %4468 = vmatprep.mubr.bf16.mxu1 %v15911_v59  ;;  %v16006_v58 = vld [vmem:[%s18374_s8 + $0xcc] ss:$48 sps:$4 sm:$0xff]  }
 0x144   : > { %5146 = vmatprep.mubr.bf16.mxu0 %v15911_v59  ;;  %v16009_v59 = vld [vmem:[%s18374_s8 + $0xe4] ss:$48 sps:$4 sm:$0xff]  }
 0x145   : > { %4530 = vmatpush1.bf16.msra.mxu1 %v15905_v60  ;;  %v16003_v60 = vld [vmem:[%s22028_s0 + $0x40] ss:$24 sps:$4 sm:$0xff]  }
 0x146   : > { %5208 = vmatpush1.bf16.msra.mxu0 %v15908_v61  ;;  %4531 = vmatprep.subr.bf16.mxu1 %v15916_v62  ;;  %v16004_v61 = vld [vmem:[%s18374_s8 + $0xc8] ss:$48 sps:$4 sm:$0xff]   ;;  %v16007_v62 = vld [vmem:[%s18374_s8 + $0xe0] ss:$48 sps:$4 sm:$0xff]  }
 0x147   : > { %5209 = vmatprep.subr.bf16.mxu0 %v15919_v63  ;;  %v16012_v63 = vld [vmem:[%s18374_s8 + $0x12c] ss:$48 sps:$4 sm:$0xff]  }
 0x148   : > { %4469 = vmatmul.mubr.bf16.gmra.mrb[12].mxu1 %v15913_v0 }
 0x149   : > { %5147 = vmatmul.mubr.bf16.gmra.mrb[12].mxu0 %v15913_v0  ;;  %4532 = vmatpush1.bf16.msra.mxu1 %v15914_v1  ;;  %v16015_v0 = vld [vmem:[%s18374_s8 + $0x144] ss:$48 sps:$4 sm:$0xff]  }
 0x14a   : > { %5210 = vmatpush1.bf16.msra.mxu0 %v15917_v2  ;;  %4533 = vmatprep.subr.bf16.mxu1 %v15922_v3  ;;  %v16016_v1 = vld [vmem:[%s22028_s0 + $0x74] ss:$24 sps:$4 sm:$0xff]   ;;  %v16010_v2 = vld [vmem:[%s18374_s8 + $0x128] ss:$48 sps:$4 sm:$0xff]   ;;  %v16013_v3 = vld [vmem:[%s18374_s8 + $0x140] ss:$48 sps:$4 sm:$0xff]  }
 0x14b   : > { %5211 = vmatprep.subr.bf16.mxu0 %v15925_v4  ;;  %4478 = vmatprep.mubr.bf16.mxu1 %v15926_v5  ;;  %v16021_v4 = vld [vmem:[%s18374_s8 + $0x18c] ss:$48 sps:$4 sm:$0xff]  }
 0x14c   : > { %5156 = vmatprep.mubr.bf16.mxu0 %v15926_v5  ;;  %v16024_v5 = vld [vmem:[%s18374_s8 + $0x1a4] ss:$48 sps:$4 sm:$0xff]  }
 0x14d   : > { %4534 = vmatpush1.bf16.msra.mxu1 %v15920_v6  ;;  %v16018_v6 = vld [vmem:[%s22028_s0 + $0x70] ss:$24 sps:$4 sm:$0xff]  }
 0x14e   : > { %5212 = vmatpush1.bf16.msra.mxu0 %v15923_v7  ;;  %4535 = vmatprep.subr.bf16.mxu1 %v15931_v8  ;;  %v16019_v7 = vld [vmem:[%s18374_s8 + $0x188] ss:$48 sps:$4 sm:$0xff]   ;;  %v16022_v8 = vld [vmem:[%s18374_s8 + $0x1a0] ss:$48 sps:$4 sm:$0xff]  }
 0x14f   : > { %5213 = vmatprep.subr.bf16.mxu0 %v15934_v9  ;;  %v16027_v9 = vld [vmem:[%s18374_s8 + $0x1ec] ss:$48 sps:$4 sm:$0xff]  }
 0x150   : > { %4479 = vmatmul.mubr.bf16.gmra.mrb[16].mxu1 %v15928_v10 }
 0x151   : > { %5157 = vmatmul.mubr.bf16.gmra.mrb[16].mxu0 %v15928_v10  ;;  %4536 = vmatpush1.bf16.msra.mxu1 %v15929_v11  ;;  %v16030_v10 = vld [vmem:[%s18374_s8 + $0x204] ss:$48 sps:$4 sm:$0xff]  }
 0x152   : > { %5214 = vmatpush1.bf16.msra.mxu0 %v15932_v12  ;;  %4537 = vmatprep.subr.bf16.mxu1 %v15937_v13  ;;  %v16031_v11 = vld [vmem:[%s22028_s0 + $0xa4] ss:$24 sps:$4 sm:$0xff]   ;;  %v16025_v12 = vld [vmem:[%s18374_s8 + $0x1e8] ss:$48 sps:$4 sm:$0xff]   ;;  %v16028_v13 = vld [vmem:[%s18374_s8 + $0x200] ss:$48 sps:$4 sm:$0xff]  }
 0x153   : > { %5215 = vmatprep.subr.bf16.mxu0 %v15940_v14  ;;  %4488 = vmatprep.mubr.bf16.mxu1 %v15941_v15  ;;  %v16036_v14 = vld [vmem:[%s18374_s8 + $0x24c] ss:$48 sps:$4 sm:$0xff]  }
 0x154   : > { %5166 = vmatprep.mubr.bf16.mxu0 %v15941_v15  ;;  %v16039_v15 = vld [vmem:[%s18374_s8 + $0x264] ss:$48 sps:$4 sm:$0xff]  }
 0x155   : > { %4538 = vmatpush1.bf16.msra.mxu1 %v15935_v16  ;;  %v16033_v16 = vld [vmem:[%s22028_s0 + $0xa0] ss:$24 sps:$4 sm:$0xff]  }
 0x156   : > { %5216 = vmatpush1.bf16.msra.mxu0 %v15938_v17  ;;  %4539 = vmatprep.subr.bf16.mxu1 %v15946_v18  ;;  %v16034_v17 = vld [vmem:[%s18374_s8 + $0x248] ss:$48 sps:$4 sm:$0xff]   ;;  %v16037_v18 = vld [vmem:[%s18374_s8 + $0x260] ss:$48 sps:$4 sm:$0xff]  }
 0x157   : > { %5217 = vmatprep.subr.bf16.mxu0 %v15949_v19  ;;  %v16042_v19 = vld [vmem:[%s18374_s8 + $0x2ac] ss:$48 sps:$4 sm:$0xff]  }
 0x158   : > { %4489 = vmatmul.mubr.bf16.gmra.mrb[20].mxu1 %v15943_v20 }
 0x159   : > { %5167 = vmatmul.mubr.bf16.gmra.mrb[20].mxu0 %v15943_v20  ;;  %4540 = vmatpush1.bf16.msra.mxu1 %v15944_v21  ;;  %v16045_v20 = vld [vmem:[%s18374_s8 + $0x2c4] ss:$48 sps:$4 sm:$0xff]  }
 0x15a   : > { %5218 = vmatpush1.bf16.msra.mxu0 %v15947_v22  ;;  %4541 = vmatprep.subr.bf16.mxu1 %v15952_v23  ;;  %v16046_v21 = vld [vmem:[%s22028_s0 + $0xd4] ss:$24 sps:$4 sm:$0xff]   ;;  %v16040_v22 = vld [vmem:[%s18374_s8 + $0x2a8] ss:$48 sps:$4 sm:$0xff]   ;;  %v16043_v23 = vld [vmem:[%s18374_s8 + $0x2c0] ss:$48 sps:$4 sm:$0xff]  }
 0x15b   : > { %5219 = vmatprep.subr.bf16.mxu0 %v15955_v24  ;;  %4498 = vmatprep.mubr.bf16.mxu1 %v15956_v25  ;;  %v16051_v24 = vld [vmem:[%s18374_s8 + $0x30c] ss:$48 sps:$4 sm:$0xff]  }
 0x15c   : > { %5176 = vmatprep.mubr.bf16.mxu0 %v15956_v25  ;;  %v16054_v25 = vld [vmem:[%s18374_s8 + $0x324] ss:$48 sps:$4 sm:$0xff]  }
 0x15d   : > { %4542 = vmatpush1.bf16.msra.mxu1 %v15950_v26  ;;  %v16048_v26 = vld [vmem:[%s22028_s0 + $0xd0] ss:$24 sps:$4 sm:$0xff]  }
 0x15e   : > { %5220 = vmatpush1.bf16.msra.mxu0 %v15953_v27  ;;  %4543 = vmatprep.subr.bf16.mxu1 %v15961_v28  ;;  %v16049_v27 = vld [vmem:[%s18374_s8 + $0x308] ss:$48 sps:$4 sm:$0xff]   ;;  %v16052_v28 = vld [vmem:[%s18374_s8 + $0x320] ss:$48 sps:$4 sm:$0xff]  }
 0x15f   : > { %5221 = vmatprep.subr.bf16.mxu0 %v15964_v29  ;;  %v16057_v29 = vld [vmem:[%s18374_s8 + $0x36c] ss:$48 sps:$4 sm:$0xff]  }
 0x160   : > { %4499 = vmatmul.mubr.bf16.gmra.mrb[24].mxu1 %v15958_v30 }
 0x161   : > { %5177 = vmatmul.mubr.bf16.gmra.mrb[24].mxu0 %v15958_v30  ;;  %4544 = vmatpush1.bf16.msra.mxu1 %v15959_v31  ;;  %v16060_v30 = vld [vmem:[%s18374_s8 + $0x384] ss:$48 sps:$4 sm:$0xff]  }
 0x162   : > { %5222 = vmatpush1.bf16.msra.mxu0 %v15962_v32  ;;  %4545 = vmatprep.subr.bf16.mxu1 %v15967_v33  ;;  %v16061_v31 = vld [vmem:[%s22028_s0 + $0x104] ss:$24 sps:$4 sm:$0xff]   ;;  %v16055_v32 = vld [vmem:[%s18374_s8 + $0x368] ss:$48 sps:$4 sm:$0xff]   ;;  %v16058_v33 = vld [vmem:[%s18374_s8 + $0x380] ss:$48 sps:$4 sm:$0xff]  }
 0x163   : > { %5223 = vmatprep.subr.bf16.mxu0 %v15970_v34  ;;  %4508 = vmatprep.mubr.bf16.mxu1 %v15971_v35  ;;  %v16066_v34 = vld [vmem:[%s18374_s8 + $0x3cc] ss:$48 sps:$4 sm:$0xff]  }
 0x164   : > { %5186 = vmatprep.mubr.bf16.mxu0 %v15971_v35  ;;  %v16069_v35 = vld [vmem:[%s18374_s8 + $0x3e4] ss:$48 sps:$4 sm:$0xff]  }
 0x165   : > { %4546 = vmatpush1.bf16.msra.mxu1 %v15965_v36  ;;  %v16063_v36 = vld [vmem:[%s22028_s0 + $0x100] ss:$24 sps:$4 sm:$0xff]  }
 0x166   : > { %5224 = vmatpush1.bf16.msra.mxu0 %v15968_v37  ;;  %4547 = vmatprep.subr.bf16.mxu1 %v15976_v38  ;;  %v16064_v37 = vld [vmem:[%s18374_s8 + $0x3c8] ss:$48 sps:$4 sm:$0xff]   ;;  %v16067_v38 = vld [vmem:[%s18374_s8 + $0x3e0] ss:$48 sps:$4 sm:$0xff]  }
 0x167   : > { %5225 = vmatprep.subr.bf16.mxu0 %v15979_v39  ;;  %v16072_v39 = vld [vmem:[%s18374_s8 + $0x42c] ss:$48 sps:$4 sm:$0xff]  }
 0x168   : > { %4509 = vmatmul.mubr.bf16.gmra.mrb[28].mxu1 %v15973_v40 }
 0x169   : > { %5187 = vmatmul.mubr.bf16.gmra.mrb[28].mxu0 %v15973_v40  ;;  %4548 = vmatpush1.bf16.msra.mxu1 %v15974_v41  ;;  %v16075_v40 = vld [vmem:[%s18374_s8 + $0x444] ss:$48 sps:$4 sm:$0xff]  }
 0x16a   : > { %5226 = vmatpush1.bf16.msra.mxu0 %v15977_v42  ;;  %4549 = vmatprep.subr.bf16.mxu1 %v15982_v43  ;;  %v16076_v41 = vld [vmem:[%s22028_s0 + $0x134] ss:$24 sps:$4 sm:$0xff]   ;;  %v16070_v42 = vld [vmem:[%s18374_s8 + $0x428] ss:$48 sps:$4 sm:$0xff]   ;;  %v16073_v43 = vld [vmem:[%s18374_s8 + $0x440] ss:$48 sps:$4 sm:$0xff]  }
 0x16b   : > { %5227 = vmatprep.subr.bf16.mxu0 %v15985_v44  ;;  %4551 = vmatprep.mubr.bf16.mxu1 %v15986_v45  ;;  %v16081_v44 = vld [vmem:[%s18374_s8 + $0x48c] ss:$48 sps:$4 sm:$0xff]  }
 0x16c   : > { %5229 = vmatprep.mubr.bf16.mxu0 %v15986_v45  ;;  %v16084_v45 = vld [vmem:[%s18374_s8 + $0x4a4] ss:$48 sps:$4 sm:$0xff]  }
 0x16d   : > { %4550 = vmatpush1.bf16.msra.mxu1 %v15980_v46  ;;  %v16078_v46 = vld [vmem:[%s22028_s0 + $0x130] ss:$24 sps:$4 sm:$0xff]  }
 0x16e   : > { %5228 = vmatpush1.bf16.msra.mxu0 %v15983_v47  ;;  %4632 = vmatprep.subr.bf16.mxu1 %v15991_v48  ;;  %v16079_v47 = vld [vmem:[%s18374_s8 + $0x488] ss:$48 sps:$4 sm:$0xff]   ;;  %v16082_v48 = vld [vmem:[%s18374_s8 + $0x4a0] ss:$48 sps:$4 sm:$0xff]  }
 0x16f   : > { %5649 = vmatprep.subr.bf16.mxu0 %v15994_v49  ;;  %v16087_v49 = vld [vmem:[%s18374_s8 + $0x4ec] ss:$48 sps:$4 sm:$0xff]  }
 0x170   : > { %4552 = vmatmul.mubr.bf16.vlgmr.msra.gmra.mrb[0].mxu1 %v15988_v50 }
 0x171   : > { %5230 = vmatmul.mubr.bf16.vlgmr.msra.gmra.mrb[0].mxu0 %v15988_v50  ;;  %4633 = vmatpush1.bf16.msra.mxu1 %v15989_v51  ;;  %v16090_v50 = vld [vmem:[%s18374_s8 + $0x504] ss:$48 sps:$4 sm:$0xff]  }
 0x172   : > { %5650 = vmatpush1.bf16.msra.mxu0 %v15992_v52  ;;  %4634 = vmatprep.subr.bf16.mxu1 %v15997_v53  ;;  %v16091_v51 = vld [vmem:[%s22028_s0 + $0x164] ss:$24 sps:$4 sm:$0xff]   ;;  %v16085_v52 = vld [vmem:[%s18374_s8 + $0x4e8] ss:$48 sps:$4 sm:$0xff]   ;;  %v16088_v53 = vld [vmem:[%s18374_s8 + $0x500] ss:$48 sps:$4 sm:$0xff]  }
 0x173   : > { %5651 = vmatprep.subr.bf16.mxu0 %v16000_v54  ;;  %4561 = vmatprep.mubr.bf16.mxu1 %v16001_v55  ;;  %v16096_v54 = vld [vmem:[%s18374_s8 + $0x54c] ss:$48 sps:$4 sm:$0xff]  }
 0x174   : > { %5239 = vmatprep.mubr.bf16.mxu0 %v16001_v55  ;;  %v16099_v55 = vld [vmem:[%s18374_s8 + $0x564] ss:$48 sps:$4 sm:$0xff]  }
 0x175   : > { %4635 = vmatpush1.bf16.msra.mxu1 %v15995_v56  ;;  %v16093_v56 = vld [vmem:[%s22028_s0 + $0x160] ss:$24 sps:$4 sm:$0xff]  }
 0x176   : > { %5652 = vmatpush1.bf16.msra.mxu0 %v15998_v57  ;;  %4636 = vmatprep.subr.bf16.mxu1 %v16006_v58  ;;  %v16094_v57 = vld [vmem:[%s18374_s8 + $0x548] ss:$48 sps:$4 sm:$0xff]   ;;  %v16097_v58 = vld [vmem:[%s18374_s8 + $0x560] ss:$48 sps:$4 sm:$0xff]  }
 0x177   : > { %5653 = vmatprep.subr.bf16.mxu0 %v16009_v59  ;;  %v16102_v59 = vld [vmem:[%s18374_s8 + $0x5ac] ss:$48 sps:$4 sm:$0xff]  }
 0x178   : > { %4562 = vmatmul.mubr.bf16.gmra.mrb[4].mxu1 %v16003_v60 }
 0x179   : > { %5240 = vmatmul.mubr.bf16.gmra.mrb[4].mxu0 %v16003_v60  ;;  %4637 = vmatpush1.bf16.msra.mxu1 %v16004_v61  ;;  %v16105_v60 = vld [vmem:[%s18374_s8 + $0x5c4] ss:$48 sps:$4 sm:$0xff]   ;;  %v16100_v61 = vld [vmem:[%s18374_s8 + $0x5a8] ss:$48 sps:$4 sm:$0xff]  }
 0x17a   : > { %5654 = vmatpush1.bf16.msra.mxu0 %v16007_v62  ;;  %4638 = vmatprep.subr.bf16.mxu1 %v16012_v63  ;;  %v16103_v62 = vld [vmem:[%s18374_s8 + $0x5c0] ss:$48 sps:$4 sm:$0xff]   ;;  %v16108_v63 = vld [vmem:[%s18374_s8 + $0x60c] ss:$48 sps:$4 sm:$0xff]  }
 0x17b   : > { %5655 = vmatprep.subr.bf16.mxu0 %v16015_v0  ;;  %4571 = vmatprep.mubr.bf16.mxu1 %v16016_v1  ;;  %v16111_v0 = vld [vmem:[%s18374_s8 + $0x624] ss:$48 sps:$4 sm:$0xff]  }
 0x17c   : > { %5249 = vmatprep.mubr.bf16.mxu0 %v16016_v1  ;;  %v17834_v1 = vld [vmem:[%s22028_s0 + $0x4] ss:$24 sps:$4 sm:$0xff]  }
 0x17d   : > { %4639 = vmatpush1.bf16.msra.mxu1 %v16010_v2  ;;  %v16106_v2 = vld [vmem:[%s18374_s8 + $0x608] ss:$48 sps:$4 sm:$0xff]  }
 0x17e   : > { %5656 = vmatpush1.bf16.msra.mxu0 %v16013_v3  ;;  %4640 = vmatprep.subr.bf16.mxu1 %v16021_v4  ;;  %v16109_v3 = vld [vmem:[%s18374_s8 + $0x620] ss:$48 sps:$4 sm:$0xff]   ;;  %v16114_v4 = vld [vmem:[%s18374_s8 + $0x66c] ss:$48 sps:$4 sm:$0xff]  }
 0x17f   : > { %5657 = vmatprep.subr.bf16.mxu0 %v16024_v5  ;;  %v16117_v5 = vld [vmem:[%s18374_s8 + $0x684] ss:$48 sps:$4 sm:$0xff]  }
 0x180   : > { %4572 = vmatmul.mubr.bf16.gmra.mrb[8].mxu1 %v16018_v6 }
 0x181   : > { %5250 = vmatmul.mubr.bf16.gmra.mrb[8].mxu0 %v16018_v6  ;;  %4641 = vmatpush1.bf16.msra.mxu1 %v16019_v7  ;;  %v17835_v6 = vld [vmem:[%s22028_s0] ss:$24 sps:$4 sm:$0xff]  }
 0x182   : > { %5658 = vmatpush1.bf16.msra.mxu0 %v16022_v8  ;;  %4642 = vmatprep.subr.bf16.mxu1 %v16027_v9  ;;  %v16112_v7 = vld [vmem:[%s18374_s8 + $0x668] ss:$48 sps:$4 sm:$0xff]   ;;  %v16115_v8 = vld [vmem:[%s18374_s8 + $0x680] ss:$48 sps:$4 sm:$0xff]   ;;  %v16120_v9 = vld [vmem:[%s18374_s8 + $0x6cc] ss:$48 sps:$4 sm:$0xff]  }
 0x183   : > { %5659 = vmatprep.subr.bf16.mxu0 %v16030_v10  ;;  %4581 = vmatprep.mubr.bf16.mxu1 %v16031_v11  ;;  %v16123_v10 = vld [vmem:[%s18374_s8 + $0x6e4] ss:$48 sps:$4 sm:$0xff]  }
 0x184   : > { %5259 = vmatprep.mubr.bf16.mxu0 %v16031_v11  ;;  %v17836_v11 = vld [vmem:[%s22028_s0 + $0x34] ss:$24 sps:$4 sm:$0xff]  }
 0x185   : > { %4643 = vmatpush1.bf16.msra.mxu1 %v16025_v12  ;;  %v16118_v12 = vld [vmem:[%s18374_s8 + $0x6c8] ss:$48 sps:$4 sm:$0xff]  }
 0x186   : > { %5660 = vmatpush1.bf16.msra.mxu0 %v16028_v13  ;;  %4644 = vmatprep.subr.bf16.mxu1 %v16036_v14  ;;  %v16121_v13 = vld [vmem:[%s18374_s8 + $0x6e0] ss:$48 sps:$4 sm:$0xff]   ;;  %v16126_v14 = vld [vmem:[%s18374_s8 + $0x72c] ss:$48 sps:$4 sm:$0xff]  }
 0x187   : > { %5661 = vmatprep.subr.bf16.mxu0 %v16039_v15  ;;  %v16129_v15 = vld [vmem:[%s18374_s8 + $0x744] ss:$48 sps:$4 sm:$0xff]  }
 0x188   : > { %4582 = vmatmul.mubr.bf16.gmra.mrb[12].mxu1 %v16033_v16 }
 0x189   : > { %5260 = vmatmul.mubr.bf16.gmra.mrb[12].mxu0 %v16033_v16  ;;  %4645 = vmatpush1.bf16.msra.mxu1 %v16034_v17  ;;  %v17837_v16 = vld [vmem:[%s22028_s0 + $0x30] ss:$24 sps:$4 sm:$0xff]  }
 0x18a   : > { %5662 = vmatpush1.bf16.msra.mxu0 %v16037_v18  ;;  %4646 = vmatprep.subr.bf16.mxu1 %v16042_v19  ;;  %v16124_v17 = vld [vmem:[%s18374_s8 + $0x728] ss:$48 sps:$4 sm:$0xff]   ;;  %v16127_v18 = vld [vmem:[%s18374_s8 + $0x740] ss:$48 sps:$4 sm:$0xff]   ;;  %v16132_v19 = vld [vmem:[%s18374_s8 + $0x78c] ss:$48 sps:$4 sm:$0xff]  }
 0x18b   : > { %5663 = vmatprep.subr.bf16.mxu0 %v16045_v20  ;;  %4591 = vmatprep.mubr.bf16.mxu1 %v16046_v21  ;;  %v16135_v20 = vld [vmem:[%s18374_s8 + $0x7a4] ss:$48 sps:$4 sm:$0xff]  }
 0x18c   : > { %5269 = vmatprep.mubr.bf16.mxu0 %v16046_v21  ;;  %v17838_v21 = vld [vmem:[%s22028_s0 + $0x64] ss:$24 sps:$4 sm:$0xff]  }
 0x18d   : > { %4647 = vmatpush1.bf16.msra.mxu1 %v16040_v22  ;;  %v16130_v22 = vld [vmem:[%s18374_s8 + $0x788] ss:$48 sps:$4 sm:$0xff]  }
 0x18e   : > { %5664 = vmatpush1.bf16.msra.mxu0 %v16043_v23  ;;  %4648 = vmatprep.subr.bf16.mxu1 %v16051_v24  ;;  %v16133_v23 = vld [vmem:[%s18374_s8 + $0x7a0] ss:$48 sps:$4 sm:$0xff]   ;;  %v16138_v24 = vld [vmem:[%s18374_s8 + $0x7ec] ss:$48 sps:$4 sm:$0xff]  }
 0x18f   : > { %5665 = vmatprep.subr.bf16.mxu0 %v16054_v25  ;;  %v16141_v25 = vld [vmem:[%s18374_s8 + $0x804] ss:$48 sps:$4 sm:$0xff]  }
 0x190   : > { %4592 = vmatmul.mubr.bf16.gmra.mrb[16].mxu1 %v16048_v26 }
 0x191   : > { %5270 = vmatmul.mubr.bf16.gmra.mrb[16].mxu0 %v16048_v26  ;;  %4649 = vmatpush1.bf16.msra.mxu1 %v16049_v27  ;;  %v17839_v26 = vld [vmem:[%s22028_s0 + $0x60] ss:$24 sps:$4 sm:$0xff]  }
 0x192   : > { %5666 = vmatpush1.bf16.msra.mxu0 %v16052_v28  ;;  %4650 = vmatprep.subr.bf16.mxu1 %v16057_v29  ;;  %v16136_v27 = vld [vmem:[%s18374_s8 + $0x7e8] ss:$48 sps:$4 sm:$0xff]   ;;  %v16139_v28 = vld [vmem:[%s18374_s8 + $0x800] ss:$48 sps:$4 sm:$0xff]   ;;  %v16144_v29 = vld [vmem:[%s18374_s8 + $0x84c] ss:$48 sps:$4 sm:$0xff]  }
 0x193   : > { %5667 = vmatprep.subr.bf16.mxu0 %v16060_v30  ;;  %4601 = vmatprep.mubr.bf16.mxu1 %v16061_v31  ;;  %v16147_v30 = vld [vmem:[%s18374_s8 + $0x864] ss:$48 sps:$4 sm:$0xff]  }
 0x194   : > { %5279 = vmatprep.mubr.bf16.mxu0 %v16061_v31  ;;  %v17840_v31 = vld [vmem:[%s22028_s0 + $0x94] ss:$24 sps:$4 sm:$0xff]  }
 0x195   : > { %4651 = vmatpush1.bf16.msra.mxu1 %v16055_v32  ;;  %v16142_v32 = vld [vmem:[%s18374_s8 + $0x848] ss:$48 sps:$4 sm:$0xff]  }
 0x196   : > { %5668 = vmatpush1.bf16.msra.mxu0 %v16058_v33  ;;  %4652 = vmatprep.subr.bf16.mxu1 %v16066_v34  ;;  %v16145_v33 = vld [vmem:[%s18374_s8 + $0x860] ss:$48 sps:$4 sm:$0xff]   ;;  %v16150_v34 = vld [vmem:[%s18374_s8 + $0x8ac] ss:$48 sps:$4 sm:$0xff]  }
 0x197   : > { %5669 = vmatprep.subr.bf16.mxu0 %v16069_v35  ;;  %v16153_v35 = vld [vmem:[%s18374_s8 + $0x8c4] ss:$48 sps:$4 sm:$0xff]  }
 0x198   : > { %4602 = vmatmul.mubr.bf16.gmra.mrb[20].mxu1 %v16063_v36 }
 0x199   : > { %5280 = vmatmul.mubr.bf16.gmra.mrb[20].mxu0 %v16063_v36  ;;  %4653 = vmatpush1.bf16.msra.mxu1 %v16064_v37  ;;  %v17841_v36 = vld [vmem:[%s22028_s0 + $0x90] ss:$24 sps:$4 sm:$0xff]  }
 0x19a   : > { %5670 = vmatpush1.bf16.msra.mxu0 %v16067_v38  ;;  %4654 = vmatprep.subr.bf16.mxu1 %v16072_v39  ;;  %v16148_v37 = vld [vmem:[%s18374_s8 + $0x8a8] ss:$48 sps:$4 sm:$0xff]   ;;  %v16151_v38 = vld [vmem:[%s18374_s8 + $0x8c0] ss:$48 sps:$4 sm:$0xff]   ;;  %v16156_v39 = vld [vmem:[%s18374_s8 + $0x90c] ss:$48 sps:$4 sm:$0xff]  }
 0x19b   : > { %5671 = vmatprep.subr.bf16.mxu0 %v16075_v40  ;;  %4611 = vmatprep.mubr.bf16.mxu1 %v16076_v41  ;;  %v16159_v40 = vld [vmem:[%s18374_s8 + $0x924] ss:$48 sps:$4 sm:$0xff]  }
 0x19c   : > { %5289 = vmatprep.mubr.bf16.mxu0 %v16076_v41  ;;  %v17842_v41 = vld [vmem:[%s22028_s0 + $0xc4] ss:$24 sps:$4 sm:$0xff]  }
 0x19d   : > { %4655 = vmatpush1.bf16.msra.mxu1 %v16070_v42  ;;  %v16154_v42 = vld [vmem:[%s18374_s8 + $0x908] ss:$48 sps:$4 sm:$0xff]  }
 0x19e   : > { %5672 = vmatpush1.bf16.msra.mxu0 %v16073_v43  ;;  %4656 = vmatprep.subr.bf16.mxu1 %v16081_v44  ;;  %v16157_v43 = vld [vmem:[%s18374_s8 + $0x920] ss:$48 sps:$4 sm:$0xff]   ;;  %v16162_v44 = vld [vmem:[%s18374_s8 + $0x96c] ss:$48 sps:$4 sm:$0xff]  }
 0x19f   : > { %5673 = vmatprep.subr.bf16.mxu0 %v16084_v45  ;;  %v16165_v45 = vld [vmem:[%s18374_s8 + $0x984] ss:$48 sps:$4 sm:$0xff]  }
 0x1a0   : > { %4612 = vmatmul.mubr.bf16.gmra.mrb[24].mxu1 %v16078_v46 }
 0x1a1   : > { %5290 = vmatmul.mubr.bf16.gmra.mrb[24].mxu0 %v16078_v46  ;;  %4657 = vmatpush1.bf16.msra.mxu1 %v16079_v47  ;;  %v17843_v46 = vld [vmem:[%s22028_s0 + $0xc0] ss:$24 sps:$4 sm:$0xff]  }
 0x1a2   : > { %5674 = vmatpush1.bf16.msra.mxu0 %v16082_v48  ;;  %4658 = vmatprep.subr.bf16.mxu1 %v16087_v49  ;;  %v16160_v47 = vld [vmem:[%s18374_s8 + $0x968] ss:$48 sps:$4 sm:$0xff]   ;;  %v16163_v48 = vld [vmem:[%s18374_s8 + $0x980] ss:$48 sps:$4 sm:$0xff]   ;;  %v16168_v49 = vld [vmem:[%s18374_s8 + $0x9cc] ss:$48 sps:$4 sm:$0xff]  }
 0x1a3   : > { %5675 = vmatprep.subr.bf16.mxu0 %v16090_v50  ;;  %4621 = vmatprep.mubr.bf16.mxu1 %v16091_v51  ;;  %v16171_v50 = vld [vmem:[%s18374_s8 + $0x9e4] ss:$48 sps:$4 sm:$0xff]  }
 0x1a4   : > { %5299 = vmatprep.mubr.bf16.mxu0 %v16091_v51  ;;  %v17844_v51 = vld [vmem:[%s22028_s0 + $0xf4] ss:$24 sps:$4 sm:$0xff]  }
 0x1a5   : > { %4659 = vmatpush1.bf16.msra.mxu1 %v16085_v52  ;;  %v16166_v52 = vld [vmem:[%s18374_s8 + $0x9c8] ss:$48 sps:$4 sm:$0xff]  }
 0x1a6   : > { %5676 = vmatpush1.bf16.msra.mxu0 %v16088_v53  ;;  %4660 = vmatprep.subr.bf16.mxu1 %v16096_v54  ;;  %v16169_v53 = vld [vmem:[%s18374_s8 + $0x9e0] ss:$48 sps:$4 sm:$0xff]   ;;  %v16174_v54 = vld [vmem:[%s18374_s8 + $0xa2c] ss:$48 sps:$4 sm:$0xff]  }
 0x1a7   : > { %5677 = vmatprep.subr.bf16.mxu0 %v16099_v55  ;;  %v16177_v55 = vld [vmem:[%s18374_s8 + $0xa44] ss:$48 sps:$4 sm:$0xff]  }
 0x1a8   : > { %4622 = vmatmul.mubr.bf16.gmra.mrb[28].mxu1 %v16093_v56 }
 0x1a9   : > { %5300 = vmatmul.mubr.bf16.gmra.mrb[28].mxu0 %v16093_v56  ;;  %4661 = vmatpush1.bf16.msra.mxu1 %v16094_v57  ;;  %v17845_v56 = vld [vmem:[%s22028_s0 + $0xf0] ss:$24 sps:$4 sm:$0xff]  }
 0x1aa   : > { %5678 = vmatpush1.bf16.msra.mxu0 %v16097_v58  ;;  %4662 = vmatprep.subr.bf16.mxu1 %v16102_v59  ;;  %v16172_v57 = vld [vmem:[%s18374_s8 + $0xa28] ss:$48 sps:$4 sm:$0xff]   ;;  %v16175_v58 = vld [vmem:[%s18374_s8 + $0xa40] ss:$48 sps:$4 sm:$0xff]   ;;  %v16180_v59 = vld [vmem:[%s18374_s8 + $0xa8c] ss:$48 sps:$4 sm:$0xff]  }
 0x1ab   : > { %5679 = vmatprep.subr.bf16.mxu0 %v16105_v60  ;;  %4664 = vmatprep.mubr.bf16.mxu1 %v17834_v1  ;;  %v16183_v60 = vld [vmem:[%s18374_s8 + $0xaa4] ss:$48 sps:$4 sm:$0xff]  }
 0x1ac   : > { %5681 = vmatprep.mubr.bf16.mxu0 %v17834_v1  ;;  %v16189_v1 = vld [vmem:[%s18374_s8 + $0xb04] ss:$48 sps:$4 sm:$0xff]  }
 0x1ad   : > { %4663 = vmatpush1.bf16.msra.mxu1 %v16100_v61  ;;  %v17846_v61 = vld [vmem:[%s22028_s0 + $0x124] ss:$24 sps:$4 sm:$0xff]  }
 0x1ae   : > { %5680 = vmatpush1.bf16.msra.mxu0 %v16103_v62  ;;  %4745 = vmatprep.subr.bf16.mxu1 %v16108_v63  ;;  %v16178_v62 = vld [vmem:[%s18374_s8 + $0xa88] ss:$48 sps:$4 sm:$0xff]   ;;  %v16181_v63 = vld [vmem:[%s18374_s8 + $0xaa0] ss:$48 sps:$4 sm:$0xff]  }
 0x1af   : > { %5762 = vmatprep.subr.bf16.mxu0 %v16111_v0  ;;  %v16186_v0 = vld [vmem:[%s18374_s8 + $0xaec] ss:$48 sps:$4 sm:$0xff]  }
 0x1b0   : > { %4665 = vmatmul.mubr.bf16.vlgmr.msra.gmra.mrb[32].mxu1 %v17835_v6 }
 0x1b1   : > { %5682 = vmatmul.mubr.bf16.vlgmr.msra.gmra.mrb[32].mxu0 %v17835_v6  ;;  %4746 = vmatpush1.bf16.msra.mxu1 %v16106_v2  ;;  %v17847_v2 = vld [vmem:[%s22028_s0 + $0x120] ss:$24 sps:$4 sm:$0xff]   ;;  %v16195_v6 = vld [vmem:[%s18374_s8 + $0xb64] ss:$48 sps:$4 sm:$0xff]  }
 0x1b2   : > { %5763 = vmatpush1.bf16.msra.mxu0 %v16109_v3  ;;  %4747 = vmatprep.subr.bf16.mxu1 %v16114_v4  ;;  %v16184_v3 = vld [vmem:[%s18374_s8 + $0xae8] ss:$48 sps:$4 sm:$0xff]   ;;  %v16187_v4 = vld [vmem:[%s18374_s8 + $0xb00] ss:$48 sps:$4 sm:$0xff]  }
 0x1b3   : > { %5764 = vmatprep.subr.bf16.mxu0 %v16117_v5  ;;  %4674 = vmatprep.mubr.bf16.mxu1 %v17836_v11  ;;  %v16192_v5 = vld [vmem:[%s18374_s8 + $0xb4c] ss:$48 sps:$4 sm:$0xff]  }
 0x1b4   : > { %5691 = vmatprep.mubr.bf16.mxu0 %v17836_v11  ;;  %v16201_v11 = vld [vmem:[%s18374_s8 + $0xbc4] ss:$48 sps:$4 sm:$0xff]  }
 0x1b5   : > { %4748 = vmatpush1.bf16.msra.mxu1 %v16112_v7  ;;  %v17848_v7 = vld [vmem:[%s22028_s0 + $0x154] ss:$24 sps:$4 sm:$0xff]  }
 0x1b6   : > { %5765 = vmatpush1.bf16.msra.mxu0 %v16115_v8  ;;  %4749 = vmatprep.subr.bf16.mxu1 %v16120_v9  ;;  %v16190_v8 = vld [vmem:[%s18374_s8 + $0xb48] ss:$48 sps:$4 sm:$0xff]   ;;  %v16193_v9 = vld [vmem:[%s18374_s8 + $0xb60] ss:$48 sps:$4 sm:$0xff]  }
 0x1b7   : > { %5766 = vmatprep.subr.bf16.mxu0 %v16123_v10  ;;  %v16198_v10 = vld [vmem:[%s18374_s8 + $0xbac] ss:$48 sps:$4 sm:$0xff]  }
 0x1b8   : > { %4675 = vmatmul.mubr.bf16.gmra.mrb[36].mxu1 %v17837_v16 }
 0x1b9   : > { %5692 = vmatmul.mubr.bf16.gmra.mrb[36].mxu0 %v17837_v16  ;;  %4750 = vmatpush1.bf16.msra.mxu1 %v16118_v12  ;;  %v17849_v12 = vld [vmem:[%s22028_s0 + $0x150] ss:$24 sps:$4 sm:$0xff]   ;;  %v16207_v16 = vld [vmem:[%s18374_s8 + $0xc24] ss:$48 sps:$4 sm:$0xff]  }
 0x1ba   : > { %5767 = vmatpush1.bf16.msra.mxu0 %v16121_v13  ;;  %4751 = vmatprep.subr.bf16.mxu1 %v16126_v14  ;;  %v16196_v13 = vld [vmem:[%s18374_s8 + $0xba8] ss:$48 sps:$4 sm:$0xff]   ;;  %v16199_v14 = vld [vmem:[%s18374_s8 + $0xbc0] ss:$48 sps:$4 sm:$0xff]  }
 0x1bb   : > { %5768 = vmatprep.subr.bf16.mxu0 %v16129_v15  ;;  %4684 = vmatprep.mubr.bf16.mxu1 %v17838_v21  ;;  %v16204_v15 = vld [vmem:[%s18374_s8 + $0xc0c] ss:$48 sps:$4 sm:$0xff]  }
 0x1bc   : > { %5701 = vmatprep.mubr.bf16.mxu0 %v17838_v21  ;;  %v16213_v21 = vld [vmem:[%s18374_s8 + $0xc84] ss:$48 sps:$4 sm:$0xff]  }
 0x1bd   : > { %4752 = vmatpush1.bf16.msra.mxu1 %v16124_v17  ;;  %v17850_v17 = vld [vmem:[%s22028_s0 + $0xc] ss:$24 sps:$4 sm:$0xff]  }
 0x1be   : > { %5769 = vmatpush1.bf16.msra.mxu0 %v16127_v18  ;;  %4753 = vmatprep.subr.bf16.mxu1 %v16132_v19  ;;  %v16202_v18 = vld [vmem:[%s18374_s8 + $0xc08] ss:$48 sps:$4 sm:$0xff]   ;;  %v16205_v19 = vld [vmem:[%s18374_s8 + $0xc20] ss:$48 sps:$4 sm:$0xff]  }
 0x1bf   : > { %5770 = vmatprep.subr.bf16.mxu0 %v16135_v20  ;;  %v16210_v20 = vld [vmem:[%s18374_s8 + $0xc6c] ss:$48 sps:$4 sm:$0xff]  }
 0x1c0   : > { %4685 = vmatmul.mubr.bf16.gmra.mrb[40].mxu1 %v17839_v26 }
 0x1c1   : > { %5702 = vmatmul.mubr.bf16.gmra.mrb[40].mxu0 %v17839_v26  ;;  %4754 = vmatpush1.bf16.msra.mxu1 %v16130_v22  ;;  %v17851_v22 = vld [vmem:[%s22028_s0 + $0x8] ss:$24 sps:$4 sm:$0xff]   ;;  %v16219_v26 = vld [vmem:[%s18374_s8 + $0xce4] ss:$48 sps:$4 sm:$0xff]  }
 0x1c2   : > { %5771 = vmatpush1.bf16.msra.mxu0 %v16133_v23  ;;  %4755 = vmatprep.subr.bf16.mxu1 %v16138_v24  ;;  %v16208_v23 = vld [vmem:[%s18374_s8 + $0xc68] ss:$48 sps:$4 sm:$0xff]   ;;  %v16211_v24 = vld [vmem:[%s18374_s8 + $0xc80] ss:$48 sps:$4 sm:$0xff]  }
 0x1c3   : > { %5772 = vmatprep.subr.bf16.mxu0 %v16141_v25  ;;  %4694 = vmatprep.mubr.bf16.mxu1 %v17840_v31  ;;  %v16216_v25 = vld [vmem:[%s18374_s8 + $0xccc] ss:$48 sps:$4 sm:$0xff]  }
 0x1c4   : > { %5711 = vmatprep.mubr.bf16.mxu0 %v17840_v31  ;;  %v16225_v31 = vld [vmem:[%s18374_s8 + $0xd44] ss:$48 sps:$4 sm:$0xff]  }
 0x1c5   : > { %4756 = vmatpush1.bf16.msra.mxu1 %v16136_v27  ;;  %v17852_v27 = vld [vmem:[%s22028_s0 + $0x3c] ss:$24 sps:$4 sm:$0xff]  }
 0x1c6   : > { %5773 = vmatpush1.bf16.msra.mxu0 %v16139_v28  ;;  %4757 = vmatprep.subr.bf16.mxu1 %v16144_v29  ;;  %v16214_v28 = vld [vmem:[%s18374_s8 + $0xcc8] ss:$48 sps:$4 sm:$0xff]   ;;  %v16217_v29 = vld [vmem:[%s18374_s8 + $0xce0] ss:$48 sps:$4 sm:$0xff]  }
 0x1c7   : > { %5774 = vmatprep.subr.bf16.mxu0 %v16147_v30  ;;  %v16222_v30 = vld [vmem:[%s18374_s8 + $0xd2c] ss:$48 sps:$4 sm:$0xff]  }
 0x1c8   : > { %4695 = vmatmul.mubr.bf16.gmra.mrb[44].mxu1 %v17841_v36 }
 0x1c9   : > { %5712 = vmatmul.mubr.bf16.gmra.mrb[44].mxu0 %v17841_v36  ;;  %4758 = vmatpush1.bf16.msra.mxu1 %v16142_v32  ;;  %v17853_v32 = vld [vmem:[%s22028_s0 + $0x38] ss:$24 sps:$4 sm:$0xff]   ;;  %v16231_v36 = vld [vmem:[%s18374_s8 + $0xda4] ss:$48 sps:$4 sm:$0xff]  }
 0x1ca   : > { %5775 = vmatpush1.bf16.msra.mxu0 %v16145_v33  ;;  %4759 = vmatprep.subr.bf16.mxu1 %v16150_v34  ;;  %v16220_v33 = vld [vmem:[%s18374_s8 + $0xd28] ss:$48 sps:$4 sm:$0xff]   ;;  %v16223_v34 = vld [vmem:[%s18374_s8 + $0xd40] ss:$48 sps:$4 sm:$0xff]  }
 0x1cb   : > { %5776 = vmatprep.subr.bf16.mxu0 %v16153_v35  ;;  %4704 = vmatprep.mubr.bf16.mxu1 %v17842_v41  ;;  %v16228_v35 = vld [vmem:[%s18374_s8 + $0xd8c] ss:$48 sps:$4 sm:$0xff]  }
 0x1cc   : > { %5721 = vmatprep.mubr.bf16.mxu0 %v17842_v41  ;;  %v16237_v41 = vld [vmem:[%s18374_s8 + $0xe04] ss:$48 sps:$4 sm:$0xff]  }
 0x1cd   : > { %4760 = vmatpush1.bf16.msra.mxu1 %v16148_v37  ;;  %v17854_v37 = vld [vmem:[%s22028_s0 + $0x6c] ss:$24 sps:$4 sm:$0xff]  }
 0x1ce   : > { %5777 = vmatpush1.bf16.msra.mxu0 %v16151_v38  ;;  %4761 = vmatprep.subr.bf16.mxu1 %v16156_v39  ;;  %v16226_v38 = vld [vmem:[%s18374_s8 + $0xd88] ss:$48 sps:$4 sm:$0xff]   ;;  %v16229_v39 = vld [vmem:[%s18374_s8 + $0xda0] ss:$48 sps:$4 sm:$0xff]  }
 0x1cf   : > { %5778 = vmatprep.subr.bf16.mxu0 %v16159_v40  ;;  %v16234_v40 = vld [vmem:[%s18374_s8 + $0xdec] ss:$48 sps:$4 sm:$0xff]  }
 0x1d0   : > { %4705 = vmatmul.mubr.bf16.gmra.mrb[48].mxu1 %v17843_v46 }
 0x1d1   : > { %5722 = vmatmul.mubr.bf16.gmra.mrb[48].mxu0 %v17843_v46  ;;  %4762 = vmatpush1.bf16.msra.mxu1 %v16154_v42  ;;  %v16232_v42 = vld [vmem:[%s18374_s8 + $0xde8] ss:$48 sps:$4 sm:$0xff]   ;;  %v16243_v46 = vld [vmem:[%s18374_s8 + $0xe64] ss:$48 sps:$4 sm:$0xff]  }
 0x1d2   : > { %5779 = vmatpush1.bf16.msra.mxu0 %v16157_v43  ;;  %4763 = vmatprep.subr.bf16.mxu1 %v16162_v44  ;;  %v16235_v43 = vld [vmem:[%s18374_s8 + $0xe00] ss:$48 sps:$4 sm:$0xff]  }
 0x1d3   : > { %5780 = vmatprep.subr.bf16.mxu0 %v16165_v45  ;;  %4714 = vmatprep.mubr.bf16.mxu1 %v17844_v51  ;;  %v17855_v44 = vld [vmem:[%s22028_s0 + $0x68] ss:$24 sps:$4 sm:$0xff]   ;;  %v16240_v45 = vld [vmem:[%s18374_s8 + $0xe4c] ss:$48 sps:$4 sm:$0xff]  }
 0x1d4   : > { %5731 = vmatprep.mubr.bf16.mxu0 %v17844_v51  ;;  %v16249_v51 = vld [vmem:[%s18374_s8 + $0xec4] ss:$48 sps:$4 sm:$0xff]  }
 0x1d5   : > { %4764 = vmatpush1.bf16.msra.mxu1 %v16160_v47  ;;  %v17856_v47 = vld [vmem:[%s22028_s0 + $0x9c] ss:$24 sps:$4 sm:$0xff]  }
 0x1d6   : > { %5781 = vmatpush1.bf16.msra.mxu0 %v16163_v48  ;;  %4765 = vmatprep.subr.bf16.mxu1 %v16168_v49  ;;  %v16238_v48 = vld [vmem:[%s18374_s8 + $0xe48] ss:$48 sps:$4 sm:$0xff]   ;;  %v16241_v49 = vld [vmem:[%s18374_s8 + $0xe60] ss:$48 sps:$4 sm:$0xff]  }
 0x1d7   : > { %5782 = vmatprep.subr.bf16.mxu0 %v16171_v50  ;;  %v16246_v50 = vld [vmem:[%s18374_s8 + $0xeac] ss:$48 sps:$4 sm:$0xff]  }
 0x1d8   : > { %4715 = vmatmul.mubr.bf16.gmra.mrb[52].mxu1 %v17845_v56 }
 0x1d9   : > { %5732 = vmatmul.mubr.bf16.gmra.mrb[52].mxu0 %v17845_v56  ;;  %4766 = vmatpush1.bf16.msra.mxu1 %v16166_v52  ;;  %v16244_v52 = vld [vmem:[%s18374_s8 + $0xea8] ss:$48 sps:$4 sm:$0xff]   ;;  %v16255_v56 = vld [vmem:[%s18374_s8 + $0xf24] ss:$48 sps:$4 sm:$0xff]  }
 0x1da   : > { %5783 = vmatpush1.bf16.msra.mxu0 %v16169_v53  ;;  %4767 = vmatprep.subr.bf16.mxu1 %v16174_v54  ;;  %v16247_v53 = vld [vmem:[%s18374_s8 + $0xec0] ss:$48 sps:$4 sm:$0xff]  }
 0x1db   : > { %5784 = vmatprep.subr.bf16.mxu0 %v16177_v55  ;;  %4724 = vmatprep.mubr.bf16.mxu1 %v17846_v61  ;;  %v17857_v54 = vld [vmem:[%s22028_s0 + $0x98] ss:$24 sps:$4 sm:$0xff]   ;;  %v16252_v55 = vld [vmem:[%s18374_s8 + $0xf0c] ss:$48 sps:$4 sm:$0xff]  }
 0x1dc   : > { %5741 = vmatprep.mubr.bf16.mxu0 %v17846_v61  ;;  %v16261_v61 = vld [vmem:[%s18374_s8 + $0xf84] ss:$48 sps:$4 sm:$0xff]  }
 0x1dd   : > { %4768 = vmatpush1.bf16.msra.mxu1 %v16172_v57  ;;  %v17858_v57 = vld [vmem:[%s22028_s0 + $0xcc] ss:$24 sps:$4 sm:$0xff]  }
 0x1de   : > { %5785 = vmatpush1.bf16.msra.mxu0 %v16175_v58  ;;  %4769 = vmatprep.subr.bf16.mxu1 %v16180_v59  ;;  %v16250_v58 = vld [vmem:[%s18374_s8 + $0xf08] ss:$48 sps:$4 sm:$0xff]   ;;  %v16253_v59 = vld [vmem:[%s18374_s8 + $0xf20] ss:$48 sps:$4 sm:$0xff]  }
 0x1df   : > { %5786 = vmatprep.subr.bf16.mxu0 %v16183_v60  ;;  %v16258_v60 = vld [vmem:[%s18374_s8 + $0xf6c] ss:$48 sps:$4 sm:$0xff]  }
 0x1e0   : > { %4725 = vmatmul.mubr.bf16.gmra.mrb[56].mxu1 %v17847_v2 }
 0x1e1   : > { %5742 = vmatmul.mubr.bf16.gmra.mrb[56].mxu0 %v17847_v2  ;;  %4770 = vmatpush1.bf16.msra.mxu1 %v16178_v62  ;;  %v16256_v62 = vld [vmem:[%s18374_s8 + $0xf68] ss:$48 sps:$4 sm:$0xff]   ;;  %v16267_v2 = vld [vmem:[%s18374_s8 + $0xfe4] ss:$48 sps:$4 sm:$0xff]  }
 0x1e2   : > { %5787 = vmatpush1.bf16.msra.mxu0 %v16181_v63  ;;  %4771 = vmatprep.subr.bf16.mxu1 %v16186_v0  ;;  %v17859_v63 = vld [vmem:[%s22028_s0 + $0xc8] ss:$24 sps:$4 sm:$0xff]  }
 0x1e3   : > { %5788 = vmatprep.subr.bf16.mxu0 %v16189_v1  ;;  %4734 = vmatprep.mubr.bf16.mxu1 %v17848_v7  ;;  %v16259_v0 = vld [vmem:[%s18374_s8 + $0xf80] ss:$48 sps:$4 sm:$0xff]   ;;  %v16264_v1 = vld [vmem:[%s18374_s8 + $0xfcc] ss:$48 sps:$4 sm:$0xff]  }
 0x1e4   : > { %5751 = vmatprep.mubr.bf16.mxu0 %v17848_v7  ;;  %v16273_v7 = vld [vmem:[%s18374_s8 + $0x1044] ss:$48 sps:$4 sm:$0xff]  }
 0x1e5   : > { %4772 = vmatpush1.bf16.msra.mxu1 %v16184_v3  ;;  %v17860_v3 = vld [vmem:[%s22028_s0 + $0xfc] ss:$24 sps:$4 sm:$0xff]  }
 0x1e6   : > { %5789 = vmatpush1.bf16.msra.mxu0 %v16187_v4  ;;  %4773 = vmatprep.subr.bf16.mxu1 %v16192_v5  ;;  %v16262_v4 = vld [vmem:[%s18374_s8 + $0xfc8] ss:$48 sps:$4 sm:$0xff]   ;;  %v16265_v5 = vld [vmem:[%s18374_s8 + $0xfe0] ss:$48 sps:$4 sm:$0xff]  }
 0x1e7   : > { %5790 = vmatprep.subr.bf16.mxu0 %v16195_v6  ;;  %v16270_v6 = vld [vmem:[%s18374_s8 + $0x102c] ss:$48 sps:$4 sm:$0xff]  }
 0x1e8   : > { %4735 = vmatmul.mubr.bf16.gmra.mrb[60].mxu1 %v17849_v12 }
 0x1e9   : > { %5752 = vmatmul.mubr.bf16.gmra.mrb[60].mxu0 %v17849_v12  ;;  %4774 = vmatpush1.bf16.msra.mxu1 %v16190_v8  ;;  %v16268_v8 = vld [vmem:[%s18374_s8 + $0x1028] ss:$48 sps:$4 sm:$0xff]   ;;  %v16279_v12 = vld [vmem:[%s18374_s8 + $0x10a4] ss:$48 sps:$4 sm:$0xff]  }
 0x1ea   : > { %5791 = vmatpush1.bf16.msra.mxu0 %v16193_v9  ;;  %4775 = vmatprep.subr.bf16.mxu1 %v16198_v10  ;;  %v17861_v9 = vld [vmem:[%s22028_s0 + $0xf8] ss:$24 sps:$4 sm:$0xff]  }
 0x1eb   : > { %5792 = vmatprep.subr.bf16.mxu0 %v16201_v11  ;;  %4777 = vmatprep.mubr.bf16.mxu1 %v17850_v17  ;;  %v16271_v10 = vld [vmem:[%s18374_s8 + $0x1040] ss:$48 sps:$4 sm:$0xff]   ;;  %v16276_v11 = vld [vmem:[%s18374_s8 + $0x108c] ss:$48 sps:$4 sm:$0xff]  }
 0x1ec   : > { %5794 = vmatprep.mubr.bf16.mxu0 %v17850_v17  ;;  %v16285_v17 = vld [vmem:[%s18374_s8 + $0x1104] ss:$48 sps:$4 sm:$0xff]  }
 0x1ed   : > { %4776 = vmatpush1.bf16.msra.mxu1 %v16196_v13  ;;  %v17862_v13 = vld [vmem:[%s22028_s0 + $0x12c] ss:$24 sps:$4 sm:$0xff]  }
 0x1ee   : > { %5793 = vmatpush1.bf16.msra.mxu0 %v16199_v14  ;;  %4858 = vmatprep.subr.bf16.mxu1 %v16204_v15  ;;  %v16274_v14 = vld [vmem:[%s18374_s8 + $0x1088] ss:$48 sps:$4 sm:$0xff]   ;;  %v16277_v15 = vld [vmem:[%s18374_s8 + $0x10a0] ss:$48 sps:$4 sm:$0xff]  }
 0x1ef   : > { %5875 = vmatprep.subr.bf16.mxu0 %v16207_v16  ;;  %v16282_v16 = vld [vmem:[%s18374_s8 + $0x10ec] ss:$48 sps:$4 sm:$0xff]  }
 0x1f0   : > { %4778 = vmatmul.mubr.bf16.vlgmr.msra.gmra.mrb[32].mxu1 %v17851_v22 }
 0x1f1   : > { %5795 = vmatmul.mubr.bf16.vlgmr.msra.gmra.mrb[32].mxu0 %v17851_v22  ;;  %4859 = vmatpush1.bf16.msra.mxu1 %v16202_v18  ;;  %v16280_v18 = vld [vmem:[%s18374_s8 + $0x10e8] ss:$48 sps:$4 sm:$0xff]   ;;  %v16291_v22 = vld [vmem:[%s18374_s8 + $0x1164] ss:$48 sps:$4 sm:$0xff]  }
 0x1f2   : > { %5876 = vmatpush1.bf16.msra.mxu0 %v16205_v19  ;;  %4860 = vmatprep.subr.bf16.mxu1 %v16210_v20  ;;  %v17863_v19 = vld [vmem:[%s22028_s0 + $0x128] ss:$24 sps:$4 sm:$0xff]  }
 0x1f3   : > { %5877 = vmatprep.subr.bf16.mxu0 %v16213_v21  ;;  %4787 = vmatprep.mubr.bf16.mxu1 %v17852_v27  ;;  %v16283_v20 = vld [vmem:[%s18374_s8 + $0x1100] ss:$48 sps:$4 sm:$0xff]   ;;  %v16288_v21 = vld [vmem:[%s18374_s8 + $0x114c] ss:$48 sps:$4 sm:$0xff]  }
 0x1f4   : > { %5804 = vmatprep.mubr.bf16.mxu0 %v17852_v27  ;;  %v16297_v27 = vld [vmem:[%s18374_s8 + $0x11c4] ss:$48 sps:$4 sm:$0xff]  }
 0x1f5   : > { %4861 = vmatpush1.bf16.msra.mxu1 %v16208_v23  ;;  %v17864_v23 = vld [vmem:[%s22028_s0 + $0x15c] ss:$24 sps:$4 sm:$0xff]  }
 0x1f6   : > { %5878 = vmatpush1.bf16.msra.mxu0 %v16211_v24  ;;  %4862 = vmatprep.subr.bf16.mxu1 %v16216_v25  ;;  %v16286_v24 = vld [vmem:[%s18374_s8 + $0x1148] ss:$48 sps:$4 sm:$0xff]   ;;  %v16289_v25 = vld [vmem:[%s18374_s8 + $0x1160] ss:$48 sps:$4 sm:$0xff]  }
 0x1f7   : > { %5879 = vmatprep.subr.bf16.mxu0 %v16219_v26  ;;  %v16294_v26 = vld [vmem:[%s18374_s8 + $0x11ac] ss:$48 sps:$4 sm:$0xff]  }
 0x1f8   : > { %4788 = vmatmul.mubr.bf16.gmra.mrb[36].mxu1 %v17853_v32 }
 0x1f9   : > { %5805 = vmatmul.mubr.bf16.gmra.mrb[36].mxu0 %v17853_v32  ;;  %4863 = vmatpush1.bf16.msra.mxu1 %v16214_v28  ;;  %v16292_v28 = vld [vmem:[%s18374_s8 + $0x11a8] ss:$48 sps:$4 sm:$0xff]   ;;  %v16303_v32 = vld [vmem:[%s18387_s7 + $0x4] ss:$24 sps:$4 sm:$0xff]  }
 0x1fa   : > { %5880 = vmatpush1.bf16.msra.mxu0 %v16217_v29  ;;  %4864 = vmatprep.subr.bf16.mxu1 %v16222_v30  ;;  %v17865_v29 = vld [vmem:[%s22028_s0 + $0x158] ss:$24 sps:$4 sm:$0xff]  }
 0x1fb   : > { %5881 = vmatprep.subr.bf16.mxu0 %v16225_v31  ;;  %4797 = vmatprep.mubr.bf16.mxu1 %v17854_v37  ;;  %v16295_v30 = vld [vmem:[%s18374_s8 + $0x11c0] ss:$48 sps:$4 sm:$0xff]   ;;  %v16300_v31 = vld [vmem:[%s18374_s8 + $0x1c] ss:$48 sps:$4 sm:$0xff]  }
 0x1fc   : > { %5814 = vmatprep.mubr.bf16.mxu0 %v17854_v37  ;;  %v16309_v37 = vld [vmem:[%s18387_s7 + $0x34] ss:$24 sps:$4 sm:$0xff]  }
 0x1fd   : > { %4865 = vmatpush1.bf16.msra.mxu1 %v16220_v33  ;;  %v17866_v33 = vld [vmem:[%s22028_s0 + $0x14] ss:$24 sps:$4 sm:$0xff]  }
 0x1fe   : > { %5882 = vmatpush1.bf16.msra.mxu0 %v16223_v34  ;;  %4866 = vmatprep.subr.bf16.mxu1 %v16228_v35  ;;  %v16298_v34 = vld [vmem:[%s18374_s8 + $0x18] ss:$48 sps:$4 sm:$0xff]  }
 0x1ff   : > { %5883 = vmatprep.subr.bf16.mxu0 %v16231_v36  ;;  %v16301_v35 = vld [vmem:[%s18387_s7] ss:$24 sps:$4 sm:$0xff]   ;;  %v16306_v36 = vld [vmem:[%s18374_s8 + $0x7c] ss:$48 sps:$4 sm:$0xff]  }
 0x200   : > { %4798 = vmatmul.mubr.bf16.gmra.mrb[40].mxu1 %v17855_v44 }
 0x201   : > { %5815 = vmatmul.mubr.bf16.gmra.mrb[40].mxu0 %v17855_v44  ;;  %4867 = vmatpush1.bf16.msra.mxu1 %v16226_v38  ;;  %v16304_v38 = vld [vmem:[%s18374_s8 + $0x78] ss:$48 sps:$4 sm:$0xff]  }
 0x202   : > { %5884 = vmatpush1.bf16.msra.mxu0 %v16229_v39  ;;  %4868 = vmatprep.subr.bf16.mxu1 %v16234_v40  ;;  %v17867_v39 = vld [vmem:[%s22028_s0 + $0x10] ss:$24 sps:$4 sm:$0xff]  }
 0x203   : > { %5885 = vmatprep.subr.bf16.mxu0 %v16237_v41  ;;  %4807 = vmatprep.mubr.bf16.mxu1 %v17856_v47  ;;  %v16307_v40 = vld [vmem:[%s18387_s7 + $0x30] ss:$24 sps:$4 sm:$0xff]   ;;  %v16312_v41 = vld [vmem:[%s18374_s8 + $0xdc] ss:$48 sps:$4 sm:$0xff]  }
 0x204   : > { %5824 = vmatprep.mubr.bf16.mxu0 %v17856_v47  ;;  %v16310_v44 = vld [vmem:[%s18374_s8 + $0xd8] ss:$48 sps:$4 sm:$0xff]   ;;  %v16321_v47 = vld [vmem:[%s18387_s7 + $0x94] ss:$24 sps:$4 sm:$0xff]  }
 0x205   : > { %4869 = vmatpush1.bf16.msra.mxu1 %v16232_v42  ;;  %v16315_v42 = vld [vmem:[%s18387_s7 + $0x64] ss:$24 sps:$4 sm:$0xff]  }
 0x206   : > { %5886 = vmatpush1.bf16.msra.mxu0 %v16235_v43  ;;  %4870 = vmatprep.subr.bf16.mxu1 %v16240_v45  ;;  %v17868_v43 = vld [vmem:[%s22028_s0 + $0x44] ss:$24 sps:$4 sm:$0xff]   ;;  %v16313_v45 = vld [vmem:[%s18387_s7 + $0x60] ss:$24 sps:$4 sm:$0xff]  }
 0x207   : > { %5887 = vmatprep.subr.bf16.mxu0 %v16243_v46  ;;  %v16318_v46 = vld [vmem:[%s18374_s8 + $0x13c] ss:$48 sps:$4 sm:$0xff]  }
 0x208   : > { %4808 = vmatmul.mubr.bf16.gmra.mrb[44].mxu1 %v17857_v54 }
 0x209   : > { %5825 = vmatmul.mubr.bf16.gmra.mrb[44].mxu0 %v17857_v54  ;;  %4871 = vmatpush1.bf16.msra.mxu1 %v16238_v48  ;;  %v1113_v48 = vlaneseq  ;;  %v16327_v54 = vld [vmem:[%s18387_s7 + $0xc4] ss:$24 sps:$4 sm:$0xff]  }
 0x20a   : > { %5888 = vmatpush1.bf16.msra.mxu0 %v16241_v49  ;;  %4872 = vmatprep.subr.bf16.mxu1 %v16246_v50  ;;  %v16316_v49 = vld [vmem:[%s18374_s8 + $0x138] ss:$48 sps:$4 sm:$0xff]  }
 0x20b   : > { %5889 = vmatprep.subr.bf16.mxu0 %v16249_v51  ;;  %4817 = vmatprep.mubr.bf16.mxu1 %v17858_v57  ;;  %v17869_v50 = vld [vmem:[%s22028_s0 + $0x40] ss:$24 sps:$4 sm:$0xff]  }
 0x20c   : > { %5834 = vmatprep.mubr.bf16.mxu0 %v17858_v57  ;;  %v16319_v51 = vld [vmem:[%s18387_s7 + $0x90] ss:$24 sps:$4 sm:$0xff]   ;;  %v16325_v57 = vld [vmem:[%s18387_s7 + $0xc0] ss:$24 sps:$4 sm:$0xff]  }
 0x20d   : > { %4873 = vmatpush1.bf16.msra.mxu1 %v16244_v52  ;;  %v19099_v52 = vshrl.u32 %v1113_v48, 7 }
 0x20e   : > { %5890 = vmatpush1.bf16.msra.mxu0 %v16247_v53  ;;  %4874 = vmatprep.subr.bf16.mxu1 %v16252_v55  ;;  %v16324_v53 = vld [vmem:[%s18374_s8 + $0x19c] ss:$48 sps:$4 sm:$0xff]  }
 0x20f   : > { %5891 = vmatprep.subr.bf16.mxu0 %v16255_v56  ;;  %22180 = vst [vmem:[#allocation14_spill] sm:$0xff] %v19099_v52  ;;  %v17870_v55 = vld [vmem:[%s22028_s0 + $0x74] ss:$24 sps:$4 sm:$0xff]   ;;  %v16322_v56 = vld [vmem:[%s18374_s8 + $0x198] ss:$48 sps:$4 sm:$0xff]  }
 0x210   : > { %4818 = vmatmul.mubr.bf16.gmra.mrb[48].mxu1 %v17859_v63 }
 0x211   : > { %5835 = vmatmul.mubr.bf16.gmra.mrb[48].mxu0 %v17859_v63  ;;  %4875 = vmatpush1.bf16.msra.mxu1 %v16250_v58  ;;  %v1109_v58 = vld [vmem:[%s18381_s27] sm:$0xff]  ;;  %v1131_v63 = vsub.s32 4, %v19099_v52 }
 0x212   : > { %5892 = vmatpush1.bf16.msra.mxu0 %v16253_v59  ;;  %4876 = vmatprep.subr.bf16.mxu1 %v16258_v60  ;;  %v22037_v59 = vsub.s32 0, %v19099_v52  ;;  %v16330_v60 = vld [vmem:[%s18374_s8 + $0x1fc] ss:$48 sps:$4 sm:$0xff]  }
 0x213   : > { %5893 = vmatprep.subr.bf16.mxu0 %v16261_v61  ;;  %4827 = vmatprep.mubr.bf16.mxu1 %v17860_v3  ;;  %v16333_v61 = vld [vmem:[%s18387_s7 + $0xf4] ss:$24 sps:$4 sm:$0xff]  }
 0x214   : > { %5844 = vmatprep.mubr.bf16.mxu0 %v17860_v3  ;;  %v16331_v3 = vld [vmem:[%s18387_s7 + $0xf0] ss:$24 sps:$4 sm:$0xff]  }
 0x215   : > { %4877 = vmatpush1.bf16.msra.mxu1 %v16256_v62  ;;  %v22036_v62 = vsub.s32 1, %v19099_v52 }
 0x216   : > { %5894 = vmatpush1.bf16.msra.mxu0 %v16259_v0  ;;  %4878 = vmatprep.subr.bf16.mxu1 %v16264_v1  ;;  %v16328_v0 = vld [vmem:[%s18374_s8 + $0x1f8] ss:$48 sps:$4 sm:$0xff]  }
 0x217   : > { %5895 = vmatprep.subr.bf16.mxu0 %v16267_v2  ;;  %v17871_v1 = vld [vmem:[%s22028_s0 + $0x70] ss:$24 sps:$4 sm:$0xff]   ;;  %v19120_v2 = vrot.slane %v1109_v58, %v22037_v59 }
 0x218   : > { %4828 = vmatmul.mubr.bf16.gmra.mrb[52].mxu1 %v17861_v9 }
 0x219   : > { %5845 = vmatmul.mubr.bf16.gmra.mrb[52].mxu0 %v17861_v9  ;;  %4879 = vmatpush1.bf16.msra.mxu1 %v16262_v4  ;;  %v19125_v4 = vrot.slane %v1109_v58, %v22036_v62  ;;  %v17872_v9 = vld [vmem:[%s22028_s0 + $0xa4] ss:$24 sps:$4 sm:$0xff]   ;;  %v16391_v62 = vld [vmem:[%s18387_s7 + $0x2d0] ss:$24 sps:$4 sm:$0xff]  }
 0x21a   : > { %5896 = vmatpush1.bf16.msra.mxu0 %v16265_v5  ;;  %4880 = vmatprep.subr.bf16.mxu1 %v16270_v6  ;;  %v16336_v5 = vld [vmem:[%s18374_s8 + $0x25c] ss:$48 sps:$4 sm:$0xff]  }
 0x21b   : > { %5897 = vmatprep.subr.bf16.mxu0 %v16273_v7  ;;  %4837 = vmatprep.mubr.bf16.mxu1 %v17862_v13  ;;  %v16339_v6 = vld [vmem:[%s18387_s7 + $0x124] ss:$24 sps:$4 sm:$0xff]   ;;  %v19129_v7 = vrot.slane %v1109_v58, %v1131_v63 }
 0x21c   : > { %5854 = vmatprep.mubr.bf16.mxu0 %v17862_v13 }
 0x21d   : > { %4881 = vmatpush1.bf16.msra.mxu1 %v16268_v8 }
 0x21e   : > { %5898 = vmatpush1.bf16.msra.mxu0 %v16271_v10  ;;  %4882 = vmatprep.subr.bf16.mxu1 %v16276_v11  ;;  %v16334_v10 = vld [vmem:[%s18374_s8 + $0x258] ss:$48 sps:$4 sm:$0xff]  }
 0x21f   : > { %5899 = vmatprep.subr.bf16.mxu0 %v16279_v12  ;;  %v16337_v11 = vld [vmem:[%s18387_s7 + $0x120] ss:$24 sps:$4 sm:$0xff]  }
 0x220   : > { %4838 = vmatmul.mubr.bf16.gmra.mrb[56].mxu1 %v17863_v19 }
 0x221   : > { %5855 = vmatmul.mubr.bf16.gmra.mrb[56].mxu0 %v17863_v19  ;;  %4883 = vmatpush1.bf16.msra.mxu1 %v16274_v14 }
 0x222   : > { %5900 = vmatpush1.bf16.msra.mxu0 %v16277_v15  ;;  %4884 = vmatprep.subr.bf16.mxu1 %v16282_v16  ;;  %v16342_v15 = vld [vmem:[%s18374_s8 + $0x2bc] ss:$48 sps:$4 sm:$0xff]   ;;  %v1135_v16 = vsub.s32 5, %v19099_v52 }
 0x223   : > { %5901 = vmatprep.subr.bf16.mxu0 %v16285_v17  ;;  %4847 = vmatprep.mubr.bf16.mxu1 %v17864_v23 }
 0x224   : > { %5864 = vmatprep.mubr.bf16.mxu0 %v17864_v23 }
 0x225   : > { %4885 = vmatpush1.bf16.msra.mxu1 %v16280_v18 }
 0x226   : > { %5902 = vmatpush1.bf16.msra.mxu0 %v16283_v20  ;;  %4886 = vmatprep.subr.bf16.mxu1 %v16288_v21 }
 0x227   : > { %5903 = vmatprep.subr.bf16.mxu0 %v16291_v22 }
 0x228   : > { %4848 = vmatmul.mubr.bf16.gmra.mrb[60].mxu1 %v17865_v29 }
 0x229   : > { %5865 = vmatmul.mubr.bf16.gmra.mrb[60].mxu0 %v17865_v29  ;;  %4887 = vmatpush1.bf16.msra.mxu1 %v16286_v24 }
 0x22a   : > { %5904 = vmatpush1.bf16.msra.mxu0 %v16289_v25  ;;  %4888 = vmatprep.subr.bf16.mxu1 %v16294_v26  ;;  %v16345_v25 = vld [vmem:[%s18387_s7 + $0x154] ss:$24 sps:$4 sm:$0xff]  }
 0x22b   : > { %5905 = vmatprep.subr.bf16.mxu0 %v16297_v27  ;;  %4890 = vmatprep.mubr.bf16.mxu1 %v17866_v33 }
 0x22c   : > { %5907 = vmatprep.mubr.bf16.mxu0 %v17866_v33  ;;  %v19151_v33 = vrot.slane %v1109_v58, %v1135_v16 }
 0x22d   : > { %4889 = vmatpush1.bf16.msra.mxu1 %v16292_v28 }
 0x22e   : > { %5906 = vmatpush1.bf16.msra.mxu0 %v16295_v30  ;;  %5310 = vmatprep.subr.bf16.mxu1 %v16300_v31  ;;  %v17873_v30 = vld [vmem:[%s22028_s0 + $0xa0] ss:$24 sps:$4 sm:$0xff]  }
 0x22f   : > { %10935 = vmatprep.subr.bf16.mxu0 %v16303_v32  ;;  %v16340_v31 = vld [vmem:[%s18374_s8 + $0x2b8] ss:$48 sps:$4 sm:$0xff]  }
 0x230   : > { %4891 = vmatmul.mubr.bf16.vlgmr.msra.gmra.mrb[32].mxu1 %v17867_v39  ;;  %v16343_v32 = vld [vmem:[%s18387_s7 + $0x150] ss:$24 sps:$4 sm:$0xff]  }
 0x231   : > { %5908 = vmatmul.mubr.bf16.vlgmr.msra.gmra.mrb[32].mxu0 %v17867_v39  ;;  %5311 = vmatpush1.bf16.msra.mxu1 %v16298_v34 }
 0x232   : > { %10936 = vmatpush1.bf16.msra.mxu0 %v16301_v35  ;;  %5312 = vmatprep.subr.bf16.mxu1 %v16306_v36  ;;  %v16348_v36 = vld [vmem:[%s18374_s8 + $0x31c] ss:$48 sps:$4 sm:$0xff]  }
 0x233   : > { %10937 = vmatprep.subr.bf16.mxu0 %v16309_v37  ;;  %4900 = vmatprep.mubr.bf16.mxu1 %v17868_v43  ;;  %v16351_v37 = vld [vmem:[%s18387_s7 + $0x184] ss:$24 sps:$4 sm:$0xff]  }
 0x234   : > { %5917 = vmatprep.mubr.bf16.mxu0 %v17868_v43  ;;  %v16349_v43 = vld [vmem:[%s18387_s7 + $0x180] ss:$24 sps:$4 sm:$0xff]  }
 0x235   : > { %5313 = vmatpush1.bf16.msra.mxu1 %v16304_v38 }
 0x236   : > { %10938 = vmatpush1.bf16.msra.mxu0 %v16307_v40  ;;  %5314 = vmatprep.subr.bf16.mxu1 %v16312_v41  ;;  %v17874_v41 = vld [vmem:[%s22028_s0 + $0xd4] ss:$24 sps:$4 sm:$0xff]  }
 0x237   : > { %10939 = vmatprep.subr.bf16.mxu0 %v16315_v42  ;;  %v16346_v42 = vld [vmem:[%s18374_s8 + $0x318] ss:$48 sps:$4 sm:$0xff]  }
 0x238   : > { %4901 = vmatmul.mubr.bf16.gmra.mrb[36].mxu1 %v17869_v50 }
 0x239   : > { %5918 = vmatmul.mubr.bf16.gmra.mrb[36].mxu0 %v17869_v50  ;;  %5315 = vmatpush1.bf16.msra.mxu1 %v16310_v44 }
 0x23a   : > { %10940 = vmatpush1.bf16.msra.mxu0 %v16313_v45  ;;  %5316 = vmatprep.subr.bf16.mxu1 %v16318_v46 }
 0x23b   : > { %10941 = vmatprep.subr.bf16.mxu0 %v16321_v47  ;;  %4910 = vmatprep.mubr.bf16.mxu1 %v17870_v55  ;;  %v16354_v47 = vld [vmem:[%s18374_s8 + $0x37c] ss:$48 sps:$4 sm:$0xff]  }
 0x23c   : > { %5927 = vmatprep.mubr.bf16.mxu0 %v17870_v55 }
 0x23d   : > { %5317 = vmatpush1.bf16.msra.mxu1 %v16316_v49 }
 0x23e   : > { %10942 = vmatpush1.bf16.msra.mxu0 %v16319_v51  ;;  %5318 = vmatprep.subr.bf16.mxu1 %v16324_v53 }
 0x23f   : > { %10943 = vmatprep.subr.bf16.mxu0 %v16327_v54 }
 0x240   : > { %4911 = vmatmul.mubr.bf16.gmra.mrb[40].mxu1 %v17871_v1 }
 0x241   : > { %5928 = vmatmul.mubr.bf16.gmra.mrb[40].mxu0 %v17871_v1  ;;  %5319 = vmatpush1.bf16.msra.mxu1 %v16322_v56  ;;  %v16357_v56 = vld [vmem:[%s18387_s7 + $0x1b4] ss:$24 sps:$4 sm:$0xff]  }
 0x242   : > { %10944 = vmatpush1.bf16.msra.mxu0 %v16325_v57  ;;  %5320 = vmatprep.subr.bf16.mxu1 %v16330_v60 }
 0x243   : > { %10945 = vmatprep.subr.bf16.mxu0 %v16333_v61  ;;  %v4553_v8 = vpop.f32.mrb[0].mxu1  ;;  %4920 = vmatprep.mubr.bf16.mxu1 %v17872_v9 }
 0x244   : > { %5937 = vmatprep.mubr.bf16.mxu0 %v17872_v9  ;;  %v5231_v12 = vpop.f32.mrb[0].mxu0  ;;  %v14508_v13 = vadd.f32 %v4553_v8, %v19120_v2  ;;  %v4555_v14 = vpop.f32.mrb[1].mxu1  ;;  %v16355_v8 = vld [vmem:[%s18387_s7 + $0x1b0] ss:$24 sps:$4 sm:$0xff]  }
 0x245   : > { %v5233_v17 = vpop.f32.mrb[1].mxu0  ;;  %v14509_v18 = vadd.f32 %v4555_v14, %v19125_v4  ;;  %v4557_v19 = vpop.f32.mrb[2].mxu1  ;;  %5321 = vmatpush1.bf16.msra.mxu1 %v16328_v0  ;;  %v14572_v20 = vadd.f32 %v5231_v12, %v19129_v7  ;;  %v16360_v12 = vld [vmem:[%s18374_s8 + $0x3dc] ss:$48 sps:$4 sm:$0xff]  }
 0x246   : > { %10946 = vmatpush1.bf16.msra.mxu0 %v16331_v3  ;;  %v5235_v21 = vpop.f32.mrb[2].mxu0  ;;  %v6519_v22 = vmul.f32 0.70710677, %v14508_v13  ;;  %v14510_v23 = vadd.f32 %v4557_v19, %v19120_v2  ;;  %v4559_v24 = vpop.f32.mrb[3].mxu1  ;;  %5322 = vmatprep.subr.bf16.mxu1 %v16336_v5  ;;  %v19157_v39 = vmul.f32 0.5, %v14508_v13  ;;  %v14573_v49 = vadd.f32 %v5233_v17, %v19151_v33 }
 0x247   : > { %10947 = vmatprep.subr.bf16.mxu0 %v16339_v6  ;;  %v5237_v26 = vpop.f32.mrb[3].mxu0  ;;  %v6520_v27 = vmul.f32 0.70710677, %v14509_v18  ;;  %v19144_v28 = vadd.f32 %v4559_v24, %v19125_v4  ;;  %v6523_v35 = vmul.f32 0.70710677, %v14572_v20  ;;  %v14574_v38 = vadd.f32 %v5235_v21, %v19129_v7 }
 0x248   : > { %17450 = verf.f32 %v6519_v22  ;;  %v6531_v29 = vmul.f32 0.70710677, %v14510_v23  ;;  %4921 = vmatmul.mubr.bf16.gmra.mrb[44].mxu1 %v17873_v30  ;;  %v19166_v48 = vmul.f32 0.5, %v14572_v20  ;;  %v19171_v53 = vmul.f32 0.5, %v14509_v18  ;;  %v16352_v6 = vld [vmem:[%s18374_s8 + $0x378] ss:$48 sps:$4 sm:$0xff]  }
 0x249   : > { %5938 = vmatmul.mubr.bf16.gmra.mrb[44].mxu0 %v17873_v30  ;;  %17452 = verf.f32 %v6520_v27  ;;  %v6532_v34 = vmul.f32 0.70710677, %v19144_v28  ;;  %5323 = vmatpush1.bf16.msra.mxu1 %v16334_v10  ;;  %v6535_v50 = vmul.f32 0.70710677, %v14574_v38  ;;  %v14575_v57 = vadd.f32 %v5237_v26, %v19151_v33  ;;  %v16363_v13 = vld [vmem:[%s18387_s7 + $0x1e4] ss:$24 sps:$4 sm:$0xff]  }
 0x24a   : > { %10948 = vmatpush1.bf16.msra.mxu0 %v16337_v11  ;;  %17454 = verf.f32 %v6531_v29  ;;  %5324 = vmatprep.subr.bf16.mxu1 %v16342_v15  ;;  %v19178_v60 = vmul.f32 0.5, %v14510_v23  ;;  %v19186_v9 = vmul.f32 0.5, %v14573_v49  ;;  %v17875_v11 = vld [vmem:[%s22028_s0 + $0xd0] ss:$24 sps:$4 sm:$0xff]   ;;  %v6524_v14 = vmul.f32 0.70710677, %v14573_v49 }
 0x24b   : > { %10949 = vmatprep.subr.bf16.mxu0 %v16345_v25  ;;  %17456 = verf.f32 %v6532_v34  ;;  %v4563_v40 = vpop.f32.mrb[4].mxu1  ;;  %4930 = vmatprep.mubr.bf16.mxu1 %v17874_v41  ;;  %v6340_v16 = vmul.f32 0.5, %v19144_v28  ;;  %v6536_v18 = vmul.f32 0.70710677, %v14575_v57  ;;  %v19197_v20 = vmul.f32 0.5, %v14574_v38 }
 0x24c   : > { %5947 = vmatprep.mubr.bf16.mxu0 %v17874_v41  ;;  %v5241_v44 = vpop.f32.mrb[4].mxu0  ;;  %v14512_v45 = vadd.f32 %v4563_v40, %v19120_v2  ;;  %v4565_v46 = vpop.f32.mrb[5].mxu1  ;;  %17458 = verf.f32 %v6523_v35  ;;  %v19199_v21 = vmul.f32 0.5, %v14575_v57  ;;  %v17876_v28 = vld [vmem:[%s22028_s0 + $0x104] ss:$24 sps:$4 sm:$0xff]  }
 0x24d   : > { %v19169_v51 = vpop.f32.mrb[5].mxu0  ;;  %v14513_v54 = vadd.f32 %v4565_v46, %v19125_v4  ;;  %v4567_v55 = vpop.f32.mrb[6].mxu1  ;;  %5325 = vmatpush1.bf16.msra.mxu1 %v16340_v31  ;;  %17460 = verf.f32 %v6535_v50  ;;  %v19194_v15 = vadd.f32 %v5241_v44, %v19129_v7  ;;  %v16358_v29 = vld [vmem:[%s18374_s8 + $0x3d8] ss:$48 sps:$4 sm:$0xff]   ;;  %v16366_v38 = vld [vmem:[%s18374_s8 + $0x43c] ss:$48 sps:$4 sm:$0xff]  }
 0x24e   : > { %10950 = vmatpush1.bf16.msra.mxu0 %v16343_v32  ;;  %v19176_v58 = vpop.f32.mrb[6].mxu0  ;;  %v6543_v61 = vmul.f32 0.70710677, %v14512_v45  ;;  %v14514_v63 = vadd.f32 %v4567_v55, %v19120_v2  ;;  %v4569_v0 = vpop.f32.mrb[7].mxu1  ;;  %5326 = vmatprep.subr.bf16.mxu1 %v16348_v36  ;;  %v19202_v25 = vmul.f32 0.5, %v14512_v45  ;;  %v14577_v46 = vadd.f32 %v19169_v51, %v19151_v33 }
 0x24f   : > { %10951 = vmatprep.subr.bf16.mxu0 %v16351_v37  ;;  %v19181_v1 = vpop.f32.mrb[7].mxu0  ;;  %v6544_v3 = vmul.f32 0.70710677, %v14513_v54  ;;  %v14515_v5 = vadd.f32 %v4569_v0, %v19125_v4  ;;  %v6547_v22 = vmul.f32 0.70710677, %v19194_v15  ;;  %v19204_v26 = vmul.f32 0.5, %v14513_v54 }
 0x250   : > { %17462 = verf.f32 %v6543_v61  ;;  %v6555_v10 = vmul.f32 0.70710677, %v14514_v63  ;;  %4931 = vmatmul.mubr.bf16.gmra.mrb[48].mxu1 %v17875_v11  ;;  %v16361_v30 = vld [vmem:[%s18387_s7 + $0x1e0] ss:$24 sps:$4 sm:$0xff]   ;;  %v19213_v35 = vmul.f32 0.5, %v14514_v63 }
 0x251   : > { %5948 = vmatmul.mubr.bf16.gmra.mrb[48].mxu0 %v17875_v11  ;;  %17464 = verf.f32 %v6544_v3  ;;  %v6556_v17 = vmul.f32 0.70710677, %v14515_v5  ;;  %5327 = vmatpush1.bf16.msra.mxu1 %v16346_v42  ;;  %v16369_v40 = vld [vmem:[%s18387_s7 + $0x214] ss:$24 sps:$4 sm:$0xff]   ;;  %v19229_v50 = vmul.f32 0.5, %v14515_v5 }
 0x252   : > { %10952 = vmatpush1.bf16.msra.mxu0 %v16349_v43  ;;  %v17451_v19 = vpop.eup %17450  ;;  %17466 = verf.f32 %v6555_v10  ;;  %5328 = vmatprep.subr.bf16.mxu1 %v16354_v47  ;;  %v16364_v3 = vld [vmem:[%s18374_s8 + $0x438] ss:$48 sps:$4 sm:$0xff]   ;;  %v16375_v11 = vld [vmem:[%s18387_s7 + $0x244] ss:$24 sps:$4 sm:$0xff]  }
 0x253   : > { %10953 = vmatprep.subr.bf16.mxu0 %v16357_v56  ;;  %v17453_v23 = vpop.eup %17452  ;;  %v6903_v24 = vadd.f32 1.0, %v17451_v19  ;;  %17468 = verf.f32 %v6556_v17  ;;  %v4573_v27 = vpop.f32.mrb[8].mxu1  ;;  %4940 = vmatprep.mubr.bf16.mxu1 %v17876_v28  ;;  %v16367_v5 = vld [vmem:[%s18387_s7 + $0x210] ss:$24 sps:$4 sm:$0xff]  }
 0x254   : > { %5957 = vmatprep.mubr.bf16.mxu0 %v17876_v28  ;;  %v19211_v31 = vpop.f32.mrb[8].mxu0  ;;  %v17455_v32 = vpop.eup %17454  ;;  %v6904_v34 = vadd.f32 1.0, %v17453_v23  ;;  %v19216_v36 = vadd.f32 %v4573_v27, %v19120_v2  ;;  %17470 = verf.f32 %v6524_v14  ;;  %v17878_v28 = vld [vmem:[%s22028_s0 + $0x134] ss:$24 sps:$4 sm:$0xff]  }
 0x255   : > { %v4575_v37 = vpop.f32.mrb[9].mxu1  ;;  %v19220_v41 = vpop.f32.mrb[9].mxu0  ;;  %v6915_v43 = vadd.f32 1.0, %v17455_v32  ;;  %5329 = vmatpush1.bf16.msra.mxu1 %v16352_v6  ;;  %17472 = verf.f32 %v6536_v18  ;;  %v7095_v61 = vmul.f32 %v6903_v24, %v19157_v39  ;;  %v17877_v39 = vld [vmem:[%s22028_s0 + $0x100] ss:$24 sps:$4 sm:$0xff]   ;;  %v19265_v32 = vmul.f32 0.5, %v14577_v46 }
 0x256   : > { %v17457_v42 = vpop.eup %17456  ;;  %v19223_v44 = vadd.f32 %v4575_v37, %v19125_v4  ;;  %v4577_v45 = vpop.f32.mrb[10].mxu1  ;;  %10954 = vmatpush1.bf16.msra.mxu0 %v16355_v8  ;;  %v6567_v54 = vmul.f32 0.70710677, %v19216_v36  ;;  %5330 = vmatprep.subr.bf16.mxu1 %v16360_v12  ;;  %17474 = verf.f32 %v6547_v22  ;;  %v7096_v6 = vmul.f32 %v6904_v34, %v19171_v53 }
 0x257   : > { %v19227_v47 = vpop.f32.mrb[10].mxu0  ;;  %v6916_v49 = vadd.f32 1.0, %v17457_v42  ;;  %v4579_v55 = vpop.f32.mrb[11].mxu1  ;;  %10955 = vmatprep.subr.bf16.mxu0 %v16363_v13  ;;  %v7107_v51 = vmul.f32 %v6915_v43, %v19178_v60  ;;  %v19238_v0 = vadd.f32 %v4577_v45, %v19120_v2  ;;  %v16372_v60 = vld [vmem:[%s18374_s8 + $0x49c] ss:$48 sps:$4 sm:$0xff]   ;;  %v19258_v22 = vmul.f32 0.5, %v19194_v15 }
 0x258   : > { %v19232_v56 = vpop.f32.mrb[11].mxu0  ;;  %v17459_v57 = vpop.eup %17458  ;;  %v6568_v63 = vmul.f32 0.70710677, %v19223_v44  ;;  %17476 = verf.f32 %v6567_v54  ;;  %v19244_v10 = vadd.f32 %v4579_v55, %v19125_v4  ;;  %4941 = vmatmul.mubr.bf16.gmra.mrb[52].mxu1 %v17877_v39  ;;  %v6548_v53 = vmul.f32 0.70710677, %v14577_v46 }
 0x259   : > { %v7108_v8 = vmul.f32 %v6916_v49, %v6340_v16  ;;  %5958 = vmatmul.mubr.bf16.gmra.mrb[52].mxu0 %v17877_v39  ;;  %v17461_v12 = vpop.eup %17460  ;;  %v19251_v13 = vpack.c.bf16 %v7107_v51, %v7095_v61  ;;  %v6579_v14 = vmul.f32 0.70710677, %v19238_v0  ;;  %5331 = vmatpush1.bf16.msra.mxu1 %v16358_v29  ;;  %v6907_v19 = vadd.f32 1.0, %v17459_v57  ;;  %v16370_v29 = vld [vmem:[%s18374_s8 + $0x498] ss:$48 sps:$4 sm:$0xff]  }
 0x25a   : > { %17478 = verf.f32 %v6568_v63  ;;  %10956 = vmatpush1.bf16.msra.mxu0 %v16361_v30  ;;  %v17463_v16 = vpop.eup %17462  ;;  %v6580_v17 = vmul.f32 0.70710677, %v19244_v10  ;;  %5332 = vmatprep.subr.bf16.mxu1 %v16366_v38  ;;  %v16373_v30 = vld [vmem:[%s18387_s7 + $0x240] ss:$24 sps:$4 sm:$0xff]   ;;  %v19269_v15 = vadd.f32 %v19176_v58, %v19129_v7  ;;  %v16378_v43 = vld [vmem:[%s18374_s8 + $0x4fc] ss:$48 sps:$4 sm:$0xff]  }
 0x25b   : > { %22181 = vst [vmem:[#allocation15_spill] sm:$0xff] %v19251_v13  ;;  %10957 = vmatprep.subr.bf16.mxu0 %v16369_v40  ;;  %v19255_v18 = vpack.c.bf16 %v7108_v8, %v7096_v6  ;;  %v17465_v23 = vpop.eup %17464  ;;  %v6927_v24 = vadd.f32 1.0, %v17463_v16  ;;  %17480 = verf.f32 %v6579_v14  ;;  %v4583_v27 = vpop.f32.mrb[12].mxu1  ;;  %4950 = vmatprep.mubr.bf16.mxu1 %v17878_v28  ;;  %v16381_v45 = vld [vmem:[%s18387_s7 + $0x274] ss:$24 sps:$4 sm:$0xff]   ;;  %v6919_v49 = vadd.f32 1.0, %v17461_v12 }
 0x25c   : > { %5967 = vmatprep.mubr.bf16.mxu0 %v17878_v28  ;;  %v19271_v34 = vpop.f32.mrb[12].mxu0  ;;  %v17467_v37 = vpop.eup %17466  ;;  %v6928_v38 = vadd.f32 1.0, %v17465_v23  ;;  %17482 = verf.f32 %v6580_v17  ;;  %v19274_v40 = vadd.f32 %v4583_v27, %v19120_v2  ;;  %v19284_v61 = vmul.f32 0.5, %v19269_v15  ;;  %v16384_v27 = vld [vmem:[%s18374_s8 + $0x55c] ss:$48 sps:$4 sm:$0xff]  }
 0x25d   : > { %22182 = vst [vmem:[#allocation16_spill] sm:$0xff] %v19255_v18  ;;  %v4585_v42 = vpop.f32.mrb[13].mxu1  ;;  %v19278_v54 = vpop.f32.mrb[13].mxu0  ;;  %v6939_v55 = vadd.f32 1.0, %v17467_v37  ;;  %5333 = vmatpush1.bf16.msra.mxu1 %v16364_v3  ;;  %17484 = verf.f32 %v6548_v53  ;;  %v7119_v6 = vmul.f32 %v6927_v24, %v19202_v25  ;;  %v7099_v3 = vmul.f32 %v6907_v19, %v19166_v48  ;;  %v17879_v48 = vld [vmem:[%s22028_s0 + $0x130] ss:$24 sps:$4 sm:$0xff]  }
 0x25e   : > { %v17469_v46 = vpop.eup %17468  ;;  %v19281_v57 = vadd.f32 %v4585_v42, %v19125_v4  ;;  %v4587_v58 = vpop.f32.mrb[14].mxu1  ;;  %10958 = vmatpush1.bf16.msra.mxu0 %v16367_v5  ;;  %v6591_v39 = vmul.f32 0.70710677, %v19274_v40  ;;  %5334 = vmatprep.subr.bf16.mxu1 %v16372_v60  ;;  %v7120_v53 = vmul.f32 %v6928_v38, %v19204_v26  ;;  %v16376_v26 = vld [vmem:[%s18374_s8 + $0x4f8] ss:$48 sps:$4 sm:$0xff]   ;;  %v7111_v19 = vmul.f32 %v6919_v49, %v19197_v20 }
 0x25f   : > { %v19286_v51 = vpop.f32.mrb[14].mxu0  ;;  %v17471_v63 = vpop.eup %17470  ;;  %v6940_v8 = vadd.f32 1.0, %v17469_v46  ;;  %10959 = vmatprep.subr.bf16.mxu0 %v16375_v11  ;;  %v7131_v16 = vmul.f32 %v6939_v55, %v19213_v35  ;;  %v19297_v25 = vadd.f32 %v4587_v58, %v19120_v2  ;;  %v16379_v35 = vld [vmem:[%s18387_s7 + $0x270] ss:$24 sps:$4 sm:$0xff]   ;;  %v6375_v24 = vmul.f32 0.5, %v19216_v36 }
 0x260   : > { %v4589_v12 = vpop.f32.mrb[15].mxu1  ;;  %v19291_v5 = vpop.f32.mrb[15].mxu0  ;;  %v6592_v17 = vmul.f32 0.70710677, %v19281_v57  ;;  %17486 = verf.f32 %v6591_v39  ;;  %4951 = vmatmul.mubr.bf16.gmra.mrb[56].mxu1 %v17879_v48  ;;  %v16387_v42 = vld [vmem:[%s18387_s7 + $0x2a4] ss:$24 sps:$4 sm:$0xff]   ;;  %v19318_v36 = vpack.c.bf16 %v7111_v19, %v7099_v3 }
 0x261   : > { %v17473_v14 = vpop.eup %17472  ;;  %v7132_v60 = vmul.f32 %v6940_v8, %v19229_v50  ;;  %v19301_v11 = vadd.f32 %v4589_v12, %v19125_v4  ;;  %5968 = vmatmul.mubr.bf16.gmra.mrb[56].mxu0 %v17879_v48  ;;  %v6603_v50 = vmul.f32 0.70710677, %v19297_v25  ;;  %5335 = vmatpush1.bf16.msra.mxu1 %v16370_v29  ;;  %v19312_v28 = vpack.c.bf16 %v7131_v16, %v7119_v6  ;;  %v16385_v6 = vld [vmem:[%s18387_s7 + $0x2a0] ss:$24 sps:$4 sm:$0xff]  }
 0x262   : > { %v17475_v23 = vpop.eup %17474  ;;  %17488 = verf.f32 %v6592_v17  ;;  %10960 = vmatpush1.bf16.msra.mxu0 %v16373_v30  ;;  %5336 = vmatprep.subr.bf16.mxu1 %v16378_v43  ;;  %v6908_v20 = vadd.f32 1.0, %v17471_v63  ;;  %22185 = vst [vmem:[#allocation19_spill] sm:$0xff] %v19318_v36  ;;  %v6376_v30 = vmul.f32 0.5, %v19223_v44  ;;  %v6387_v55 = vmul.f32 0.5, %v19238_v0  ;;  %v17880_v43 = vld [vmem:[%s22028_s0 + $0x164] ss:$24 sps:$4 sm:$0xff]  }
 0x263   : > { %22183 = vst [vmem:[#allocation17_spill] sm:$0xff] %v19312_v28  ;;  %v17477_v37 = vpop.eup %17476  ;;  %v6604_v38 = vmul.f32 0.70710677, %v19301_v11  ;;  %10961 = vmatprep.subr.bf16.mxu0 %v16381_v45  ;;  %v19316_v46 = vpack.c.bf16 %v7132_v60, %v7120_v53  ;;  %17490 = verf.f32 %v6603_v50  ;;  %v4593_v58 = vpop.f32.mrb[16].mxu1  ;;  %4960 = vmatprep.mubr.bf16.mxu1 %v17880_v43  ;;  %v16382_v45 = vld [vmem:[%s18374_s8 + $0x558] ss:$48 sps:$4 sm:$0xff]  }
 0x264   : > { %v17479_v49 = vpop.eup %17478  ;;  %v6951_v29 = vadd.f32 1.0, %v17477_v37  ;;  %5977 = vmatprep.mubr.bf16.mxu0 %v17880_v43  ;;  %v19327_v63 = vpop.f32.mrb[16].mxu0  ;;  %v6388_v8 = vmul.f32 0.5, %v19244_v10  ;;  %v19331_v39 = vadd.f32 %v4593_v58, %v19120_v2  ;;  %v16390_v0 = vld [vmem:[%s18374_s8 + $0x5bc] ss:$48 sps:$4 sm:$0xff]   ;;  %v6920_v12 = vadd.f32 1.0, %v17473_v14 }
 0x265   : > { %22184 = vst [vmem:[#allocation18_spill] sm:$0xff] %v19316_v46  ;;  %17492 = verf.f32 %v6604_v38  ;;  %v4595_v44 = vpop.f32.mrb[17].mxu1  ;;  %v19334_v3 = vpop.f32.mrb[17].mxu0  ;;  %v6952_v16 = vadd.f32 1.0, %v17479_v49  ;;  %v19337_v17 = vmul.f32 0.5, %v19274_v40  ;;  %v19340_v60 = vmul.f32 0.5, %v19281_v57  ;;  %5337 = vmatpush1.bf16.msra.mxu1 %v16376_v26 }
 0x266   : > { %v17481_v53 = vpop.eup %17480  ;;  %v19343_v48 = vadd.f32 %v4595_v44, %v19125_v4  ;;  %v4597_v10 = vpop.f32.mrb[18].mxu1  ;;  %10962 = vmatpush1.bf16.msra.mxu0 %v16379_v35  ;;  %v6615_v37 = vmul.f32 0.70710677, %v19331_v39  ;;  %5338 = vmatprep.subr.bf16.mxu1 %v16384_v27  ;;  %v19349_v57 = vmul.f32 %v6908_v20, %v19186_v9  ;;  %v6931_v38 = vadd.f32 1.0, %v17475_v23  ;;  %v16393_v27 = vld [vmem:[%s18387_s7 + $0x2d4] ss:$24 sps:$4 sm:$0xff]  }
 0x267   : > { %v19345_v19 = vpop.f32.mrb[18].mxu0  ;;  %v17483_v14 = vpop.eup %17482  ;;  %v6963_v50 = vadd.f32 1.0, %v17481_v53  ;;  %10963 = vmatprep.subr.bf16.mxu0 %v16387_v42  ;;  %v7143_v35 = vmul.f32 %v6951_v29, %v6375_v24  ;;  %v19355_v44 = vadd.f32 %v4597_v10, %v19120_v2  ;;  %v16388_v53 = vld [vmem:[%s18374_s8 + $0x5b8] ss:$48 sps:$4 sm:$0xff]   ;;  %v16396_v24 = vld [vmem:[%s18374_s8 + $0x61c] ss:$48 sps:$4 sm:$0xff]   ;;  %v7144_v29 = vmul.f32 %v6952_v16, %v6376_v30 }
 0x268   : > { %v4599_v40 = vpop.f32.mrb[19].mxu1  ;;  %22186 = vst [vmem:[#allocation20_spill] sm:$0xff] %v19349_v57  ;;  %v19351_v49 = vpop.f32.mrb[19].mxu0  ;;  %v6964_v58 = vadd.f32 1.0, %v17483_v14  ;;  %v6616_v43 = vmul.f32 0.70710677, %v19343_v48  ;;  %17494 = verf.f32 %v6615_v37 }
 0x269   : > { %v17485_v26 = vpop.eup %17484  ;;  %v7155_v42 = vmul.f32 %v6963_v50, %v6387_v55  ;;  %v19361_v9 = vadd.f32 %v4599_v40, %v19125_v4  ;;  %v17881_v23 = vld [vmem:[%s22028_s0 + $0x160] ss:$24 sps:$4 sm:$0xff]   ;;  %v6559_v20 = vmul.f32 0.70710677, %v19269_v15  ;;  %v6627_v14 = vmul.f32 0.70710677, %v19355_v44  ;;  %5339 = vmatpush1.bf16.msra.mxu1 %v16382_v45 }
 0x26a   : > { %4961 = vmatmul.mubr.bf16.gmra.mrb[60].mxu1 %v17881_v23  ;;  %5978 = vmatmul.mubr.bf16.gmra.mrb[60].mxu0 %v17881_v23  ;;  %v7156_v10 = vmul.f32 %v6964_v58, %v6388_v8  ;;  %17496 = verf.f32 %v6616_v43  ;;  %v16480_v55 = vld [vmem:[%s18387_s7 + $0x304] ss:$24 sps:$4 sm:$0xff]   ;;  %v17487_v50 = vpop.eup %17486  ;;  %v6411_v37 = vmul.f32 0.5, %v19297_v25  ;;  %v6412_v40 = vmul.f32 0.5, %v19301_v11  ;;  %v16394_v25 = vld [vmem:[%s18374_s8 + $0x618] ss:$48 sps:$4 sm:$0xff]  }
 0x26b   : > { %10964 = vmatpush1.bf16.msra.mxu0 %v16385_v6  ;;  %v6628_v59 = vmul.f32 0.70710677, %v19361_v9  ;;  %10967 = vmatprep.mubr.bf16.mxu0 %v19255_v18  ;;  %v19374_v15 = vpack.c.bf16 %v7155_v42, %v7143_v35  ;;  %17498 = verf.f32 %v6627_v14  ;;  %v4603_v8 = vpop.f32.mrb[20].mxu1  ;;  %v17882_v45 = vld [vmem:[%s22028_s0 + $0x4] ss:$24 sps:$4 sm:$0xff]   ;;  %v19383_v11 = vmul.f32 %v6920_v12, %v19199_v21 }
 0x26c   : > { %5340 = vmatprep.subr.bf16.mxu1 %v16390_v0  ;;  %v17489_v30 = vpop.eup %17488  ;;  %10965 = vmatprep.subr.bf16.mxu0 %v16393_v27  ;;  %v19380_v6 = vpack.c.bf16 %v7156_v10, %v7144_v29  ;;  %v19385_v16 = vadd.f32 1.0, %v17485_v26  ;;  %v19387_v0 = vpop.f32.mrb[20].mxu0  ;;  %v6975_v35 = vadd.f32 1.0, %v17487_v50  ;;  %v14528_v58 = vadd.f32 %v4603_v8, %v19120_v2  ;;  %v16399_v27 = vld [vmem:[%s18374_s8 + $0x67c] ss:$48 sps:$4 sm:$0xff]  }
 0x26d   : > { %22187 = vst [vmem:[#allocation21_spill] sm:$0xff] %v19374_v15  ;;  %5342 = vmatprep.mubr.bf16.mxu1 %v17882_v45  ;;  %22189 = vst [vmem:[#allocation23_spill] sm:$0xff] %v19383_v11  ;;  %17500 = verf.f32 %v6628_v59  ;;  %v4605_v43 = vpop.f32.mrb[21].mxu1  ;;  %v19392_v42 = vmul.f32 %v6931_v38, %v19258_v22  ;;  %v19394_v23 = vpop.f32.mrb[21].mxu0  ;;  %v6976_v10 = vadd.f32 1.0, %v17489_v30  ;;  %v19397_v21 = vmul.f32 0.5, %v19331_v39  ;;  %5341 = vmatpush1.bf16.msra.mxu1 %v16388_v53 }
 0x26e   : > { %22188 = vst [vmem:[#allocation22_spill] sm:$0xff] %v19380_v6  ;;  %v17491_v29 = vpop.eup %17490  ;;  %v19400_v12 = vadd.f32 %v4605_v43, %v19125_v4  ;;  %v4607_v26 = vpop.f32.mrb[22].mxu1  ;;  %17502 = verf.f32 %v6559_v20  ;;  %v19405_v14 = vmul.f32 0.5, %v19343_v48  ;;  %v6639_v50 = vmul.f32 0.70710677, %v14528_v58  ;;  %5423 = vmatprep.subr.bf16.mxu1 %v16396_v24 }
 0x26f   : > { %22190 = vst [vmem:[#allocation24_spill] sm:$0xff] %v19392_v42  ;;  %10966 = vmatpush1.bf16.msra.mxu0 %v16391_v62  ;;  %v19402_v59 = vpop.f32.mrb[22].mxu0  ;;  %v17493_v22 = vpop.eup %17492  ;;  %v6987_v38 = vadd.f32 1.0, %v17491_v29  ;;  %v14579_v39 = vadd.f32 %v19181_v1, %v19151_v33  ;;  %v19413_v20 = vadd.f32 %v4607_v26, %v19120_v2  ;;  %v16397_v45 = vld [vmem:[%s18374_s8 + $0x678] ss:$48 sps:$4 sm:$0xff]   ;;  %v19418_v48 = vadd.f32 %v19211_v31, %v19129_v7 }
 0x270   : > { %v4609_v30 = vpop.f32.mrb[23].mxu1  ;;  %v19409_v8 = vpop.f32.mrb[23].mxu0  ;;  %11048 = vmatprep.subr.bf16.mxu0 %v16480_v55  ;;  %v6988_v62 = vadd.f32 1.0, %v17493_v22  ;;  %v6640_v53 = vmul.f32 0.70710677, %v19400_v12  ;;  %v7167_v1 = vmul.f32 %v6975_v35, %v19337_v17  ;;  %17504 = verf.f32 %v6639_v50 }
 0x271   : > { %v16478_v24 = vld [vmem:[%s18387_s7 + $0x300] ss:$24 sps:$4 sm:$0xff]   ;;  %v7179_v43 = vmul.f32 %v6987_v38, %v6411_v37  ;;  %v19423_v29 = vadd.f32 %v4609_v30, %v19125_v4  ;;  %v16402_v26 = vld [vmem:[%s18374_s8 + $0x6dc] ss:$48 sps:$4 sm:$0xff]   ;;  %v7168_v31 = vmul.f32 %v6976_v10, %v19340_v60  ;;  %v6651_v17 = vmul.f32 0.70710677, %v19413_v20 }
 0x272   : > { %v17883_v55 = vld [vmem:[%s22028_s0] ss:$24 sps:$4 sm:$0xff]   ;;  %10968 = vmatmul.mubr.bf16.vlgmr.msra.gmra.mrb[64].mxu0 %v19251_v13  ;;  %v16486_v22 = vld [vmem:[%s18387_s7 + $0x334] ss:$24 sps:$4 sm:$0xff]   ;;  %v7180_v18 = vmul.f32 %v6988_v62, %v6412_v40  ;;  %17506 = verf.f32 %v6640_v53  ;;  %v17495_v35 = vpop.eup %17494  ;;  %v6435_v38 = vmul.f32 0.5, %v19355_v44  ;;  %v19446_v44 = vmul.f32 0.5, %v14579_v39 }
 0x273   : > { %5343 = vmatmul.mubr.bf16.vlgmr.msra.gmra.mrb[64].mxu1 %v17883_v55  ;;  %10977 = vmatprep.mubr.bf16.mxu0 %v19316_v46  ;;  %v16484_v37 = vld [vmem:[%s18387_s7 + $0x330] ss:$24 sps:$4 sm:$0xff]   ;;  %v6652_v50 = vmul.f32 0.70710677, %v19423_v29  ;;  %v17884_v30 = vld [vmem:[%s22028_s0 + $0x34] ss:$24 sps:$4 sm:$0xff]   ;;  %v19440_v60 = vpack.c.bf16 %v7179_v43, %v7167_v1  ;;  %17508 = verf.f32 %v6651_v17 }
 0x274   : > { %5424 = vmatpush1.bf16.msra.mxu1 %v16394_v25  ;;  %5352 = vmatprep.mubr.bf16.mxu1 %v17884_v30  ;;  %v6560_v40 = vmul.f32 0.70710677, %v14579_v39  ;;  %v17497_v10 = vpop.eup %17496  ;;  %v6436_v25 = vmul.f32 0.5, %v19361_v9  ;;  %v4613_v62 = vpop.f32.mrb[24].mxu1  ;;  %v16400_v53 = vld [vmem:[%s18374_s8 + $0x6d8] ss:$48 sps:$4 sm:$0xff]   ;;  %v19444_v55 = vpack.c.bf16 %v7180_v18, %v7168_v31 }
 0x275   : > { %5425 = vmatprep.subr.bf16.mxu1 %v16399_v27  ;;  %22191 = vst [vmem:[#allocation25_spill] sm:$0xff] %v19440_v60  ;;  %v19448_v27 = vpop.f32.mrb[24].mxu0  ;;  %11049 = vmatpush1.bf16.msra.mxu0 %v16478_v24  ;;  %v6999_v46 = vadd.f32 1.0, %v17495_v35  ;;  %v19450_v13 = vmul.f32 0.5, %v14528_v58  ;;  %17510 = verf.f32 %v6652_v50  ;;  %v14532_v1 = vadd.f32 %v4613_v62, %v19120_v2  ;;  %v4615_v43 = vpop.f32.mrb[25].mxu1 }
 0x276   : > { %22192 = vst [vmem:[#allocation26_spill] sm:$0xff] %v19444_v55  ;;  %v16405_v30 = vld [vmem:[%s18374_s8 + $0x73c] ss:$48 sps:$4 sm:$0xff]   ;;  %v19454_v36 = vpop.f32.mrb[25].mxu0  ;;  %11050 = vmatprep.subr.bf16.mxu0 %v16486_v22  ;;  %v17499_v9 = vpop.eup %17498  ;;  %v7000_v17 = vadd.f32 1.0, %v17497_v10  ;;  %v19457_v18 = vadd.f32 %v4615_v43, %v19125_v4  ;;  %v19461_v24 = vmul.f32 %v19385_v16, %v19265_v32  ;;  %v19469_v22 = vmul.f32 0.5, %v19400_v12 }
 0x277   : > { %v4617_v39 = vpop.f32.mrb[26].mxu1  ;;  %v19464_v58 = vmul.f32 0.70710677, %v19418_v48  ;;  %v19466_v31 = vpop.f32.mrb[26].mxu0  ;;  %v7011_v50 = vadd.f32 1.0, %v17499_v9  ;;  %17512 = verf.f32 %v6560_v40  ;;  %v19479_v9 = vadd.f32 %v19220_v41, %v19151_v33 }
 0x278   : > { %5426 = vmatpush1.bf16.msra.mxu1 %v16397_v45  ;;  %22193 = vst [vmem:[#allocation27_spill] sm:$0xff] %v19461_v24  ;;  %v17501_v35 = vpop.eup %17500  ;;  %v6663_v10 = vmul.f32 0.70710677, %v14532_v1  ;;  %v4619_v62 = vpop.f32.mrb[27].mxu1  ;;  %v6664_v43 = vmul.f32 0.70710677, %v19457_v18  ;;  %v19475_v52 = vadd.f32 %v4617_v39, %v19120_v2 }
 0x279   : > { %5427 = vmatprep.subr.bf16.mxu1 %v16402_v26  ;;  %v19471_v45 = vpop.f32.mrb[27].mxu0  ;;  %v17503_v32 = vpop.eup %17502  ;;  %v7012_v16 = vadd.f32 1.0, %v17501_v35  ;;  %11051 = vmatpush1.bf16.msra.mxu0 %v16484_v37  ;;  %v16492_v12 = vld [vmem:[%s18387_s7 + $0x364] ss:$24 sps:$4 sm:$0xff]   ;;  %v7191_v26 = vmul.f32 %v6999_v46, %v19397_v21  ;;  %v7203_v40 = vmul.f32 %v7011_v50, %v6435_v38  ;;  %v19484_v42 = vadd.f32 %v4619_v62, %v19125_v4  ;;  %v17885_v35 = vld [vmem:[%s22028_s0 + $0x30] ss:$24 sps:$4 sm:$0xff]  }
 0x27a   : > { %17514 = verf.f32 %v6663_v10  ;;  %10978 = vmatmul.mubr.bf16.gmra.mrb[68].mxu0 %v19312_v28  ;;  %v16403_v41 = vld [vmem:[%s18374_s8 + $0x738] ss:$48 sps:$4 sm:$0xff]   ;;  %v7192_v37 = vmul.f32 %v7000_v17, %v19405_v14  ;;  %v6675_v46 = vmul.f32 0.70710677, %v19475_v52  ;;  %v16498_v21 = vld [vmem:[%s18387_s7 + $0x394] ss:$24 sps:$4 sm:$0xff]   ;;  %v17505_v38 = vpop.eup %17504  ;;  %11052 = vmatprep.subr.bf16.mxu0 %v16492_v12 }
 0x27b   : > { %5353 = vmatmul.mubr.bf16.gmra.mrb[68].mxu1 %v17885_v35  ;;  %v16490_v39 = vld [vmem:[%s18387_s7 + $0x360] ss:$24 sps:$4 sm:$0xff]   ;;  %v7204_v24 = vmul.f32 %v7012_v16, %v6436_v25  ;;  %17516 = verf.f32 %v6664_v43  ;;  %10987 = vmatprep.mubr.bf16.mxu0 %v19380_v6  ;;  %v6676_v50 = vmul.f32 0.70710677, %v19484_v42  ;;  %v17886_v10 = vld [vmem:[%s22028_s0 + $0x64] ss:$24 sps:$4 sm:$0xff]   ;;  %v19501_v14 = vpack.c.bf16 %v7203_v40, %v7191_v26 }
 0x27c   : > { %5428 = vmatpush1.bf16.msra.mxu1 %v16400_v53  ;;  %5362 = vmatprep.mubr.bf16.mxu1 %v17886_v10  ;;  %v16408_v62 = vld [vmem:[%s18374_s8 + $0x79c] ss:$48 sps:$4 sm:$0xff]   ;;  %v6943_v25 = vadd.f32 1.0, %v17503_v32  ;;  %v19504_v53 = vmul.f32 0.5, %v19418_v48  ;;  %v17507_v17 = vpop.eup %17506  ;;  %v6459_v16 = vmul.f32 0.5, %v19413_v20  ;;  %v6460_v43 = vmul.f32 0.5, %v19423_v29 }
 0x27d   : > { %5429 = vmatprep.subr.bf16.mxu1 %v16405_v30  ;;  %22194 = vst [vmem:[#allocation28_spill] sm:$0xff] %v19501_v14  ;;  %17518 = verf.f32 %v6675_v46  ;;  %v4623_v30 = vpop.f32.mrb[28].mxu1  ;;  %v16406_v35 = vld [vmem:[%s18374_s8 + $0x798] ss:$48 sps:$4 sm:$0xff]   ;;  %v19509_v6 = vpack.c.bf16 %v7204_v24, %v7192_v37  ;;  %v19511_v28 = vpop.f32.mrb[28].mxu0  ;;  %v7023_v26 = vadd.f32 1.0, %v17505_v38  ;;  %11053 = vmatpush1.bf16.msra.mxu0 %v16490_v39 }
 0x27e   : > { %v19513_v40 = vmul.f32 0.5, %v14532_v1  ;;  %17520 = verf.f32 %v6676_v50  ;;  %v19516_v48 = vadd.f32 %v4623_v30, %v19120_v2  ;;  %v4625_v32 = vpop.f32.mrb[29].mxu1  ;;  %v16411_v10 = vld [vmem:[%s18374_s8 + $0x7fc] ss:$48 sps:$4 sm:$0xff]   ;;  %v19519_v20 = vpop.f32.mrb[29].mxu0  ;;  %v7024_v46 = vadd.f32 1.0, %v17507_v17  ;;  %11054 = vmatprep.subr.bf16.mxu0 %v16498_v21 }
 0x27f   : > { %22195 = vst [vmem:[#allocation29_spill] sm:$0xff] %v19509_v6  ;;  %v17509_v29 = vpop.eup %17508  ;;  %v19522_v24 = vadd.f32 %v4625_v32, %v19125_v4  ;;  %v4627_v37 = vpop.f32.mrb[30].mxu1  ;;  %17522 = verf.f32 %v19464_v58  ;;  %v6572_v1 = vmul.f32 0.70710677, %v19479_v9  ;;  %v19529_v30 = vmul.f32 0.5, %v19457_v18 }
 0x280   : > { %5430 = vmatpush1.bf16.msra.mxu1 %v16403_v41  ;;  %v19526_v12 = vpop.f32.mrb[30].mxu0  ;;  %v17511_v38 = vpop.eup %17510  ;;  %v7035_v50 = vadd.f32 1.0, %v17509_v29  ;;  %v6687_v39 = vmul.f32 0.70710677, %v19516_v48  ;;  %v19533_v41 = vmul.f32 %v6943_v25, %v19284_v61  ;;  %v19539_v21 = vadd.f32 %v4627_v37, %v19120_v2  ;;  %v16496_v29 = vld [vmem:[%s18387_s7 + $0x390] ss:$24 sps:$4 sm:$0xff]  }
 0x281   : > { %22196 = vst [vmem:[#allocation30_spill] sm:$0xff] %v19526_v12  ;;  %v4629_v17 = vpop.f32.mrb[31].mxu1  ;;  %5431 = vmatprep.subr.bf16.mxu1 %v16408_v62  ;;  %v19535_v58 = vpop.f32.mrb[31].mxu0  ;;  %v7036_v32 = vadd.f32 1.0, %v17511_v38  ;;  %v6688_v11 = vmul.f32 0.70710677, %v19522_v24  ;;  %v19543_v18 = vadd.f32 %v19227_v47, %v19129_v7  ;;  %v7215_v62 = vmul.f32 %v7023_v26, %v19450_v13  ;;  %11055 = vmatpush1.bf16.msra.mxu0 %v16496_v29 }
 0x282   : > { %v17513_v57 = vpop.eup %17512  ;;  %v7227_v12 = vmul.f32 %v7035_v50, %v6459_v16  ;;  %17524 = verf.f32 %v6687_v39  ;;  %v19548_v61 = vadd.f32 %v4629_v17, %v19125_v4  ;;  %v17887_v25 = vld [vmem:[%s22028_s0 + $0x60] ss:$24 sps:$4 sm:$0xff]   ;;  %10988 = vmatmul.mubr.bf16.gmra.mrb[72].mxu0 %v19374_v15  ;;  %v16504_v2 = vld [vmem:[%s18387_s7 + $0x3c4] ss:$24 sps:$4 sm:$0xff]   ;;  %v7216_v47 = vmul.f32 %v7024_v46, %v19469_v22 }
 0x283   : > { %5363 = vmatmul.mubr.bf16.gmra.mrb[72].mxu1 %v17887_v25  ;;  %v7228_v37 = vmul.f32 %v7036_v32, %v6460_v43  ;;  %17526 = verf.f32 %v6688_v11  ;;  %v6699_v13 = vmul.f32 0.70710677, %v19539_v21  ;;  %10997 = vmatprep.mubr.bf16.mxu0 %v19444_v55  ;;  %v16409_v4 = vld [vmem:[%s18374_s8 + $0x7f8] ss:$48 sps:$4 sm:$0xff]   ;;  %v6483_v26 = vmul.f32 0.5, %v19475_v52 }
 0x284   : > { %5432 = vmatpush1.bf16.msra.mxu1 %v16406_v35  ;;  %v17515_v16 = vpop.eup %17514  ;;  %v6700_v38 = vmul.f32 0.70710677, %v19548_v61  ;;  %v17888_v50 = vld [vmem:[%s22028_s0 + $0x94] ss:$24 sps:$4 sm:$0xff]   ;;  %v19565_v11 = vpack.c.bf16 %v7227_v12, %v7215_v62  ;;  %17528 = verf.f32 %v6572_v1  ;;  %v6484_v35 = vmul.f32 0.5, %v19484_v42  ;;  %11056 = vmatprep.subr.bf16.mxu0 %v16504_v2 }
 0x285   : > { %5433 = vmatprep.subr.bf16.mxu1 %v16411_v10  ;;  %5372 = vmatprep.mubr.bf16.mxu1 %v17888_v50  ;;  %v16414_v22 = vld [vmem:[%s18374_s8 + $0x85c] ss:$48 sps:$4 sm:$0xff]   ;;  %v17517_v43 = vpop.eup %17516  ;;  %17530 = verf.f32 %v6699_v13  ;;  %v19568_v46 = vpack.c.bf16 %v7228_v37, %v7216_v47  ;;  %v6944_v52 = vadd.f32 1.0, %v17513_v57  ;;  %v16502_v10 = vld [vmem:[%s18387_s7 + $0x3c0] ss:$24 sps:$4 sm:$0xff]   ;;  %v7047_v39 = vadd.f32 1.0, %v17515_v16 }
 0x286   : > { %22197 = vst [vmem:[#allocation31_spill] sm:$0xff] %v19565_v11  ;;  %17532 = verf.f32 %v6700_v38  ;;  %v19572_v17 = vmul.f32 0.5, %v19479_v9  ;;  %v6583_v12 = vmul.f32 0.70710677, %v19543_v18  ;;  %v7048_v32 = vadd.f32 1.0, %v17517_v43  ;;  %11057 = vmatpush1.bf16.msra.mxu0 %v16502_v10 }
 0x287   : > { %22198 = vst [vmem:[#allocation32_spill] sm:$0xff] %v19568_v46  ;;  %v17519_v1 = vpop.eup %17518  ;;  %v16412_v62 = vld [vmem:[%s18374_s8 + $0x858] ss:$48 sps:$4 sm:$0xff]   ;;  %v16417_v42 = vld [vmem:[%s18374_s8 + $0x8bc] ss:$48 sps:$4 sm:$0xff]   ;;  %v19579_v25 = vadd.f32 %v19232_v56, %v19151_v33  ;;  %v19583_v57 = vadd.f32 %v19271_v34, %v19129_v7  ;;  %v19587_v9 = vadd.f32 %v19278_v54, %v19151_v33  ;;  %v19590_v47 = vmul.f32 0.5, %v19516_v48 }
 0x288   : > { %5434 = vmatpush1.bf16.msra.mxu1 %v16409_v4  ;;  %v17521_v29 = vpop.eup %17520  ;;  %v7059_v2 = vadd.f32 1.0, %v17519_v1  ;;  %v19593_v37 = vmul.f32 0.5, %v19522_v24  ;;  %v19597_v56 = vadd.f32 %v19286_v51, %v19129_v7  ;;  %v16415_v4 = vld [vmem:[%s18374_s8 + $0x8b8] ss:$48 sps:$4 sm:$0xff]   ;;  %v19601_v54 = vmul.f32 %v6944_v52, %v19446_v44  ;;  %v16510_v48 = vld [vmem:[%s18387_s7 + $0x3f4] ss:$24 sps:$4 sm:$0xff]  }
 0x289   : > { %5435 = vmatprep.subr.bf16.mxu1 %v16414_v22  ;;  %v17523_v34 = vpop.eup %17522  ;;  %v7060_v13 = vadd.f32 1.0, %v17521_v29  ;;  %17534 = verf.f32 %v6583_v12  ;;  %v6584_v16 = vmul.f32 0.70710677, %v19579_v25  ;;  %v7239_v24 = vmul.f32 %v7047_v39, %v19513_v40  ;;  %v17889_v51 = vld [vmem:[%s22028_s0 + $0x90] ss:$24 sps:$4 sm:$0xff]   ;;  %11058 = vmatprep.subr.bf16.mxu0 %v16510_v48 }
 0x28a   : > { %v7251_v38 = vmul.f32 %v7059_v2, %v6483_v26  ;;  %v6507_v50 = vmul.f32 0.5, %v19539_v21  ;;  %10998 = vmatmul.mubr.bf16.gmra.mrb[76].mxu0 %v19440_v60  ;;  %v6595_v44 = vmul.f32 0.70710677, %v19583_v57  ;;  %v16508_v22 = vld [vmem:[%s18387_s7 + $0x3f0] ss:$24 sps:$4 sm:$0xff]   ;;  %v7240_v43 = vmul.f32 %v7048_v32, %v19529_v30 }
 0x28b   : > { %5373 = vmatmul.mubr.bf16.gmra.mrb[76].mxu1 %v17889_v51  ;;  %v7252_v52 = vmul.f32 %v7060_v13, %v6484_v35  ;;  %11007 = vmatprep.mubr.bf16.mxu0 %v19509_v6  ;;  %17536 = verf.f32 %v6584_v16  ;;  %v6596_v40 = vmul.f32 0.70710677, %v19587_v9  ;;  %v16516_v21 = vld [vmem:[%s18387_s7 + $0x424] ss:$24 sps:$4 sm:$0xff]   ;;  %v6955_v30 = vadd.f32 1.0, %v17523_v34 }
 0x28c   : > { %5436 = vmatpush1.bf16.msra.mxu1 %v16412_v62  ;;  %v17525_v26 = vpop.eup %17524  ;;  %v17890_v10 = vld [vmem:[%s22028_s0 + $0xc4] ss:$24 sps:$4 sm:$0xff]   ;;  %v19621_v12 = vpack.c.bf16 %v7251_v38, %v7239_v24  ;;  %17538 = verf.f32 %v6595_v44  ;;  %v6607_v35 = vmul.f32 0.70710677, %v19597_v56  ;;  %v6508_v32 = vmul.f32 0.5, %v19548_v61  ;;  %11059 = vmatpush1.bf16.msra.mxu0 %v16508_v22 }
 0x28d   : > { %5437 = vmatprep.subr.bf16.mxu1 %v16417_v42  ;;  %5382 = vmatprep.mubr.bf16.mxu1 %v17890_v10  ;;  %v16420_v39 = vld [vmem:[%s18374_s8 + $0x91c] ss:$48 sps:$4 sm:$0xff]   ;;  %v17527_v1 = vpop.eup %17526  ;;  %v19625_v62 = vpack.c.bf16 %v7252_v52, %v7240_v43  ;;  %17540 = verf.f32 %v6596_v40  ;;  %v19629_v42 = vadd.f32 %v19291_v5, %v19151_v33  ;;  %v7071_v2 = vadd.f32 1.0, %v17525_v26  ;;  %v16418_v13 = vld [vmem:[%s18374_s8 + $0x918] ss:$48 sps:$4 sm:$0xff]  }
 0x28e   : > { %22199 = vst [vmem:[#allocation33_spill] sm:$0xff] %v19621_v12  ;;  %v17529_v29 = vpop.eup %17528  ;;  %v19633_v34 = vmul.f32 0.5, %v19543_v18  ;;  %v19637_v16 = vadd.f32 %v19327_v63, %v19129_v7  ;;  %v19641_v61 = vadd.f32 %v19334_v3, %v19151_v33  ;;  %v7072_v5 = vadd.f32 1.0, %v17527_v1  ;;  %v16423_v48 = vld [vmem:[%s18374_s8 + $0x97c] ss:$48 sps:$4 sm:$0xff]   ;;  %11060 = vmatprep.subr.bf16.mxu0 %v16516_v21 }
 0x28f   : > { %22200 = vst [vmem:[#allocation34_spill] sm:$0xff] %v19625_v62  ;;  %v17531_v24 = vpop.eup %17530  ;;  %17542 = verf.f32 %v6607_v35  ;;  %v6608_v38 = vmul.f32 0.70710677, %v19629_v42  ;;  %v19647_v18 = vadd.f32 %v19345_v19, %v19129_v7  ;;  %v19650_v3 = vmul.f32 %v6955_v30, %v19504_v53  ;;  %v16421_v43 = vld [vmem:[%s18374_s8 + $0x978] ss:$48 sps:$4 sm:$0xff]  }
 0x290   : > { %5438 = vmatpush1.bf16.msra.mxu1 %v16415_v4  ;;  %v17533_v63 = vpop.eup %17532  ;;  %v7083_v51 = vadd.f32 1.0, %v17531_v24  ;;  %v19653_v44 = vmul.f32 0.5, %v19579_v25  ;;  %v6619_v4 = vmul.f32 0.70710677, %v19637_v16  ;;  %v6956_v52 = vadd.f32 1.0, %v17529_v29 }
 0x291   : > { %5439 = vmatprep.subr.bf16.mxu1 %v16420_v39  ;;  %v7084_v22 = vadd.f32 1.0, %v17533_v63  ;;  %17544 = verf.f32 %v6608_v38  ;;  %v6620_v19 = vmul.f32 0.70710677, %v19641_v61  ;;  %v16514_v40 = vld [vmem:[%s18387_s7 + $0x420] ss:$24 sps:$4 sm:$0xff]   ;;  %v7263_v21 = vmul.f32 %v7071_v2, %v19590_v47 }
 0x292   : > { %v7275_v26 = vmul.f32 %v7083_v51, %v6507_v50  ;;  %v17891_v53 = vld [vmem:[%s22028_s0 + $0xc0] ss:$24 sps:$4 sm:$0xff]   ;;  %11008 = vmatmul.mubr.bf16.gmra.mrb[80].mxu0 %v19501_v14  ;;  %17546 = verf.f32 %v6619_v4  ;;  %v6631_v25 = vmul.f32 0.70710677, %v19647_v18  ;;  %v16522_v10 = vld [vmem:[%s18387_s7 + $0x454] ss:$24 sps:$4 sm:$0xff]   ;;  %v7264_v30 = vmul.f32 %v7072_v5, %v19593_v37 }
 0x293   : > { %5383 = vmatmul.mubr.bf16.gmra.mrb[80].mxu1 %v17891_v53  ;;  %v17535_v39 = vpop.eup %17534  ;;  %v7276_v35 = vmul.f32 %v7084_v22, %v6508_v32  ;;  %11017 = vmatprep.mubr.bf16.mxu0 %v19568_v46  ;;  %v16426_v47 = vld [vmem:[%s18374_s8 + $0x9dc] ss:$48 sps:$4 sm:$0xff]   ;;  %17548 = verf.f32 %v6620_v19  ;;  %v14591_v50 = vadd.f32 %v19351_v49, %v19151_v33  ;;  %v16520_v1 = vld [vmem:[%s18387_s7 + $0x450] ss:$24 sps:$4 sm:$0xff]   ;;  %v14592_v37 = vadd.f32 %v19387_v0, %v19129_v7 }
 0x294   : > { %5440 = vmatpush1.bf16.msra.mxu1 %v16418_v13  ;;  %v17892_v29 = vld [vmem:[%s22028_s0 + $0xf4] ss:$24 sps:$4 sm:$0xff]   ;;  %v19675_v2 = vpack.c.bf16 %v7275_v26, %v7263_v21  ;;  %17550 = verf.f32 %v6631_v25  ;;  %v14593_v32 = vadd.f32 %v19394_v23, %v19151_v33  ;;  %v16424_v24 = vld [vmem:[%s18374_s8 + $0x9d8] ss:$48 sps:$4 sm:$0xff]   ;;  %v19685_v5 = vmul.f32 0.5, %v19583_v57  ;;  %11061 = vmatpush1.bf16.msra.mxu0 %v16514_v40 }
 0x295   : > { %5441 = vmatprep.subr.bf16.mxu1 %v16423_v48  ;;  %5392 = vmatprep.mubr.bf16.mxu1 %v17892_v29  ;;  %v17537_v13 = vpop.eup %17536  ;;  %v19682_v49 = vpack.c.bf16 %v7276_v35, %v7264_v30  ;;  %v19688_v48 = vmul.f32 0.5, %v19587_v9  ;;  %v6632_v38 = vmul.f32 0.70710677, %v14591_v50  ;;  %v19691_v51 = vmul.f32 %v6956_v52, %v19572_v17  ;;  %v16429_v22 = vld [vmem:[%s18374_s8 + $0xa3c] ss:$48 sps:$4 sm:$0xff]  }
 0x296   : > { %22201 = vst [vmem:[#allocation35_spill] sm:$0xff] %v19675_v2  ;;  %v17539_v63 = vpop.eup %17538  ;;  %v6967_v0 = vadd.f32 1.0, %v17535_v39  ;;  %v19694_v23 = vmul.f32 0.5, %v19597_v56  ;;  %v6643_v4 = vmul.f32 0.70710677, %v14592_v37  ;;  %11062 = vmatprep.subr.bf16.mxu0 %v16522_v10  ;;  %v19698_v9 = vmul.f32 0.5, %v19629_v42 }
 0x297   : > { %22202 = vst [vmem:[#allocation36_spill] sm:$0xff] %v19682_v49  ;;  %v17541_v57 = vpop.eup %17540  ;;  %17552 = verf.f32 %v6632_v38  ;;  %v6644_v19 = vmul.f32 0.70710677, %v14593_v32  ;;  %v14594_v17 = vadd.f32 %v19402_v59, %v19129_v7  ;;  %v19703_v52 = vmul.f32 0.5, %v19637_v16  ;;  %v16526_v40 = vld [vmem:[%s18387_s7 + $0x480] ss:$24 sps:$4 sm:$0xff]  }
 0x298   : > { %5442 = vmatpush1.bf16.msra.mxu1 %v16421_v43  ;;  %v19706_v56 = vmul.f32 0.5, %v19641_v61  ;;  %17554 = verf.f32 %v6643_v4  ;;  %v14595_v43 = vadd.f32 %v19409_v8, %v19151_v33  ;;  %v16528_v21 = vld [vmem:[%s18387_s7 + $0x484] ss:$24 sps:$4 sm:$0xff]   ;;  %v16427_v26 = vld [vmem:[%s18374_s8 + $0xa38] ss:$48 sps:$4 sm:$0xff]   ;;  %v6968_v53 = vadd.f32 1.0, %v17537_v13  ;;  %11063 = vmatpush1.bf16.msra.mxu0 %v16520_v1 }
 0x299   : > { %5443 = vmatprep.subr.bf16.mxu1 %v16426_v47  ;;  %v17543_v42 = vpop.eup %17542  ;;  %v6979_v25 = vadd.f32 1.0, %v17539_v63  ;;  %v19714_v10 = vmul.f32 0.5, %v19647_v18  ;;  %17556 = verf.f32 %v6644_v19  ;;  %v17893_v59 = vld [vmem:[%s22028_s0 + $0xf0] ss:$24 sps:$4 sm:$0xff]   ;;  %v19721_v8 = vmul.f32 %v6967_v0, %v19633_v34  ;;  %v16534_v1 = vld [vmem:[%s18387_s7 + $0x4b4] ss:$24 sps:$4 sm:$0xff]   ;;  %11064 = vmatprep.subr.bf16.mxu0 %v16528_v21 }
 0x29a   : > { %11018 = vmatmul.mubr.bf16.gmra.mrb[84].mxu0 %v19565_v11  ;;  %v6980_v16 = vadd.f32 1.0, %v17541_v57  ;;  %v6655_v61 = vmul.f32 0.70710677, %v14594_v17  ;;  %v6656_v39 = vmul.f32 0.70710677, %v14595_v43  ;;  %v19724_v18 = vmul.f32 0.5, %v14591_v50 }
 0x29b   : > { %5393 = vmatmul.mubr.bf16.gmra.mrb[84].mxu1 %v17893_v59  ;;  %v17545_v30 = vpop.eup %17544  ;;  %11027 = vmatprep.mubr.bf16.mxu0 %v19625_v62  ;;  %v19726_v35 = vmul.f32 0.5, %v14592_v37  ;;  %v14596_v47 = vadd.f32 %v19448_v27, %v19129_v7  ;;  %v19732_v34 = vadd.f32 %v19454_v36, %v19151_v33  ;;  %v17894_v13 = vld [vmem:[%s22028_s0 + $0x124] ss:$24 sps:$4 sm:$0xff]   ;;  %v19739_v37 = vmul.f32 0.5, %v14593_v32  ;;  %v16430_v38 = vld [vmem:[%s18374_s8 + $0xa98] ss:$48 sps:$4 sm:$0xff]  }
 0x29c   : > { %5444 = vmatpush1.bf16.msra.mxu1 %v16424_v24  ;;  %v17547_v29 = vpop.eup %17546  ;;  %5402 = vmatprep.mubr.bf16.mxu1 %v17894_v13  ;;  %v16432_v50 = vld [vmem:[%s18374_s8 + $0xa9c] ss:$48 sps:$4 sm:$0xff]   ;;  %v6991_v24 = vadd.f32 1.0, %v17543_v42  ;;  %17558 = verf.f32 %v6655_v61  ;;  %v19743_v27 = vadd.f32 %v19466_v31, %v19129_v7  ;;  %v19747_v63 = vmul.f32 %v6968_v53, %v19653_v44  ;;  %v16433_v61 = vld [vmem:[%s18374_s8 + $0xaf8] ss:$48 sps:$4 sm:$0xff]  }
 0x29d   : > { %5445 = vmatprep.subr.bf16.mxu1 %v16429_v22  ;;  %v17549_v36 = vpop.eup %17548  ;;  %17560 = verf.f32 %v6656_v39  ;;  %v6667_v0 = vmul.f32 0.70710677, %v14596_v47  ;;  %v19751_v4 = vadd.f32 %v19471_v45, %v19151_v33  ;;  %v16435_v57 = vld [vmem:[%s18374_s8 + $0xafc] ss:$48 sps:$4 sm:$0xff]   ;;  %v19755_v22 = vmul.f32 %v6979_v25, %v19685_v5  ;;  %11065 = vmatpush1.bf16.msra.mxu0 %v16526_v40  ;;  %v16532_v45 = vld [vmem:[%s18387_s7 + $0x4b0] ss:$24 sps:$4 sm:$0xff]  }
 0x29e   : > { %v17551_v32 = vpop.eup %17550  ;;  %v19758_v31 = vmul.f32 %v6980_v16, %v19688_v48  ;;  %v19760_v19 = vmul.f32 0.5, %v14594_v17  ;;  %v6668_v44 = vmul.f32 0.70710677, %v19732_v34  ;;  %v6992_v42 = vadd.f32 1.0, %v17545_v30  ;;  %11066 = vmatprep.subr.bf16.mxu0 %v16534_v1  ;;  %v17895_v16 = vld [vmem:[%s22028_s0 + $0x120] ss:$24 sps:$4 sm:$0xff]  }
 0x29f   : > { %v7003_v53 = vadd.f32 1.0, %v17547_v29  ;;  %v19763_v59 = vmul.f32 0.5, %v14595_v43  ;;  %17562 = verf.f32 %v6667_v0  ;;  %v19767_v5 = vmul.f32 %v6991_v24, %v19694_v23  ;;  %v22203_v30 = vld [vmem:[#allocation30_spill] sm:$0xff] }
 0x2a0   : > { %5446 = vmatpush1.bf16.msra.mxu1 %v16427_v26  ;;  %v7004_v48 = vadd.f32 1.0, %v17549_v36  ;;  %17564 = verf.f32 %v6668_v44  ;;  %v6679_v17 = vmul.f32 0.70710677, %v19743_v27  ;;  %v7015_v40 = vadd.f32 1.0, %v17551_v32  ;;  %v16438_v13 = vld [vmem:[%s18374_s8 + $0xb5c] ss:$48 sps:$4 sm:$0xff]  }
 0x2a1   : > { %5447 = vmatprep.subr.bf16.mxu1 %v16432_v50  ;;  %v17553_v21 = vpop.eup %17552  ;;  %v6680_v26 = vmul.f32 0.70710677, %v19751_v4  ;;  %v19773_v43 = vadd.f32 %v19511_v28, %v19129_v7  ;;  %v19777_v25 = vadd.f32 %v19519_v20, %v19151_v33  ;;  %v19786_v1 = vadd.f32 %v22203_v30, %v19129_v7  ;;  %v16540_v20 = vld [vmem:[%s18387_s7 + $0x4e4] ss:$24 sps:$4 sm:$0xff]   ;;  %11067 = vmatpush1.bf16.msra.mxu0 %v16532_v45  ;;  %v16538_v44 = vld [vmem:[%s18387_s7 + $0x4e0] ss:$24 sps:$4 sm:$0xff]  }
 0x2a2   : > { %v17555_v23 = vpop.eup %17554  ;;  %11028 = vmatmul.mubr.bf16.gmra.mrb[88].mxu0 %v19621_v12  ;;  %v7016_v39 = vadd.f32 1.0, %v17553_v21  ;;  %17566 = verf.f32 %v6679_v17  ;;  %v19790_v28 = vadd.f32 %v19535_v58, %v19151_v33  ;;  %v19795_v24 = vmul.f32 0.5, %v14596_v47  ;;  %v17896_v7 = vld [vmem:[%s22028_s0 + $0x154] ss:$24 sps:$4 sm:$0xff]   ;;  %v16436_v21 = vld [vmem:[%s18374_s8 + $0xb58] ss:$48 sps:$4 sm:$0xff]   ;;  %11068 = vmatprep.subr.bf16.mxu0 %v16540_v20 }
 0x2a3   : > { %5403 = vmatmul.mubr.bf16.gmra.mrb[88].mxu1 %v17895_v16  ;;  %v17557_v29 = vpop.eup %17556  ;;  %11037 = vmatprep.mubr.bf16.mxu0 %v19682_v49  ;;  %v7027_v50 = vadd.f32 1.0, %v17555_v23  ;;  %17568 = verf.f32 %v6680_v26  ;;  %v6691_v36 = vmul.f32 0.70710677, %v19773_v43  ;;  %v7184_v33 = vmul.f32 %v6992_v42, %v19698_v9  ;;  %v22207_v16 = vld [vmem:[#allocation27_spill] sm:$0xff]  ;;  %v22209_v20 = vld [vmem:[#allocation24_spill] sm:$0xff] }
 0x2a4   : > { %5448 = vmatpush1.bf16.msra.mxu1 %v16430_v38  ;;  %5412 = vmatprep.mubr.bf16.mxu1 %v17896_v7  ;;  %v7028_v58 = vadd.f32 1.0, %v17557_v29  ;;  %v19803_v38 = vmul.f32 0.5, %v19732_v34  ;;  %v6692_v0 = vmul.f32 0.70710677, %v19777_v25  ;;  %v7195_v47 = vmul.f32 %v7003_v53, %v19703_v52  ;;  %v16441_v52 = vld [vmem:[%s18374_s8 + $0xbbc] ss:$48 sps:$4 sm:$0xff]  }
 0x2a5   : > { %5449 = vmatprep.subr.bf16.mxu1 %v16435_v57  ;;  %v7196_v32 = vmul.f32 %v7004_v48, %v19706_v56  ;;  %17570 = verf.f32 %v6691_v36  ;;  %v6703_v57 = vmul.f32 0.70710677, %v19786_v1  ;;  %v7207_v9 = vmul.f32 %v7015_v40, %v19714_v10  ;;  %v16546_v48 = vld [vmem:[%s18387_s7 + $0x514] ss:$24 sps:$4 sm:$0xff]   ;;  %11069 = vmatpush1.bf16.msra.mxu0 %v16538_v44  ;;  %v16544_v30 = vld [vmem:[%s18387_s7 + $0x510] ss:$24 sps:$4 sm:$0xff]  }
 0x2a6   : > { %v17559_v17 = vpop.eup %17558  ;;  %v7208_v34 = vmul.f32 %v7016_v39, %v19724_v18  ;;  %17572 = verf.f32 %v6692_v0  ;;  %v6704_v42 = vmul.f32 0.70710677, %v19790_v28  ;;  %v7219_v56 = vmul.f32 %v7027_v50, %v19726_v35  ;;  %v22204_v18 = vld [vmem:[#allocation20_spill] sm:$0xff]  ;;  %v22205_v40 = vld [vmem:[#allocation23_spill] sm:$0xff]  ;;  %v16552_v7 = vld [vmem:[%s18387_s7 + $0x544] ss:$24 sps:$4 sm:$0xff]   ;;  %11070 = vmatprep.subr.bf16.mxu0 %v16546_v48 }
 0x2a7   : > { %v17561_v26 = vpop.eup %17560  ;;  %v7220_v53 = vmul.f32 %v7028_v58, %v19739_v37  ;;  %v7039_v45 = vadd.f32 1.0, %v17559_v17  ;;  %17574 = verf.f32 %v6703_v57  ;;  %v19820_v23 = vpack.c.bf16 %v22205_v40, %v22204_v18  ;;  %v16444_v58 = vld [vmem:[%s18374_s8 + $0xc1c] ss:$48 sps:$4 sm:$0xff]   ;;  %v16556_v18 = vld [vmem:[%s18387_s7 + $0x570] ss:$24 sps:$4 sm:$0xff]  }
 0x2a8   : > { %5450 = vmatpush1.bf16.msra.mxu1 %v16433_v61  ;;  %v7040_v10 = vadd.f32 1.0, %v17561_v26  ;;  %17576 = verf.f32 %v6704_v42  ;;  %v19824_v61 = vpack.c.bf16 %v19601_v54, %v22207_v16  ;;  %v6487_v37 = vmul.f32 0.5, %v19743_v27  ;;  %v17897_v54 = vld [vmem:[%s22028_s0 + $0x150] ss:$24 sps:$4 sm:$0xff]   ;;  %v16447_v26 = vld [vmem:[%s18374_s8 + $0xc7c] ss:$48 sps:$4 sm:$0xff]  }
 0x2a9   : > { %5451 = vmatprep.subr.bf16.mxu1 %v16438_v13  ;;  %22206 = vst [vmem:[#allocation30_spill] sm:$0xff] %v19820_v23  ;;  %v17563_v39 = vpop.eup %17562  ;;  %v7231_v35 = vmul.f32 %v7039_v45, %v19760_v19  ;;  %v19831_v29 = vpack.c.bf16 %v19533_v41, %v22209_v20  ;;  %v19835_v13 = vpack.c.bf16 %v19747_v63, %v19691_v51  ;;  %v16439_v27 = vld [vmem:[%s18374_s8 + $0xbb8] ss:$48 sps:$4 sm:$0xff]   ;;  %v17898_v63 = vld [vmem:[%s22028_s0 + $0xc] ss:$24 sps:$4 sm:$0xff]  }
 0x2aa   : > { %22208 = vst [vmem:[#allocation20_spill] sm:$0xff] %v19824_v61  ;;  %v17565_v50 = vpop.eup %17564  ;;  %11038 = vmatmul.mubr.bf16.gmra.mrb[92].mxu0 %v19675_v2  ;;  %v7232_v19 = vmul.f32 %v7040_v10, %v19763_v59  ;;  %v7051_v36 = vadd.f32 1.0, %v17563_v39  ;;  %v19846_v41 = vpack.c.bf16 %v19721_v8, %v19650_v3  ;;  %v19849_v51 = vpack.c.bf16 %v7184_v33, %v19758_v31  ;;  %v16445_v39 = vld [vmem:[%s18374_s8 + $0xc78] ss:$48 sps:$4 sm:$0xff]   ;;  %v16450_v20 = vld [vmem:[%s18374_s8 + $0xcdc] ss:$48 sps:$4 sm:$0xff]  }
 0x2ab   : > { %22210 = vst [vmem:[#allocation23_spill] sm:$0xff] %v19831_v29  ;;  %22211 = vst [vmem:[#allocation27_spill] sm:$0xff] %v19835_v13  ;;  %5413 = vmatmul.mubr.bf16.gmra.mrb[92].mxu1 %v17897_v54  ;;  %v7052_v0 = vadd.f32 1.0, %v17565_v50  ;;  %v19857_v59 = vpack.c.bf16 %v19767_v5, %v19755_v22  ;;  %v19859_v57 = vpack.c.bf16 %v7208_v34, %v7196_v32  ;;  %v6488_v31 = vmul.f32 0.5, %v19751_v4  ;;  %v16550_v32 = vld [vmem:[%s18387_s7 + $0x540] ss:$24 sps:$4 sm:$0xff]  }
 0x2ac   : > { %22212 = vst [vmem:[#allocation24_spill] sm:$0xff] %v19846_v41  ;;  %22213 = vst [vmem:[#allocation37_spill] sm:$0xff] %v19849_v51  ;;  %5452 = vmatpush1.bf16.msra.mxu1 %v16436_v21  ;;  %5455 = vmatprep.mubr.bf16.mxu1 %v17898_v63  ;;  %v19861_v3 = vpack.c.bf16 %v7207_v9, %v7195_v47  ;;  %v17567_v8 = vpop.eup %17566  ;;  %v19864_v33 = vpack.c.bf16 %v7232_v19, %v7220_v53  ;;  %v16442_v21 = vld [vmem:[%s18374_s8 + $0xc18] ss:$48 sps:$4 sm:$0xff]   ;;  %v6499_v34 = vmul.f32 0.5, %v19773_v43 }
 0x2ad   : > { %22214 = vst [vmem:[#allocation38_spill] sm:$0xff] %v19857_v59  ;;  %22215 = vst [vmem:[#allocation39_spill] sm:$0xff] %v19859_v57  ;;  %5453 = vmatprep.subr.bf16.mxu1 %v16441_v52  ;;  %v19866_v44 = vpack.c.bf16 %v7231_v35, %v7219_v56  ;;  %v17569_v17 = vpop.eup %17568  ;;  %v7243_v22 = vmul.f32 %v7051_v36, %v19795_v24  ;;  %v7063_v5 = vadd.f32 1.0, %v17567_v8  ;;  %11071 = vmatpush1.bf16.msra.mxu0 %v16544_v30  ;;  %v16558_v4 = vld [vmem:[%s18387_s7 + $0x574] ss:$24 sps:$4 sm:$0xff]  }
 0x2ae   : > { %22216 = vst [vmem:[#allocation40_spill] sm:$0xff] %v19861_v3  ;;  %22217 = vst [vmem:[#allocation41_spill] sm:$0xff] %v19864_v33  ;;  %v7244_v47 = vmul.f32 %v7052_v0, %v19803_v38  ;;  %v7064_v9 = vadd.f32 1.0, %v17569_v17  ;;  %11072 = vmatprep.subr.bf16.mxu0 %v16552_v7  ;;  %v6500_v56 = vmul.f32 0.5, %v19777_v25  ;;  %v6511_v38 = vmul.f32 0.5, %v19786_v1 }
 0x2af   : > { %22218 = vst [vmem:[#allocation42_spill] sm:$0xff] %v19866_v44  ;;  %v17571_v42 = vpop.eup %17570  ;;  %v7255_v52 = vmul.f32 %v7063_v5, %v6487_v37  ;;  %v6512_v43 = vmul.f32 0.5, %v19790_v28  ;;  %v17899_v25 = vld [vmem:[%s22028_s0 + $0x8] ss:$24 sps:$4 sm:$0xff]   ;;  %v16564_v37 = vld [vmem:[%s18387_s7 + $0x5a4] ss:$24 sps:$4 sm:$0xff]  }
 0x2b0   : > { %5454 = vmatpush1.bf16.msra.mxu1 %v16439_v27  ;;  %v17573_v53 = vpop.eup %17572  ;;  %v7256_v24 = vmul.f32 %v7064_v9, %v6488_v31  ;;  %v7075_v45 = vadd.f32 1.0, %v17571_v42  ;;  %v17900_v30 = vld [vmem:[%s22028_s0 + $0x3c] ss:$24 sps:$4 sm:$0xff]   ;;  %v16562_v36 = vld [vmem:[%s18387_s7 + $0x5a0] ss:$24 sps:$4 sm:$0xff]  }
 0x2b1   : > { %5536 = vmatprep.subr.bf16.mxu1 %v16444_v58  ;;  %v17575_v48 = vpop.eup %17574  ;;  %v7076_v10 = vadd.f32 1.0, %v17573_v53  ;;  %11073 = vmatpush1.bf16.msra.mxu0 %v16550_v32  ;;  %v19879_v40 = vpack.c.bf16 %v7255_v52, %v7243_v22  ;;  %v16448_v7 = vld [vmem:[%s18374_s8 + $0xcd8] ss:$48 sps:$4 sm:$0xff]   ;;  %v16570_v63 = vld [vmem:[%s18387_s7 + $0x5d4] ss:$24 sps:$4 sm:$0xff]  }
 0x2b2   : > { %v17577_v16 = vpop.eup %17576  ;;  %v7267_v35 = vmul.f32 %v7075_v45, %v6499_v34  ;;  %v7087_v1 = vadd.f32 1.0, %v17575_v48  ;;  %11074 = vmatprep.subr.bf16.mxu0 %v16558_v4  ;;  %v19886_v28 = vpack.c.bf16 %v7256_v24, %v7244_v47  ;;  %v16453_v0 = vld [vmem:[%s18374_s8 + $0xd3c] ss:$48 sps:$4 sm:$0xff]   ;;  %v16568_v31 = vld [vmem:[%s18387_s7 + $0x5d0] ss:$24 sps:$4 sm:$0xff]  }
 0x2b3   : > { %22219 = vst [vmem:[#allocation43_spill] sm:$0xff] %v19879_v40  ;;  %5456 = vmatmul.mubr.bf16.vlgmr.msra.gmra.mrb[64].mxu1 %v17899_v25  ;;  %v7268_v50 = vmul.f32 %v7076_v10, %v6500_v56  ;;  %v7088_v54 = vadd.f32 1.0, %v17577_v16  ;;  %v17901_v17 = vld [vmem:[%s22028_s0 + $0x38] ss:$24 sps:$4 sm:$0xff]   ;;  %v16576_v22 = vld [vmem:[%s18387_s7 + $0x604] ss:$24 sps:$4 sm:$0xff]  }
 0x2b4   : > { %22220 = vst [vmem:[#allocation44_spill] sm:$0xff] %v19886_v28  ;;  %5537 = vmatpush1.bf16.msra.mxu1 %v16442_v21  ;;  %5465 = vmatprep.mubr.bf16.mxu1 %v17900_v30  ;;  %v7279_v27 = vmul.f32 %v7087_v1, %v6511_v38  ;;  %v16451_v21 = vld [vmem:[%s18374_s8 + $0xd38] ss:$48 sps:$4 sm:$0xff]   ;;  %v17902_v5 = vld [vmem:[%s22028_s0 + $0x6c] ss:$24 sps:$4 sm:$0xff]  }
 0x2b5   : > { %5538 = vmatprep.subr.bf16.mxu1 %v16447_v26  ;;  %v7280_v19 = vmul.f32 %v7088_v54, %v6512_v43  ;;  %11075 = vmatpush1.bf16.msra.mxu0 %v16556_v18  ;;  %v16456_v32 = vld [vmem:[%s18374_s8 + $0xd9c] ss:$48 sps:$4 sm:$0xff]   ;;  %v16454_v47 = vld [vmem:[%s18374_s8 + $0xd98] ss:$48 sps:$4 sm:$0xff]  }
 0x2b6   : > { %11076 = vmatprep.subr.bf16.mxu0 %v16564_v37  ;;  %v19895_v58 = vpack.c.bf16 %v7279_v27, %v7267_v35  ;;  %v16459_v9 = vld [vmem:[%s18374_s8 + $0xdfc] ss:$48 sps:$4 sm:$0xff]   ;;  %v17903_v34 = vld [vmem:[%s22028_s0 + $0x68] ss:$24 sps:$4 sm:$0xff]   ;;  %v17905_v53 = vld [vmem:[%s22028_s0 + $0x98] ss:$24 sps:$4 sm:$0xff]  }
 0x2b7   : > { %v19898_v8 = vpack.c.bf16 %v7280_v19, %v7268_v50  ;;  %v16457_v4 = vld [vmem:[%s18374_s8 + $0xdf8] ss:$48 sps:$4 sm:$0xff]   ;;  %v17904_v42 = vld [vmem:[%s22028_s0 + $0x9c] ss:$24 sps:$4 sm:$0xff]   ;;  %v17906_v45 = vld [vmem:[%s22028_s0 + $0xcc] ss:$24 sps:$4 sm:$0xff]  }
 0x2b8   : > { %22221 = vst [vmem:[#allocation45_spill] sm:$0xff] %v19895_v58  ;;  %5539 = vmatpush1.bf16.msra.mxu1 %v16445_v39  ;;  %v16462_v26 = vld [vmem:[%s18374_s8 + $0xe5c] ss:$48 sps:$4 sm:$0xff]   ;;  %v16460_v52 = vld [vmem:[%s18374_s8 + $0xe58] ss:$48 sps:$4 sm:$0xff]  }
 0x2b9   : > { %22222 = vst [vmem:[#allocation46_spill] sm:$0xff] %v19898_v8  ;;  %5540 = vmatprep.subr.bf16.mxu1 %v16450_v20  ;;  %11077 = vmatpush1.bf16.msra.mxu0 %v16562_v36  ;;  %v16465_v56 = vld [vmem:[%s18374_s8 + $0xebc] ss:$48 sps:$4 sm:$0xff]   ;;  %v16463_v24 = vld [vmem:[%s18374_s8 + $0xeb8] ss:$48 sps:$4 sm:$0xff]  }
 0x2ba   : > { %11078 = vmatprep.subr.bf16.mxu0 %v16570_v63  ;;  %v16468_v38 = vld [vmem:[%s18374_s8 + $0xf1c] ss:$48 sps:$4 sm:$0xff]   ;;  %v16466_v48 = vld [vmem:[%s18374_s8 + $0xf18] ss:$48 sps:$4 sm:$0xff]  }
 0x2bb   : > { %5466 = vmatmul.mubr.bf16.gmra.mrb[68].mxu1 %v17901_v17  ;;  %v16471_v10 = vld [vmem:[%s18374_s8 + $0xf7c] ss:$48 sps:$4 sm:$0xff]   ;;  %v17907_v43 = vld [vmem:[%s22028_s0 + $0xc8] ss:$24 sps:$4 sm:$0xff]   ;;  %v17909_v1 = vld [vmem:[%s22028_s0 + $0xf8] ss:$24 sps:$4 sm:$0xff]  }
 0x2bc   : > { %5541 = vmatpush1.bf16.msra.mxu1 %v16448_v7  ;;  %5475 = vmatprep.mubr.bf16.mxu1 %v17902_v5  ;;  %v16469_v18 = vld [vmem:[%s18374_s8 + $0xf78] ss:$48 sps:$4 sm:$0xff]   ;;  %v17908_v16 = vld [vmem:[%s22028_s0 + $0xfc] ss:$24 sps:$4 sm:$0xff]   ;;  %v17910_v30 = vld [vmem:[%s22028_s0 + $0x12c] ss:$24 sps:$4 sm:$0xff]  }
 0x2bd   : > { %5542 = vmatprep.subr.bf16.mxu1 %v16453_v0  ;;  %11079 = vmatpush1.bf16.msra.mxu0 %v16568_v31  ;;  %v16474_v25 = vld [vmem:[%s18374_s8 + $0xfdc] ss:$48 sps:$4 sm:$0xff]   ;;  %v16472_v39 = vld [vmem:[%s18374_s8 + $0xfd8] ss:$48 sps:$4 sm:$0xff]  }
 0x2be   : > { %11161 = vmatprep.subr.bf16.mxu0 %v16576_v22  ;;  %v16477_v35 = vld [vmem:[%s18374_s8 + $0x103c] ss:$48 sps:$4 sm:$0xff]   ;;  %v16475_v37 = vld [vmem:[%s18374_s8 + $0x1038] ss:$48 sps:$4 sm:$0xff]  }
 0x2bf   : > { %v16483_v20 = vld [vmem:[%s18374_s8 + $0x109c] ss:$48 sps:$4 sm:$0xff]   ;;  %v16481_v50 = vld [vmem:[%s18374_s8 + $0x1098] ss:$48 sps:$4 sm:$0xff]  }
 0x2c0   : > { %5543 = vmatpush1.bf16.msra.mxu1 %v16451_v21  ;;  %v16489_v54 = vld [vmem:[%s18374_s8 + $0x10fc] ss:$48 sps:$4 sm:$0xff]   ;;  %v17911_v27 = vld [vmem:[%s22028_s0 + $0x128] ss:$24 sps:$4 sm:$0xff]   ;;  %v17913_v31 = vld [vmem:[%s22028_s0 + $0x158] ss:$24 sps:$4 sm:$0xff]  }
 0x2c1   : > { %5544 = vmatprep.subr.bf16.mxu1 %v16456_v32  ;;  %v16487_v19 = vld [vmem:[%s18374_s8 + $0x10f8] ss:$48 sps:$4 sm:$0xff]   ;;  %v17912_v36 = vld [vmem:[%s22028_s0 + $0x15c] ss:$24 sps:$4 sm:$0xff]  }
 0x2c2   : > { %v16495_v7 = vld [vmem:[%s18374_s8 + $0x115c] ss:$48 sps:$4 sm:$0xff]   ;;  %v16493_v63 = vld [vmem:[%s18374_s8 + $0x1158] ss:$48 sps:$4 sm:$0xff]  }
 0x2c3   : > { %5476 = vmatmul.mubr.bf16.gmra.mrb[72].mxu1 %v17903_v34  ;;  %v16501_v0 = vld [vmem:[%s18374_s8 + $0x11bc] ss:$48 sps:$4 sm:$0xff]   ;;  %v16499_v17 = vld [vmem:[%s18374_s8 + $0x11b8] ss:$48 sps:$4 sm:$0xff]  }
 0x2c4   : > { %5545 = vmatpush1.bf16.msra.mxu1 %v16454_v47  ;;  %5485 = vmatprep.mubr.bf16.mxu1 %v17904_v42  ;;  %v17914_v21 = vld [vmem:[%s22028_s0 + $0x14] ss:$24 sps:$4 sm:$0xff]   ;;  %v16505_v5 = vld [vmem:[%s18374_s8 + $0x28] ss:$48 sps:$4 sm:$0xff]   ;;  %v17916_v34 = vld [vmem:[%s22028_s0 + $0x44] ss:$24 sps:$4 sm:$0xff]  }
 0x2c5   : > { %5546 = vmatprep.subr.bf16.mxu1 %v16459_v9  ;;  %v16507_v22 = vld [vmem:[%s18374_s8 + $0x2c] ss:$48 sps:$4 sm:$0xff]   ;;  %v17915_v47 = vld [vmem:[%s22028_s0 + $0x10] ss:$24 sps:$4 sm:$0xff]  }
 0x2c6   : > { %v16513_v32 = vld [vmem:[%s18374_s8 + $0x8c] ss:$48 sps:$4 sm:$0xff]   ;;  %v16511_v9 = vld [vmem:[%s18374_s8 + $0x88] ss:$48 sps:$4 sm:$0xff]  }
 0x2c7   : > { %v16517_v42 = vld [vmem:[%s18374_s8 + $0xe8] ss:$48 sps:$4 sm:$0xff]  }
 0x2c8   : > { %5547 = vmatpush1.bf16.msra.mxu1 %v16457_v4  ;;  %v16519_v4 = vld [vmem:[%s18374_s8 + $0xec] ss:$48 sps:$4 sm:$0xff]   ;;  %v16577_v55 = vld [vmem:[%s18374_s8 + $0x4a8] ss:$48 sps:$4 sm:$0xff]  }
 0x2c9   : > { %5548 = vmatprep.subr.bf16.mxu1 %v16462_v26  ;;  %v16525_v26 = vld [vmem:[%s18374_s8 + $0x14c] ss:$48 sps:$4 sm:$0xff]   ;;  %v16613_v51 = vld [vmem:[%s18374_s8 + $0x6e8] ss:$48 sps:$4 sm:$0xff]  }
 0x2cb   : > { %5486 = vmatmul.mubr.bf16.gmra.mrb[76].mxu1 %v17905_v53  ;;  %v17918_v53 = vld [vmem:[%s22028_s0 + $0x74] ss:$24 sps:$4 sm:$0xff]  }
 0x2cc   : > { %5549 = vmatpush1.bf16.msra.mxu1 %v16460_v52  ;;  %5495 = vmatprep.mubr.bf16.mxu1 %v17906_v45  ;;  %v17917_v52 = vld [vmem:[%s22028_s0 + $0x40] ss:$24 sps:$4 sm:$0xff]  }
 0x2cd   : > { %5550 = vmatprep.subr.bf16.mxu1 %v16465_v56  ;;  %v16523_v56 = vld [vmem:[%s18374_s8 + $0x148] ss:$48 sps:$4 sm:$0xff]  }
 0x2ce   : > { %v16529_v45 = vld [vmem:[%s18374_s8 + $0x1a8] ss:$48 sps:$4 sm:$0xff]  }
 0x2d0   : > { %5551 = vmatpush1.bf16.msra.mxu1 %v16463_v24  ;;  %v16531_v24 = vld [vmem:[%s18374_s8 + $0x1ac] ss:$48 sps:$4 sm:$0xff]  }
 0x2d1   : > { %5552 = vmatprep.subr.bf16.mxu1 %v16468_v38  ;;  %v22223_v38 = vld [vmem:[#allocation14_spill] sm:$0xff] }
 0x2d3   : > { %5496 = vmatmul.mubr.bf16.gmra.mrb[80].mxu1 %v17907_v43  ;;  %v1110_v43 = vld [vmem:[%s18381_s27 + $0x8] sm:$0xf] }
 0x2d4   : > { %5553 = vmatpush1.bf16.msra.mxu1 %v16466_v48  ;;  %5505 = vmatprep.mubr.bf16.mxu1 %v17908_v16  ;;  %v22052_v48 = vsub.s32 2, %v22223_v38  ;;  %v17919_v16 = vld [vmem:[%s22028_s0 + $0x70] ss:$24 sps:$4 sm:$0xff]  }
 0x2d5   : > { %5554 = vmatprep.subr.bf16.mxu1 %v16471_v10  ;;  %v16537_v10 = vld [vmem:[%s18374_s8 + $0x20c] ss:$48 sps:$4 sm:$0xff]  }
 0x2d8   : > { %5555 = vmatpush1.bf16.msra.mxu1 %v16469_v18  ;;  %v22051_v18 = vsub.s32 3, %v22223_v38 }
 0x2d9   : > { %5556 = vmatprep.subr.bf16.mxu1 %v16474_v25  ;;  %v17920_v25 = vld [vmem:[%s18381_s27] sm:$0xff] }
 0x2db   : > { %5506 = vmatmul.mubr.bf16.gmra.mrb[84].mxu1 %v17909_v1  ;;  %v16535_v1 = vld [vmem:[%s18374_s8 + $0x208] ss:$48 sps:$4 sm:$0xff]  }
 0x2dc   : > { %5557 = vmatpush1.bf16.msra.mxu1 %v16472_v39  ;;  %5515 = vmatprep.mubr.bf16.mxu1 %v17910_v30  ;;  %v20001_v39 = vrot.slane %v17920_v25, %v22052_v48  ;;  %v16543_v30 = vld [vmem:[%s18374_s8 + $0x26c] ss:$48 sps:$4 sm:$0xff]   ;;  %v16565_v48 = vld [vmem:[%s18374_s8 + $0x3e8] ss:$48 sps:$4 sm:$0xff]  }
 0x2dd   : > { %5558 = vmatprep.subr.bf16.mxu1 %v16477_v35  ;;  %v20005_v35 = vrot.slane %v17920_v25, %v22051_v18 }
 0x2e0   : > { %5559 = vmatpush1.bf16.msra.mxu1 %v16475_v37  ;;  %v17921_v37 = vld [vmem:[%s22028_s0 + $0xa4] ss:$24 sps:$4 sm:$0xff]  }
 0x2e1   : > { %5560 = vmatprep.subr.bf16.mxu1 %v16483_v20  ;;  %v22224_v20 = vsub.s32 0, %v22223_v38 }
 0x2e3   : > { %5516 = vmatmul.mubr.bf16.gmra.mrb[88].mxu1 %v17911_v27  ;;  %v16541_v27 = vld [vmem:[%s18374_s8 + $0x268] ss:$48 sps:$4 sm:$0xff]  }
 0x2e4   : > { %5561 = vmatpush1.bf16.msra.mxu1 %v16481_v50  ;;  %5525 = vmatprep.mubr.bf16.mxu1 %v17912_v36  ;;  %v20014_v50 = vrot.slane %v1110_v43, %v22224_v20 }
 0x2e5   : > { %5562 = vmatprep.subr.bf16.mxu1 %v16489_v54 }
 0x2e8   : > { %5563 = vmatpush1.bf16.msra.mxu1 %v16487_v19 }
 0x2e9   : > { %5564 = vmatprep.subr.bf16.mxu1 %v16495_v7 }
 0x2eb   : > { %5526 = vmatmul.mubr.bf16.gmra.mrb[92].mxu1 %v17913_v31 }
 0x2ec   : > { %5565 = vmatpush1.bf16.msra.mxu1 %v16493_v63  ;;  %5568 = vmatprep.mubr.bf16.mxu1 %v17914_v21 }
 0x2ed   : > { %5566 = vmatprep.subr.bf16.mxu1 %v16501_v0 }
 0x2f0   : > { %5567 = vmatpush1.bf16.msra.mxu1 %v16499_v17 }
 0x2f1   : > { %5988 = vmatprep.subr.bf16.mxu1 %v16507_v22 }
 0x2f3   : > { %5569 = vmatmul.mubr.bf16.vlgmr.msra.gmra.mrb[64].mxu1 %v17915_v47  ;;  %v16549_v47 = vld [vmem:[%s18374_s8 + $0x2cc] ss:$48 sps:$4 sm:$0xff]  }
 0x2f4   : > { %5989 = vmatpush1.bf16.msra.mxu1 %v16505_v5  ;;  %5578 = vmatprep.mubr.bf16.mxu1 %v17916_v34 }
 0x2f5   : > { %5990 = vmatprep.subr.bf16.mxu1 %v16513_v32 }
 0x2f8   : > { %5991 = vmatpush1.bf16.msra.mxu1 %v16511_v9 }
 0x2f9   : > { %5992 = vmatprep.subr.bf16.mxu1 %v16519_v4 }
 0x2fb   : > { %5579 = vmatmul.mubr.bf16.gmra.mrb[68].mxu1 %v17917_v52  ;;  %v16547_v52 = vld [vmem:[%s18374_s8 + $0x2c8] ss:$48 sps:$4 sm:$0xff]  }
 0x2fc   : > { %5993 = vmatpush1.bf16.msra.mxu1 %v16517_v42  ;;  %5588 = vmatprep.mubr.bf16.mxu1 %v17918_v53 }
 0x2fd   : > { %5994 = vmatprep.subr.bf16.mxu1 %v16525_v26  ;;  %v17922_v26 = vld [vmem:[%s22028_s0 + $0xa0] ss:$24 sps:$4 sm:$0xff]  }
 0x300   : > { %5995 = vmatpush1.bf16.msra.mxu1 %v16523_v56  ;;  %v22225_v56 = vsub.s32 1, %v22223_v38 }
 0x301   : > { %5996 = vmatprep.subr.bf16.mxu1 %v16531_v24 }
 0x302   : > { %v20029_v53 = vrot.slane %v1110_v43, %v22225_v56 }
 0x303   : > { %5589 = vmatmul.mubr.bf16.gmra.mrb[72].mxu1 %v17919_v16  ;;  %v4892_v54 = vpop.f32.mrb[32].mxu1  ;;  %v16555_v16 = vld [vmem:[%s18374_s8 + $0x32c] ss:$48 sps:$4 sm:$0xff]  }
 0x304   : > { %5997 = vmatpush1.bf16.msra.mxu1 %v16529_v45  ;;  %5598 = vmatprep.mubr.bf16.mxu1 %v17921_v37  ;;  %v5909_v19 = vpop.f32.mrb[32].mxu0  ;;  %v14540_v36 = vadd.f32 %v4892_v54, %v20001_v39  ;;  %v4894_v7 = vpop.f32.mrb[33].mxu1  ;;  %v17923_v45 = vld [vmem:[%s22028_s0 + $0xd4] ss:$24 sps:$4 sm:$0xff]   ;;  %v16553_v37 = vld [vmem:[%s18374_s8 + $0x328] ss:$48 sps:$4 sm:$0xff]  }
 0x305   : > { %5998 = vmatprep.subr.bf16.mxu1 %v16537_v10  ;;  %v5911_v63 = vpop.f32.mrb[33].mxu0  ;;  %v14541_v0 = vadd.f32 %v4894_v7, %v20005_v35  ;;  %v4896_v31 = vpop.f32.mrb[34].mxu1  ;;  %v14636_v17 = vadd.f32 %v5909_v19, %v20014_v50  ;;  %v16561_v54 = vld [vmem:[%s18374_s8 + $0x38c] ss:$48 sps:$4 sm:$0xff]  }
 0x306   : > { %v5913_v21 = vpop.f32.mrb[34].mxu0  ;;  %v6521_v22 = vmul.f32 0.70710677, %v14540_v36  ;;  %v14542_v5 = vadd.f32 %v4896_v31, %v20001_v39  ;;  %v4898_v32 = vpop.f32.mrb[35].mxu1  ;;  %v20040_v31 = vmul.f32 0.5, %v14540_v36 }
 0x307   : > { %v5915_v9 = vpop.f32.mrb[35].mxu0  ;;  %v6522_v34 = vmul.f32 0.70710677, %v14541_v0  ;;  %v14543_v4 = vadd.f32 %v4898_v32, %v20005_v35  ;;  %v6527_v10 = vmul.f32 0.70710677, %v14636_v17  ;;  %v14638_v25 = vadd.f32 %v5913_v21, %v20014_v50 }
 0x308   : > { %5999 = vmatpush1.bf16.msra.mxu1 %v16535_v1  ;;  %17578 = verf.f32 %v6521_v22  ;;  %v6533_v42 = vmul.f32 0.70710677, %v14542_v5  ;;  %v20043_v21 = vmul.f32 0.5, %v14636_v17  ;;  %v14639_v36 = vadd.f32 %v5915_v9, %v20029_v53 }
 0x309   : > { %6000 = vmatprep.subr.bf16.mxu1 %v16543_v30  ;;  %17580 = verf.f32 %v6522_v34  ;;  %v6534_v24 = vmul.f32 0.70710677, %v14543_v4  ;;  %v6539_v19 = vmul.f32 0.70710677, %v14638_v25  ;;  %v20047_v34 = vmul.f32 0.5, %v14541_v0 }
 0x30a   : > { %17582 = verf.f32 %v6533_v42 }
 0x30b   : > { %5599 = vmatmul.mubr.bf16.gmra.mrb[76].mxu1 %v17922_v26  ;;  %17584 = verf.f32 %v6534_v24  ;;  %v4902_v1 = vpop.f32.mrb[36].mxu1  ;;  %v6341_v24 = vmul.f32 0.5, %v14542_v5  ;;  %v6342_v5 = vmul.f32 0.5, %v14543_v4  ;;  %v6540_v4 = vmul.f32 0.70710677, %v14639_v36 }
 0x30c   : > { %6001 = vmatpush1.bf16.msra.mxu1 %v16541_v27  ;;  %5608 = vmatprep.mubr.bf16.mxu1 %v17923_v45  ;;  %v5919_v43 = vpop.f32.mrb[36].mxu0  ;;  %v14544_v30 = vadd.f32 %v4902_v1, %v20001_v39  ;;  %v4904_v20 = vpop.f32.mrb[37].mxu1  ;;  %v14637_v27 = vadd.f32 %v5911_v63, %v20029_v53  ;;  %17586 = verf.f32 %v6527_v10  ;;  %v17924_v10 = vld [vmem:[%s22028_s0 + $0xd0] ss:$24 sps:$4 sm:$0xff]   ;;  %v16567_v1 = vld [vmem:[%s18374_s8 + $0x3ec] ss:$48 sps:$4 sm:$0xff]  }
 0x30d   : > { %6002 = vmatprep.subr.bf16.mxu1 %v16549_v47  ;;  %v5921_v7 = vpop.f32.mrb[37].mxu0  ;;  %v14545_v22 = vadd.f32 %v4904_v20, %v20005_v35  ;;  %v4906_v32 = vpop.f32.mrb[38].mxu1  ;;  %17588 = verf.f32 %v6539_v19  ;;  %v20064_v9 = vadd.f32 %v5919_v43, %v20014_v50  ;;  %v17925_v19 = vld [vmem:[%s22028_s0 + $0x104] ss:$24 sps:$4 sm:$0xff]   ;;  %v20072_v43 = vmul.f32 0.5, %v14639_v36 }
 0x30e   : > { %v20045_v47 = vpop.f32.mrb[38].mxu0  ;;  %v6545_v42 = vmul.f32 0.70710677, %v14544_v30  ;;  %v14546_v63 = vadd.f32 %v4906_v32, %v20001_v39  ;;  %v4908_v26 = vpop.f32.mrb[39].mxu1  ;;  %v6528_v32 = vmul.f32 0.70710677, %v14637_v27 }
 0x30f   : > { %v20051_v56 = vpop.f32.mrb[39].mxu0  ;;  %v6546_v45 = vmul.f32 0.70710677, %v14545_v22  ;;  %v20054_v17 = vadd.f32 %v4908_v26, %v20005_v35  ;;  %v20070_v26 = vmul.f32 0.5, %v14638_v25  ;;  %v20074_v18 = vmul.f32 0.5, %v14544_v30 }
 0x310   : > { %6003 = vmatpush1.bf16.msra.mxu1 %v16547_v52  ;;  %v16559_v52 = vld [vmem:[%s18374_s8 + $0x388] ss:$48 sps:$4 sm:$0xff]   ;;  %17590 = verf.f32 %v6545_v42  ;;  %v6557_v0 = vmul.f32 0.70710677, %v14546_v63  ;;  %v6551_v2 = vmul.f32 0.70710677, %v20064_v9 }
 0x311   : > { %6004 = vmatprep.subr.bf16.mxu1 %v16555_v16  ;;  %v20061_v16 = vmul.f32 0.5, %v14637_v27  ;;  %17592 = verf.f32 %v6546_v45  ;;  %v6558_v20 = vmul.f32 0.70710677, %v20054_v17  ;;  %v16573_v36 = vld [vmem:[%s18374_s8 + $0x44c] ss:$48 sps:$4 sm:$0xff]   ;;  %v20096_v11 = vmul.f32 0.5, %v14546_v63 }
 0x312   : > { %v17579_v42 = vpop.eup %17578  ;;  %17594 = verf.f32 %v6557_v0  ;;  %v16571_v63 = vld [vmem:[%s18374_s8 + $0x448] ss:$48 sps:$4 sm:$0xff]  }
 0x313   : > { %5609 = vmatmul.mubr.bf16.gmra.mrb[80].mxu1 %v17924_v10  ;;  %v17581_v45 = vpop.eup %17580  ;;  %v6905_v10 = vadd.f32 1.0, %v17579_v42  ;;  %17596 = verf.f32 %v6558_v20 }
 0x314   : > { %6005 = vmatpush1.bf16.msra.mxu1 %v16553_v37  ;;  %5618 = vmatprep.mubr.bf16.mxu1 %v17925_v19  ;;  %v4912_v37 = vpop.f32.mrb[40].mxu1  ;;  %v20078_v19 = vpop.f32.mrb[40].mxu0  ;;  %v6906_v0 = vadd.f32 1.0, %v17581_v45  ;;  %17598 = verf.f32 %v6528_v32  ;;  %v20092_v45 = vadd.f32 %v5921_v7, %v20029_v53 }
 0x315   : > { %6006 = vmatprep.subr.bf16.mxu1 %v16561_v54  ;;  %v17583_v27 = vpop.eup %17582  ;;  %v20080_v54 = vmul.f32 0.5, %v14545_v22  ;;  %v20083_v25 = vadd.f32 %v4912_v37, %v20001_v39  ;;  %v4914_v49 = vpop.f32.mrb[41].mxu1  ;;  %17600 = verf.f32 %v6540_v4  ;;  %v7097_v32 = vmul.f32 %v6905_v10, %v20040_v31  ;;  %v17926_v4 = vld [vmem:[%s22028_s0 + $0x100] ss:$24 sps:$4 sm:$0xff]  }
 0x316   : > { %v20086_v12 = vpop.f32.mrb[41].mxu0  ;;  %v17585_v30 = vpop.eup %17584  ;;  %v6917_v42 = vadd.f32 1.0, %v17583_v27  ;;  %v20089_v20 = vadd.f32 %v4914_v49, %v20005_v35  ;;  %v16574_v31 = vld [vmem:[%s18387_s7 + $0x600] ss:$24 sps:$4 sm:$0xff]  }
 0x317   : > { %v4916_v62 = vpop.f32.mrb[42].mxu1  ;;  %v20094_v22 = vpop.f32.mrb[42].mxu0  ;;  %v6918_v37 = vadd.f32 1.0, %v17585_v30  ;;  %v6569_v46 = vmul.f32 0.70710677, %v20083_v25  ;;  %v7098_v30 = vmul.f32 %v6906_v0, %v20047_v34 }
 0x318   : > { %6007 = vmatpush1.bf16.msra.mxu1 %v16559_v52  ;;  %v4918_v14 = vpop.f32.mrb[43].mxu1  ;;  %v20099_v49 = vpop.f32.mrb[43].mxu0  ;;  %v7109_v27 = vmul.f32 %v6917_v42, %v6341_v24  ;;  %v6570_v7 = vmul.f32 0.70710677, %v20089_v20  ;;  %v20104_v6 = vadd.f32 %v4916_v62, %v20001_v39  ;;  %v16579_v24 = vld [vmem:[%s18374_s8 + $0x4ac] ss:$48 sps:$4 sm:$0xff]  }
 0x319   : > { %6008 = vmatprep.subr.bf16.mxu1 %v16567_v1  ;;  %v17587_v52 = vpop.eup %17586  ;;  %v7110_v60 = vmul.f32 %v6918_v37, %v6342_v5  ;;  %17602 = verf.f32 %v6569_v46  ;;  %v20109_v1 = vadd.f32 %v4918_v14, %v20005_v35  ;;  %v17927_v14 = vld [vmem:[%s22028_s0 + $0x134] ss:$24 sps:$4 sm:$0xff]   ;;  %v6552_v46 = vmul.f32 0.70710677, %v20092_v45 }
 0x31a   : > { %v17589_v10 = vpop.eup %17588  ;;  %v20116_v42 = vpack.c.bf16 %v7109_v27, %v7097_v32  ;;  %17604 = verf.f32 %v6570_v7  ;;  %v6581_v62 = vmul.f32 0.70710677, %v20104_v6  ;;  %v16582_v37 = vld [vmem:[%s18387_s7 + $0x634] ss:$24 sps:$4 sm:$0xff]   ;;  %v6911_v32 = vadd.f32 1.0, %v17587_v52 }
 0x31b   : > { %5619 = vmatmul.mubr.bf16.gmra.mrb[84].mxu1 %v17926_v4  ;;  %v17591_v34 = vpop.eup %17590  ;;  %v6582_v5 = vmul.f32 0.70710677, %v20109_v1  ;;  %v20124_v0 = vpack.c.bf16 %v7110_v60, %v7098_v30  ;;  %17606 = verf.f32 %v6551_v2  ;;  %v6366_v7 = vmul.f32 0.5, %v20054_v17  ;;  %v4922_v4 = vpop.f32.mrb[44].mxu1  ;;  %v16580_v30 = vld [vmem:[%s18387_s7 + $0x630] ss:$24 sps:$4 sm:$0xff]  }
 0x31c   : > { %22226 = vst [vmem:[#allocation47_spill] sm:$0xff] %v20116_v42  ;;  %6009 = vmatpush1.bf16.msra.mxu1 %v16565_v48  ;;  %5628 = vmatprep.mubr.bf16.mxu1 %v17927_v14  ;;  %v17593_v27 = vpop.eup %17592  ;;  %v6929_v48 = vadd.f32 1.0, %v17591_v34  ;;  %17608 = verf.f32 %v6581_v62  ;;  %v20130_v14 = vmul.f32 0.5, %v20064_v9  ;;  %v20132_v15 = vpop.f32.mrb[44].mxu0  ;;  %v20135_v52 = vadd.f32 %v4922_v4, %v20001_v39 }
 0x31d   : > { %6010 = vmatprep.subr.bf16.mxu1 %v16573_v36  ;;  %22227 = vst [vmem:[#allocation48_spill] sm:$0xff] %v20124_v0  ;;  %v17595_v36 = vpop.eup %17594  ;;  %v6930_v60 = vadd.f32 1.0, %v17593_v27  ;;  %17610 = verf.f32 %v6582_v5  ;;  %v4924_v2 = vpop.f32.mrb[45].mxu1  ;;  %11080 = vmatprep.mubr.bf16.mxu0 %v20124_v0  ;;  %v6923_v17 = vadd.f32 1.0, %v17589_v10  ;;  %v16585_v5 = vld [vmem:[%s18374_s8 + $0x50c] ss:$48 sps:$4 sm:$0xff]   ;;  %v20148_v27 = vadd.f32 %v20045_v47, %v20014_v50 }
 0x31e   : > { %v20139_v62 = vpop.f32.mrb[45].mxu0  ;;  %v17597_v34 = vpop.eup %17596  ;;  %v6941_v38 = vadd.f32 1.0, %v17595_v36  ;;  %v20142_v9 = vadd.f32 %v4924_v2, %v20005_v35  ;;  %11081 = vmatmul.mubr.bf16.vlgmr.msra.gmra.mrb[64].mxu0 %v20116_v42  ;;  %17612 = verf.f32 %v6552_v46  ;;  %v7121_v10 = vmul.f32 %v6929_v48, %v20074_v18  ;;  %v16588_v48 = vld [vmem:[%s18387_s7 + $0x664] ss:$24 sps:$4 sm:$0xff]  }
 0x31f   : > { %v4926_v58 = vpop.f32.mrb[46].mxu1  ;;  %v20150_v4 = vpop.f32.mrb[46].mxu0  ;;  %v6942_v0 = vadd.f32 1.0, %v17597_v34  ;;  %v6593_v36 = vmul.f32 0.70710677, %v20135_v52  ;;  %11162 = vmatpush1.bf16.msra.mxu0 %v16574_v31  ;;  %v7122_v47 = vmul.f32 %v6930_v60, %v20080_v54  ;;  %v20181_v60 = vmul.f32 0.5, %v20092_v45 }
 0x320   : > { %6011 = vmatpush1.bf16.msra.mxu1 %v16571_v63  ;;  %v4928_v2 = vpop.f32.mrb[47].mxu1  ;;  %v7103_v63 = vmul.f32 %v6911_v32, %v20043_v21  ;;  %v20155_v46 = vpop.f32.mrb[47].mxu0  ;;  %v7133_v8 = vmul.f32 %v6941_v38, %v20096_v11  ;;  %v6594_v40 = vmul.f32 0.70710677, %v20142_v9  ;;  %v20161_v18 = vadd.f32 %v4926_v58, %v20001_v39  ;;  %11163 = vmatprep.subr.bf16.mxu0 %v16582_v37  ;;  %v17928_v54 = vld [vmem:[%s22028_s0 + $0x130] ss:$24 sps:$4 sm:$0xff]  }
 0x321   : > { %6012 = vmatprep.subr.bf16.mxu1 %v16579_v24  ;;  %v17599_v42 = vpop.eup %17598  ;;  %v7134_v24 = vmul.f32 %v6942_v0, %v6366_v7  ;;  %17614 = verf.f32 %v6593_v36  ;;  %v20165_v21 = vadd.f32 %v4928_v2, %v20005_v35  ;;  %v16583_v11 = vld [vmem:[%s18374_s8 + $0x508] ss:$48 sps:$4 sm:$0xff]   ;;  %v7115_v58 = vmul.f32 %v6923_v17, %v20070_v26  ;;  %v17929_v0 = vld [vmem:[%s22028_s0 + $0x164] ss:$24 sps:$4 sm:$0xff]  }
 0x322   : > { %v17601_v31 = vpop.eup %17600  ;;  %v16586_v38 = vld [vmem:[%s18387_s7 + $0x660] ss:$24 sps:$4 sm:$0xff]   ;;  %17616 = verf.f32 %v6594_v40  ;;  %v6605_v37 = vmul.f32 0.70710677, %v20161_v18  ;;  %v20174_v32 = vpack.c.bf16 %v7133_v8, %v7121_v10  ;;  %v16591_v7 = vld [vmem:[%s18374_s8 + $0x56c] ss:$48 sps:$4 sm:$0xff]  }
 0x323   : > { %5629 = vmatmul.mubr.bf16.gmra.mrb[88].mxu1 %v17928_v54  ;;  %v17603_v34 = vpop.eup %17602  ;;  %v6606_v36 = vmul.f32 0.70710677, %v20165_v21  ;;  %11164 = vmatpush1.bf16.msra.mxu0 %v16580_v30  ;;  %v20184_v40 = vpack.c.bf16 %v7134_v24, %v7122_v47  ;;  %v6912_v8 = vadd.f32 1.0, %v17599_v42  ;;  %v20187_v26 = vpack.c.bf16 %v7115_v58, %v7103_v63  ;;  %v4932_v45 = vpop.f32.mrb[48].mxu1  ;;  %v16589_v54 = vld [vmem:[%s18374_s8 + $0x568] ss:$48 sps:$4 sm:$0xff]  }
 0x324   : > { %6013 = vmatpush1.bf16.msra.mxu1 %v16577_v55  ;;  %22228 = vst [vmem:[#allocation49_spill] sm:$0xff] %v20174_v32  ;;  %5638 = vmatprep.mubr.bf16.mxu1 %v17929_v0  ;;  %v16594_v55 = vld [vmem:[%s18387_s7 + $0x694] ss:$24 sps:$4 sm:$0xff]   ;;  %v17605_v17 = vpop.eup %17604  ;;  %v6377_v10 = vmul.f32 0.5, %v20083_v25  ;;  %v6378_v2 = vmul.f32 0.5, %v20089_v20  ;;  %17618 = verf.f32 %v6605_v37  ;;  %v20193_v30 = vmul.f32 0.5, %v20148_v27 }
 0x325   : > { %6014 = vmatprep.subr.bf16.mxu1 %v16585_v5  ;;  %22229 = vst [vmem:[#allocation50_spill] sm:$0xff] %v20184_v40  ;;  %22230 = vst [vmem:[#allocation51_spill] sm:$0xff] %v20187_v26  ;;  %11165 = vmatprep.subr.bf16.mxu0 %v16588_v48  ;;  %v20195_v5 = vpop.f32.mrb[48].mxu0  ;;  %v20197_v47 = vpop.eup %17606  ;;  %v6953_v42 = vadd.f32 1.0, %v17603_v34  ;;  %v6389_v63 = vmul.f32 0.5, %v20104_v6  ;;  %17620 = verf.f32 %v6606_v36  ;;  %v20201_v25 = vadd.f32 %v4932_v45, %v20001_v39 }
 0x326   : > { %v4934_v24 = vpop.f32.mrb[49].mxu1  ;;  %11090 = vmatprep.mubr.bf16.mxu0 %v20184_v40  ;;  %v16592_v20 = vld [vmem:[%s18387_s7 + $0x690] ss:$24 sps:$4 sm:$0xff]   ;;  %v16597_v48 = vld [vmem:[%s18374_s8 + $0x5cc] ss:$48 sps:$4 sm:$0xff]   ;;  %v20206_v58 = vpop.f32.mrb[49].mxu0 }
 0x327   : > { %v17609_v37 = vpop.eup %17608  ;;  %v6954_v0 = vadd.f32 1.0, %v17605_v17  ;;  %v6390_v26 = vmul.f32 0.5, %v20109_v1  ;;  %v20210_v28 = vadd.f32 %v4934_v24, %v20005_v35  ;;  %v4936_v34 = vpop.f32.mrb[50].mxu1  ;;  %11091 = vmatmul.mubr.bf16.gmra.mrb[68].mxu0 %v20174_v32  ;;  %v6924_v6 = vadd.f32 1.0, %v17601_v31 }
 0x328   : > { %6015 = vmatpush1.bf16.msra.mxu1 %v16583_v11  ;;  %v20213_v36 = vpop.f32.mrb[50].mxu0  ;;  %v17611_v45 = vpop.eup %17610  ;;  %v6965_v40 = vadd.f32 1.0, %v17609_v37  ;;  %v20216_v44 = vmul.f32 0.5, %v20135_v52  ;;  %v6617_v17 = vmul.f32 0.70710677, %v20201_v25  ;;  %11166 = vmatpush1.bf16.msra.mxu0 %v16586_v38  ;;  %v20220_v1 = vmul.f32 %v6912_v8, %v20061_v16 }
 0x329   : > { %v4938_v33 = vpop.f32.mrb[51].mxu1  ;;  %6016 = vmatprep.subr.bf16.mxu1 %v16591_v7  ;;  %v20222_v11 = vpop.f32.mrb[51].mxu0  ;;  %v6966_v24 = vadd.f32 1.0, %v17611_v45  ;;  %v20225_v32 = vmul.f32 0.5, %v20142_v9  ;;  %v6618_v37 = vmul.f32 0.70710677, %v20210_v28  ;;  %v20229_v52 = vadd.f32 %v4936_v34, %v20001_v39  ;;  %11167 = vmatprep.subr.bf16.mxu0 %v16594_v55 }
 0x32a   : > { %22231 = vst [vmem:[#allocation52_spill] sm:$0xff] %v20220_v1  ;;  %v17613_v31 = vpop.eup %17612  ;;  %v16600_v38 = vld [vmem:[%s18387_s7 + $0x6c4] ss:$24 sps:$4 sm:$0xff]   ;;  %v7145_v7 = vmul.f32 %v6953_v42, %v6377_v10  ;;  %v7157_v3 = vmul.f32 %v6965_v40, %v6389_v63  ;;  %17622 = verf.f32 %v6617_v17  ;;  %v20233_v16 = vadd.f32 %v4938_v33, %v20005_v35  ;;  %v17930_v9 = vld [vmem:[%s22028_s0 + $0x160] ss:$24 sps:$4 sm:$0xff]  }
 0x32b   : > { %5639 = vmatmul.mubr.bf16.gmra.mrb[92].mxu1 %v17930_v9  ;;  %v16595_v8 = vld [vmem:[%s18374_s8 + $0x5c8] ss:$48 sps:$4 sm:$0xff]   ;;  %v7146_v45 = vmul.f32 %v6954_v0, %v6378_v2  ;;  %v7158_v57 = vmul.f32 %v6966_v24, %v6390_v26  ;;  %17624 = verf.f32 %v6618_v37  ;;  %v6629_v34 = vmul.f32 0.70710677, %v20229_v52  ;;  %v17931_v40 = vld [vmem:[%s22028_s0 + $0x4] ss:$24 sps:$4 sm:$0xff]   ;;  %v17615_v10 = vpop.eup %17614 }
 0x32c   : > { %6017 = vmatpush1.bf16.msra.mxu1 %v16589_v54  ;;  %v16598_v55 = vld [vmem:[%s18387_s7 + $0x6c0] ss:$24 sps:$4 sm:$0xff]   ;;  %6020 = vmatprep.mubr.bf16.mxu1 %v17931_v40  ;;  %v16603_v33 = vld [vmem:[%s18374_s8 + $0x62c] ss:$48 sps:$4 sm:$0xff]   ;;  %v6413_v42 = vmul.f32 0.5, %v20161_v18  ;;  %v20247_v26 = vpack.c.bf16 %v7157_v3, %v7145_v7  ;;  %v17617_v54 = vpop.eup %17616  ;;  %v6414_v0 = vmul.f32 0.5, %v20165_v21  ;;  %v20256_v18 = vmul.f32 %v6924_v6, %v20072_v43 }
 0x32d   : > { %v6630_v63 = vmul.f32 0.70710677, %v20233_v16  ;;  %11168 = vmatpush1.bf16.msra.mxu0 %v16592_v20  ;;  %6018 = vmatprep.subr.bf16.mxu1 %v16597_v48  ;;  %v6563_v2 = vmul.f32 0.70710677, %v20148_v27  ;;  %17626 = verf.f32 %v6629_v34  ;;  %v4942_v17 = vpop.f32.mrb[52].mxu1  ;;  %v20251_v24 = vpack.c.bf16 %v7158_v57, %v7146_v45  ;;  %v20258_v20 = vpop.f32.mrb[52].mxu0 }
 0x32e   : > { %22232 = vst [vmem:[#allocation53_spill] sm:$0xff] %v20247_v26  ;;  %11169 = vmatprep.subr.bf16.mxu0 %v16600_v38  ;;  %v16601_v37 = vld [vmem:[%s18374_s8 + $0x628] ss:$48 sps:$4 sm:$0xff]   ;;  %v16606_v9 = vld [vmem:[%s18387_s7 + $0x6f4] ss:$24 sps:$4 sm:$0xff]   ;;  %22234 = vst [vmem:[#allocation55_spill] sm:$0xff] %v20256_v18  ;;  %v20261_v48 = vadd.f32 %v4942_v17, %v20001_v39  ;;  %v17619_v38 = vpop.eup %17618 }
 0x32f   : > { %22233 = vst [vmem:[#allocation54_spill] sm:$0xff] %v20251_v24  ;;  %v6977_v3 = vadd.f32 1.0, %v17615_v10  ;;  %17628 = verf.f32 %v6630_v63  ;;  %v4944_v27 = vpop.f32.mrb[53].mxu1  ;;  %v16609_v7 = vld [vmem:[%s18374_s8 + $0x68c] ss:$48 sps:$4 sm:$0xff]   ;;  %v20265_v21 = vadd.f32 1.0, %v20197_v47  ;;  %11100 = vmatprep.mubr.bf16.mxu0 %v20251_v24  ;;  %v17621_v47 = vpop.eup %17620 }
 0x330   : > { %v20267_v57 = vpop.f32.mrb[53].mxu0  ;;  %v6978_v45 = vadd.f32 1.0, %v17617_v54  ;;  %v20270_v34 = vmul.f32 0.5, %v20201_v25  ;;  %v20273_v43 = vadd.f32 %v4944_v27, %v20005_v35  ;;  %v4946_v6 = vpop.f32.mrb[54].mxu1  ;;  %6019 = vmatpush1.bf16.msra.mxu1 %v16595_v8  ;;  %v20276_v40 = vadd.f32 1.0, %v17613_v31  ;;  %11101 = vmatmul.mubr.bf16.gmra.mrb[72].mxu0 %v20247_v26 }
 0x331   : > { %v20278_v10 = vpop.f32.mrb[54].mxu0  ;;  %v6989_v63 = vadd.f32 1.0, %v17619_v38  ;;  %v6641_v17 = vmul.f32 0.70710677, %v20261_v48  ;;  %v4948_v25 = vpop.f32.mrb[55].mxu1  ;;  %6101 = vmatprep.subr.bf16.mxu1 %v16603_v33  ;;  %17630 = verf.f32 %v6563_v2  ;;  %v14643_v54 = vadd.f32 %v20051_v56, %v20029_v53  ;;  %11170 = vmatpush1.bf16.msra.mxu0 %v16598_v55 }
 0x332   : > { %v20284_v8 = vpop.f32.mrb[55].mxu0  ;;  %v6990_v31 = vadd.f32 1.0, %v17621_v47  ;;  %v6642_v27 = vmul.f32 0.70710677, %v20273_v43  ;;  %v20288_v24 = vadd.f32 %v4946_v6, %v20001_v39  ;;  %v16604_v38 = vld [vmem:[%s18387_s7 + $0x6f0] ss:$24 sps:$4 sm:$0xff]   ;;  %v20293_v33 = vadd.f32 %v20078_v19, %v20014_v50  ;;  %11171 = vmatprep.subr.bf16.mxu0 %v16606_v9 }
 0x333   : > { %v7169_v2 = vmul.f32 %v6977_v3, %v20216_v44  ;;  %v7181_v26 = vmul.f32 %v6989_v63, %v6413_v42  ;;  %17632 = verf.f32 %v6641_v17  ;;  %v20297_v56 = vadd.f32 %v4948_v25, %v20005_v35  ;;  %v17932_v6 = vld [vmem:[%s22028_s0] ss:$24 sps:$4 sm:$0xff]   ;;  %v16612_v47 = vld [vmem:[%s18387_s7 + $0x724] ss:$24 sps:$4 sm:$0xff]  }
 0x334   : > { %6021 = vmatmul.mubr.bf16.vlgmr.msra.gmra.mrb[96].mxu1 %v17932_v6  ;;  %v16607_v55 = vld [vmem:[%s18374_s8 + $0x688] ss:$48 sps:$4 sm:$0xff]   ;;  %v7170_v19 = vmul.f32 %v6978_v45, %v20225_v32  ;;  %v7182_v59 = vmul.f32 %v6990_v31, %v6414_v0  ;;  %17634 = verf.f32 %v6642_v27  ;;  %v6653_v44 = vmul.f32 0.70710677, %v20288_v24  ;;  %v17933_v3 = vld [vmem:[%s22028_s0 + $0x34] ss:$24 sps:$4 sm:$0xff]   ;;  %v17623_v17 = vpop.eup %17622 }
 0x335   : > { %6102 = vmatpush1.bf16.msra.mxu1 %v16601_v37  ;;  %v16610_v42 = vld [vmem:[%s18387_s7 + $0x720] ss:$24 sps:$4 sm:$0xff]   ;;  %6030 = vmatprep.mubr.bf16.mxu1 %v17933_v3  ;;  %v16615_v63 = vld [vmem:[%s18374_s8 + $0x6ec] ss:$48 sps:$4 sm:$0xff]   ;;  %v6426_v9 = vmul.f32 0.5, %v20210_v28  ;;  %v20313_v32 = vpack.c.bf16 %v7181_v26, %v7169_v2  ;;  %v17625_v37 = vpop.eup %17624  ;;  %v6437_v31 = vmul.f32 0.5, %v20229_v52 }
 0x336   : > { %v6654_v25 = vmul.f32 0.70710677, %v20297_v56  ;;  %6103 = vmatprep.subr.bf16.mxu1 %v16609_v7  ;;  %v16618_v0 = vld [vmem:[%s18387_s7 + $0x754] ss:$24 sps:$4 sm:$0xff]   ;;  %v6564_v45 = vmul.f32 0.70710677, %v14643_v54  ;;  %17636 = verf.f32 %v6653_v44  ;;  %11172 = vmatpush1.bf16.msra.mxu0 %v16604_v38  ;;  %v20318_v3 = vpack.c.bf16 %v7182_v59, %v7170_v19 }
 0x337   : > { %22235 = vst [vmem:[#allocation56_spill] sm:$0xff] %v20313_v32  ;;  %v6438_v27 = vmul.f32 0.5, %v20233_v16  ;;  %v4952_v6 = vpop.f32.mrb[56].mxu1  ;;  %v20321_v28 = vpop.f32.mrb[56].mxu0  ;;  %v7001_v41 = vadd.f32 1.0, %v17623_v17  ;;  %11173 = vmatprep.subr.bf16.mxu0 %v16612_v47  ;;  %v20327_v13 = vmul.f32 0.5, %v14643_v54  ;;  %v20337_v44 = vmul.f32 %v20265_v21, %v20130_v14 }
 0x338   : > { %22236 = vst [vmem:[#allocation57_spill] sm:$0xff] %v20318_v3  ;;  %17638 = verf.f32 %v6654_v25  ;;  %v20324_v26 = vadd.f32 %v4952_v6, %v20001_v39  ;;  %v4954_v7 = vpop.f32.mrb[57].mxu1  ;;  %v16621_v2 = vld [vmem:[%s18374_s8 + $0x74c] ss:$48 sps:$4 sm:$0xff]   ;;  %v20329_v52 = vpop.f32.mrb[57].mxu0  ;;  %v7002_v38 = vadd.f32 1.0, %v17625_v37  ;;  %11110 = vmatprep.mubr.bf16.mxu0 %v20318_v3 }
 0x339   : > { %v17627_v16 = vpop.eup %17626  ;;  %v20332_v59 = vadd.f32 %v4954_v7, %v20005_v35  ;;  %v4956_v19 = vpop.f32.mrb[58].mxu1  ;;  %6104 = vmatpush1.bf16.msra.mxu1 %v16607_v55  ;;  %22237 = vst [vmem:[#allocation58_spill] sm:$0xff] %v20337_v44  ;;  %v20340_v47 = vmul.f32 0.70710677, %v20293_v33  ;;  %v20345_v37 = vmul.f32 0.5, %v20261_v48  ;;  %11111 = vmatmul.mubr.bf16.gmra.mrb[76].mxu0 %v20313_v32  ;;  %17640 = verf.f32 %v6564_v45 }
 0x33a   : > { %v20342_v54 = vpop.f32.mrb[58].mxu0  ;;  %v17629_v17 = vpop.eup %17628  ;;  %v7013_v25 = vadd.f32 1.0, %v17627_v16  ;;  %v6665_v6 = vmul.f32 0.70710677, %v20324_v26  ;;  %6105 = vmatprep.subr.bf16.mxu1 %v16615_v63  ;;  %v20353_v3 = vadd.f32 %v4956_v19, %v20001_v39  ;;  %11174 = vmatpush1.bf16.msra.mxu0 %v16610_v42  ;;  %v16616_v48 = vld [vmem:[%s18387_s7 + $0x750] ss:$24 sps:$4 sm:$0xff]   ;;  %v20358_v16 = vadd.f32 %v20086_v12, %v20029_v53 }
 0x33b   : > { %v4958_v55 = vpop.f32.mrb[59].mxu1  ;;  %v20349_v14 = vpop.f32.mrb[59].mxu0  ;;  %v7014_v21 = vadd.f32 1.0, %v17629_v17  ;;  %v6666_v7 = vmul.f32 0.70710677, %v20332_v59  ;;  %v7193_v63 = vmul.f32 %v7001_v41, %v20270_v34  ;;  %11175 = vmatprep.subr.bf16.mxu0 %v16618_v0  ;;  %v7194_v44 = vmul.f32 %v7002_v38, %v6426_v9 }
 0x33c   : > { %v17631_v32 = vpop.eup %17630  ;;  %v7205_v45 = vmul.f32 %v7013_v25, %v6437_v31  ;;  %17642 = verf.f32 %v6665_v6  ;;  %v20362_v17 = vadd.f32 %v4958_v55, %v20005_v35  ;;  %v17934_v19 = vld [vmem:[%s22028_s0 + $0x30] ss:$24 sps:$4 sm:$0xff]   ;;  %v16624_v12 = vld [vmem:[%s18387_s7 + $0x784] ss:$24 sps:$4 sm:$0xff]   ;;  %v6677_v41 = vmul.f32 0.70710677, %v20353_v3 }
 0x33d   : > { %6031 = vmatmul.mubr.bf16.gmra.mrb[100].mxu1 %v17934_v19  ;;  %v16619_v42 = vld [vmem:[%s18374_s8 + $0x748] ss:$48 sps:$4 sm:$0xff]   ;;  %v7206_v18 = vmul.f32 %v7014_v21, %v6438_v27  ;;  %17644 = verf.f32 %v6666_v7  ;;  %v17935_v31 = vld [vmem:[%s22028_s0 + $0x64] ss:$24 sps:$4 sm:$0xff]   ;;  %v17633_v6 = vpop.eup %17632  ;;  %v6450_v0 = vmul.f32 0.5, %v20273_v43  ;;  %v6461_v21 = vmul.f32 0.5, %v20288_v24 }
 0x33e   : > { %6106 = vmatpush1.bf16.msra.mxu1 %v16613_v51  ;;  %v16622_v34 = vld [vmem:[%s18387_s7 + $0x780] ss:$24 sps:$4 sm:$0xff]   ;;  %6040 = vmatprep.mubr.bf16.mxu1 %v17935_v31  ;;  %v16627_v25 = vld [vmem:[%s18374_s8 + $0x7ac] ss:$48 sps:$4 sm:$0xff]   ;;  %v6678_v55 = vmul.f32 0.70710677, %v20362_v17  ;;  %v20377_v9 = vpack.c.bf16 %v7205_v45, %v7193_v63  ;;  %v17635_v38 = vpop.eup %17634  ;;  %17646 = verf.f32 %v6677_v41 }
 0x33f   : > { %6107 = vmatprep.subr.bf16.mxu1 %v16621_v2  ;;  %v16630_v27 = vld [vmem:[%s18387_s7 + $0x7b4] ss:$24 sps:$4 sm:$0xff]   ;;  %v20381_v51 = vmul.f32 0.5, %v20293_v33  ;;  %v6462_v7 = vmul.f32 0.5, %v20297_v56  ;;  %11176 = vmatpush1.bf16.msra.mxu0 %v16616_v48  ;;  %v4962_v19 = vpop.f32.mrb[60].mxu1  ;;  %v20385_v31 = vpack.c.bf16 %v7206_v18, %v7194_v44  ;;  %v20388_v1 = vpop.f32.mrb[60].mxu0 }
 0x340   : > { %22238 = vst [vmem:[#allocation59_spill] sm:$0xff] %v20377_v9  ;;  %v16625_v43 = vld [vmem:[%s18374_s8 + $0x7a8] ss:$48 sps:$4 sm:$0xff]   ;;  %v7025_v2 = vadd.f32 1.0, %v17633_v6  ;;  %17648 = verf.f32 %v6678_v55  ;;  %v20391_v63 = vadd.f32 %v4962_v19, %v20001_v39  ;;  %v4964_v33 = vpop.f32.mrb[61].mxu1  ;;  %11177 = vmatprep.subr.bf16.mxu0 %v16624_v12  ;;  %v6947_v29 = vadd.f32 1.0, %v17631_v32  ;;  %v17637_v56 = vpop.eup %17636 }
 0x341   : > { %22239 = vst [vmem:[#allocation60_spill] sm:$0xff] %v20385_v31  ;;  %v16633_v45 = vld [vmem:[%s18374_s8 + $0x80c] ss:$48 sps:$4 sm:$0xff]   ;;  %v20394_v24 = vpop.f32.mrb[61].mxu0  ;;  %v7026_v41 = vadd.f32 1.0, %v17635_v38  ;;  %v20397_v48 = vadd.f32 %v4964_v33, %v20005_v35  ;;  %11120 = vmatprep.mubr.bf16.mxu0 %v20385_v31  ;;  %v4966_v18 = vpop.f32.mrb[62].mxu1  ;;  %17650 = verf.f32 %v20340_v47 }
 0x342   : > { %6108 = vmatpush1.bf16.msra.mxu1 %v16619_v42  ;;  %v6576_v44 = vmul.f32 0.70710677, %v20358_v16  ;;  %v20402_v6 = vpop.f32.mrb[62].mxu0  ;;  %v17639_v12 = vpop.eup %17638  ;;  %v7037_v32 = vadd.f32 1.0, %v17637_v56  ;;  %v20405_v55 = vmul.f32 0.5, %v20324_v26  ;;  %11121 = vmatmul.mubr.bf16.gmra.mrb[80].mxu0 %v20377_v9  ;;  %v20411_v42 = vmul.f32 %v20276_v40, %v20181_v60 }
 0x343   : > { %v6689_v38 = vmul.f32 0.70710677, %v20391_v63  ;;  %v4968_v19 = vpop.f32.mrb[63].mxu1  ;;  %6109 = vmatprep.subr.bf16.mxu1 %v16627_v25  ;;  %v20413_v47 = vpop.f32.mrb[63].mxu0  ;;  %v7038_v33 = vadd.f32 1.0, %v17639_v12  ;;  %v20417_v26 = vadd.f32 %v4966_v18, %v20001_v39  ;;  %11178 = vmatpush1.bf16.msra.mxu0 %v16622_v34  ;;  %v20422_v9 = vadd.f32 %v20094_v22, %v20014_v50 }
 0x344   : > { %22240 = vst [vmem:[#allocation61_spill] sm:$0xff] %v20411_v42  ;;  %22241 = vst [vmem:[#allocation62_spill] sm:$0xff] %v20413_v47  ;;  %v6690_v56 = vmul.f32 0.70710677, %v20397_v48  ;;  %v16628_v31 = vld [vmem:[%s18387_s7 + $0x7b0] ss:$24 sps:$4 sm:$0xff]   ;;  %v17641_v25 = vpop.eup %17640  ;;  %v7217_v60 = vmul.f32 %v7025_v2, %v20345_v37  ;;  %v7229_v40 = vmul.f32 %v7037_v32, %v6461_v21  ;;  %v20426_v42 = vadd.f32 %v4968_v19, %v20005_v35 }
 0x345   : > { %17652 = verf.f32 %v6689_v38  ;;  %v17936_v39 = vld [vmem:[%s22028_s0 + $0x60] ss:$24 sps:$4 sm:$0xff]   ;;  %11179 = vmatprep.subr.bf16.mxu0 %v16630_v27  ;;  %v16636_v18 = vld [vmem:[%s18387_s7 + $0x7e4] ss:$24 sps:$4 sm:$0xff]   ;;  %v7218_v22 = vmul.f32 %v7026_v41, %v6450_v0  ;;  %v7230_v12 = vmul.f32 %v7038_v33, %v6462_v7  ;;  %v6701_v47 = vmul.f32 0.70710677, %v20417_v26 }
 0x346   : > { %6041 = vmatmul.mubr.bf16.gmra.mrb[104].mxu1 %v17936_v39  ;;  %v16631_v34 = vld [vmem:[%s18374_s8 + $0x808] ss:$48 sps:$4 sm:$0xff]   ;;  %17654 = verf.f32 %v6690_v56  ;;  %v17937_v35 = vld [vmem:[%s22028_s0 + $0x94] ss:$24 sps:$4 sm:$0xff]   ;;  %v17643_v21 = vpop.eup %17642  ;;  %v6474_v27 = vmul.f32 0.5, %v20332_v59  ;;  %v20440_v0 = vpack.c.bf16 %v7229_v40, %v7217_v60  ;;  %v20448_v33 = vmul.f32 %v6947_v29, %v20193_v30 }
 0x347   : > { %6110 = vmatpush1.bf16.msra.mxu1 %v16625_v43  ;;  %v16634_v37 = vld [vmem:[%s18387_s7 + $0x7e0] ss:$24 sps:$4 sm:$0xff]   ;;  %6050 = vmatprep.mubr.bf16.mxu1 %v17937_v35  ;;  %v6702_v2 = vmul.f32 0.70710677, %v20426_v42  ;;  %v16639_v7 = vld [vmem:[%s18374_s8 + $0x86c] ss:$48 sps:$4 sm:$0xff]   ;;  %17656 = verf.f32 %v6576_v44  ;;  %v17645_v41 = vpop.eup %17644  ;;  %v20443_v32 = vpack.c.bf16 %v7230_v12, %v7218_v22  ;;  %v20461_v29 = vadd.f32 %v20099_v49, %v20029_v53 }
 0x348   : > { %6111 = vmatprep.subr.bf16.mxu1 %v16633_v45  ;;  %22242 = vst [vmem:[#allocation63_spill] sm:$0xff] %v20440_v0  ;;  %v7049_v43 = vadd.f32 1.0, %v17643_v21  ;;  %17658 = verf.f32 %v6701_v47  ;;  %11180 = vmatpush1.bf16.msra.mxu0 %v16628_v31  ;;  %v16637_v38 = vld [vmem:[%s18374_s8 + $0x868] ss:$48 sps:$4 sm:$0xff]   ;;  %v16642_v19 = vld [vmem:[%s18387_s7 + $0x814] ss:$24 sps:$4 sm:$0xff]   ;;  %v17647_v56 = vpop.eup %17646  ;;  %v20465_v30 = vadd.f32 %v20132_v15, %v20014_v50 }
 0x349   : > { %22243 = vst [vmem:[#allocation64_spill] sm:$0xff] %v20443_v32  ;;  %v7050_v59 = vadd.f32 1.0, %v17645_v41  ;;  %v6485_v45 = vmul.f32 0.5, %v20353_v3  ;;  %17660 = verf.f32 %v6702_v2  ;;  %11181 = vmatprep.subr.bf16.mxu0 %v16636_v18  ;;  %v6587_v44 = vmul.f32 0.70710677, %v20422_v9  ;;  %11130 = vmatprep.mubr.bf16.mxu0 %v20443_v32 }
 0x34a   : > { %v6486_v60 = vmul.f32 0.5, %v20362_v17  ;;  %v16640_v31 = vld [vmem:[%s18387_s7 + $0x810] ss:$24 sps:$4 sm:$0xff]   ;;  %v16645_v47 = vld [vmem:[%s18374_s8 + $0x8cc] ss:$48 sps:$4 sm:$0xff]   ;;  %v20457_v40 = vmul.f32 0.5, %v20358_v16  ;;  %v17649_v3 = vpop.eup %17648  ;;  %11131 = vmatmul.mubr.bf16.gmra.mrb[84].mxu0 %v20440_v0  ;;  %v20473_v16 = vadd.f32 %v20139_v62, %v20029_v53  ;;  %v7241_v18 = vmul.f32 %v7049_v43, %v20405_v55 }
 0x34b   : > { %6112 = vmatpush1.bf16.msra.mxu1 %v16631_v34  ;;  %v7061_v39 = vadd.f32 1.0, %v17647_v56  ;;  %v20468_v17 = vmul.f32 0.5, %v20391_v63  ;;  %v6948_v34 = vadd.f32 1.0, %v17641_v25  ;;  %v17651_v49 = vpop.eup %17650  ;;  %v7062_v15 = vadd.f32 1.0, %v17649_v3  ;;  %v17938_v25 = vld [vmem:[%s22028_s0 + $0x90] ss:$24 sps:$4 sm:$0xff]  }
 0x34c   : > { %6113 = vmatprep.subr.bf16.mxu1 %v16639_v7  ;;  %v20477_v22 = vmul.f32 0.5, %v20397_v48  ;;  %11182 = vmatpush1.bf16.msra.mxu0 %v16634_v37  ;;  %v6588_v63 = vmul.f32 0.70710677, %v20461_v29  ;;  %v7242_v12 = vmul.f32 %v7050_v59, %v6474_v27  ;;  %v16648_v62 = vld [vmem:[%s18387_s7 + $0x844] ss:$24 sps:$4 sm:$0xff]   ;;  %17662 = verf.f32 %v6587_v44 }
 0x34d   : > { %v7253_v35 = vmul.f32 %v7061_v39, %v6485_v45  ;;  %11183 = vmatprep.subr.bf16.mxu0 %v16642_v19  ;;  %v6599_v55 = vmul.f32 0.70710677, %v20465_v30  ;;  %v7254_v21 = vmul.f32 %v7062_v15, %v6486_v60  ;;  %v16643_v48 = vld [vmem:[%s18374_s8 + $0x8c8] ss:$48 sps:$4 sm:$0xff]   ;;  %v17939_v37 = vld [vmem:[%s22028_s0 + $0xc4] ss:$24 sps:$4 sm:$0xff]   ;;  %v20493_v7 = vadd.f32 %v20150_v4, %v20014_v50 }
 0x34e   : > { %6051 = vmatmul.mubr.bf16.gmra.mrb[108].mxu1 %v17938_v25  ;;  %v16646_v2 = vld [vmem:[%s18387_s7 + $0x840] ss:$24 sps:$4 sm:$0xff]   ;;  %17664 = verf.f32 %v6588_v63  ;;  %v6600_v27 = vmul.f32 0.70710677, %v20473_v16  ;;  %v6959_v19 = vadd.f32 1.0, %v17651_v49  ;;  %v20500_v59 = vadd.f32 %v20155_v46, %v20029_v53 }
 0x34f   : > { %6114 = vmatpush1.bf16.msra.mxu1 %v16637_v38  ;;  %6060 = vmatprep.mubr.bf16.mxu1 %v17939_v37  ;;  %v17653_v41 = vpop.eup %17652  ;;  %v20495_v43 = vpack.c.bf16 %v7253_v35, %v7241_v18  ;;  %v16651_v38 = vld [vmem:[%s18374_s8 + $0x92c] ss:$48 sps:$4 sm:$0xff]   ;;  %17666 = verf.f32 %v6599_v55  ;;  %v6509_v44 = vmul.f32 0.5, %v20417_v26  ;;  %v20503_v56 = vpack.c.bf16 %v7254_v21, %v7242_v12  ;;  %v16652_v25 = vld [vmem:[%s18387_s7 + $0x870] ss:$24 sps:$4 sm:$0xff]  }
 0x350   : > { %6115 = vmatprep.subr.bf16.mxu1 %v16645_v47  ;;  %v17655_v45 = vpop.eup %17654  ;;  %11184 = vmatpush1.bf16.msra.mxu0 %v16640_v31  ;;  %v16654_v4 = vld [vmem:[%s18387_s7 + $0x874] ss:$24 sps:$4 sm:$0xff]   ;;  %v20507_v60 = vmul.f32 %v6948_v34, %v20327_v13  ;;  %17668 = verf.f32 %v6600_v27  ;;  %v7073_v3 = vadd.f32 1.0, %v17653_v41  ;;  %v6510_v39 = vmul.f32 0.5, %v20426_v42  ;;  %v16649_v31 = vld [vmem:[%s18374_s8 + $0x928] ss:$48 sps:$4 sm:$0xff]  }
 0x351   : > { %22244 = vst [vmem:[#allocation65_spill] sm:$0xff] %v20495_v43  ;;  %22245 = vst [vmem:[#allocation66_spill] sm:$0xff] %v20503_v56  ;;  %v17657_v47 = vpop.eup %17656  ;;  %11185 = vmatprep.subr.bf16.mxu0 %v16648_v62  ;;  %v6611_v46 = vmul.f32 0.70710677, %v20493_v7  ;;  %v6612_v49 = vmul.f32 0.70710677, %v20500_v59  ;;  %11140 = vmatprep.mubr.bf16.mxu0 %v20503_v56  ;;  %v20519_v34 = vadd.f32 %v20195_v5, %v20014_v50 }
 0x352   : > { %v17659_v26 = vpop.eup %17658  ;;  %v7074_v18 = vadd.f32 1.0, %v17655_v45  ;;  %v20515_v13 = vmul.f32 0.5, %v20422_v9  ;;  %v20523_v42 = vadd.f32 %v20206_v58, %v20029_v53  ;;  %11141 = vmatmul.mubr.bf16.gmra.mrb[88].mxu0 %v20495_v43  ;;  %v16657_v12 = vld [vmem:[%s18374_s8 + $0x98c] ss:$48 sps:$4 sm:$0xff]   ;;  %v20528_v35 = vmul.f32 %v6959_v19, %v20381_v51  ;;  %v17940_v51 = vld [vmem:[%s22028_s0 + $0xc0] ss:$24 sps:$4 sm:$0xff]  }
 0x353   : > { %6116 = vmatpush1.bf16.msra.mxu1 %v16643_v48  ;;  %v17661_v15 = vpop.eup %17660  ;;  %v7085_v63 = vadd.f32 1.0, %v17659_v26  ;;  %v20531_v9 = vmul.f32 0.5, %v20461_v29  ;;  %v20535_v5 = vadd.f32 %v20213_v36, %v20014_v50  ;;  %v6960_v62 = vadd.f32 1.0, %v17657_v47  ;;  %v16655_v36 = vld [vmem:[%s18374_s8 + $0x988] ss:$48 sps:$4 sm:$0xff]  }
 0x354   : > { %6117 = vmatprep.subr.bf16.mxu1 %v16651_v38  ;;  %v7086_v58 = vadd.f32 1.0, %v17661_v15  ;;  %11186 = vmatpush1.bf16.msra.mxu0 %v16646_v2  ;;  %17670 = verf.f32 %v6611_v46  ;;  %v6623_v55 = vmul.f32 0.70710677, %v20519_v34  ;;  %v7265_v21 = vmul.f32 %v7073_v3, %v20468_v17  ;;  %v16660_v29 = vld [vmem:[%s18387_s7 + $0x8a4] ss:$24 sps:$4 sm:$0xff]  }
 0x355   : > { %v7277_v48 = vmul.f32 %v7085_v63, %v6509_v44  ;;  %11187 = vmatprep.subr.bf16.mxu0 %v16654_v4  ;;  %17672 = verf.f32 %v6612_v49  ;;  %v6624_v2 = vmul.f32 0.70710677, %v20523_v42  ;;  %v7266_v37 = vmul.f32 %v7074_v18, %v20477_v22  ;;  %v16658_v41 = vld [vmem:[%s18387_s7 + $0x8a0] ss:$24 sps:$4 sm:$0xff]   ;;  %v17941_v17 = vld [vmem:[%s22028_s0 + $0xf4] ss:$24 sps:$4 sm:$0xff]  }
 0x356   : > { %6061 = vmatmul.mubr.bf16.gmra.mrb[112].mxu1 %v17940_v51  ;;  %v7278_v27 = vmul.f32 %v7086_v58, %v6510_v39  ;;  %17674 = verf.f32 %v6623_v55  ;;  %v6635_v38 = vmul.f32 0.70710677, %v20535_v5  ;;  %v17663_v19 = vpop.eup %17662  ;;  %v16663_v44 = vld [vmem:[%s18374_s8 + $0x9ec] ss:$48 sps:$4 sm:$0xff]   ;;  %v14655_v22 = vadd.f32 %v20222_v11, %v20029_v53  ;;  %v16661_v39 = vld [vmem:[%s18374_s8 + $0x9e8] ss:$48 sps:$4 sm:$0xff]  }
 0x357   : > { %6118 = vmatpush1.bf16.msra.mxu1 %v16649_v31  ;;  %6070 = vmatprep.mubr.bf16.mxu1 %v17941_v17  ;;  %v20552_v45 = vpack.c.bf16 %v7277_v48, %v7265_v21  ;;  %17676 = verf.f32 %v6624_v2  ;;  %v14656_v4 = vadd.f32 %v20258_v20, %v20014_v50  ;;  %v16666_v46 = vld [vmem:[%s18387_s7 + $0x8d4] ss:$24 sps:$4 sm:$0xff]   ;;  %v20564_v49 = vmul.f32 0.5, %v20465_v30  ;;  %v16664_v30 = vld [vmem:[%s18387_s7 + $0x8d0] ss:$24 sps:$4 sm:$0xff]  }
 0x358   : > { %6119 = vmatprep.subr.bf16.mxu1 %v16657_v12  ;;  %v17665_v47 = vpop.eup %17664  ;;  %11188 = vmatpush1.bf16.msra.mxu0 %v16652_v25  ;;  %v20559_v3 = vpack.c.bf16 %v7278_v27, %v7266_v37  ;;  %17678 = verf.f32 %v6635_v38  ;;  %v14657_v26 = vadd.f32 %v20267_v57, %v20029_v53  ;;  %v20569_v11 = vmul.f32 %v6960_v62, %v20457_v40  ;;  %v16720_v48 = vld [vmem:[%s18387_s7 + $0x904] ss:$24 sps:$4 sm:$0xff]  }
 0x359   : > { %22246 = vst [vmem:[#allocation67_spill] sm:$0xff] %v20552_v45  ;;  %v17667_v18 = vpop.eup %17666  ;;  %11189 = vmatprep.subr.bf16.mxu0 %v16660_v29  ;;  %v6408_v20 = vmul.f32 0.5, %v20473_v16  ;;  %v20573_v31 = vmul.f32 0.5, %v20493_v7  ;;  %v6636_v15 = vmul.f32 0.70710677, %v14655_v22  ;;  %v6971_v12 = vadd.f32 1.0, %v17663_v19 }
 0x35a   : > { %22247 = vst [vmem:[#allocation68_spill] sm:$0xff] %v20559_v3  ;;  %v17669_v63 = vpop.eup %17668  ;;  %11150 = vmatprep.mubr.bf16.mxu0 %v20559_v3  ;;  %v20578_v57 = vmul.f32 0.5, %v20500_v59  ;;  %v6647_v58 = vmul.f32 0.70710677, %v14656_v4  ;;  %v6648_v40 = vmul.f32 0.70710677, %v14657_v26  ;;  %v14658_v62 = vadd.f32 %v20278_v10, %v20014_v50 }
 0x35b   : > { %6120 = vmatpush1.bf16.msra.mxu1 %v16655_v36  ;;  %11151 = vmatmul.mubr.bf16.gmra.mrb[92].mxu0 %v20552_v45  ;;  %v16669_v16 = vld [vmem:[%s18374_s8 + $0xa4c] ss:$48 sps:$4 sm:$0xff]   ;;  %v20583_v7 = vmul.f32 0.5, %v20519_v34  ;;  %v20586_v25 = vmul.f32 0.5, %v20523_v42  ;;  %17680 = verf.f32 %v6636_v15  ;;  %v16667_v59 = vld [vmem:[%s18374_s8 + $0xa48] ss:$48 sps:$4 sm:$0xff]   ;;  %v14659_v21 = vadd.f32 %v20284_v8, %v20029_v53 }
 0x35c   : > { %6121 = vmatprep.subr.bf16.mxu1 %v16663_v44  ;;  %11190 = vmatpush1.bf16.msra.mxu0 %v16658_v41  ;;  %v6972_v55 = vadd.f32 1.0, %v17665_v47  ;;  %17682 = verf.f32 %v6647_v58  ;;  %v20596_v34 = vadd.f32 %v20321_v28, %v20014_v50  ;;  %v17942_v42 = vld [vmem:[%s22028_s0 + $0xf0] ss:$24 sps:$4 sm:$0xff]   ;;  %v6983_v10 = vadd.f32 1.0, %v17667_v18  ;;  %v17943_v8 = vld [vmem:[%s22028_s0 + $0x124] ss:$24 sps:$4 sm:$0xff]  }
 0x35d   : > { %11193 = vmatprep.mubr.bf16.mxu0 %v19820_v23  ;;  %11191 = vmatprep.subr.bf16.mxu0 %v16666_v46  ;;  %v6984_v51 = vadd.f32 1.0, %v17669_v63  ;;  %17684 = verf.f32 %v6648_v40  ;;  %v6659_v36 = vmul.f32 0.70710677, %v14658_v62  ;;  %v20606_v28 = vmul.f32 %v6971_v12, %v20515_v13  ;;  %v16672_v17 = vld [vmem:[%s18374_s8 + $0xaac] ss:$48 sps:$4 sm:$0xff]  }
 0x35e   : > { %6071 = vmatmul.mubr.bf16.gmra.mrb[116].mxu1 %v17942_v42  ;;  %v17671_v29 = vpop.eup %17670  ;;  %v20609_v2 = vmul.f32 0.5, %v20535_v5  ;;  %v20611_v37 = vmul.f32 0.5, %v14655_v22  ;;  %v6660_v27 = vmul.f32 0.70710677, %v14659_v21  ;;  %v20614_v38 = vmul.f32 0.5, %v14656_v4 }
 0x35f   : > { %6122 = vmatpush1.bf16.msra.mxu1 %v16661_v39  ;;  %6080 = vmatprep.mubr.bf16.mxu1 %v17943_v8  ;;  %v17673_v41 = vpop.eup %17672  ;;  %17686 = verf.f32 %v6659_v36  ;;  %v6671_v19 = vmul.f32 0.70710677, %v20596_v34  ;;  %v20619_v13 = vadd.f32 %v20329_v52, %v20029_v53  ;;  %v20621_v44 = vmul.f32 0.5, %v14657_v26  ;;  %v16718_v47 = vld [vmem:[%s18387_s7 + $0x900] ss:$24 sps:$4 sm:$0xff]  }
 0x360   : > { %6123 = vmatprep.subr.bf16.mxu1 %v16669_v16  ;;  %v17675_v5 = vpop.eup %17674  ;;  %11192 = vmatpush1.bf16.msra.mxu0 %v16664_v30  ;;  %17688 = verf.f32 %v6660_v27  ;;  %v20625_v22 = vadd.f32 %v20342_v54, %v20014_v50  ;;  %v20629_v4 = vadd.f32 %v20349_v14, %v20029_v53  ;;  %v16670_v46 = vld [vmem:[%s18374_s8 + $0xaa8] ss:$48 sps:$4 sm:$0xff]   ;;  %v16675_v18 = vld [vmem:[%s18374_s8 + $0xb0c] ss:$48 sps:$4 sm:$0xff]   ;;  %v20635_v52 = vmul.f32 %v6972_v55, %v20531_v9  ;;  %v22248_v9 = vld [vmem:[#allocation19_spill] sm:$0xff] }
 0x361   : > { %v17677_v39 = vpop.eup %17676  ;;  %v20638_v15 = vmul.f32 %v6983_v10, %v20564_v49  ;;  %v20640_v26 = vmul.f32 %v6984_v51, %v6408_v20  ;;  %17690 = verf.f32 %v6671_v19  ;;  %11274 = vmatprep.subr.bf16.mxu0 %v16720_v48  ;;  %v16726_v54 = vld [vmem:[%s18387_s7 + $0x934] ss:$24 sps:$4 sm:$0xff]   ;;  %v6995_v30 = vadd.f32 1.0, %v17671_v29  ;;  %v16724_v48 = vld [vmem:[%s18387_s7 + $0x930] ss:$24 sps:$4 sm:$0xff]  }
 0x362   : > { %v17679_v63 = vpop.eup %17678  ;;  %v20643_v14 = vmul.f32 0.5, %v14658_v62  ;;  %v6672_v12 = vmul.f32 0.70710677, %v20619_v13  ;;  %v6683_v58 = vmul.f32 0.70710677, %v20625_v22  ;;  %v6996_v49 = vadd.f32 1.0, %v17673_v41 }
 0x363   : > { %6124 = vmatpush1.bf16.msra.mxu1 %v16667_v59  ;;  %11194 = vmatmul.mubr.bf16.vlgmr.msra.gmra.mrb[64].mxu0 %v22248_v9  ;;  %v7007_v40 = vadd.f32 1.0, %v17675_v5  ;;  %v20648_v20 = vmul.f32 0.5, %v14659_v21  ;;  %v6684_v16 = vmul.f32 0.70710677, %v20629_v4  ;;  %v7008_v59 = vadd.f32 1.0, %v17677_v39 }
 0x364   : > { %6125 = vmatprep.subr.bf16.mxu1 %v16672_v17  ;;  %11203 = vmatprep.mubr.bf16.mxu0 %v19824_v61  ;;  %17692 = verf.f32 %v6672_v12  ;;  %v20654_v62 = vadd.f32 %v20388_v1, %v20014_v50  ;;  %v20658_v55 = vadd.f32 %v20394_v24, %v20029_v53  ;;  %v17944_v42 = vld [vmem:[%s22028_s0 + $0x120] ss:$24 sps:$4 sm:$0xff]   ;;  %v7019_v10 = vadd.f32 1.0, %v17679_v63  ;;  %v16732_v24 = vld [vmem:[%s18387_s7 + $0x964] ss:$24 sps:$4 sm:$0xff]  }
 0x365   : > { %11275 = vmatpush1.bf16.msra.mxu0 %v16718_v47  ;;  %v17681_v21 = vpop.eup %17680  ;;  %17694 = verf.f32 %v6683_v58  ;;  %v20666_v51 = vadd.f32 %v20402_v6, %v20014_v50  ;;  %v22249_v1 = vld [vmem:[#allocation62_spill] sm:$0xff]  ;;  %v17945_v27 = vld [vmem:[%s22028_s0 + $0x154] ss:$24 sps:$4 sm:$0xff]   ;;  %v20678_v17 = vmul.f32 0.5, %v20596_v34  ;;  %v7187_v19 = vmul.f32 %v6995_v30, %v20573_v31 }
 0x366   : > { %6081 = vmatmul.mubr.bf16.gmra.mrb[120].mxu1 %v17944_v42  ;;  %v20670_v36 = vadd.f32 %v22249_v1, %v20029_v53  ;;  %11276 = vmatprep.subr.bf16.mxu0 %v16726_v54  ;;  %v17683_v29 = vpop.eup %17682  ;;  %v16673_v8 = vld [vmem:[%s18374_s8 + $0xb08] ss:$48 sps:$4 sm:$0xff]   ;;  %v7020_v41 = vadd.f32 1.0, %v17681_v21  ;;  %17696 = verf.f32 %v6684_v16  ;;  %v6695_v50 = vmul.f32 0.70710677, %v20654_v62 }
 0x367   : > { %6126 = vmatpush1.bf16.msra.mxu1 %v16670_v46  ;;  %6090 = vmatprep.mubr.bf16.mxu1 %v17945_v27  ;;  %v17685_v53 = vpop.eup %17684  ;;  %v16678_v6 = vld [vmem:[%s18374_s8 + $0xb6c] ss:$48 sps:$4 sm:$0xff]   ;;  %v7188_v5 = vmul.f32 %v6996_v49, %v20578_v57  ;;  %v7031_v47 = vadd.f32 1.0, %v17683_v29  ;;  %v6696_v39 = vmul.f32 0.70710677, %v20658_v55  ;;  %v7199_v46 = vmul.f32 %v7007_v40, %v20583_v7 }
 0x368   : > { %6127 = vmatprep.subr.bf16.mxu1 %v16675_v18  ;;  %v7032_v34 = vadd.f32 1.0, %v17685_v53  ;;  %17698 = verf.f32 %v6695_v50  ;;  %v6707_v54 = vmul.f32 0.70710677, %v20666_v51  ;;  %v16730_v63 = vld [vmem:[%s18387_s7 + $0x960] ss:$24 sps:$4 sm:$0xff]   ;;  %v7200_v12 = vmul.f32 %v7008_v59, %v20586_v25  ;;  %v22250_v25 = vld [vmem:[#allocation23_spill] sm:$0xff] }
 0x369   : > { %11277 = vmatpush1.bf16.msra.mxu0 %v16724_v48  ;;  %v17687_v18 = vpop.eup %17686  ;;  %v7211_v31 = vmul.f32 %v7019_v10, %v20609_v2  ;;  %17700 = verf.f32 %v6696_v39  ;;  %v6708_v57 = vmul.f32 0.70710677, %v20670_v36  ;;  %v16738_v30 = vld [vmem:[%s18387_s7 + $0x994] ss:$24 sps:$4 sm:$0xff]   ;;  %v16676_v7 = vld [vmem:[%s18374_s8 + $0xb68] ss:$48 sps:$4 sm:$0xff]   ;;  %v7212_v40 = vmul.f32 %v7020_v41, %v20611_v37 }
 0x36a   : > { %11278 = vmatprep.subr.bf16.mxu0 %v16732_v24  ;;  %v17689_v58 = vpop.eup %17688  ;;  %v16681_v49 = vld [vmem:[%s18374_s8 + $0xbcc] ss:$48 sps:$4 sm:$0xff]   ;;  %v7223_v16 = vmul.f32 %v7031_v47, %v20614_v38  ;;  %v7043_v48 = vadd.f32 1.0, %v17687_v18  ;;  %17702 = verf.f32 %v6707_v54  ;;  %v7224_v2 = vmul.f32 %v7032_v34, %v20621_v44  ;;  %v22252_v10 = vld [vmem:[#allocation55_spill] sm:$0xff]  ;;  %v17946_v50 = vld [vmem:[%s22028_s0 + $0x150] ss:$24 sps:$4 sm:$0xff]  }
 0x36b   : > { %6128 = vmatpush1.bf16.msra.mxu1 %v16673_v8  ;;  %v17691_v21 = vpop.eup %17690  ;;  %11204 = vmatmul.mubr.bf16.gmra.mrb[68].mxu0 %v22250_v25  ;;  %v7044_v59 = vadd.f32 1.0, %v17689_v58  ;;  %17704 = verf.f32 %v6708_v57  ;;  %v22251_v42 = vld [vmem:[#allocation52_spill] sm:$0xff]  ;;  %v22253_v24 = vld [vmem:[#allocation27_spill] sm:$0xff]  ;;  %v22254_v8 = vld [vmem:[#allocation61_spill] sm:$0xff]  ;;  %v6492_v54 = vmul.f32 0.5, %v20629_v4  ;;  %v20742_v18 = vpack.c.bf16 %v7211_v31, %v7199_v46 }
 0x36c   : > { %6129 = vmatprep.subr.bf16.mxu1 %v16678_v6  ;;  %v20700_v1 = vpack.c.bf16 %v22252_v10, %v22251_v42  ;;  %11213 = vmatprep.mubr.bf16.mxu0 %v22253_v24  ;;  %v7235_v37 = vmul.f32 %v7043_v48, %v20643_v14  ;;  %v7055_v38 = vadd.f32 1.0, %v17691_v21  ;;  %v16736_v29 = vld [vmem:[%s18387_s7 + $0x990] ss:$24 sps:$4 sm:$0xff]   ;;  %v20707_v27 = vpack.c.bf16 %v20507_v60, %v22254_v8  ;;  %v22255_v44 = vld [vmem:[#allocation58_spill] sm:$0xff]  ;;  %v17947_v34 = vld [vmem:[%s22028_s0 + $0xc] ss:$24 sps:$4 sm:$0xff]  }
 0x36d   : > { %11279 = vmatpush1.bf16.msra.mxu0 %v16730_v63  ;;  %v20711_v41 = vpack.c.bf16 %v20448_v33, %v22255_v44  ;;  %v16679_v53 = vld [vmem:[%s18374_s8 + $0xbc8] ss:$48 sps:$4 sm:$0xff]   ;;  %v7236_v14 = vmul.f32 %v7044_v59, %v20648_v20  ;;  %v6480_v6 = vmul.f32 0.5, %v20619_v13  ;;  %v16744_v47 = vld [vmem:[%s18387_s7 + $0x9c4] ss:$24 sps:$4 sm:$0xff]   ;;  %v20722_v60 = vpack.c.bf16 %v20635_v52, %v20569_v11 }
 0x36e   : > { %6091 = vmatmul.mubr.bf16.gmra.mrb[124].mxu1 %v17946_v50  ;;  %11280 = vmatprep.subr.bf16.mxu0 %v16738_v30  ;;  %v20726_v33 = vpack.c.bf16 %v20606_v28, %v20528_v35  ;;  %v17693_v39 = vpop.eup %17692  ;;  %v16684_v20 = vld [vmem:[%s18374_s8 + $0xc2c] ss:$48 sps:$4 sm:$0xff]   ;;  %v6491_v13 = vmul.f32 0.5, %v20625_v22  ;;  %v20735_v11 = vpack.c.bf16 %v7188_v5, %v20640_v26  ;;  %v20738_v35 = vpack.c.bf16 %v7187_v19, %v20638_v15  ;;  %v16682_v30 = vld [vmem:[%s18374_s8 + $0xc28] ss:$48 sps:$4 sm:$0xff]   ;;  %v22258_v59 = vld [vmem:[#allocation37_spill] sm:$0xff] }
 0x36f   : > { %6130 = vmatpush1.bf16.msra.mxu1 %v16676_v7  ;;  %6133 = vmatprep.mubr.bf16.mxu1 %v17947_v34  ;;  %v17695_v28 = vpop.eup %17694  ;;  %v7056_v52 = vadd.f32 1.0, %v17693_v39  ;;  %v20740_v63 = vpack.c.bf16 %v7212_v40, %v7200_v12  ;;  %v20744_v57 = vpack.c.bf16 %v7236_v14, %v7224_v2  ;;  %v7247_v4 = vmul.f32 %v7055_v38, %v20678_v17  ;;  %v16742_v5 = vld [vmem:[%s18387_s7 + $0x9c0] ss:$24 sps:$4 sm:$0xff]   ;;  %v16750_v12 = vld [vmem:[%s18387_s7 + $0x9f4] ss:$24 sps:$4 sm:$0xff]  }
 0x370   : > { %6131 = vmatprep.subr.bf16.mxu1 %v16681_v49  ;;  %v17697_v22 = vpop.eup %17696  ;;  %v7067_v26 = vadd.f32 1.0, %v17695_v28  ;;  %v20749_v15 = vpack.c.bf16 %v7235_v37, %v7223_v16  ;;  %v6503_v7 = vmul.f32 0.5, %v20654_v62  ;;  %v16687_v31 = vld [vmem:[%s18374_s8 + $0xc8c] ss:$48 sps:$4 sm:$0xff]   ;;  %v6504_v40 = vmul.f32 0.5, %v20658_v55 }
 0x371   : > { %11281 = vmatpush1.bf16.msra.mxu0 %v16736_v29  ;;  %v7248_v19 = vmul.f32 %v7056_v52, %v6480_v6  ;;  %v7068_v58 = vadd.f32 1.0, %v17697_v22  ;;  %v22257_v17 = vld [vmem:[#allocation24_spill] sm:$0xff]  ;;  %v6515_v2 = vmul.f32 0.5, %v20666_v51  ;;  %v6516_v10 = vmul.f32 0.5, %v20670_v36  ;;  %v16756_v50 = vld [vmem:[%s18387_s7 + $0xa24] ss:$24 sps:$4 sm:$0xff]  }
 0x372   : > { %22256 = vst [vmem:[#allocation62_spill] sm:$0xff] %v20749_v15  ;;  %11282 = vmatprep.subr.bf16.mxu0 %v16744_v47  ;;  %v17699_v46 = vpop.eup %17698  ;;  %v7259_v49 = vmul.f32 %v7067_v26, %v6491_v13  ;;  %v16748_v37 = vld [vmem:[%s18387_s7 + $0x9f0] ss:$24 sps:$4 sm:$0xff]   ;;  %v16690_v14 = vld [vmem:[%s18374_s8 + $0xcec] ss:$48 sps:$4 sm:$0xff]  }
 0x373   : > { %6132 = vmatpush1.bf16.msra.mxu1 %v16679_v53  ;;  %v17701_v48 = vpop.eup %17700  ;;  %11214 = vmatmul.mubr.bf16.gmra.mrb[72].mxu0 %v22257_v17  ;;  %v7260_v16 = vmul.f32 %v7068_v58, %v6492_v54  ;;  %v7079_v21 = vadd.f32 1.0, %v17699_v46  ;;  %v17948_v29 = vld [vmem:[%s22028_s0 + $0x8] ss:$24 sps:$4 sm:$0xff]   ;;  %v17949_v53 = vld [vmem:[%s22028_s0 + $0x3c] ss:$24 sps:$4 sm:$0xff]  }
 0x374   : > { %6214 = vmatprep.subr.bf16.mxu1 %v16684_v20  ;;  %v17703_v62 = vpop.eup %17702  ;;  %11223 = vmatprep.mubr.bf16.mxu0 %v22258_v59  ;;  %v7080_v42 = vadd.f32 1.0, %v17701_v48  ;;  %v20760_v55 = vpack.c.bf16 %v7259_v49, %v7247_v4  ;;  %v16685_v8 = vld [vmem:[%s18374_s8 + $0xc88] ss:$48 sps:$4 sm:$0xff]   ;;  %v16762_v54 = vld [vmem:[%s18387_s7 + $0xa54] ss:$24 sps:$4 sm:$0xff]  }
 0x375   : > { %11283 = vmatpush1.bf16.msra.mxu0 %v16742_v5  ;;  %v17705_v38 = vpop.eup %17704  ;;  %v7271_v51 = vmul.f32 %v7079_v21, %v6503_v7  ;;  %v7091_v44 = vadd.f32 1.0, %v17703_v62  ;;  %v20767_v36 = vpack.c.bf16 %v7260_v16, %v7248_v19  ;;  %v16754_v20 = vld [vmem:[%s18387_s7 + $0xa20] ss:$24 sps:$4 sm:$0xff]   ;;  %v16693_v52 = vld [vmem:[%s18374_s8 + $0xd4c] ss:$48 sps:$4 sm:$0xff]   ;;  %v22264_v4 = vld [vmem:[#allocation39_spill] sm:$0xff] }
 0x376   : > { %22259 = vst [vmem:[#allocation52_spill] sm:$0xff] %v20760_v55  ;;  %6134 = vmatmul.mubr.bf16.vlgmr.msra.gmra.mrb[96].mxu1 %v17948_v29  ;;  %11284 = vmatprep.subr.bf16.mxu0 %v16750_v12  ;;  %v7272_v6 = vmul.f32 %v7080_v42, %v6504_v40  ;;  %v7092_v47 = vadd.f32 1.0, %v17705_v38  ;;  %v16688_v13 = vld [vmem:[%s18374_s8 + $0xce8] ss:$48 sps:$4 sm:$0xff]   ;;  %v16768_v58 = vld [vmem:[%s18387_s7 + $0xa84] ss:$24 sps:$4 sm:$0xff]  }
 0x377   : > { %22260 = vst [vmem:[#allocation55_spill] sm:$0xff] %v20767_v36  ;;  %6215 = vmatpush1.bf16.msra.mxu1 %v16682_v30  ;;  %6143 = vmatprep.mubr.bf16.mxu1 %v17949_v53  ;;  %v7283_v39 = vmul.f32 %v7091_v44, %v6515_v2  ;;  %v22263_v30 = vld [vmem:[#allocation38_spill] sm:$0xff]  ;;  %v16760_v26 = vld [vmem:[%s18387_s7 + $0xa50] ss:$24 sps:$4 sm:$0xff]   ;;  %v17951_v7 = vld [vmem:[%s22028_s0 + $0x6c] ss:$24 sps:$4 sm:$0xff]  }
 0x378   : > { %6216 = vmatprep.subr.bf16.mxu1 %v16687_v31  ;;  %v7284_v34 = vmul.f32 %v7092_v47, %v6516_v10  ;;  %v17950_v5 = vld [vmem:[%s22028_s0 + $0x38] ss:$24 sps:$4 sm:$0xff]   ;;  %v16696_v12 = vld [vmem:[%s18374_s8 + $0xdac] ss:$48 sps:$4 sm:$0xff]   ;;  %v16772_v21 = vld [vmem:[%s18387_s7 + $0xab0] ss:$24 sps:$4 sm:$0xff]  }
 0x379   : > { %11285 = vmatpush1.bf16.msra.mxu0 %v16748_v37  ;;  %v20776_v28 = vpack.c.bf16 %v7283_v39, %v7271_v51  ;;  %v16691_v19 = vld [vmem:[%s18374_s8 + $0xd48] ss:$48 sps:$4 sm:$0xff]   ;;  %v16774_v49 = vld [vmem:[%s18387_s7 + $0xab4] ss:$24 sps:$4 sm:$0xff]   ;;  %v22266_v16 = vld [vmem:[#allocation41_spill] sm:$0xff] }
 0x37a   : > { %11286 = vmatprep.subr.bf16.mxu0 %v16756_v50  ;;  %v20779_v22 = vpack.c.bf16 %v7284_v34, %v7272_v6  ;;  %v16766_v46 = vld [vmem:[%s18387_s7 + $0xa80] ss:$24 sps:$4 sm:$0xff]   ;;  %v16699_v40 = vld [vmem:[%s18374_s8 + $0xe0c] ss:$48 sps:$4 sm:$0xff]   ;;  %v17952_v2 = vld [vmem:[%s22028_s0 + $0x68] ss:$24 sps:$4 sm:$0xff]  }
 0x37b   : > { %22261 = vst [vmem:[#allocation61_spill] sm:$0xff] %v20776_v28  ;;  %6217 = vmatpush1.bf16.msra.mxu1 %v16685_v8  ;;  %11224 = vmatmul.mubr.bf16.gmra.mrb[76].mxu0 %v22263_v30  ;;  %v16694_v31 = vld [vmem:[%s18374_s8 + $0xda8] ss:$48 sps:$4 sm:$0xff]   ;;  %v16780_v42 = vld [vmem:[%s18387_s7 + $0xae4] ss:$24 sps:$4 sm:$0xff]  }
 0x37c   : > { %22262 = vst [vmem:[#allocation58_spill] sm:$0xff] %v20779_v22  ;;  %6218 = vmatprep.subr.bf16.mxu1 %v16690_v14  ;;  %11233 = vmatprep.mubr.bf16.mxu0 %v22264_v4  ;;  %v22265_v48 = vld [vmem:[#allocation40_spill] sm:$0xff]  ;;  %v17953_v10 = vld [vmem:[%s22028_s0 + $0x9c] ss:$24 sps:$4 sm:$0xff]   ;;  %v16778_v38 = vld [vmem:[%s18387_s7 + $0xae0] ss:$24 sps:$4 sm:$0xff]  }
 0x37d   : > { %11287 = vmatpush1.bf16.msra.mxu0 %v16754_v20  ;;  %v16697_v62 = vld [vmem:[%s18374_s8 + $0xe08] ss:$48 sps:$4 sm:$0xff]   ;;  %v16702_v37 = vld [vmem:[%s18374_s8 + $0xe6c] ss:$48 sps:$4 sm:$0xff]  }
 0x37e   : > { %6144 = vmatmul.mubr.bf16.gmra.mrb[100].mxu1 %v17950_v5  ;;  %11288 = vmatprep.subr.bf16.mxu0 %v16762_v54  ;;  %v16700_v29 = vld [vmem:[%s18374_s8 + $0xe68] ss:$48 sps:$4 sm:$0xff]   ;;  %v16786_v8 = vld [vmem:[%s18387_s7 + $0xb14] ss:$24 sps:$4 sm:$0xff]   ;;  %v16792_v47 = vld [vmem:[%s18387_s7 + $0xb44] ss:$24 sps:$4 sm:$0xff]  }
 0x37f   : > { %6219 = vmatpush1.bf16.msra.mxu1 %v16688_v13  ;;  %6153 = vmatprep.mubr.bf16.mxu1 %v17951_v7  ;;  %v16705_v51 = vld [vmem:[%s18374_s8 + $0xecc] ss:$48 sps:$4 sm:$0xff]   ;;  %v16784_v53 = vld [vmem:[%s18387_s7 + $0xb10] ss:$24 sps:$4 sm:$0xff]   ;;  %v17954_v14 = vld [vmem:[%s22028_s0 + $0x98] ss:$24 sps:$4 sm:$0xff]  }
 0x380   : > { %6220 = vmatprep.subr.bf16.mxu1 %v16693_v52  ;;  %v22267_v44 = vld [vmem:[#allocation42_spill] sm:$0xff]  ;;  %v22268_v50 = vld [vmem:[#allocation44_spill] sm:$0xff] }
 0x381   : > { %11289 = vmatpush1.bf16.msra.mxu0 %v16760_v26  ;;  %v16703_v6 = vld [vmem:[%s18374_s8 + $0xec8] ss:$48 sps:$4 sm:$0xff]   ;;  %v17955_v39 = vld [vmem:[%s22028_s0 + $0xcc] ss:$24 sps:$4 sm:$0xff]  }
 0x382   : > { %11290 = vmatprep.subr.bf16.mxu0 %v16768_v58  ;;  %v16708_v34 = vld [vmem:[%s18374_s8 + $0xf2c] ss:$48 sps:$4 sm:$0xff]   ;;  %v16790_v20 = vld [vmem:[%s18387_s7 + $0xb40] ss:$24 sps:$4 sm:$0xff]   ;;  %v22269_v26 = vld [vmem:[#allocation43_spill] sm:$0xff] }
 0x383   : > { %6221 = vmatpush1.bf16.msra.mxu1 %v16691_v19  ;;  %11234 = vmatmul.mubr.bf16.gmra.mrb[80].mxu0 %v22265_v48  ;;  %v16706_v13 = vld [vmem:[%s18374_s8 + $0xf28] ss:$48 sps:$4 sm:$0xff]   ;;  %v16798_v54 = vld [vmem:[%s18387_s7 + $0xb74] ss:$24 sps:$4 sm:$0xff]  }
 0x384   : > { %6222 = vmatprep.subr.bf16.mxu1 %v16696_v12  ;;  %11243 = vmatprep.mubr.bf16.mxu0 %v22266_v16  ;;  %v16711_v52 = vld [vmem:[%s18374_s8 + $0xf8c] ss:$48 sps:$4 sm:$0xff]   ;;  %v16796_v19 = vld [vmem:[%s18387_s7 + $0xb70] ss:$24 sps:$4 sm:$0xff]  }
 0x385   : > { %11291 = vmatpush1.bf16.msra.mxu0 %v16766_v46  ;;  %v22270_v5 = vld [vmem:[#allocation46_spill] sm:$0xff]  ;;  %v17956_v58 = vld [vmem:[%s22028_s0 + $0xc8] ss:$24 sps:$4 sm:$0xff]  }
 0x386   : > { %6154 = vmatmul.mubr.bf16.gmra.mrb[104].mxu1 %v17952_v2  ;;  %11292 = vmatprep.subr.bf16.mxu0 %v16774_v49  ;;  %v16709_v7 = vld [vmem:[%s18374_s8 + $0xf88] ss:$48 sps:$4 sm:$0xff]   ;;  %v16804_v12 = vld [vmem:[%s18387_s7 + $0xba4] ss:$24 sps:$4 sm:$0xff]  }
 0x387   : > { %6223 = vmatpush1.bf16.msra.mxu1 %v16694_v31  ;;  %6163 = vmatprep.mubr.bf16.mxu1 %v17953_v10  ;;  %v17957_v46 = vld [vmem:[%s22028_s0 + $0xfc] ss:$24 sps:$4 sm:$0xff]   ;;  %v16802_v49 = vld [vmem:[%s18387_s7 + $0xba0] ss:$24 sps:$4 sm:$0xff]  }
 0x388   : > { %6224 = vmatprep.subr.bf16.mxu1 %v16699_v40  ;;  %v16714_v31 = vld [vmem:[%s18374_s8 + $0xfec] ss:$48 sps:$4 sm:$0xff]   ;;  %v16712_v40 = vld [vmem:[%s18374_s8 + $0xfe8] ss:$48 sps:$4 sm:$0xff]  }
 0x389   : > { %11293 = vmatpush1.bf16.msra.mxu0 %v16772_v21  ;;  %v16810_v21 = vld [vmem:[%s18387_s7 + $0xbd4] ss:$24 sps:$4 sm:$0xff]   ;;  %v17958_v10 = vld [vmem:[%s22028_s0 + $0xf8] ss:$24 sps:$4 sm:$0xff]  }
 0x38a   : > { %11294 = vmatprep.subr.bf16.mxu0 %v16780_v42  ;;  %v16717_v2 = vld [vmem:[%s18374_s8 + $0x104c] ss:$48 sps:$4 sm:$0xff]   ;;  %v16808_v42 = vld [vmem:[%s18387_s7 + $0xbd0] ss:$24 sps:$4 sm:$0xff]  }
 0x38b   : > { %6225 = vmatpush1.bf16.msra.mxu1 %v16697_v62  ;;  %11244 = vmatmul.mubr.bf16.gmra.mrb[84].mxu0 %v22267_v44  ;;  %v22271_v62 = vld [vmem:[#allocation45_spill] sm:$0xff] }
 0x38c   : > { %6226 = vmatprep.subr.bf16.mxu1 %v16702_v37  ;;  %11253 = vmatprep.mubr.bf16.mxu0 %v22268_v50  ;;  %v16715_v37 = vld [vmem:[%s18374_s8 + $0x1048] ss:$48 sps:$4 sm:$0xff]  }
 0x38d   : > { %11295 = vmatpush1.bf16.msra.mxu0 %v16778_v38  ;;  %v16723_v38 = vld [vmem:[%s18374_s8 + $0x10ac] ss:$48 sps:$4 sm:$0xff]  }
 0x38e   : > { %6164 = vmatmul.mubr.bf16.gmra.mrb[108].mxu1 %v17954_v14  ;;  %11296 = vmatprep.subr.bf16.mxu0 %v16786_v8  ;;  %v17959_v8 = vld [vmem:[%s22028_s0 + $0x12c] ss:$24 sps:$4 sm:$0xff]   ;;  %v17960_v14 = vld [vmem:[%s22028_s0 + $0x128] ss:$24 sps:$4 sm:$0xff]  }
 0x38f   : > { %6227 = vmatpush1.bf16.msra.mxu1 %v16700_v29  ;;  %6173 = vmatprep.mubr.bf16.mxu1 %v17955_v39  ;;  %v16816_v29 = vld [vmem:[%s18387_s7 + $0xc04] ss:$24 sps:$4 sm:$0xff]  }
 0x390   : > { %6228 = vmatprep.subr.bf16.mxu1 %v16705_v51  ;;  %v16721_v51 = vld [vmem:[%s18374_s8 + $0x10a8] ss:$48 sps:$4 sm:$0xff]   ;;  %v16735_v39 = vld [vmem:[%s18374_s8 + $0x116c] ss:$48 sps:$4 sm:$0xff]  }
 0x391   : > { %11297 = vmatpush1.bf16.msra.mxu0 %v16784_v53  ;;  %v16729_v53 = vld [vmem:[%s18374_s8 + $0x110c] ss:$48 sps:$4 sm:$0xff]  }
 0x392   : > { %11298 = vmatprep.subr.bf16.mxu0 %v16792_v47  ;;  %v17961_v47 = vld [vmem:[%s22028_s0 + $0x15c] ss:$24 sps:$4 sm:$0xff]  }
 0x393   : > { %6229 = vmatpush1.bf16.msra.mxu1 %v16703_v6  ;;  %11254 = vmatmul.mubr.bf16.gmra.mrb[88].mxu0 %v22269_v26  ;;  %v16727_v6 = vld [vmem:[%s18374_s8 + $0x1108] ss:$48 sps:$4 sm:$0xff]  }
 0x394   : > { %6230 = vmatprep.subr.bf16.mxu1 %v16708_v34  ;;  %11263 = vmatprep.mubr.bf16.mxu0 %v22270_v5  ;;  %v16733_v34 = vld [vmem:[%s18374_s8 + $0x1168] ss:$48 sps:$4 sm:$0xff]  }
 0x395   : > { %11299 = vmatpush1.bf16.msra.mxu0 %v16790_v20  ;;  %v16741_v20 = vld [vmem:[%s18374_s8 + $0x11cc] ss:$48 sps:$4 sm:$0xff]  }
 0x396   : > { %6174 = vmatmul.mubr.bf16.gmra.mrb[112].mxu1 %v17956_v58  ;;  %11300 = vmatprep.subr.bf16.mxu0 %v16798_v54  ;;  %v16739_v54 = vld [vmem:[%s18374_s8 + $0x11c8] ss:$48 sps:$4 sm:$0xff]  }
 0x397   : > { %6231 = vmatpush1.bf16.msra.mxu1 %v16706_v13  ;;  %6183 = vmatprep.mubr.bf16.mxu1 %v17957_v46  ;;  %v17962_v13 = vld [vmem:[%s22028_s0 + $0x158] ss:$24 sps:$4 sm:$0xff]  }
 0x398   : > { %6232 = vmatprep.subr.bf16.mxu1 %v16711_v52  ;;  %v17963_v52 = vld [vmem:[%s22028_s0 + $0x14] ss:$24 sps:$4 sm:$0xff]   ;;  %v16745_v58 = vld [vmem:[%s18387_s7 + $0x8] ss:$24 sps:$4 sm:$0xff]   ;;  %v16751_v46 = vld [vmem:[%s18387_s7 + $0x38] ss:$24 sps:$4 sm:$0xff]  }
 0x399   : > { %11301 = vmatpush1.bf16.msra.mxu0 %v16796_v19  ;;  %v16747_v19 = vld [vmem:[%s18387_s7 + $0xc] ss:$24 sps:$4 sm:$0xff]  }
 0x39a   : > { %11302 = vmatprep.subr.bf16.mxu0 %v16804_v12  ;;  %v17964_v12 = vld [vmem:[%s22028_s0 + $0x10] ss:$24 sps:$4 sm:$0xff]  }
 0x39b   : > { %6233 = vmatpush1.bf16.msra.mxu1 %v16709_v7  ;;  %11264 = vmatmul.mubr.bf16.gmra.mrb[92].mxu0 %v22271_v62  ;;  %v16753_v7 = vld [vmem:[%s18387_s7 + $0x3c] ss:$24 sps:$4 sm:$0xff]  }
 0x39c   : > { %6234 = vmatprep.subr.bf16.mxu1 %v16714_v31  ;;  %v17965_v31 = vld [vmem:[%s22028_s0 + $0x44] ss:$24 sps:$4 sm:$0xff]  }
 0x39d   : > { %11303 = vmatpush1.bf16.msra.mxu0 %v16802_v49  ;;  %v16759_v49 = vld [vmem:[%s18387_s7 + $0x6c] ss:$24 sps:$4 sm:$0xff]  }
 0x39e   : > { %6184 = vmatmul.mubr.bf16.gmra.mrb[116].mxu1 %v17958_v10  ;;  %11304 = vmatprep.subr.bf16.mxu0 %v16810_v21  ;;  %v16765_v21 = vld [vmem:[%s18387_s7 + $0x9c] ss:$24 sps:$4 sm:$0xff]  }
 0x39f   : > { %6235 = vmatpush1.bf16.msra.mxu1 %v16712_v40  ;;  %6193 = vmatprep.mubr.bf16.mxu1 %v17959_v8  ;;  %v16757_v40 = vld [vmem:[%s18387_s7 + $0x68] ss:$24 sps:$4 sm:$0xff]   ;;  %v17967_v10 = vld [vmem:[%s22028_s0 + $0x74] ss:$24 sps:$4 sm:$0xff]  }
 0x3a0   : > { %6236 = vmatprep.subr.bf16.mxu1 %v16717_v2  ;;  %v17966_v2 = vld [vmem:[%s22028_s0 + $0x40] ss:$24 sps:$4 sm:$0xff]  }
 0x3a1   : > { %11305 = vmatpush1.bf16.msra.mxu0 %v16808_v42  ;;  %v16763_v42 = vld [vmem:[%s18387_s7 + $0x98] ss:$24 sps:$4 sm:$0xff]   ;;  %v16769_v8 = vld [vmem:[%s18387_s7 + $0xc8] ss:$24 sps:$4 sm:$0xff]  }
 0x3a2   : > { %11387 = vmatprep.subr.bf16.mxu0 %v16816_v29 }
 0x3a3   : > { %6237 = vmatpush1.bf16.msra.mxu1 %v16715_v37  ;;  %v16771_v37 = vld [vmem:[%s18387_s7 + $0xcc] ss:$24 sps:$4 sm:$0xff]  }
 0x3a4   : > { %6238 = vmatprep.subr.bf16.mxu1 %v16723_v38  ;;  %v22272_v38 = vld [vmem:[#allocation14_spill] sm:$0xff] }
 0x3a5   : > { %v1139_v29 = vsub.s32 6, %v22272_v38 }
 0x3a6   : > { %6194 = vmatmul.mubr.bf16.gmra.mrb[120].mxu1 %v17960_v14  ;;  %v17968_v14 = vld [vmem:[%s22028_s0 + $0x70] ss:$24 sps:$4 sm:$0xff]  }
 0x3a7   : > { %6239 = vmatpush1.bf16.msra.mxu1 %v16721_v51  ;;  %6203 = vmatprep.mubr.bf16.mxu1 %v17961_v47  ;;  %v1143_v51 = vsub.s32 7, %v22272_v38 }
 0x3a8   : > { %6240 = vmatprep.subr.bf16.mxu1 %v16729_v53  ;;  %v16777_v53 = vld [vmem:[%s18387_s7 + $0xfc] ss:$24 sps:$4 sm:$0xff]  }
 0x3ab   : > { %6241 = vmatpush1.bf16.msra.mxu1 %v16727_v6  ;;  %v17969_v6 = vld [vmem:[%s18381_s27] sm:$0xff] }
 0x3ac   : > { %6242 = vmatprep.subr.bf16.mxu1 %v16735_v39  ;;  %v20904_v47 = vrot.slane %v17969_v6, %v1139_v29  ;;  %v20906_v39 = vrot.slane %v17969_v6, %v1143_v51  ;;  %v16787_v29 = vld [vmem:[%s18387_s7 + $0x158] ss:$24 sps:$4 sm:$0xff]   ;;  %v16795_v51 = vld [vmem:[%s18387_s7 + $0x18c] ss:$24 sps:$4 sm:$0xff]  }
 0x3ae   : > { %6204 = vmatmul.mubr.bf16.gmra.mrb[124].mxu1 %v17962_v13  ;;  %v16783_v13 = vld [vmem:[%s18387_s7 + $0x12c] ss:$24 sps:$4 sm:$0xff]  }
 0x3af   : > { %6243 = vmatpush1.bf16.msra.mxu1 %v16733_v34  ;;  %6246 = vmatprep.mubr.bf16.mxu1 %v17963_v52  ;;  %v16775_v34 = vld [vmem:[%s18387_s7 + $0xf8] ss:$24 sps:$4 sm:$0xff]  }
 0x3b0   : > { %6244 = vmatprep.subr.bf16.mxu1 %v16741_v20  ;;  %v17970_v20 = vld [vmem:[%s22028_s0 + $0xa4] ss:$24 sps:$4 sm:$0xff]  }
 0x3b3   : > { %6245 = vmatpush1.bf16.msra.mxu1 %v16739_v54 }
 0x3b4   : > { %11613 = vmatprep.subr.bf16.mxu1 %v16747_v19 }
 0x3b6   : > { %6247 = vmatmul.mubr.bf16.vlgmr.msra.gmra.mrb[96].mxu1 %v17964_v12  ;;  %v16781_v12 = vld [vmem:[%s18387_s7 + $0x128] ss:$24 sps:$4 sm:$0xff]  }
 0x3b7   : > { %11614 = vmatpush1.bf16.msra.mxu1 %v16745_v58  ;;  %6256 = vmatprep.mubr.bf16.mxu1 %v17965_v31 }
 0x3b8   : > { %11615 = vmatprep.subr.bf16.mxu1 %v16753_v7 }
 0x3bb   : > { %11616 = vmatpush1.bf16.msra.mxu1 %v16751_v46 }
 0x3bc   : > { %11617 = vmatprep.subr.bf16.mxu1 %v16759_v49 }
 0x3be   : > { %6257 = vmatmul.mubr.bf16.gmra.mrb[100].mxu1 %v17966_v2 }
 0x3bf   : > { %11618 = vmatpush1.bf16.msra.mxu1 %v16757_v40  ;;  %6266 = vmatprep.mubr.bf16.mxu1 %v17967_v10  ;;  %v16789_v40 = vld [vmem:[%s18387_s7 + $0x15c] ss:$24 sps:$4 sm:$0xff]   ;;  %v17971_v10 = vld [vmem:[%s22028_s0 + $0xa0] ss:$24 sps:$4 sm:$0xff]  }
 0x3c0   : > { %11619 = vmatprep.subr.bf16.mxu1 %v16765_v21 }
 0x3c3   : > { %11620 = vmatpush1.bf16.msra.mxu1 %v16763_v42 }
 0x3c4   : > { %11621 = vmatprep.subr.bf16.mxu1 %v16771_v37 }
 0x3c6   : > { %6267 = vmatmul.mubr.bf16.gmra.mrb[104].mxu1 %v17968_v14  ;;  %v5570_v54 = vpop.f32.mrb[64].mxu1 }
 0x3c7   : > { %11622 = vmatpush1.bf16.msra.mxu1 %v16769_v8  ;;  %6276 = vmatprep.mubr.bf16.mxu1 %v17970_v20  ;;  %v20914_v52 = vadd.f32 %v5570_v54, %v20904_v47  ;;  %v5572_v19 = vpop.f32.mrb[65].mxu1  ;;  %v17972_v8 = vld [vmem:[%s22028_s0 + $0xd4] ss:$24 sps:$4 sm:$0xff]  }
 0x3c8   : > { %11623 = vmatprep.subr.bf16.mxu1 %v16777_v53  ;;  %v20917_v58 = vadd.f32 %v5572_v19, %v20906_v39  ;;  %v5574_v7 = vpop.f32.mrb[66].mxu1 }
 0x3c9   : > { %v6525_v46 = vmul.f32 0.70710677, %v20914_v52  ;;  %v14606_v31 = vadd.f32 %v5574_v7, %v20904_v47  ;;  %v5576_v49 = vpop.f32.mrb[67].mxu1  ;;  %v6333_v62 = vmul.f32 0.5, %v20914_v52 }
 0x3ca   : > { %v6526_v21 = vmul.f32 0.70710677, %v20917_v58  ;;  %v14607_v2 = vadd.f32 %v5576_v49, %v20906_v39 }
 0x3cb   : > { %11624 = vmatpush1.bf16.msra.mxu1 %v16775_v34  ;;  %17706 = verf.f32 %v6525_v46  ;;  %v6537_v42 = vmul.f32 0.70710677, %v14606_v31 }
 0x3cc   : > { %11625 = vmatprep.subr.bf16.mxu1 %v16783_v13  ;;  %17708 = verf.f32 %v6526_v21  ;;  %v6538_v37 = vmul.f32 0.70710677, %v14607_v2  ;;  %v16793_v13 = vld [vmem:[%s18387_s7 + $0x188] ss:$24 sps:$4 sm:$0xff]   ;;  %v17973_v21 = vld [vmem:[%s22028_s0 + $0xd0] ss:$24 sps:$4 sm:$0xff]  }
 0x3cd   : > { %17710 = verf.f32 %v6537_v42  ;;  %v6346_v26 = vmul.f32 0.5, %v14607_v2  ;;  %v17975_v2 = vld [vmem:[%s22028_s0 + $0x100] ss:$24 sps:$4 sm:$0xff]  }
 0x3ce   : > { %6277 = vmatmul.mubr.bf16.gmra.mrb[108].mxu1 %v17971_v10  ;;  %17712 = verf.f32 %v6538_v37  ;;  %v5580_v53 = vpop.f32.mrb[68].mxu1  ;;  %v16799_v10 = vld [vmem:[%s18387_s7 + $0x1b8] ss:$24 sps:$4 sm:$0xff]   ;;  %v17974_v37 = vld [vmem:[%s22028_s0 + $0x104] ss:$24 sps:$4 sm:$0xff]  }
 0x3cf   : > { %11626 = vmatpush1.bf16.msra.mxu1 %v16781_v12  ;;  %6286 = vmatprep.mubr.bf16.mxu1 %v17972_v8  ;;  %v20934_v14 = vadd.f32 %v5580_v53, %v20904_v47  ;;  %v5582_v6 = vpop.f32.mrb[69].mxu1  ;;  %v16801_v12 = vld [vmem:[%s18387_s7 + $0x1bc] ss:$24 sps:$4 sm:$0xff]   ;;  %v16807_v8 = vld [vmem:[%s18387_s7 + $0x1ec] ss:$24 sps:$4 sm:$0xff]  }
 0x3d0   : > { %11627 = vmatprep.subr.bf16.mxu1 %v16789_v40  ;;  %v20937_v34 = vadd.f32 %v5582_v6, %v20906_v39  ;;  %v5584_v20 = vpop.f32.mrb[70].mxu1 }
 0x3d1   : > { %v6549_v54 = vmul.f32 0.70710677, %v20934_v14  ;;  %v20942_v19 = vadd.f32 %v5584_v20, %v20904_v47  ;;  %v5586_v7 = vpop.f32.mrb[71].mxu1 }
 0x3d2   : > { %v6550_v46 = vmul.f32 0.70710677, %v20937_v34  ;;  %v20947_v49 = vadd.f32 %v5586_v7, %v20906_v39 }
 0x3d3   : > { %11628 = vmatpush1.bf16.msra.mxu1 %v16787_v29  ;;  %17714 = verf.f32 %v6549_v54  ;;  %v6561_v40 = vmul.f32 0.70710677, %v20942_v19 }
 0x3d4   : > { %11629 = vmatprep.subr.bf16.mxu1 %v16795_v51  ;;  %17716 = verf.f32 %v6550_v46  ;;  %v6562_v42 = vmul.f32 0.70710677, %v20947_v49  ;;  %v16805_v46 = vld [vmem:[%s18387_s7 + $0x1e8] ss:$24 sps:$4 sm:$0xff]  }
 0x3d5   : > { %v17707_v29 = vpop.eup %17706  ;;  %17718 = verf.f32 %v6561_v40 }
 0x3d6   : > { %6287 = vmatmul.mubr.bf16.gmra.mrb[112].mxu1 %v17973_v21  ;;  %v17709_v51 = vpop.eup %17708  ;;  %v6909_v53 = vadd.f32 1.0, %v17707_v29  ;;  %17720 = verf.f32 %v6562_v42  ;;  %v5590_v6 = vpop.f32.mrb[72].mxu1  ;;  %v16813_v29 = vld [vmem:[%s18387_s7 + $0x21c] ss:$24 sps:$4 sm:$0xff]   ;;  %v6334_v42 = vmul.f32 0.5, %v20917_v58 }
 0x3d7   : > { %11630 = vmatpush1.bf16.msra.mxu1 %v16793_v13  ;;  %6296 = vmatprep.mubr.bf16.mxu1 %v17974_v37  ;;  %v17711_v20 = vpop.eup %17710  ;;  %v6910_v54 = vadd.f32 1.0, %v17709_v51  ;;  %v20960_v13 = vadd.f32 %v5590_v6, %v20904_v47  ;;  %v5592_v7 = vpop.f32.mrb[73].mxu1  ;;  %v6345_v37 = vmul.f32 0.5, %v14606_v31 }
 0x3d8   : > { %11631 = vmatprep.subr.bf16.mxu1 %v16801_v12  ;;  %v17713_v21 = vpop.eup %17712  ;;  %v6921_v5 = vadd.f32 1.0, %v17711_v20  ;;  %v20965_v12 = vadd.f32 %v5592_v7, %v20906_v39  ;;  %v5594_v40 = vpop.f32.mrb[74].mxu1  ;;  %v7101_v44 = vmul.f32 %v6909_v53, %v6333_v62 }
 0x3d9   : > { %v6922_v51 = vadd.f32 1.0, %v17713_v21  ;;  %v6573_v6 = vmul.f32 0.70710677, %v20960_v13  ;;  %v5596_v50 = vpop.f32.mrb[75].mxu1  ;;  %v20972_v31 = vadd.f32 %v5594_v40, %v20904_v47  ;;  %v7102_v20 = vmul.f32 %v6910_v54, %v6334_v42 }
 0x3da   : > { %v7113_v16 = vmul.f32 %v6921_v5, %v6345_v37  ;;  %v6574_v52 = vmul.f32 0.70710677, %v20965_v12  ;;  %v20975_v58 = vadd.f32 %v5596_v50, %v20906_v39  ;;  %v16822_v37 = vld [vmem:[%s18387_s7 + $0xc34] ss:$24 sps:$4 sm:$0xff]  }
 0x3db   : > { %11632 = vmatpush1.bf16.msra.mxu1 %v16799_v10  ;;  %v7114_v7 = vmul.f32 %v6922_v51, %v6346_v26  ;;  %17722 = verf.f32 %v6573_v6  ;;  %v6585_v5 = vmul.f32 0.70710677, %v20972_v31  ;;  %v16811_v10 = vld [vmem:[%s18387_s7 + $0x218] ss:$24 sps:$4 sm:$0xff]   ;;  %v17976_v26 = vld [vmem:[%s22028_s0 + $0x134] ss:$24 sps:$4 sm:$0xff]  }
 0x3dc   : > { %11633 = vmatprep.subr.bf16.mxu1 %v16807_v8  ;;  %v20980_v62 = vpack.c.bf16 %v7113_v16, %v7101_v44  ;;  %17724 = verf.f32 %v6574_v52  ;;  %v6586_v8 = vmul.f32 0.70710677, %v20975_v58  ;;  %v16814_v16 = vld [vmem:[%s18387_s7 + $0xc00] ss:$24 sps:$4 sm:$0xff]   ;;  %v16819_v44 = vld [vmem:[%s18387_s7 + $0x24c] ss:$24 sps:$4 sm:$0xff]  }
 0x3dd   : > { %v17715_v50 = vpop.eup %17714  ;;  %v20988_v53 = vpack.c.bf16 %v7114_v7, %v7102_v20  ;;  %17726 = verf.f32 %v6585_v5  ;;  %v16817_v52 = vld [vmem:[%s18387_s7 + $0x248] ss:$24 sps:$4 sm:$0xff]   ;;  %v6357_v7 = vmul.f32 0.5, %v20934_v14 }
 0x3de   : > { %6297 = vmatmul.mubr.bf16.gmra.mrb[116].mxu1 %v17975_v2  ;;  %22273 = vst [vmem:[#allocation14_spill] sm:$0xff] %v20980_v62  ;;  %v17717_v54 = vpop.eup %17716  ;;  %v6933_v21 = vadd.f32 1.0, %v17715_v50  ;;  %17728 = verf.f32 %v6586_v8  ;;  %v16820_v20 = vld [vmem:[%s18387_s7 + $0xc30] ss:$24 sps:$4 sm:$0xff]   ;;  %v6369_v2 = vmul.f32 0.5, %v20942_v19 }
 0x3df   : > { %11634 = vmatpush1.bf16.msra.mxu1 %v16805_v46  ;;  %6306 = vmatprep.mubr.bf16.mxu1 %v17976_v26  ;;  %22274 = vst [vmem:[#allocation69_spill] sm:$0xff] %v20988_v53  ;;  %v5600_v46 = vpop.f32.mrb[76].mxu1  ;;  %v17719_v40 = vpop.eup %17718  ;;  %v6934_v42 = vadd.f32 1.0, %v17717_v54  ;;  %v16825_v8 = vld [vmem:[%s18387_s7 + $0x27c] ss:$24 sps:$4 sm:$0xff]   ;;  %v6358_v54 = vmul.f32 0.5, %v20937_v34 }
 0x3e0   : > { %11635 = vmatprep.subr.bf16.mxu1 %v16813_v29  ;;  %v20994_v51 = vadd.f32 %v5600_v46, %v20904_v47  ;;  %v5602_v6 = vpop.f32.mrb[77].mxu1  ;;  %11306 = vmatprep.mubr.bf16.mxu0 %v20988_v53  ;;  %v17721_v29 = vpop.eup %17720  ;;  %v6945_v5 = vadd.f32 1.0, %v17719_v40  ;;  %v6370_v46 = vmul.f32 0.5, %v20947_v49  ;;  %v7125_v19 = vmul.f32 %v6933_v21, %v6357_v7  ;;  %v16823_v21 = vld [vmem:[%s18387_s7 + $0x278] ss:$24 sps:$4 sm:$0xff]  }
 0x3e1   : > { %v21002_v26 = vadd.f32 %v5602_v6, %v20906_v39  ;;  %v5604_v50 = vpop.f32.mrb[78].mxu1  ;;  %11307 = vmatmul.mubr.bf16.vlgmr.msra.gmra.mrb[64].mxu0 %v20980_v62  ;;  %v6946_v53 = vadd.f32 1.0, %v17721_v29  ;;  %v7126_v62 = vmul.f32 %v6934_v42, %v6358_v54  ;;  %v16826_v7 = vld [vmem:[%s18387_s7 + $0xc60] ss:$24 sps:$4 sm:$0xff]  }
 0x3e2   : > { %v6597_v48 = vmul.f32 0.70710677, %v20994_v51  ;;  %v5606_v14 = vpop.f32.mrb[79].mxu1  ;;  %11388 = vmatpush1.bf16.msra.mxu0 %v16814_v16  ;;  %v7137_v40 = vmul.f32 %v6945_v5, %v6369_v2  ;;  %v21011_v4 = vadd.f32 %v5604_v50, %v20904_v47  ;;  %v17977_v16 = vld [vmem:[%s22028_s0 + $0x130] ss:$24 sps:$4 sm:$0xff]  }
 0x3e3   : > { %11636 = vmatpush1.bf16.msra.mxu1 %v16811_v10  ;;  %v6598_v6 = vmul.f32 0.70710677, %v21002_v26  ;;  %11389 = vmatprep.subr.bf16.mxu0 %v16822_v37  ;;  %v16828_v10 = vld [vmem:[%s18387_s7 + $0xc64] ss:$24 sps:$4 sm:$0xff]   ;;  %v7138_v34 = vmul.f32 %v6946_v53, %v6370_v46  ;;  %v21015_v49 = vadd.f32 %v5606_v14, %v20906_v39  ;;  %v16834_v50 = vld [vmem:[%s18387_s7 + $0xc94] ss:$24 sps:$4 sm:$0xff]  }
 0x3e4   : > { %11637 = vmatprep.subr.bf16.mxu1 %v16819_v44  ;;  %17730 = verf.f32 %v6597_v48  ;;  %v6609_v44 = vmul.f32 0.70710677, %v21011_v4  ;;  %v21022_v37 = vpack.c.bf16 %v7137_v40, %v7125_v19  ;;  %v17978_v48 = vld [vmem:[%s22028_s0 + $0x164] ss:$24 sps:$4 sm:$0xff]  }
 0x3e5   : > { %17732 = verf.f32 %v6598_v6  ;;  %v17723_v53 = vpop.eup %17722  ;;  %v6610_v42 = vmul.f32 0.70710677, %v21015_v49  ;;  %v21028_v29 = vpack.c.bf16 %v7138_v34, %v7126_v62  ;;  %v16832_v62 = vld [vmem:[%s18387_s7 + $0xc90] ss:$24 sps:$4 sm:$0xff]   ;;  %v16837_v34 = vld [vmem:[%s18387_s7 + $0x2dc] ss:$24 sps:$4 sm:$0xff]  }
 0x3e6   : > { %6307 = vmatmul.mubr.bf16.gmra.mrb[120].mxu1 %v17977_v16  ;;  %22275 = vst [vmem:[#allocation70_spill] sm:$0xff] %v21022_v37  ;;  %11390 = vmatpush1.bf16.msra.mxu0 %v16820_v20  ;;  %v17725_v2 = vpop.eup %17724  ;;  %17734 = verf.f32 %v6609_v44  ;;  %v5610_v5 = vpop.f32.mrb[80].mxu1  ;;  %v6957_v54 = vadd.f32 1.0, %v17723_v53  ;;  %v16829_v20 = vld [vmem:[%s18387_s7 + $0x2a8] ss:$24 sps:$4 sm:$0xff]   ;;  %v6382_v44 = vmul.f32 0.5, %v20965_v12 }
 0x3e7   : > { %11638 = vmatpush1.bf16.msra.mxu1 %v16817_v52  ;;  %6316 = vmatprep.mubr.bf16.mxu1 %v17978_v48  ;;  %22276 = vst [vmem:[#allocation71_spill] sm:$0xff] %v21028_v29  ;;  %v16831_v52 = vld [vmem:[%s18387_s7 + $0x2ac] ss:$24 sps:$4 sm:$0xff]   ;;  %17736 = verf.f32 %v6610_v42  ;;  %v21034_v46 = vadd.f32 %v5610_v5, %v20904_v47  ;;  %v5612_v14 = vpop.f32.mrb[81].mxu1  ;;  %v17727_v19 = vpop.eup %17726  ;;  %v6958_v40 = vadd.f32 1.0, %v17725_v2  ;;  %v6393_v48 = vmul.f32 0.5, %v20972_v31 }
 0x3e8   : > { %11639 = vmatprep.subr.bf16.mxu1 %v16825_v8  ;;  %11391 = vmatprep.subr.bf16.mxu0 %v16828_v10  ;;  %v6381_v8 = vmul.f32 0.5, %v20960_v13  ;;  %v21041_v6 = vadd.f32 %v5612_v14, %v20906_v39  ;;  %v5614_v10 = vpop.f32.mrb[82].mxu1  ;;  %v17729_v16 = vpop.eup %17728  ;;  %v6969_v53 = vadd.f32 1.0, %v17727_v19  ;;  %v6394_v13 = vmul.f32 0.5, %v20975_v58  ;;  %v17979_v58 = vld [vmem:[%s22028_s0 + $0x160] ss:$24 sps:$4 sm:$0xff]  }
 0x3e9   : > { %11316 = vmatprep.mubr.bf16.mxu0 %v21028_v29  ;;  %v6621_v42 = vmul.f32 0.70710677, %v21034_v46  ;;  %v5616_v5 = vpop.f32.mrb[83].mxu1  ;;  %v6970_v2 = vadd.f32 1.0, %v17729_v16 }
 0x3ea   : > { %11317 = vmatmul.mubr.bf16.gmra.mrb[68].mxu0 %v21022_v37  ;;  %v6622_v14 = vmul.f32 0.70710677, %v21041_v6  ;;  %v16840_v37 = vld [vmem:[%s18387_s7 + $0xcc4] ss:$24 sps:$4 sm:$0xff]   ;;  %v7149_v12 = vmul.f32 %v6957_v54, %v6381_v8  ;;  %v7161_v29 = vmul.f32 %v6969_v53, %v6393_v48  ;;  %v21055_v31 = vadd.f32 %v5616_v5, %v20906_v39  ;;  %v16835_v54 = vld [vmem:[%s18387_s7 + $0x2d8] ss:$24 sps:$4 sm:$0xff]  }
 0x3eb   : > { %11640 = vmatpush1.bf16.msra.mxu1 %v16823_v21  ;;  %11392 = vmatpush1.bf16.msra.mxu0 %v16826_v7  ;;  %v21051_v21 = vadd.f32 %v5614_v10, %v20904_v47  ;;  %17738 = verf.f32 %v6621_v42  ;;  %v7150_v7 = vmul.f32 %v6958_v40, %v6382_v44  ;;  %v16843_v48 = vld [vmem:[%s18387_s7 + $0x30c] ss:$24 sps:$4 sm:$0xff]  }
 0x3ec   : > { %11641 = vmatprep.subr.bf16.mxu1 %v16831_v52  ;;  %11393 = vmatprep.subr.bf16.mxu0 %v16834_v50  ;;  %v7162_v52 = vmul.f32 %v6970_v2, %v6394_v13  ;;  %17740 = verf.f32 %v6622_v14  ;;  %v22277_v50 = vld [vmem:[#allocation16_spill] sm:$0xff]  ;;  %v6634_v10 = vmul.f32 0.70710677, %v21055_v31  ;;  %v21064_v16 = vpack.c.bf16 %v7161_v29, %v7149_v12  ;;  %v16841_v2 = vld [vmem:[%s18387_s7 + $0x308] ss:$24 sps:$4 sm:$0xff]  }
 0x3ed   : > { %v6633_v19 = vmul.f32 0.70710677, %v21051_v21  ;;  %v6405_v29 = vmul.f32 0.5, %v20994_v51 }
 0x3ee   : > { %6317 = vmatmul.mubr.bf16.gmra.mrb[124].mxu1 %v17979_v58  ;;  %v17731_v8 = vpop.eup %17730  ;;  %22278 = vst [vmem:[#allocation72_spill] sm:$0xff] %v21064_v16  ;;  %v5620_v44 = vpop.f32.mrb[84].mxu1  ;;  %v21067_v53 = vpack.c.bf16 %v7162_v52, %v7150_v7  ;;  %v6406_v52 = vmul.f32 0.5, %v21002_v26  ;;  %v16844_v26 = vld [vmem:[%s18387_s7 + $0xcf0] ss:$24 sps:$4 sm:$0xff]  }
 0x3ef   : > { %11642 = vmatpush1.bf16.msra.mxu1 %v16829_v20  ;;  %11645 = vmatprep.mubr.bf16.mxu1 %v22277_v50  ;;  %v17733_v40 = vpop.eup %17732  ;;  %17742 = verf.f32 %v6633_v19  ;;  %v16838_v20 = vld [vmem:[%s18387_s7 + $0xcc0] ss:$24 sps:$4 sm:$0xff]   ;;  %v6981_v42 = vadd.f32 1.0, %v17731_v8  ;;  %v21071_v5 = vadd.f32 %v5620_v44, %v20904_v47  ;;  %v5622_v13 = vpop.f32.mrb[85].mxu1  ;;  %v6417_v19 = vmul.f32 0.5, %v21011_v4 }
 0x3f0   : > { %11394 = vmatpush1.bf16.msra.mxu0 %v16832_v62  ;;  %11643 = vmatprep.subr.bf16.mxu1 %v16837_v34  ;;  %22279 = vst [vmem:[#allocation73_spill] sm:$0xff] %v21067_v53  ;;  %17744 = verf.f32 %v6634_v10  ;;  %v16846_v62 = vld [vmem:[%s18387_s7 + $0xcf4] ss:$24 sps:$4 sm:$0xff]   ;;  %v17735_v34 = vpop.eup %17734  ;;  %v6982_v14 = vadd.f32 1.0, %v17733_v40  ;;  %v21077_v12 = vadd.f32 %v5622_v13, %v20906_v39  ;;  %v5624_v58 = vpop.f32.mrb[86].mxu1  ;;  %v6418_v40 = vmul.f32 0.5, %v21015_v49 }
 0x3f1   : > { %11395 = vmatprep.subr.bf16.mxu0 %v16840_v37  ;;  %11326 = vmatprep.mubr.bf16.mxu0 %v21067_v53  ;;  %v16849_v37 = vld [vmem:[%s18387_s7 + $0x33c] ss:$24 sps:$4 sm:$0xff]   ;;  %v17737_v7 = vpop.eup %17736  ;;  %v6993_v8 = vadd.f32 1.0, %v17735_v34  ;;  %v6645_v10 = vmul.f32 0.70710677, %v21071_v5  ;;  %v5626_v51 = vpop.f32.mrb[87].mxu1  ;;  %v7173_v4 = vmul.f32 %v6981_v42, %v6405_v29 }
 0x3f2   : > { %11327 = vmatmul.mubr.bf16.gmra.mrb[72].mxu0 %v21064_v16  ;;  %v6994_v44 = vadd.f32 1.0, %v17737_v7  ;;  %v6646_v13 = vmul.f32 0.70710677, %v21077_v12  ;;  %v21092_v50 = vadd.f32 %v5626_v51, %v20906_v39  ;;  %v22280_v16 = vld [vmem:[#allocation15_spill] sm:$0xff]  ;;  %v16852_v49 = vld [vmem:[%s18387_s7 + $0xd24] ss:$24 sps:$4 sm:$0xff]  }
 0x3f3   : > { %11644 = vmatpush1.bf16.msra.mxu1 %v16835_v54  ;;  %v21088_v54 = vadd.f32 %v5624_v58, %v20904_v47  ;;  %v7185_v34 = vmul.f32 %v6993_v8, %v6417_v19  ;;  %17746 = verf.f32 %v6645_v10  ;;  %v22281_v53 = vld [vmem:[#allocation18_spill] sm:$0xff] }
 0x3f4   : > { %11726 = vmatprep.subr.bf16.mxu1 %v16843_v48  ;;  %11396 = vmatpush1.bf16.msra.mxu0 %v16838_v20  ;;  %v7174_v48 = vmul.f32 %v6982_v14, %v6406_v52  ;;  %v7186_v7 = vmul.f32 %v6994_v44, %v6418_v40  ;;  %17748 = verf.f32 %v6646_v13  ;;  %v16847_v20 = vld [vmem:[%s18387_s7 + $0x338] ss:$24 sps:$4 sm:$0xff]   ;;  %v6658_v29 = vmul.f32 0.70710677, %v21092_v50  ;;  %v16853_v44 = vld [vmem:[%s18387_s7 + $0x368] ss:$24 sps:$4 sm:$0xff]  }
 0x3f5   : > { %11397 = vmatprep.subr.bf16.mxu0 %v16846_v62  ;;  %v6657_v58 = vmul.f32 0.70710677, %v21088_v54  ;;  %v17739_v42 = vpop.eup %17738  ;;  %v21100_v19 = vpack.c.bf16 %v7185_v34, %v7173_v4  ;;  %v16855_v62 = vld [vmem:[%s18387_s7 + $0x36c] ss:$24 sps:$4 sm:$0xff]   ;;  %v16850_v10 = vld [vmem:[%s18387_s7 + $0xd20] ss:$24 sps:$4 sm:$0xff]  }
 0x3f6   : > { %11646 = vmatmul.mubr.bf16.vlgmr.msra.gmra.mrb[128].mxu1 %v22280_v16  ;;  %v17741_v8 = vpop.eup %17740  ;;  %v5630_v14 = vpop.f32.mrb[88].mxu1  ;;  %v21103_v52 = vpack.c.bf16 %v7186_v7, %v7174_v48  ;;  %v7005_v51 = vadd.f32 1.0, %v17739_v42  ;;  %v6429_v4 = vmul.f32 0.5, %v21034_v46  ;;  %v16861_v7 = vld [vmem:[%s18387_s7 + $0x39c] ss:$24 sps:$4 sm:$0xff]   ;;  %v6430_v42 = vmul.f32 0.5, %v21041_v6 }
 0x3f7   : > { %11655 = vmatprep.mubr.bf16.mxu1 %v22281_v53  ;;  %11727 = vmatpush1.bf16.msra.mxu1 %v16841_v2  ;;  %22282 = vst [vmem:[#allocation74_spill] sm:$0xff] %v21100_v19  ;;  %17750 = verf.f32 %v6657_v58  ;;  %v21107_v2 = vadd.f32 %v5630_v14, %v20904_v47  ;;  %v5632_v40 = vpop.f32.mrb[89].mxu1  ;;  %v7006_v34 = vadd.f32 1.0, %v17741_v8  ;;  %v6442_v8 = vmul.f32 0.5, %v21055_v31  ;;  %v16856_v6 = vld [vmem:[%s18387_s7 + $0xd50] ss:$24 sps:$4 sm:$0xff]  }
 0x3f8   : > { %11728 = vmatprep.subr.bf16.mxu1 %v16849_v37  ;;  %11398 = vmatpush1.bf16.msra.mxu0 %v16844_v26  ;;  %22283 = vst [vmem:[#allocation75_spill] sm:$0xff] %v21103_v52  ;;  %17752 = verf.f32 %v6658_v29  ;;  %v16858_v37 = vld [vmem:[%s18387_s7 + $0xd54] ss:$24 sps:$4 sm:$0xff]   ;;  %v21113_v26 = vadd.f32 %v5632_v40, %v20906_v39  ;;  %v5634_v48 = vpop.f32.mrb[90].mxu1  ;;  %v16864_v31 = vld [vmem:[%s18387_s7 + $0xd84] ss:$24 sps:$4 sm:$0xff]  }
 0x3f9   : > { %11399 = vmatprep.subr.bf16.mxu0 %v16852_v49  ;;  %v17743_v13 = vpop.eup %17742  ;;  %11336 = vmatprep.mubr.bf16.mxu0 %v21103_v52  ;;  %v6441_v49 = vmul.f32 0.5, %v21051_v21  ;;  %v6669_v14 = vmul.f32 0.70710677, %v21107_v2  ;;  %v5636_v46 = vpop.f32.mrb[91].mxu1  ;;  %v7197_v21 = vmul.f32 %v7005_v51, %v6429_v4  ;;  %v22285_v52 = vld [vmem:[#allocation22_spill] sm:$0xff] }
 0x3fa   : > { %v17745_v58 = vpop.eup %17744  ;;  %v7017_v29 = vadd.f32 1.0, %v17743_v13  ;;  %11337 = vmatmul.mubr.bf16.gmra.mrb[76].mxu0 %v21100_v19  ;;  %v6670_v53 = vmul.f32 0.70710677, %v21113_v26  ;;  %v21128_v16 = vadd.f32 %v5636_v46, %v20906_v39  ;;  %v22284_v19 = vld [vmem:[#allocation17_spill] sm:$0xff] }
 0x3fb   : > { %11729 = vmatpush1.bf16.msra.mxu1 %v16847_v20  ;;  %v7018_v40 = vadd.f32 1.0, %v17745_v58  ;;  %v21124_v20 = vadd.f32 %v5634_v48, %v20904_v47  ;;  %17754 = verf.f32 %v6669_v14 }
 0x3fc   : > { %11730 = vmatprep.subr.bf16.mxu1 %v16855_v62  ;;  %11400 = vmatpush1.bf16.msra.mxu0 %v16850_v10  ;;  %v7209_v13 = vmul.f32 %v7017_v29, %v6441_v49  ;;  %v7198_v62 = vmul.f32 %v7006_v34, %v6430_v42  ;;  %17756 = verf.f32 %v6670_v53  ;;  %v16859_v10 = vld [vmem:[%s18387_s7 + $0x398] ss:$24 sps:$4 sm:$0xff]   ;;  %v6682_v4 = vmul.f32 0.70710677, %v21128_v16 }
 0x3fd   : > { %11401 = vmatprep.subr.bf16.mxu0 %v16858_v37  ;;  %v7210_v58 = vmul.f32 %v7018_v40, %v6442_v8  ;;  %v6681_v48 = vmul.f32 0.70710677, %v21124_v20  ;;  %v17747_v51 = vpop.eup %17746  ;;  %v16867_v37 = vld [vmem:[%s18387_s7 + $0x3cc] ss:$24 sps:$4 sm:$0xff]   ;;  %v16862_v42 = vld [vmem:[%s18387_s7 + $0xd80] ss:$24 sps:$4 sm:$0xff]  }
 0x3fe   : > { %11656 = vmatmul.mubr.bf16.gmra.mrb[132].mxu1 %v22284_v19  ;;  %v21136_v49 = vpack.c.bf16 %v7209_v13, %v7197_v21  ;;  %v17749_v29 = vpop.eup %17748  ;;  %v5640_v34 = vpop.f32.mrb[92].mxu1  ;;  %v7029_v14 = vadd.f32 1.0, %v17747_v51  ;;  %v16865_v8 = vld [vmem:[%s18387_s7 + $0x3c8] ss:$24 sps:$4 sm:$0xff]   ;;  %v6453_v21 = vmul.f32 0.5, %v21071_v5  ;;  %v6454_v51 = vmul.f32 0.5, %v21077_v12 }
 0x3ff   : > { %11665 = vmatprep.mubr.bf16.mxu1 %v22285_v52  ;;  %11731 = vmatpush1.bf16.msra.mxu1 %v16853_v44  ;;  %17758 = verf.f32 %v6681_v48  ;;  %v21139_v53 = vpack.c.bf16 %v7210_v58, %v7198_v62  ;;  %v21143_v44 = vadd.f32 %v5640_v34, %v20904_v47  ;;  %v5642_v46 = vpop.f32.mrb[93].mxu1  ;;  %v7030_v13 = vadd.f32 1.0, %v17749_v29  ;;  %v16873_v58 = vld [vmem:[%s18387_s7 + $0x3fc] ss:$24 sps:$4 sm:$0xff]   ;;  %v16868_v12 = vld [vmem:[%s18387_s7 + $0xdb0] ss:$24 sps:$4 sm:$0xff]  }
 0x400   : > { %11732 = vmatprep.subr.bf16.mxu1 %v16861_v7  ;;  %22286 = vst [vmem:[#allocation76_spill] sm:$0xff] %v21136_v49  ;;  %11402 = vmatpush1.bf16.msra.mxu0 %v16856_v6  ;;  %17760 = verf.f32 %v6682_v4  ;;  %v16870_v7 = vld [vmem:[%s18387_s7 + $0xdb4] ss:$24 sps:$4 sm:$0xff]   ;;  %v21149_v6 = vadd.f32 %v5642_v46, %v20906_v39  ;;  %v5644_v62 = vpop.f32.mrb[94].mxu1  ;;  %v6466_v29 = vmul.f32 0.5, %v21092_v50 }
 0x401   : > { %11403 = vmatprep.subr.bf16.mxu0 %v16864_v31  ;;  %v17751_v40 = vpop.eup %17750  ;;  %11346 = vmatprep.mubr.bf16.mxu0 %v21139_v53  ;;  %v6465_v31 = vmul.f32 0.5, %v21088_v54  ;;  %v6693_v34 = vmul.f32 0.70710677, %v21143_v44  ;;  %v5646_v5 = vpop.f32.mrb[95].mxu1  ;;  %v7221_v54 = vmul.f32 %v7029_v14, %v6453_v21  ;;  %v16876_v50 = vld [vmem:[%s18387_s7 + $0xde4] ss:$24 sps:$4 sm:$0xff]  }
 0x402   : > { %v17753_v48 = vpop.eup %17752  ;;  %v7041_v4 = vadd.f32 1.0, %v17751_v40  ;;  %11347 = vmatmul.mubr.bf16.gmra.mrb[80].mxu0 %v21136_v49  ;;  %v6694_v52 = vmul.f32 0.70710677, %v21149_v6  ;;  %v21164_v19 = vadd.f32 %v5646_v5, %v20906_v39  ;;  %v22287_v49 = vld [vmem:[#allocation21_spill] sm:$0xff] }
 0x403   : > { %11733 = vmatpush1.bf16.msra.mxu1 %v16859_v10  ;;  %v7042_v46 = vadd.f32 1.0, %v17753_v48  ;;  %v21160_v10 = vadd.f32 %v5644_v62, %v20904_v47  ;;  %17762 = verf.f32 %v6693_v34  ;;  %v22288_v62 = vld [vmem:[#allocation26_spill] sm:$0xff] }
 0x404   : > { %11734 = vmatprep.subr.bf16.mxu1 %v16867_v37  ;;  %11404 = vmatpush1.bf16.msra.mxu0 %v16862_v42  ;;  %v7233_v40 = vmul.f32 %v7041_v4, %v6465_v31  ;;  %v7222_v37 = vmul.f32 %v7030_v13, %v6454_v51  ;;  %17764 = verf.f32 %v6694_v52  ;;  %v16871_v42 = vld [vmem:[%s18387_s7 + $0x3f8] ss:$24 sps:$4 sm:$0xff]   ;;  %v6706_v21 = vmul.f32 0.70710677, %v21164_v19 }
 0x405   : > { %11405 = vmatprep.subr.bf16.mxu0 %v16870_v7  ;;  %v7234_v48 = vmul.f32 %v7042_v46, %v6466_v29  ;;  %v6705_v47 = vmul.f32 0.70710677, %v21160_v10  ;;  %v17755_v14 = vpop.eup %17754  ;;  %v16879_v7 = vld [vmem:[%s18387_s7 + $0x42c] ss:$24 sps:$4 sm:$0xff]   ;;  %v16874_v52 = vld [vmem:[%s18387_s7 + $0xde0] ss:$24 sps:$4 sm:$0xff]  }
 0x406   : > { %11666 = vmatmul.mubr.bf16.gmra.mrb[136].mxu1 %v22287_v49  ;;  %v21172_v39 = vpack.c.bf16 %v7233_v40, %v7221_v54  ;;  %v17757_v31 = vpop.eup %17756  ;;  %v7053_v51 = vadd.f32 1.0, %v17755_v14  ;;  %v6477_v29 = vmul.f32 0.5, %v21107_v2  ;;  %v6489_v46 = vmul.f32 0.5, %v21124_v20  ;;  %v16885_v54 = vld [vmem:[%s18387_s7 + $0x45c] ss:$24 sps:$4 sm:$0xff]  }
 0x407   : > { %11675 = vmatprep.mubr.bf16.mxu1 %v22288_v62  ;;  %11735 = vmatpush1.bf16.msra.mxu1 %v16865_v8  ;;  %17766 = verf.f32 %v6705_v47  ;;  %v21175_v13 = vpack.c.bf16 %v7234_v48, %v7222_v37  ;;  %v16882_v8 = vld [vmem:[%s18387_s7 + $0xe14] ss:$24 sps:$4 sm:$0xff]   ;;  %v7054_v34 = vadd.f32 1.0, %v17757_v31  ;;  %v6478_v40 = vmul.f32 0.5, %v21113_v26  ;;  %v16880_v48 = vld [vmem:[%s18387_s7 + $0xe10] ss:$24 sps:$4 sm:$0xff]  }
 0x408   : > { %11736 = vmatprep.subr.bf16.mxu1 %v16873_v58  ;;  %11406 = vmatpush1.bf16.msra.mxu0 %v16868_v12  ;;  %17768 = verf.f32 %v6706_v21  ;;  %v16877_v58 = vld [vmem:[%s18387_s7 + $0x428] ss:$24 sps:$4 sm:$0xff]   ;;  %v7245_v47 = vmul.f32 %v7053_v51, %v6477_v29  ;;  %v22289_v14 = vld [vmem:[#allocation25_spill] sm:$0xff] }
 0x409   : > { %11407 = vmatprep.subr.bf16.mxu0 %v16876_v50  ;;  %v17759_v4 = vpop.eup %17758  ;;  %11356 = vmatprep.mubr.bf16.mxu0 %v21175_v13  ;;  %v6490_v50 = vmul.f32 0.5, %v21128_v16  ;;  %v16888_v2 = vld [vmem:[%s18387_s7 + $0xe44] ss:$24 sps:$4 sm:$0xff]   ;;  %v7246_v20 = vmul.f32 %v7054_v34, %v6478_v40  ;;  %v16883_v26 = vld [vmem:[%s18387_s7 + $0x458] ss:$24 sps:$4 sm:$0xff]   ;;  %v6513_v40 = vmul.f32 0.5, %v21160_v10 }
 0x40a   : > { %v17761_v5 = vpop.eup %17760  ;;  %v7065_v12 = vadd.f32 1.0, %v17759_v4  ;;  %11357 = vmatmul.mubr.bf16.gmra.mrb[84].mxu0 %v21172_v39  ;;  %v16894_v34 = vld [vmem:[%s18387_s7 + $0xe74] ss:$24 sps:$4 sm:$0xff]   ;;  %v16900_v10 = vld [vmem:[%s18387_s7 + $0xea4] ss:$24 sps:$4 sm:$0xff]  }
 0x40b   : > { %11737 = vmatpush1.bf16.msra.mxu1 %v16871_v42  ;;  %v7066_v37 = vadd.f32 1.0, %v17761_v5 }
 0x40c   : > { %11738 = vmatprep.subr.bf16.mxu1 %v16879_v7  ;;  %11408 = vmatpush1.bf16.msra.mxu0 %v16874_v52  ;;  %v7257_v42 = vmul.f32 %v7065_v12, %v6489_v46  ;;  %v22290_v7 = vld [vmem:[#allocation29_spill] sm:$0xff]  ;;  %v16891_v52 = vld [vmem:[%s18387_s7 + $0x48c] ss:$24 sps:$4 sm:$0xff]  }
 0x40d   : > { %11409 = vmatprep.subr.bf16.mxu0 %v16882_v8  ;;  %v7258_v21 = vmul.f32 %v7066_v37, %v6490_v50  ;;  %v17763_v16 = vpop.eup %17762  ;;  %v16886_v8 = vld [vmem:[%s18387_s7 + $0xe40] ss:$24 sps:$4 sm:$0xff]   ;;  %v16897_v37 = vld [vmem:[%s18387_s7 + $0x4bc] ss:$24 sps:$4 sm:$0xff]  }
 0x40e   : > { %11676 = vmatmul.mubr.bf16.gmra.mrb[140].mxu1 %v22289_v14  ;;  %v21192_v31 = vpack.c.bf16 %v7257_v42, %v7245_v47  ;;  %v17765_v51 = vpop.eup %17764  ;;  %v7077_v5 = vadd.f32 1.0, %v17763_v16  ;;  %v6514_v47 = vmul.f32 0.5, %v21164_v19  ;;  %v16895_v19 = vld [vmem:[%s18387_s7 + $0x4b8] ss:$24 sps:$4 sm:$0xff]  }
 0x40f   : > { %11685 = vmatprep.mubr.bf16.mxu1 %v22290_v7  ;;  %11739 = vmatpush1.bf16.msra.mxu1 %v16877_v58  ;;  %v21195_v4 = vpack.c.bf16 %v7258_v21, %v7246_v20  ;;  %v7078_v46 = vadd.f32 1.0, %v17765_v51  ;;  %v16889_v58 = vld [vmem:[%s18387_s7 + $0x488] ss:$24 sps:$4 sm:$0xff]   ;;  %v16903_v51 = vld [vmem:[%s18387_s7 + $0x4ec] ss:$24 sps:$4 sm:$0xff]  }
 0x410   : > { %11740 = vmatprep.subr.bf16.mxu1 %v16885_v54  ;;  %11410 = vmatpush1.bf16.msra.mxu0 %v16880_v48  ;;  %v6501_v54 = vmul.f32 0.5, %v21143_v44  ;;  %v6502_v48 = vmul.f32 0.5, %v21149_v6  ;;  %v22291_v44 = vld [vmem:[#allocation28_spill] sm:$0xff] }
 0x411   : > { %11411 = vmatprep.subr.bf16.mxu0 %v16888_v2  ;;  %v17767_v29 = vpop.eup %17766  ;;  %11366 = vmatprep.mubr.bf16.mxu0 %v21195_v4  ;;  %v16892_v2 = vld [vmem:[%s18387_s7 + $0xe70] ss:$24 sps:$4 sm:$0xff]  }
 0x412   : > { %v17769_v12 = vpop.eup %17768  ;;  %v7089_v50 = vadd.f32 1.0, %v17767_v29  ;;  %11367 = vmatmul.mubr.bf16.gmra.mrb[88].mxu0 %v21192_v31  ;;  %v7269_v20 = vmul.f32 %v7077_v5, %v6501_v54  ;;  %v16898_v5 = vld [vmem:[%s18387_s7 + $0xea0] ss:$24 sps:$4 sm:$0xff]   ;;  %v16960_v54 = vld [vmem:[%s18387_s7 + $0xf04] ss:$24 sps:$4 sm:$0xff]  }
 0x413   : > { %11741 = vmatpush1.bf16.msra.mxu1 %v16883_v26  ;;  %v7090_v42 = vadd.f32 1.0, %v17769_v12  ;;  %v7270_v26 = vmul.f32 %v7078_v46, %v6502_v48  ;;  %v16901_v29 = vld [vmem:[%s18387_s7 + $0x4e8] ss:$24 sps:$4 sm:$0xff]   ;;  %v16909_v46 = vld [vmem:[%s18387_s7 + $0x51c] ss:$24 sps:$4 sm:$0xff]  }
 0x414   : > { %11742 = vmatprep.subr.bf16.mxu1 %v16891_v52  ;;  %11412 = vmatpush1.bf16.msra.mxu0 %v16886_v8  ;;  %v7281_v21 = vmul.f32 %v7089_v50, %v6513_v40  ;;  %v22292_v52 = vld [vmem:[#allocation32_spill] sm:$0xff]  ;;  %v22293_v12 = vld [vmem:[#allocation31_spill] sm:$0xff]  ;;  %v22294_v40 = vld [vmem:[#allocation34_spill] sm:$0xff] }
 0x415   : > { %11413 = vmatprep.subr.bf16.mxu0 %v16894_v34  ;;  %v7282_v16 = vmul.f32 %v7090_v42, %v6514_v47  ;;  %v16906_v34 = vld [vmem:[%s18387_s7 + $0xed4] ss:$24 sps:$4 sm:$0xff]   ;;  %v16907_v50 = vld [vmem:[%s18387_s7 + $0x518] ss:$24 sps:$4 sm:$0xff]   ;;  %v16910_v42 = vld [vmem:[%s18387_s7 + $0x548] ss:$24 sps:$4 sm:$0xff]  }
 0x416   : > { %11686 = vmatmul.mubr.bf16.gmra.mrb[144].mxu1 %v22291_v44  ;;  %v21212_v6 = vpack.c.bf16 %v7281_v21, %v7269_v20  ;;  %v16958_v48 = vld [vmem:[%s18387_s7 + $0xf00] ss:$24 sps:$4 sm:$0xff]   ;;  %v16966_v47 = vld [vmem:[%s18387_s7 + $0xf34] ss:$24 sps:$4 sm:$0xff]   ;;  %v16964_v21 = vld [vmem:[%s18387_s7 + $0xf30] ss:$24 sps:$4 sm:$0xff]  }
 0x417   : > { %11695 = vmatprep.mubr.bf16.mxu1 %v22292_v52  ;;  %11743 = vmatpush1.bf16.msra.mxu1 %v16889_v58  ;;  %v21215_v8 = vpack.c.bf16 %v7282_v16, %v7270_v26  ;;  %v16904_v58 = vld [vmem:[%s18387_s7 + $0xed0] ss:$24 sps:$4 sm:$0xff]   ;;  %v16915_v20 = vld [vmem:[%s18387_s7 + $0x57c] ss:$24 sps:$4 sm:$0xff]  }
 0x418   : > { %11744 = vmatprep.subr.bf16.mxu1 %v16897_v37  ;;  %11414 = vmatpush1.bf16.msra.mxu0 %v16892_v2  ;;  %v16912_v37 = vld [vmem:[%s18387_s7 + $0x54c] ss:$24 sps:$4 sm:$0xff]   ;;  %v22297_v16 = vld [vmem:[#allocation36_spill] sm:$0xff] }
 0x419   : > { %11415 = vmatprep.subr.bf16.mxu0 %v16900_v10  ;;  %11376 = vmatprep.mubr.bf16.mxu0 %v21215_v8  ;;  %v22295_v2 = vld [vmem:[#allocation51_spill] sm:$0xff]  ;;  %v22296_v10 = vld [vmem:[#allocation33_spill] sm:$0xff] }
 0x41a   : > { %11377 = vmatmul.mubr.bf16.gmra.mrb[92].mxu0 %v21212_v6  ;;  %v16972_v26 = vld [vmem:[%s18387_s7 + $0xf64] ss:$24 sps:$4 sm:$0xff]  }
 0x41b   : > { %11745 = vmatpush1.bf16.msra.mxu1 %v16895_v19  ;;  %11419 = vmatprep.mubr.bf16.mxu0 %v20700_v1  ;;  %v16913_v19 = vld [vmem:[%s18387_s7 + $0x578] ss:$24 sps:$4 sm:$0xff]  }
 0x41c   : > { %11746 = vmatprep.subr.bf16.mxu1 %v16903_v51  ;;  %11416 = vmatpush1.bf16.msra.mxu0 %v16898_v5  ;;  %v16918_v51 = vld [vmem:[%s18387_s7 + $0x5ac] ss:$24 sps:$4 sm:$0xff]   ;;  %v16970_v5 = vld [vmem:[%s18387_s7 + $0xf60] ss:$24 sps:$4 sm:$0xff]  }
 0x41d   : > { %11417 = vmatprep.subr.bf16.mxu0 %v16906_v34  ;;  %v16978_v34 = vld [vmem:[%s18387_s7 + $0xf94] ss:$24 sps:$4 sm:$0xff]  }
 0x41e   : > { %11696 = vmatmul.mubr.bf16.gmra.mrb[148].mxu1 %v22293_v12 }
 0x41f   : > { %11705 = vmatprep.mubr.bf16.mxu1 %v22294_v40  ;;  %11747 = vmatpush1.bf16.msra.mxu1 %v16901_v29  ;;  %v16916_v29 = vld [vmem:[%s18387_s7 + $0x5a8] ss:$24 sps:$4 sm:$0xff]  }
 0x420   : > { %11748 = vmatprep.subr.bf16.mxu1 %v16909_v46  ;;  %11418 = vmatpush1.bf16.msra.mxu0 %v16904_v58  ;;  %v16921_v46 = vld [vmem:[%s18387_s7 + $0x5dc] ss:$24 sps:$4 sm:$0xff]   ;;  %v16976_v58 = vld [vmem:[%s18387_s7 + $0xf90] ss:$24 sps:$4 sm:$0xff]  }
 0x421   : > { %11500 = vmatprep.subr.bf16.mxu0 %v16960_v54  ;;  %v22298_v54 = vld [vmem:[#allocation35_spill] sm:$0xff] }
 0x423   : > { %11749 = vmatpush1.bf16.msra.mxu1 %v16907_v50  ;;  %11420 = vmatmul.mubr.bf16.vlgmr.msra.gmra.mrb[64].mxu0 %v22295_v2  ;;  %v16984_v50 = vld [vmem:[%s18387_s7 + $0xfc4] ss:$24 sps:$4 sm:$0xff]  }
 0x424   : > { %11750 = vmatprep.subr.bf16.mxu1 %v16912_v37  ;;  %11429 = vmatprep.mubr.bf16.mxu0 %v20707_v27  ;;  %v22299_v37 = vld [vmem:[#allocation48_spill] sm:$0xff] }
 0x425   : > { %11501 = vmatpush1.bf16.msra.mxu0 %v16958_v48  ;;  %v16919_v48 = vld [vmem:[%s18387_s7 + $0x5d8] ss:$24 sps:$4 sm:$0xff]  }
 0x426   : > { %11706 = vmatmul.mubr.bf16.gmra.mrb[152].mxu1 %v22296_v10  ;;  %11502 = vmatprep.subr.bf16.mxu0 %v16966_v47  ;;  %v16924_v47 = vld [vmem:[%s18387_s7 + $0x60c] ss:$24 sps:$4 sm:$0xff]  }
 0x427   : > { %11715 = vmatprep.mubr.bf16.mxu1 %v22297_v16  ;;  %11751 = vmatpush1.bf16.msra.mxu1 %v16910_v42  ;;  %v16982_v42 = vld [vmem:[%s18387_s7 + $0xfc0] ss:$24 sps:$4 sm:$0xff]  }
 0x428   : > { %11752 = vmatprep.subr.bf16.mxu1 %v16915_v20  ;;  %v16990_v20 = vld [vmem:[%s18387_s7 + $0xff4] ss:$24 sps:$4 sm:$0xff]  }
 0x429   : > { %11503 = vmatpush1.bf16.msra.mxu0 %v16964_v21  ;;  %v16922_v21 = vld [vmem:[%s18387_s7 + $0x608] ss:$24 sps:$4 sm:$0xff]  }
 0x42a   : > { %11504 = vmatprep.subr.bf16.mxu0 %v16972_v26  ;;  %v16927_v26 = vld [vmem:[%s18387_s7 + $0x63c] ss:$24 sps:$4 sm:$0xff]  }
 0x42b   : > { %11753 = vmatpush1.bf16.msra.mxu1 %v16913_v19  ;;  %11430 = vmatmul.mubr.bf16.gmra.mrb[68].mxu0 %v20711_v41  ;;  %v16988_v19 = vld [vmem:[%s18387_s7 + $0xff0] ss:$24 sps:$4 sm:$0xff]  }
 0x42c   : > { %11754 = vmatprep.subr.bf16.mxu1 %v16918_v51  ;;  %11439 = vmatprep.mubr.bf16.mxu0 %v20722_v60  ;;  %v22300_v51 = vld [vmem:[#allocation47_spill] sm:$0xff] }
 0x42d   : > { %11505 = vmatpush1.bf16.msra.mxu0 %v16970_v5  ;;  %v16996_v5 = vld [vmem:[%s18387_s7 + $0x1024] ss:$24 sps:$4 sm:$0xff]  }
 0x42e   : > { %11716 = vmatmul.mubr.bf16.gmra.mrb[156].mxu1 %v22298_v54  ;;  %11506 = vmatprep.subr.bf16.mxu0 %v16978_v34  ;;  %v22301_v34 = vld [vmem:[#allocation50_spill] sm:$0xff] }
 0x42f   : > { %11755 = vmatpush1.bf16.msra.mxu1 %v16916_v29  ;;  %11758 = vmatprep.mubr.bf16.mxu1 %v22299_v37  ;;  %v16925_v29 = vld [vmem:[%s18387_s7 + $0x638] ss:$24 sps:$4 sm:$0xff]  }
 0x430   : > { %11756 = vmatprep.subr.bf16.mxu1 %v16921_v46  ;;  %v16930_v46 = vld [vmem:[%s18387_s7 + $0x66c] ss:$24 sps:$4 sm:$0xff]  }
 0x431   : > { %11507 = vmatpush1.bf16.msra.mxu0 %v16976_v58  ;;  %v16994_v58 = vld [vmem:[%s18387_s7 + $0x1020] ss:$24 sps:$4 sm:$0xff]  }
 0x432   : > { %11508 = vmatprep.subr.bf16.mxu0 %v16984_v50  ;;  %v17002_v50 = vld [vmem:[%s18387_s7 + $0x1054] ss:$24 sps:$4 sm:$0xff]  }
 0x433   : > { %11757 = vmatpush1.bf16.msra.mxu1 %v16919_v48  ;;  %11440 = vmatmul.mubr.bf16.gmra.mrb[72].mxu0 %v20726_v33  ;;  %v16928_v48 = vld [vmem:[%s18387_s7 + $0x668] ss:$24 sps:$4 sm:$0xff]  }
 0x434   : > { %11839 = vmatprep.subr.bf16.mxu1 %v16924_v47  ;;  %11449 = vmatprep.mubr.bf16.mxu0 %v20735_v11  ;;  %v16933_v47 = vld [vmem:[%s18387_s7 + $0x69c] ss:$24 sps:$4 sm:$0xff]  }
 0x435   : > { %11509 = vmatpush1.bf16.msra.mxu0 %v16982_v42  ;;  %v17000_v42 = vld [vmem:[%s18387_s7 + $0x1050] ss:$24 sps:$4 sm:$0xff]  }
 0x436   : > { %11759 = vmatmul.mubr.bf16.vlgmr.msra.gmra.mrb[128].mxu1 %v22300_v51  ;;  %11510 = vmatprep.subr.bf16.mxu0 %v16990_v20  ;;  %v22302_v20 = vld [vmem:[#allocation49_spill] sm:$0xff] }
 0x437   : > { %11768 = vmatprep.mubr.bf16.mxu1 %v22301_v34  ;;  %11840 = vmatpush1.bf16.msra.mxu1 %v16922_v21  ;;  %v17008_v21 = vld [vmem:[%s18387_s7 + $0x1084] ss:$24 sps:$4 sm:$0xff]  }
 0x438   : > { %11841 = vmatprep.subr.bf16.mxu1 %v16927_v26  ;;  %v22303_v26 = vld [vmem:[#allocation54_spill] sm:$0xff] }
 0x439   : > { %11511 = vmatpush1.bf16.msra.mxu0 %v16988_v19  ;;  %v16931_v19 = vld [vmem:[%s18387_s7 + $0x698] ss:$24 sps:$4 sm:$0xff]  }
 0x43a   : > { %11512 = vmatprep.subr.bf16.mxu0 %v16996_v5  ;;  %v16936_v5 = vld [vmem:[%s18387_s7 + $0x6cc] ss:$24 sps:$4 sm:$0xff]  }
 0x43b   : > { %11842 = vmatpush1.bf16.msra.mxu1 %v16925_v29  ;;  %11450 = vmatmul.mubr.bf16.gmra.mrb[76].mxu0 %v20738_v35  ;;  %v17006_v29 = vld [vmem:[%s18387_s7 + $0x1080] ss:$24 sps:$4 sm:$0xff]  }
 0x43c   : > { %11843 = vmatprep.subr.bf16.mxu1 %v16930_v46  ;;  %11459 = vmatprep.mubr.bf16.mxu0 %v20740_v63  ;;  %v17014_v46 = vld [vmem:[%s18387_s7 + $0x10b4] ss:$24 sps:$4 sm:$0xff]  }
 0x43d   : > { %11513 = vmatpush1.bf16.msra.mxu0 %v16994_v58  ;;  %v16934_v58 = vld [vmem:[%s18387_s7 + $0x6c8] ss:$24 sps:$4 sm:$0xff]  }
 0x43e   : > { %11769 = vmatmul.mubr.bf16.gmra.mrb[132].mxu1 %v22302_v20  ;;  %11514 = vmatprep.subr.bf16.mxu0 %v17002_v50  ;;  %v16939_v50 = vld [vmem:[%s18387_s7 + $0x6fc] ss:$24 sps:$4 sm:$0xff]  }
 0x43f   : > { %11778 = vmatprep.mubr.bf16.mxu1 %v22303_v26  ;;  %11844 = vmatpush1.bf16.msra.mxu1 %v16928_v48  ;;  %v17012_v48 = vld [vmem:[%s18387_s7 + $0x10b0] ss:$24 sps:$4 sm:$0xff]   ;;  %v17018_v26 = vld [vmem:[%s18387_s7 + $0x10e0] ss:$24 sps:$4 sm:$0xff]   ;;  %v17026_v20 = vld [vmem:[%s18387_s7 + $0x1114] ss:$24 sps:$4 sm:$0xff]  }
 0x440   : > { %11845 = vmatprep.subr.bf16.mxu1 %v16933_v47  ;;  %v22304_v47 = vld [vmem:[#allocation53_spill] sm:$0xff] }
 0x441   : > { %11515 = vmatpush1.bf16.msra.mxu0 %v17000_v42  ;;  %v17020_v42 = vld [vmem:[%s18387_s7 + $0x10e4] ss:$24 sps:$4 sm:$0xff]  }
 0x442   : > { %11516 = vmatprep.subr.bf16.mxu0 %v17008_v21  ;;  %v22305_v21 = vld [vmem:[#allocation57_spill] sm:$0xff] }
 0x443   : > { %11846 = vmatpush1.bf16.msra.mxu1 %v16931_v19  ;;  %11460 = vmatmul.mubr.bf16.gmra.mrb[80].mxu0 %v20742_v18  ;;  %v16937_v19 = vld [vmem:[%s18387_s7 + $0x6f8] ss:$24 sps:$4 sm:$0xff]  }
 0x444   : > { %11847 = vmatprep.subr.bf16.mxu1 %v16936_v5  ;;  %11469 = vmatprep.mubr.bf16.mxu0 %v20744_v57  ;;  %v16942_v5 = vld [vmem:[%s18387_s7 + $0x72c] ss:$24 sps:$4 sm:$0xff]  }
 0x445   : > { %11517 = vmatpush1.bf16.msra.mxu0 %v17006_v29  ;;  %v16940_v29 = vld [vmem:[%s18387_s7 + $0x728] ss:$24 sps:$4 sm:$0xff]  }
 0x446   : > { %11779 = vmatmul.mubr.bf16.gmra.mrb[136].mxu1 %v22304_v47  ;;  %11518 = vmatprep.subr.bf16.mxu0 %v17014_v46  ;;  %v16945_v46 = vld [vmem:[%s18387_s7 + $0x75c] ss:$24 sps:$4 sm:$0xff]  }
 0x447   : > { %11788 = vmatprep.mubr.bf16.mxu1 %v22305_v21  ;;  %11848 = vmatpush1.bf16.msra.mxu1 %v16934_v58  ;;  %v17024_v58 = vld [vmem:[%s18387_s7 + $0x1110] ss:$24 sps:$4 sm:$0xff]   ;;  %v17030_v21 = vld [vmem:[%s18387_s7 + $0x1140] ss:$24 sps:$4 sm:$0xff]   ;;  %v17038_v47 = vld [vmem:[%s18387_s7 + $0x1174] ss:$24 sps:$4 sm:$0xff]  }
 0x448   : > { %11849 = vmatprep.subr.bf16.mxu1 %v16939_v50  ;;  %v22306_v50 = vld [vmem:[#allocation56_spill] sm:$0xff] }
 0x449   : > { %11519 = vmatpush1.bf16.msra.mxu0 %v17012_v48  ;;  %v17032_v48 = vld [vmem:[%s18387_s7 + $0x1144] ss:$24 sps:$4 sm:$0xff]  }
 0x44a   : > { %11520 = vmatprep.subr.bf16.mxu0 %v17020_v42  ;;  %v22307_v42 = vld [vmem:[#allocation60_spill] sm:$0xff] }
 0x44b   : > { %11850 = vmatpush1.bf16.msra.mxu1 %v16937_v19  ;;  %11470 = vmatmul.mubr.bf16.gmra.mrb[84].mxu0 %v20749_v15  ;;  %v16943_v19 = vld [vmem:[%s18387_s7 + $0x758] ss:$24 sps:$4 sm:$0xff]  }
 0x44c   : > { %11851 = vmatprep.subr.bf16.mxu1 %v16942_v5  ;;  %11479 = vmatprep.mubr.bf16.mxu0 %v20767_v36  ;;  %v16948_v5 = vld [vmem:[%s18387_s7 + $0x78c] ss:$24 sps:$4 sm:$0xff]  }
 0x44d   : > { %11521 = vmatpush1.bf16.msra.mxu0 %v17018_v26  ;;  %v16946_v26 = vld [vmem:[%s18387_s7 + $0x788] ss:$24 sps:$4 sm:$0xff]  }
 0x44e   : > { %11789 = vmatmul.mubr.bf16.gmra.mrb[140].mxu1 %v22306_v50  ;;  %11522 = vmatprep.subr.bf16.mxu0 %v17026_v20  ;;  %v16951_v20 = vld [vmem:[%s18387_s7 + $0x7bc] ss:$24 sps:$4 sm:$0xff]  }
 0x44f   : > { %11798 = vmatprep.mubr.bf16.mxu1 %v22307_v42  ;;  %11852 = vmatpush1.bf16.msra.mxu1 %v16940_v29  ;;  %v17036_v29 = vld [vmem:[%s18387_s7 + $0x1170] ss:$24 sps:$4 sm:$0xff]  }
 0x450   : > { %11853 = vmatprep.subr.bf16.mxu1 %v16945_v46  ;;  %v22308_v46 = vld [vmem:[#allocation59_spill] sm:$0xff] }
 0x451   : > { %11523 = vmatpush1.bf16.msra.mxu0 %v17024_v58  ;;  %v17044_v58 = vld [vmem:[%s18387_s7 + $0x11a4] ss:$24 sps:$4 sm:$0xff]   ;;  %v16952_v42 = vld [vmem:[%s18387_s7 + $0x7e8] ss:$24 sps:$4 sm:$0xff]  }
 0x452   : > { %11524 = vmatprep.subr.bf16.mxu0 %v17032_v48  ;;  %v16949_v48 = vld [vmem:[%s18387_s7 + $0x7b8] ss:$24 sps:$4 sm:$0xff]  }
 0x453   : > { %11854 = vmatpush1.bf16.msra.mxu1 %v16943_v19  ;;  %11480 = vmatmul.mubr.bf16.gmra.mrb[88].mxu0 %v20760_v55  ;;  %v16954_v19 = vld [vmem:[%s18387_s7 + $0x7ec] ss:$24 sps:$4 sm:$0xff]  }
 0x454   : > { %11855 = vmatprep.subr.bf16.mxu1 %v16948_v5  ;;  %11489 = vmatprep.mubr.bf16.mxu0 %v20779_v22  ;;  %v17042_v5 = vld [vmem:[%s18387_s7 + $0x11a0] ss:$24 sps:$4 sm:$0xff]   ;;  %v17053_v22 = vld [vmem:[%s18387_s7 + $0xb1c] ss:$24 sps:$4 sm:$0xff]  }
 0x455   : > { %11525 = vmatpush1.bf16.msra.mxu0 %v17030_v21  ;;  %v17050_v21 = vld [vmem:[%s18387_s7 + $0x11d4] ss:$24 sps:$4 sm:$0xff]  }
 0x456   : > { %11799 = vmatmul.mubr.bf16.gmra.mrb[144].mxu1 %v22308_v46  ;;  %11526 = vmatprep.subr.bf16.mxu0 %v17038_v47  ;;  %v16957_v47 = vld [vmem:[%s18387_s7 + $0x81c] ss:$24 sps:$4 sm:$0xff]   ;;  %v17045_v46 = vld [vmem:[%s18387_s7 + $0xae8] ss:$24 sps:$4 sm:$0xff]  }
 0x457   : > { %11808 = vmatprep.mubr.bf16.mxu1 %v20443_v32  ;;  %11856 = vmatpush1.bf16.msra.mxu1 %v16946_v26  ;;  %v17048_v26 = vld [vmem:[%s18387_s7 + $0x11d0] ss:$24 sps:$4 sm:$0xff]  }
 0x458   : > { %11857 = vmatprep.subr.bf16.mxu1 %v16951_v20  ;;  %v17056_v20 = vld [vmem:[%s18387_s7 + $0x14] ss:$24 sps:$4 sm:$0xff]  }
 0x459   : > { %11527 = vmatpush1.bf16.msra.mxu0 %v17036_v29  ;;  %v16955_v29 = vld [vmem:[%s18387_s7 + $0x818] ss:$24 sps:$4 sm:$0xff]  }
 0x45a   : > { %11528 = vmatprep.subr.bf16.mxu0 %v17044_v58  ;;  %v16963_v58 = vld [vmem:[%s18387_s7 + $0x84c] ss:$24 sps:$4 sm:$0xff]  }
 0x45b   : > { %11858 = vmatpush1.bf16.msra.mxu1 %v16949_v48  ;;  %11490 = vmatmul.mubr.bf16.gmra.mrb[92].mxu0 %v20776_v28  ;;  %v16961_v48 = vld [vmem:[%s18387_s7 + $0x848] ss:$24 sps:$4 sm:$0xff]  }
 0x45c   : > { %11859 = vmatprep.subr.bf16.mxu1 %v16954_v19  ;;  %v16969_v19 = vld [vmem:[%s18387_s7 + $0x87c] ss:$24 sps:$4 sm:$0xff]  }
 0x45d   : > { %11529 = vmatpush1.bf16.msra.mxu0 %v17042_v5  ;;  %v16975_v5 = vld [vmem:[%s18387_s7 + $0x8ac] ss:$24 sps:$4 sm:$0xff]  }
 0x45e   : > { %11809 = vmatmul.mubr.bf16.gmra.mrb[148].mxu1 %v20440_v0  ;;  %11530 = vmatprep.subr.bf16.mxu0 %v17050_v21  ;;  %v16973_v21 = vld [vmem:[%s18387_s7 + $0x8a8] ss:$24 sps:$4 sm:$0xff]  }
 0x45f   : > { %11818 = vmatprep.mubr.bf16.mxu1 %v20503_v56  ;;  %11860 = vmatpush1.bf16.msra.mxu1 %v16952_v42  ;;  %v16967_v42 = vld [vmem:[%s18387_s7 + $0x878] ss:$24 sps:$4 sm:$0xff]  }
 0x460   : > { %11861 = vmatprep.subr.bf16.mxu1 %v16957_v47  ;;  %v16981_v47 = vld [vmem:[%s18387_s7 + $0x8dc] ss:$24 sps:$4 sm:$0xff]  }
 0x461   : > { %11531 = vmatpush1.bf16.msra.mxu0 %v17048_v26  ;;  %v16979_v26 = vld [vmem:[%s18387_s7 + $0x8d8] ss:$24 sps:$4 sm:$0xff]  }
 0x462   : > { %12291 = vmatprep.subr.bf16.mxu0 %v17056_v20  ;;  %v16987_v20 = vld [vmem:[%s18387_s7 + $0x90c] ss:$24 sps:$4 sm:$0xff]  }
 0x463   : > { %11862 = vmatpush1.bf16.msra.mxu1 %v16955_v29  ;;  %v16985_v29 = vld [vmem:[%s18387_s7 + $0x908] ss:$24 sps:$4 sm:$0xff]  }
 0x464   : > { %11863 = vmatprep.subr.bf16.mxu1 %v16963_v58  ;;  %v16993_v58 = vld [vmem:[%s18387_s7 + $0x93c] ss:$24 sps:$4 sm:$0xff]  }
 0x466   : > { %11819 = vmatmul.mubr.bf16.gmra.mrb[152].mxu1 %v20495_v43  ;;  %v17047_v43 = vld [vmem:[%s18387_s7 + $0xaec] ss:$24 sps:$4 sm:$0xff]  }
 0x467   : > { %11828 = vmatprep.mubr.bf16.mxu1 %v20559_v3  ;;  %11864 = vmatpush1.bf16.msra.mxu1 %v16961_v48  ;;  %v16991_v48 = vld [vmem:[%s18387_s7 + $0x938] ss:$24 sps:$4 sm:$0xff]  }
 0x468   : > { %11865 = vmatprep.subr.bf16.mxu1 %v16969_v19  ;;  %v16999_v19 = vld [vmem:[%s18387_s7 + $0x96c] ss:$24 sps:$4 sm:$0xff]   ;;  %v22313_v3 = vld [vmem:[#allocation41_spill] sm:$0xff] }
 0x46b   : > { %11866 = vmatpush1.bf16.msra.mxu1 %v16967_v42  ;;  %v16997_v42 = vld [vmem:[%s18387_s7 + $0x968] ss:$24 sps:$4 sm:$0xff]  }
 0x46c   : > { %11867 = vmatprep.subr.bf16.mxu1 %v16975_v5  ;;  %v17005_v5 = vld [vmem:[%s18387_s7 + $0x99c] ss:$24 sps:$4 sm:$0xff]  }
 0x46e   : > { %11829 = vmatmul.mubr.bf16.gmra.mrb[156].mxu1 %v20552_v45 }
 0x46f   : > { %11868 = vmatpush1.bf16.msra.mxu1 %v16973_v21  ;;  %11871 = vmatprep.mubr.bf16.mxu1 %v19820_v23  ;;  %v17003_v21 = vld [vmem:[%s18387_s7 + $0x998] ss:$24 sps:$4 sm:$0xff]  }
 0x470   : > { %11869 = vmatprep.subr.bf16.mxu1 %v16981_v47  ;;  %v17011_v47 = vld [vmem:[%s18387_s7 + $0x9cc] ss:$24 sps:$4 sm:$0xff]  }
 0x473   : > { %11870 = vmatpush1.bf16.msra.mxu1 %v16979_v26  ;;  %v17009_v26 = vld [vmem:[%s18387_s7 + $0x9c8] ss:$24 sps:$4 sm:$0xff]  }
 0x474   : > { %11952 = vmatprep.subr.bf16.mxu1 %v16987_v20  ;;  %v17017_v20 = vld [vmem:[%s18387_s7 + $0x9fc] ss:$24 sps:$4 sm:$0xff]  }
 0x476   : > { %11872 = vmatmul.mubr.bf16.vlgmr.msra.gmra.mrb[128].mxu1 %v22248_v9  ;;  %v17027_v9 = vld [vmem:[%s18387_s7 + $0xa58] ss:$24 sps:$4 sm:$0xff]  }
 0x477   : > { %11881 = vmatprep.mubr.bf16.mxu1 %v19824_v61  ;;  %11953 = vmatpush1.bf16.msra.mxu1 %v16985_v29  ;;  %v17980_v29 = vld [vmem:[%s18381_s27 + $0x8] sm:$0xf]  ;;  %s18165_s27 = smov [#allocation8]  }
 0x478   : > { %11954 = vmatprep.subr.bf16.mxu1 %v16993_v58  ;;  %v22309_v58 = vsub.s32 2, %v22272_v38 }
 0x47b   : > { %11955 = vmatpush1.bf16.msra.mxu1 %v16991_v48  ;;  %v21355_v48 = vrot.slane %v17980_v29, %v22309_v58 }
 0x47c   : > { %11956 = vmatprep.subr.bf16.mxu1 %v16999_v19  ;;  %v22310_v19 = vsub.s32 3, %v22272_v38 }
 0x47e   : > { %11882 = vmatmul.mubr.bf16.gmra.mrb[132].mxu1 %v22250_v25 }
 0x47f   : > { %11891 = vmatprep.mubr.bf16.mxu1 %v22253_v24  ;;  %11957 = vmatpush1.bf16.msra.mxu1 %v16997_v42  ;;  %v21360_v42 = vrot.slane %v17980_v29, %v22310_v19  ;;  %v17029_v19 = vld [vmem:[%s18387_s7 + $0xa5c] ss:$24 sps:$4 sm:$0xff]  }
 0x480   : > { %11958 = vmatprep.subr.bf16.mxu1 %v17005_v5  ;;  %v17015_v5 = vld [vmem:[%s18387_s7 + $0x9f8] ss:$24 sps:$4 sm:$0xff]  }
 0x483   : > { %11959 = vmatpush1.bf16.msra.mxu1 %v17003_v21  ;;  %v17023_v21 = vld [vmem:[%s18387_s7 + $0xa2c] ss:$24 sps:$4 sm:$0xff]  }
 0x484   : > { %11960 = vmatprep.subr.bf16.mxu1 %v17011_v47 }
 0x486   : > { %11892 = vmatmul.mubr.bf16.gmra.mrb[136].mxu1 %v22257_v17 }
 0x487   : > { %11901 = vmatprep.mubr.bf16.mxu1 %v22258_v59  ;;  %11961 = vmatpush1.bf16.msra.mxu1 %v17009_v26  ;;  %v17021_v59 = vld [vmem:[%s18387_s7 + $0xa28] ss:$24 sps:$4 sm:$0xff]  }
 0x488   : > { %11962 = vmatprep.subr.bf16.mxu1 %v17017_v20 }
 0x489   : > { %v6248_v47 = vpop.f32.mrb[96].mxu1 }
 0x48a   : > { %v14668_v24 = vadd.f32 %v6248_v47, %v21355_v48  ;;  %v6250_v17 = vpop.f32.mrb[97].mxu1 }
 0x48b   : > { %v21366_v25 = vadd.f32 %v6250_v17, %v21360_v42  ;;  %v6252_v58 = vpop.f32.mrb[98].mxu1  ;;  %11963 = vmatpush1.bf16.msra.mxu1 %v17015_v5  ;;  %v22311_v5 = vld [vmem:[#allocation39_spill] sm:$0xff] }
 0x48c   : > { %v6529_v26 = vmul.f32 0.70710677, %v14668_v24  ;;  %v14670_v38 = vadd.f32 %v6252_v58, %v21355_v48  ;;  %v6254_v29 = vpop.f32.mrb[99].mxu1  ;;  %11964 = vmatprep.subr.bf16.mxu1 %v17023_v21  ;;  %v17035_v21 = vld [vmem:[%s18387_s7 + $0xa8c] ss:$24 sps:$4 sm:$0xff]  }
 0x48d   : > { %v6530_v20 = vmul.f32 0.70710677, %v21366_v25  ;;  %v14671_v61 = vadd.f32 %v6254_v29, %v21360_v42 }
 0x48e   : > { %17770 = verf.f32 %v6529_v26  ;;  %v6541_v47 = vmul.f32 0.70710677, %v14670_v38  ;;  %11902 = vmatmul.mubr.bf16.gmra.mrb[140].mxu1 %v22263_v30 }
 0x48f   : > { %17772 = verf.f32 %v6530_v20  ;;  %v6542_v17 = vmul.f32 0.70710677, %v14671_v61  ;;  %11911 = vmatprep.mubr.bf16.mxu1 %v22311_v5  ;;  %11965 = vmatpush1.bf16.msra.mxu1 %v17021_v59  ;;  %v17033_v20 = vld [vmem:[%s18387_s7 + $0xa88] ss:$24 sps:$4 sm:$0xff]  }
 0x490   : > { %17774 = verf.f32 %v6541_v47  ;;  %11966 = vmatprep.subr.bf16.mxu1 %v17029_v19  ;;  %v17041_v47 = vld [vmem:[%s18387_s7 + $0xabc] ss:$24 sps:$4 sm:$0xff]  }
 0x491   : > { %17776 = verf.f32 %v6542_v17  ;;  %v6258_v58 = vpop.f32.mrb[100].mxu1 }
 0x492   : > { %v21378_v23 = vadd.f32 %v6258_v58, %v21355_v48  ;;  %v6260_v26 = vpop.f32.mrb[101].mxu1 }
 0x493   : > { %v21381_v29 = vadd.f32 %v6260_v26, %v21360_v42  ;;  %v6262_v30 = vpop.f32.mrb[102].mxu1  ;;  %11967 = vmatpush1.bf16.msra.mxu1 %v17027_v9  ;;  %v22312_v9 = vld [vmem:[#allocation40_spill] sm:$0xff] }
 0x494   : > { %v6553_v59 = vmul.f32 0.70710677, %v21378_v23  ;;  %v21386_v5 = vadd.f32 %v6262_v30, %v21355_v48  ;;  %v6264_v19 = vpop.f32.mrb[103].mxu1  ;;  %11968 = vmatprep.subr.bf16.mxu1 %v17035_v21  ;;  %v17039_v30 = vld [vmem:[%s18387_s7 + $0xab8] ss:$24 sps:$4 sm:$0xff]  }
 0x495   : > { %v6554_v17 = vmul.f32 0.70710677, %v21381_v29  ;;  %v21391_v58 = vadd.f32 %v6264_v19, %v21360_v42 }
 0x496   : > { %17778 = verf.f32 %v6553_v59  ;;  %v6565_v26 = vmul.f32 0.70710677, %v21386_v5  ;;  %11912 = vmatmul.mubr.bf16.gmra.mrb[144].mxu1 %v22312_v9 }
 0x497   : > { %17780 = verf.f32 %v6554_v17  ;;  %v6566_v45 = vmul.f32 0.70710677, %v21391_v58  ;;  %11921 = vmatprep.mubr.bf16.mxu1 %v22313_v3  ;;  %11969 = vmatpush1.bf16.msra.mxu1 %v17033_v20  ;;  %v6337_v3 = vmul.f32 0.5, %v14668_v24  ;;  %v6349_v20 = vmul.f32 0.5, %v14670_v38 }
 0x498   : > { %v17771_v21 = vpop.eup %17770  ;;  %17782 = verf.f32 %v6565_v26  ;;  %11970 = vmatprep.subr.bf16.mxu1 %v17041_v47 }
 0x499   : > { %v17773_v56 = vpop.eup %17772  ;;  %v6913_v19 = vadd.f32 1.0, %v17771_v21  ;;  %17784 = verf.f32 %v6566_v45  ;;  %v6268_v59 = vpop.f32.mrb[104].mxu1  ;;  %v6338_v45 = vmul.f32 0.5, %v21366_v25  ;;  %v6350_v21 = vmul.f32 0.5, %v14671_v61  ;;  %v22314_v25 = vld [vmem:[#allocation42_spill] sm:$0xff] }
 0x49a   : > { %v17775_v0 = vpop.eup %17774  ;;  %v6914_v32 = vadd.f32 1.0, %v17773_v56  ;;  %v21400_v17 = vadd.f32 %v6268_v59, %v21355_v48  ;;  %v6270_v9 = vpop.f32.mrb[105].mxu1 }
 0x49b   : > { %v17777_v50 = vpop.eup %17776  ;;  %v6925_v28 = vadd.f32 1.0, %v17775_v0  ;;  %v21404_v26 = vadd.f32 %v6270_v9, %v21360_v42  ;;  %v6272_v47 = vpop.f32.mrb[106].mxu1  ;;  %11971 = vmatpush1.bf16.msra.mxu1 %v17039_v30  ;;  %v7105_v34 = vmul.f32 %v6913_v19, %v6337_v3  ;;  %v22316_v3 = vld [vmem:[#allocation44_spill] sm:$0xff] }
 0x49c   : > { %v6926_v55 = vadd.f32 1.0, %v17777_v50  ;;  %v6577_v56 = vmul.f32 0.70710677, %v21400_v17  ;;  %v6274_v59 = vpop.f32.mrb[107].mxu1  ;;  %11972 = vmatprep.subr.bf16.mxu1 %v17047_v43  ;;  %v21411_v0 = vadd.f32 %v6272_v47, %v21355_v48  ;;  %v7106_v38 = vmul.f32 %v6914_v32, %v6338_v45  ;;  %v17054_v19 = vld [vmem:[%s18387_s7 + $0x10] ss:$24 sps:$4 sm:$0xff]  }
 0x49d   : > { %v7117_v51 = vmul.f32 %v6925_v28, %v6349_v20  ;;  %v6578_v24 = vmul.f32 0.70710677, %v21404_v26  ;;  %v21414_v61 = vadd.f32 %v6274_v59, %v21360_v42  ;;  %v17051_v28 = vld [vmem:[%s18387_s7 + $0xb18] ss:$24 sps:$4 sm:$0xff]   ;;  %v17059_v20 = vld [vmem:[%s18387_s7 + $0xb4c] ss:$24 sps:$4 sm:$0xff]  }
 0x49e   : > { %v7118_v9 = vmul.f32 %v6926_v55, %v6350_v21  ;;  %17786 = verf.f32 %v6577_v56  ;;  %11922 = vmatmul.mubr.bf16.gmra.mrb[148].mxu1 %v22314_v25  ;;  %v6589_v43 = vmul.f32 0.70710677, %v21411_v0  ;;  %v17062_v45 = vld [vmem:[%s18387_s7 + $0x44] ss:$24 sps:$4 sm:$0xff]  }
 0x49f   : > { %v21417_v50 = vpack.c.bf16 %v7117_v51, %v7105_v34  ;;  %17788 = verf.f32 %v6578_v24  ;;  %11931 = vmatprep.mubr.bf16.mxu1 %v22316_v3  ;;  %11973 = vmatpush1.bf16.msra.mxu1 %v17045_v46  ;;  %v6590_v32 = vmul.f32 0.70710677, %v21414_v61  ;;  %v17057_v24 = vld [vmem:[%s18387_s7 + $0xb48] ss:$24 sps:$4 sm:$0xff]  }
 0x4a0   : > { %v17779_v30 = vpop.eup %17778  ;;  %v21423_v55 = vpack.c.bf16 %v7118_v9, %v7106_v38  ;;  %11974 = vmatprep.subr.bf16.mxu1 %v17053_v22  ;;  %17790 = verf.f32 %v6589_v43  ;;  %v17060_v38 = vld [vmem:[%s18387_s7 + $0x40] ss:$24 sps:$4 sm:$0xff]   ;;  %v6361_v9 = vmul.f32 0.5, %v21378_v23 }
 0x4a1   : > { %22315 = vst [vmem:[#allocation21_spill] sm:$0xff] %v21417_v50  ;;  %v17781_v51 = vpop.eup %17780  ;;  %v6937_v34 = vadd.f32 1.0, %v17779_v30  ;;  %v6278_v47 = vpop.f32.mrb[108].mxu1  ;;  %17792 = verf.f32 %v6590_v32  ;;  %v6373_v30 = vmul.f32 0.5, %v21386_v5  ;;  %v17065_v32 = vld [vmem:[%s18387_s7 + $0xb7c] ss:$24 sps:$4 sm:$0xff]  }
 0x4a2   : > { %22317 = vst [vmem:[#allocation26_spill] sm:$0xff] %v21423_v55  ;;  %v17783_v21 = vpop.eup %17782  ;;  %v6938_v56 = vadd.f32 1.0, %v17781_v51  ;;  %v21429_v46 = vadd.f32 %v6278_v47, %v21355_v48  ;;  %v6280_v59 = vpop.f32.mrb[109].mxu1  ;;  %11532 = vmatprep.mubr.bf16.mxu0 %v21423_v55  ;;  %v6362_v51 = vmul.f32 0.5, %v21381_v29  ;;  %v6374_v47 = vmul.f32 0.5, %v21391_v58 }
 0x4a3   : > { %v17785_v22 = vpop.eup %17784  ;;  %v6949_v43 = vadd.f32 1.0, %v17783_v21  ;;  %v21437_v3 = vadd.f32 %v6280_v59, %v21360_v42  ;;  %v6282_v25 = vpop.f32.mrb[110].mxu1  ;;  %11533 = vmatmul.mubr.bf16.vlgmr.msra.gmra.mrb[64].mxu0 %v21417_v50  ;;  %11975 = vmatpush1.bf16.msra.mxu1 %v17051_v28  ;;  %v7129_v5 = vmul.f32 %v6937_v34, %v6361_v9  ;;  %v17068_v28 = vld [vmem:[%s18387_s7 + $0x74] ss:$24 sps:$4 sm:$0xff]   ;;  %v22319_v34 = vld [vmem:[#allocation46_spill] sm:$0xff] }
 0x4a4   : > { %v6950_v55 = vadd.f32 1.0, %v17785_v22  ;;  %v6601_v36 = vmul.f32 0.70710677, %v21429_v46  ;;  %v6284_v23 = vpop.f32.mrb[111].mxu1  ;;  %12292 = vmatpush1.bf16.msra.mxu0 %v17054_v19  ;;  %11976 = vmatprep.subr.bf16.mxu1 %v17059_v20  ;;  %v21446_v15 = vadd.f32 %v6282_v25, %v21355_v48  ;;  %v7130_v50 = vmul.f32 %v6938_v56, %v6362_v51  ;;  %v22318_v19 = vld [vmem:[#allocation43_spill] sm:$0xff] }
 0x4a5   : > { %v7141_v21 = vmul.f32 %v6949_v43, %v6373_v30  ;;  %v6602_v59 = vmul.f32 0.70710677, %v21437_v3  ;;  %12293 = vmatprep.subr.bf16.mxu0 %v17062_v45  ;;  %v21450_v58 = vadd.f32 %v6284_v23, %v21360_v42  ;;  %v17063_v25 = vld [vmem:[%s18387_s7 + $0xb78] ss:$24 sps:$4 sm:$0xff]   ;;  %v17071_v9 = vld [vmem:[%s18387_s7 + $0xbac] ss:$24 sps:$4 sm:$0xff]  }
 0x4a6   : > { %v7142_v29 = vmul.f32 %v6950_v55, %v6374_v47  ;;  %17794 = verf.f32 %v6601_v36  ;;  %11932 = vmatmul.mubr.bf16.gmra.mrb[152].mxu1 %v22318_v19  ;;  %v6613_v20 = vmul.f32 0.70710677, %v21446_v15  ;;  %v17066_v22 = vld [vmem:[%s18387_s7 + $0x70] ss:$24 sps:$4 sm:$0xff]  }
 0x4a7   : > { %17796 = verf.f32 %v6602_v59  ;;  %11941 = vmatprep.mubr.bf16.mxu1 %v22319_v34  ;;  %11977 = vmatpush1.bf16.msra.mxu1 %v17057_v24  ;;  %v21456_v45 = vpack.c.bf16 %v7141_v21, %v7129_v5  ;;  %v6614_v55 = vmul.f32 0.70710677, %v21450_v58  ;;  %v17074_v24 = vld [vmem:[%s18387_s7 + $0xa4] ss:$24 sps:$4 sm:$0xff]  }
 0x4a8   : > { %v17787_v56 = vpop.eup %17786  ;;  %12294 = vmatpush1.bf16.msra.mxu0 %v17060_v38  ;;  %v21459_v36 = vpack.c.bf16 %v7142_v29, %v7130_v50  ;;  %11978 = vmatprep.subr.bf16.mxu1 %v17065_v32  ;;  %17798 = verf.f32 %v6613_v20  ;;  %v17069_v38 = vld [vmem:[%s18387_s7 + $0xba8] ss:$24 sps:$4 sm:$0xff]   ;;  %v6385_v32 = vmul.f32 0.5, %v21400_v17  ;;  %v17077_v29 = vld [vmem:[%s18387_s7 + $0xbdc] ss:$24 sps:$4 sm:$0xff]   ;;  %v6398_v17 = vmul.f32 0.5, %v21414_v61 }
 0x4a9   : > { %22320 = vst [vmem:[#allocation25_spill] sm:$0xff] %v21456_v45  ;;  %v17789_v30 = vpop.eup %17788  ;;  %v6288_v43 = vpop.f32.mrb[112].mxu1  ;;  %12295 = vmatprep.subr.bf16.mxu0 %v17068_v28  ;;  %v6961_v51 = vadd.f32 1.0, %v17787_v56  ;;  %17800 = verf.f32 %v6614_v55  ;;  %v17072_v50 = vld [vmem:[%s18387_s7 + $0xa0] ss:$24 sps:$4 sm:$0xff]   ;;  %v6386_v56 = vmul.f32 0.5, %v21404_v26 }
 0x4aa   : > { %22321 = vst [vmem:[#allocation29_spill] sm:$0xff] %v21459_v36  ;;  %v21465_v47 = vadd.f32 %v6288_v43, %v21355_v48  ;;  %v6290_v23 = vpop.f32.mrb[113].mxu1  ;;  %11542 = vmatprep.mubr.bf16.mxu0 %v21459_v36  ;;  %v17791_v5 = vpop.eup %17790  ;;  %v6962_v21 = vadd.f32 1.0, %v17789_v30  ;;  %v6397_v55 = vmul.f32 0.5, %v21411_v0 }
 0x4ab   : > { %v21472_v59 = vadd.f32 %v6290_v23, %v21360_v42  ;;  %v6292_v28 = vpop.f32.mrb[114].mxu1  ;;  %11543 = vmatmul.mubr.bf16.gmra.mrb[68].mxu0 %v21456_v45  ;;  %11979 = vmatpush1.bf16.msra.mxu1 %v17063_v25  ;;  %v17793_v20 = vpop.eup %17792  ;;  %v6973_v43 = vadd.f32 1.0, %v17791_v5  ;;  %v17080_v45 = vld [vmem:[%s18387_s7 + $0xd4] ss:$24 sps:$4 sm:$0xff]   ;;  %v7153_v26 = vmul.f32 %v6961_v51, %v6385_v32 }
 0x4ac   : > { %v6625_v34 = vmul.f32 0.70710677, %v21465_v47  ;;  %v6294_v19 = vpop.f32.mrb[115].mxu1  ;;  %12296 = vmatpush1.bf16.msra.mxu0 %v17066_v22  ;;  %11980 = vmatprep.subr.bf16.mxu1 %v17071_v9  ;;  %v6974_v30 = vadd.f32 1.0, %v17793_v20  ;;  %v21482_v25 = vadd.f32 %v6292_v28, %v21355_v48  ;;  %v22322_v22 = vld [vmem:[#allocation45_spill] sm:$0xff]  ;;  %v7154_v9 = vmul.f32 %v6962_v21, %v6386_v56 }
 0x4ad   : > { %v6626_v23 = vmul.f32 0.70710677, %v21472_v59  ;;  %12297 = vmatprep.subr.bf16.mxu0 %v17074_v24  ;;  %v7165_v36 = vmul.f32 %v6973_v43, %v6397_v55  ;;  %v21486_v0 = vadd.f32 %v6294_v19, %v21360_v42  ;;  %v22323_v28 = vld [vmem:[#allocation69_spill] sm:$0xff] }
 0x4ae   : > { %17802 = verf.f32 %v6625_v34  ;;  %11942 = vmatmul.mubr.bf16.gmra.mrb[156].mxu1 %v22322_v22  ;;  %v7166_v61 = vmul.f32 %v6974_v30, %v6398_v17  ;;  %v6637_v5 = vmul.f32 0.70710677, %v21482_v25  ;;  %v17075_v24 = vld [vmem:[%s18387_s7 + $0xbd8] ss:$24 sps:$4 sm:$0xff]   ;;  %v17083_v34 = vld [vmem:[%s18387_s7 + $0xc0c] ss:$24 sps:$4 sm:$0xff]  }
 0x4af   : > { %17804 = verf.f32 %v6626_v23  ;;  %11981 = vmatpush1.bf16.msra.mxu1 %v17069_v38  ;;  %11984 = vmatprep.mubr.bf16.mxu1 %v22323_v28  ;;  %v6638_v51 = vmul.f32 0.70710677, %v21486_v0  ;;  %v21493_v19 = vpack.c.bf16 %v7165_v36, %v7153_v26  ;;  %v17078_v38 = vld [vmem:[%s18387_s7 + $0xd0] ss:$24 sps:$4 sm:$0xff]   ;;  %v6409_v36 = vmul.f32 0.5, %v21429_v46 }
 0x4b0   : > { %v17795_v20 = vpop.eup %17794  ;;  %12298 = vmatpush1.bf16.msra.mxu0 %v17072_v50  ;;  %11982 = vmatprep.subr.bf16.mxu1 %v17077_v29  ;;  %17806 = verf.f32 %v6637_v5  ;;  %v21496_v56 = vpack.c.bf16 %v7166_v61, %v7154_v9  ;;  %v17081_v30 = vld [vmem:[%s18387_s7 + $0xc08] ss:$24 sps:$4 sm:$0xff]   ;;  %v17086_v50 = vld [vmem:[%s18387_s7 + $0x104] ss:$24 sps:$4 sm:$0xff]   ;;  %v6410_v5 = vmul.f32 0.5, %v21437_v3 }
 0x4b1   : > { %22324 = vst [vmem:[#allocation28_spill] sm:$0xff] %v21493_v19  ;;  %v17797_v32 = vpop.eup %17796  ;;  %v6298_v21 = vpop.f32.mrb[116].mxu1  ;;  %12299 = vmatprep.subr.bf16.mxu0 %v17080_v45  ;;  %v6985_v55 = vadd.f32 1.0, %v17795_v20  ;;  %17808 = verf.f32 %v6638_v51  ;;  %v17089_v45 = vld [vmem:[%s18387_s7 + $0xc3c] ss:$24 sps:$4 sm:$0xff]   ;;  %v6421_v20 = vmul.f32 0.5, %v21446_v15 }
 0x4b2   : > { %22325 = vst [vmem:[#allocation32_spill] sm:$0xff] %v21496_v56  ;;  %v21500_v43 = vadd.f32 %v6298_v21, %v21355_v48  ;;  %v6300_v17 = vpop.f32.mrb[117].mxu1  ;;  %v17799_v29 = vpop.eup %17798  ;;  %v6986_v23 = vadd.f32 1.0, %v17797_v32  ;;  %11552 = vmatprep.mubr.bf16.mxu0 %v21496_v56  ;;  %v6422_v32 = vmul.f32 0.5, %v21450_v58  ;;  %v17084_v3 = vld [vmem:[%s18387_s7 + $0x100] ss:$24 sps:$4 sm:$0xff]  }
 0x4b3   : > { %v21506_v26 = vadd.f32 %v6300_v17, %v21360_v42  ;;  %v6302_v9 = vpop.f32.mrb[118].mxu1  ;;  %11983 = vmatpush1.bf16.msra.mxu1 %v17075_v24  ;;  %v17801_v61 = vpop.eup %17800  ;;  %v6997_v51 = vadd.f32 1.0, %v17799_v29  ;;  %11553 = vmatmul.mubr.bf16.gmra.mrb[72].mxu0 %v21493_v19  ;;  %v7177_v15 = vmul.f32 %v6985_v55, %v6409_v36  ;;  %v22326_v19 = vld [vmem:[#allocation14_spill] sm:$0xff]  ;;  %v17092_v58 = vld [vmem:[%s18387_s7 + $0x134] ss:$24 sps:$4 sm:$0xff]  }
 0x4b4   : > { %v6649_v21 = vmul.f32 0.70710677, %v21500_v43  ;;  %v6304_v46 = vpop.f32.mrb[119].mxu1  ;;  %12065 = vmatprep.subr.bf16.mxu1 %v17083_v34  ;;  %v6998_v17 = vadd.f32 1.0, %v17801_v61  ;;  %v21517_v24 = vadd.f32 %v6302_v9, %v21355_v48  ;;  %12300 = vmatpush1.bf16.msra.mxu0 %v17078_v38  ;;  %v7178_v34 = vmul.f32 %v6986_v23, %v6410_v5  ;;  %v22327_v56 = vld [vmem:[#allocation71_spill] sm:$0xff] }
 0x4b5   : > { %v6650_v28 = vmul.f32 0.70710677, %v21506_v26  ;;  %v7189_v29 = vmul.f32 %v6997_v51, %v6421_v20  ;;  %v21521_v22 = vadd.f32 %v6304_v46, %v21360_v42  ;;  %12301 = vmatprep.subr.bf16.mxu0 %v17086_v50  ;;  %v17087_v38 = vld [vmem:[%s18387_s7 + $0xc38] ss:$24 sps:$4 sm:$0xff]   ;;  %v17095_v50 = vld [vmem:[%s18387_s7 + $0xc6c] ss:$24 sps:$4 sm:$0xff]  }
 0x4b6   : > { %17810 = verf.f32 %v6649_v21  ;;  %11985 = vmatmul.mubr.bf16.vlgmr.msra.gmra.mrb[128].mxu1 %v22326_v19  ;;  %v7190_v61 = vmul.f32 %v6998_v17, %v6422_v32  ;;  %v6661_v9 = vmul.f32 0.70710677, %v21517_v24  ;;  %v17090_v5 = vld [vmem:[%s18387_s7 + $0x130] ss:$24 sps:$4 sm:$0xff]  }
 0x4b7   : > { %17812 = verf.f32 %v6650_v28  ;;  %11994 = vmatprep.mubr.bf16.mxu1 %v22327_v56  ;;  %12066 = vmatpush1.bf16.msra.mxu1 %v17081_v30  ;;  %v6662_v36 = vmul.f32 0.70710677, %v21521_v22  ;;  %v21529_v20 = vpack.c.bf16 %v7189_v29, %v7177_v15  ;;  %v17093_v32 = vld [vmem:[%s18387_s7 + $0xc68] ss:$24 sps:$4 sm:$0xff]   ;;  %v6433_v15 = vmul.f32 0.5, %v21465_v47 }
 0x4b8   : > { %v17803_v55 = vpop.eup %17802  ;;  %12067 = vmatprep.subr.bf16.mxu1 %v17089_v45  ;;  %17814 = verf.f32 %v6661_v9  ;;  %12302 = vmatpush1.bf16.msra.mxu0 %v17084_v3  ;;  %v21532_v28 = vpack.c.bf16 %v7190_v61, %v7178_v34  ;;  %v17098_v45 = vld [vmem:[%s18387_s7 + $0x164] ss:$24 sps:$4 sm:$0xff]  }
 0x4b9   : > { %22328 = vst [vmem:[#allocation31_spill] sm:$0xff] %v21529_v20  ;;  %v17805_v51 = vpop.eup %17804  ;;  %v6308_v23 = vpop.f32.mrb[120].mxu1  ;;  %v7009_v21 = vadd.f32 1.0, %v17803_v55  ;;  %17816 = verf.f32 %v6662_v36  ;;  %12303 = vmatprep.subr.bf16.mxu0 %v17092_v58  ;;  %v17101_v61 = vld [vmem:[%s18387_s7 + $0xc9c] ss:$24 sps:$4 sm:$0xff]   ;;  %v6434_v55 = vmul.f32 0.5, %v21472_v59 }
 0x4ba   : > { %22329 = vst [vmem:[#allocation34_spill] sm:$0xff] %v21532_v28  ;;  %v21536_v30 = vadd.f32 %v6308_v23, %v21355_v48  ;;  %v6310_v46 = vpop.f32.mrb[121].mxu1  ;;  %v17807_v17 = vpop.eup %17806  ;;  %v7010_v29 = vadd.f32 1.0, %v17805_v51  ;;  %11562 = vmatprep.mubr.bf16.mxu0 %v21532_v28  ;;  %v6445_v58 = vmul.f32 0.5, %v21482_v25  ;;  %v6446_v51 = vmul.f32 0.5, %v21486_v0  ;;  %v22331_v28 = vld [vmem:[#allocation73_spill] sm:$0xff] }
 0x4bb   : > { %v21542_v3 = vadd.f32 %v6310_v46, %v21360_v42  ;;  %v6312_v34 = vpop.f32.mrb[122].mxu1  ;;  %12068 = vmatpush1.bf16.msra.mxu1 %v17087_v38  ;;  %v17809_v9 = vpop.eup %17808  ;;  %v7021_v36 = vadd.f32 1.0, %v17807_v17  ;;  %11563 = vmatmul.mubr.bf16.gmra.mrb[76].mxu0 %v21529_v20  ;;  %v17096_v59 = vld [vmem:[%s18387_s7 + $0x160] ss:$24 sps:$4 sm:$0xff]   ;;  %v7201_v25 = vmul.f32 %v7009_v21, %v6433_v15  ;;  %v17104_v0 = vld [vmem:[%s18387_s7 + $0x194] ss:$24 sps:$4 sm:$0xff]  }
 0x4bc   : > { %v6673_v23 = vmul.f32 0.70710677, %v21536_v30  ;;  %v6314_v47 = vpop.f32.mrb[123].mxu1  ;;  %12069 = vmatprep.subr.bf16.mxu1 %v17095_v50  ;;  %v7022_v46 = vadd.f32 1.0, %v17809_v9  ;;  %v21553_v38 = vadd.f32 %v6312_v34, %v21355_v48  ;;  %12304 = vmatpush1.bf16.msra.mxu0 %v17090_v5  ;;  %v22330_v20 = vld [vmem:[#allocation70_spill] sm:$0xff]  ;;  %v7202_v50 = vmul.f32 %v7010_v29, %v6434_v55 }
 0x4bd   : > { %v6674_v56 = vmul.f32 0.70710677, %v21542_v3  ;;  %v7213_v17 = vmul.f32 %v7021_v36, %v6445_v58  ;;  %v21557_v19 = vadd.f32 %v6314_v47, %v21360_v42  ;;  %12305 = vmatprep.subr.bf16.mxu0 %v17098_v45  ;;  %v17099_v5 = vld [vmem:[%s18387_s7 + $0xc98] ss:$24 sps:$4 sm:$0xff]   ;;  %v17107_v45 = vld [vmem:[%s18387_s7 + $0xccc] ss:$24 sps:$4 sm:$0xff]  }
 0x4be   : > { %17818 = verf.f32 %v6673_v23  ;;  %11995 = vmatmul.mubr.bf16.gmra.mrb[132].mxu1 %v22330_v20  ;;  %v7214_v9 = vmul.f32 %v7022_v46, %v6446_v51  ;;  %v6685_v34 = vmul.f32 0.70710677, %v21553_v38  ;;  %v17102_v55 = vld [vmem:[%s18387_s7 + $0x190] ss:$24 sps:$4 sm:$0xff]  }
 0x4bf   : > { %17820 = verf.f32 %v6674_v56  ;;  %12004 = vmatprep.mubr.bf16.mxu1 %v22331_v28  ;;  %12070 = vmatpush1.bf16.msra.mxu1 %v17093_v32  ;;  %v6686_v15 = vmul.f32 0.70710677, %v21557_v19  ;;  %v21565_v58 = vpack.c.bf16 %v7213_v17, %v7201_v25  ;;  %v17105_v51 = vld [vmem:[%s18387_s7 + $0xcc8] ss:$24 sps:$4 sm:$0xff]   ;;  %v6457_v25 = vmul.f32 0.5, %v21500_v43 }
 0x4c0   : > { %v17811_v21 = vpop.eup %17810  ;;  %12071 = vmatprep.subr.bf16.mxu1 %v17101_v61  ;;  %17822 = verf.f32 %v6685_v34  ;;  %12306 = vmatpush1.bf16.msra.mxu0 %v17096_v59  ;;  %v21568_v56 = vpack.c.bf16 %v7214_v9, %v7202_v50  ;;  %v17110_v61 = vld [vmem:[%s18387_s7 + $0x1c4] ss:$24 sps:$4 sm:$0xff]  }
 0x4c1   : > { %22332 = vst [vmem:[#allocation51_spill] sm:$0xff] %v21565_v58  ;;  %v17813_v36 = vpop.eup %17812  ;;  %v6318_v29 = vpop.f32.mrb[124].mxu1  ;;  %v7033_v23 = vadd.f32 1.0, %v17811_v21  ;;  %17824 = verf.f32 %v6686_v15  ;;  %12307 = vmatprep.subr.bf16.mxu0 %v17104_v0  ;;  %v17113_v9 = vld [vmem:[%s18387_s7 + $0xcfc] ss:$24 sps:$4 sm:$0xff]   ;;  %v6458_v21 = vmul.f32 0.5, %v21506_v26 }
 0x4c2   : > { %v21572_v32 = vadd.f32 %v6318_v29, %v21355_v48  ;;  %v6320_v47 = vpop.f32.mrb[125].mxu1  ;;  %v17815_v46 = vpop.eup %17814  ;;  %v7034_v17 = vadd.f32 1.0, %v17813_v36  ;;  %11572 = vmatprep.mubr.bf16.mxu0 %v21568_v56  ;;  %v6469_v0 = vmul.f32 0.5, %v21517_v24  ;;  %v6470_v36 = vmul.f32 0.5, %v21521_v22  ;;  %v17108_v26 = vld [vmem:[%s18387_s7 + $0x1c0] ss:$24 sps:$4 sm:$0xff]  }
 0x4c3   : > { %v21578_v59 = vadd.f32 %v6320_v47, %v21360_v42  ;;  %v6322_v50 = vpop.f32.mrb[126].mxu1  ;;  %12072 = vmatpush1.bf16.msra.mxu1 %v17099_v5  ;;  %v17817_v34 = vpop.eup %17816  ;;  %v7045_v15 = vadd.f32 1.0, %v17815_v46  ;;  %11573 = vmatmul.mubr.bf16.gmra.mrb[80].mxu0 %v21565_v58  ;;  %v7225_v24 = vmul.f32 %v7033_v23, %v6457_v25  ;;  %v22333_v58 = vld [vmem:[#allocation72_spill] sm:$0xff] }
 0x4c4   : > { %v6697_v29 = vmul.f32 0.70710677, %v21572_v32  ;;  %v6324_v43 = vpop.f32.mrb[127].mxu1  ;;  %12073 = vmatprep.subr.bf16.mxu1 %v17107_v45  ;;  %v7046_v47 = vadd.f32 1.0, %v17817_v34  ;;  %v21589_v5 = vadd.f32 %v6322_v50, %v21355_v48  ;;  %12308 = vmatpush1.bf16.msra.mxu0 %v17102_v55  ;;  %v17116_v22 = vld [vmem:[%s18387_s7 + $0x1f4] ss:$24 sps:$4 sm:$0xff]   ;;  %v7226_v45 = vmul.f32 %v7034_v17, %v6458_v21 }
 0x4c5   : > { %v6698_v28 = vmul.f32 0.70710677, %v21578_v59  ;;  %v7237_v46 = vmul.f32 %v7045_v15, %v6469_v0  ;;  %v21593_v20 = vadd.f32 %v6324_v43, %v21360_v42  ;;  %12309 = vmatprep.subr.bf16.mxu0 %v17110_v61  ;;  %v22334_v50 = vld [vmem:[#allocation75_spill] sm:$0xff]  ;;  %v17111_v55 = vld [vmem:[%s18387_s7 + $0xcf8] ss:$24 sps:$4 sm:$0xff]  }
 0x4c6   : > { %17826 = verf.f32 %v6697_v29  ;;  %12005 = vmatmul.mubr.bf16.gmra.mrb[136].mxu1 %v22333_v58  ;;  %v7238_v34 = vmul.f32 %v7046_v47, %v6470_v36  ;;  %v6709_v48 = vmul.f32 0.70710677, %v21589_v5  ;;  %v17119_v61 = vld [vmem:[%s18387_s7 + $0xd2c] ss:$24 sps:$4 sm:$0xff]   ;;  %v6481_v36 = vmul.f32 0.5, %v21536_v30 }
 0x4c7   : > { %17828 = verf.f32 %v6698_v28  ;;  %12014 = vmatprep.mubr.bf16.mxu1 %v22334_v50  ;;  %12074 = vmatpush1.bf16.msra.mxu1 %v17105_v51  ;;  %v6710_v25 = vmul.f32 0.70710677, %v21593_v20  ;;  %v21601_v42 = vpack.c.bf16 %v7237_v46, %v7225_v24  ;;  %v17114_v28 = vld [vmem:[%s18387_s7 + $0x1f0] ss:$24 sps:$4 sm:$0xff]   ;;  %v17122_v51 = vld [vmem:[%s18387_s7 + $0x224] ss:$24 sps:$4 sm:$0xff]  }
 0x4c8   : > { %v17819_v23 = vpop.eup %17818  ;;  %12075 = vmatprep.subr.bf16.mxu1 %v17113_v9  ;;  %17830 = verf.f32 %v6709_v48  ;;  %12310 = vmatpush1.bf16.msra.mxu0 %v17108_v26  ;;  %v21604_v17 = vpack.c.bf16 %v7238_v34, %v7226_v45  ;;  %v17117_v9 = vld [vmem:[%s18387_s7 + $0xd28] ss:$24 sps:$4 sm:$0xff]   ;;  %v6493_v47 = vmul.f32 0.5, %v21553_v38  ;;  %v17125_v24 = vld [vmem:[%s18387_s7 + $0xd5c] ss:$24 sps:$4 sm:$0xff]   ;;  %v6482_v46 = vmul.f32 0.5, %v21542_v3 }
 0x4c9   : > { %v17821_v0 = vpop.eup %17820  ;;  %v7057_v21 = vadd.f32 1.0, %v17819_v23  ;;  %17832 = verf.f32 %v6710_v25  ;;  %12311 = vmatprep.subr.bf16.mxu0 %v17116_v22  ;;  %v6494_v22 = vmul.f32 0.5, %v21557_v19  ;;  %v17120_v34 = vld [vmem:[%s18387_s7 + $0x220] ss:$24 sps:$4 sm:$0xff]   ;;  %v17128_v30 = vld [vmem:[%s18387_s7 + $0x254] ss:$24 sps:$4 sm:$0xff]  }
 0x4ca   : > { %v17823_v15 = vpop.eup %17822  ;;  %v7058_v29 = vadd.f32 1.0, %v17821_v0  ;;  %11582 = vmatprep.mubr.bf16.mxu0 %v21604_v17  ;;  %v22335_v23 = vld [vmem:[#allocation74_spill] sm:$0xff]  ;;  %v17123_v3 = vld [vmem:[%s18387_s7 + $0xd58] ss:$24 sps:$4 sm:$0xff]  }
 0x4cb   : > { %12076 = vmatpush1.bf16.msra.mxu1 %v17111_v55  ;;  %v17825_v43 = vpop.eup %17824  ;;  %v7069_v26 = vadd.f32 1.0, %v17823_v15  ;;  %11583 = vmatmul.mubr.bf16.gmra.mrb[84].mxu0 %v21601_v42  ;;  %v7249_v48 = vmul.f32 %v7057_v21, %v6481_v36  ;;  %v17131_v0 = vld [vmem:[%s18387_s7 + $0xd8c] ss:$24 sps:$4 sm:$0xff]  }
 0x4cc   : > { %12077 = vmatprep.subr.bf16.mxu1 %v17119_v61  ;;  %v7070_v45 = vadd.f32 1.0, %v17825_v43  ;;  %12312 = vmatpush1.bf16.msra.mxu0 %v17114_v28  ;;  %v7250_v38 = vmul.f32 %v7058_v29, %v6482_v46  ;;  %v17134_v29 = vld [vmem:[%s18387_s7 + $0x284] ss:$24 sps:$4 sm:$0xff]  }
 0x4cd   : > { %v7261_v55 = vmul.f32 %v7069_v26, %v6493_v47  ;;  %12313 = vmatprep.subr.bf16.mxu0 %v17122_v51  ;;  %v17126_v51 = vld [vmem:[%s18387_s7 + $0x250] ss:$24 sps:$4 sm:$0xff]   ;;  %v6505_v26 = vmul.f32 0.5, %v21572_v32 }
 0x4ce   : > { %12015 = vmatmul.mubr.bf16.gmra.mrb[140].mxu1 %v22335_v23  ;;  %v7262_v25 = vmul.f32 %v7070_v45, %v6494_v22  ;;  %v17137_v22 = vld [vmem:[%s18387_s7 + $0xdbc] ss:$24 sps:$4 sm:$0xff]   ;;  %v6506_v45 = vmul.f32 0.5, %v21578_v59 }
 0x4cf   : > { %12024 = vmatprep.mubr.bf16.mxu1 %v21139_v53  ;;  %12078 = vmatpush1.bf16.msra.mxu1 %v17117_v9  ;;  %v21621_v61 = vpack.c.bf16 %v7261_v55, %v7249_v48  ;;  %v17129_v9 = vld [vmem:[%s18387_s7 + $0xd88] ss:$24 sps:$4 sm:$0xff]   ;;  %v22336_v32 = vld [vmem:[#allocation76_spill] sm:$0xff] }
 0x4d0   : > { %v17827_v19 = vpop.eup %17826  ;;  %12079 = vmatprep.subr.bf16.mxu1 %v17125_v24  ;;  %12314 = vmatpush1.bf16.msra.mxu0 %v17120_v34  ;;  %v21624_v21 = vpack.c.bf16 %v7262_v25, %v7250_v38  ;;  %v6517_v24 = vmul.f32 0.5, %v21589_v5  ;;  %v6518_v34 = vmul.f32 0.5, %v21593_v20  ;;  %v17132_v55 = vld [vmem:[%s18387_s7 + $0x280] ss:$24 sps:$4 sm:$0xff]   ;;  %v17140_v5 = vld [vmem:[%s18387_s7 + $0x2b4] ss:$24 sps:$4 sm:$0xff]  }
 0x4d1   : > { %v17829_v28 = vpop.eup %17828  ;;  %v7081_v15 = vadd.f32 1.0, %v17827_v19  ;;  %12315 = vmatprep.subr.bf16.mxu0 %v17128_v30  ;;  %v17135_v20 = vld [vmem:[%s18387_s7 + $0xdb8] ss:$24 sps:$4 sm:$0xff]   ;;  %v17143_v19 = vld [vmem:[%s18387_s7 + $0xdec] ss:$24 sps:$4 sm:$0xff]  }
 0x4d2   : > { %v17831_v43 = vpop.eup %17830  ;;  %v7082_v36 = vadd.f32 1.0, %v17829_v28  ;;  %11592 = vmatprep.mubr.bf16.mxu0 %v21624_v21  ;;  %v17138_v28 = vld [vmem:[%s18387_s7 + $0x2b0] ss:$24 sps:$4 sm:$0xff]  }
 0x4d3   : > { %12080 = vmatpush1.bf16.msra.mxu1 %v17123_v3  ;;  %v17833_v47 = vpop.eup %17832  ;;  %v7093_v46 = vadd.f32 1.0, %v17831_v43  ;;  %11593 = vmatmul.mubr.bf16.gmra.mrb[88].mxu0 %v21621_v61  ;;  %v7273_v30 = vmul.f32 %v7081_v15, %v6505_v26  ;;  %v17141_v15 = vld [vmem:[%s18387_s7 + $0xde8] ss:$24 sps:$4 sm:$0xff]   ;;  %v22337_v43 = vld [vmem:[#allocation16_spill] sm:$0xff]  ;;  %v17155_v26 = vld [vmem:[%s18387_s7 + $0xe4c] ss:$24 sps:$4 sm:$0xff]  }
 0x4d4   : > { %12081 = vmatprep.subr.bf16.mxu1 %v17131_v0  ;;  %v7094_v48 = vadd.f32 1.0, %v17833_v47  ;;  %12316 = vmatpush1.bf16.msra.mxu0 %v17126_v51  ;;  %v7274_v25 = vmul.f32 %v7082_v36, %v6506_v45  ;;  %v17146_v51 = vld [vmem:[%s18387_s7 + $0x2e4] ss:$24 sps:$4 sm:$0xff]   ;;  %v17144_v36 = vld [vmem:[%s18387_s7 + $0x2e0] ss:$24 sps:$4 sm:$0xff]   ;;  %v22338_v45 = vld [vmem:[#allocation15_spill] sm:$0xff] }
 0x4d5   : > { %v7285_v38 = vmul.f32 %v7093_v46, %v6517_v24  ;;  %12317 = vmatprep.subr.bf16.mxu0 %v17134_v29  ;;  %v17149_v29 = vld [vmem:[%s18387_s7 + $0xe1c] ss:$24 sps:$4 sm:$0xff]   ;;  %v17147_v47 = vld [vmem:[%s18387_s7 + $0xe18] ss:$24 sps:$4 sm:$0xff]  }
 0x4d6   : > { %12025 = vmatmul.mubr.bf16.gmra.mrb[144].mxu1 %v22336_v32  ;;  %v7286_v3 = vmul.f32 %v7094_v48, %v6518_v34  ;;  %v17150_v24 = vld [vmem:[%s18387_s7 + $0x310] ss:$24 sps:$4 sm:$0xff]   ;;  %v17158_v46 = vld [vmem:[%s18387_s7 + $0x344] ss:$24 sps:$4 sm:$0xff]  }
 0x4d7   : > { %12034 = vmatprep.mubr.bf16.mxu1 %v21175_v13  ;;  %12082 = vmatpush1.bf16.msra.mxu1 %v17129_v9  ;;  %v21641_v59 = vpack.c.bf16 %v7285_v38, %v7273_v30  ;;  %v17152_v9 = vld [vmem:[%s18387_s7 + $0x314] ss:$24 sps:$4 sm:$0xff]   ;;  %v22339_v48 = vld [vmem:[#allocation18_spill] sm:$0xff]  ;;  %v17159_v38 = vld [vmem:[%s18387_s7 + $0xe78] ss:$24 sps:$4 sm:$0xff]  }
 0x4d8   : > { %12083 = vmatprep.subr.bf16.mxu1 %v17137_v22  ;;  %12318 = vmatpush1.bf16.msra.mxu0 %v17132_v55  ;;  %v21644_v0 = vpack.c.bf16 %v7286_v3, %v7274_v25  ;;  %v17153_v22 = vld [vmem:[%s18387_s7 + $0xe48] ss:$24 sps:$4 sm:$0xff]   ;;  %v17161_v34 = vld [vmem:[%s18387_s7 + $0xe7c] ss:$24 sps:$4 sm:$0xff]  }
 0x4d9   : > { %12319 = vmatprep.subr.bf16.mxu0 %v17140_v5  ;;  %v17156_v55 = vld [vmem:[%s18387_s7 + $0x340] ss:$24 sps:$4 sm:$0xff]   ;;  %v17164_v30 = vld [vmem:[%s18387_s7 + $0x374] ss:$24 sps:$4 sm:$0xff]   ;;  %v17162_v25 = vld [vmem:[%s18387_s7 + $0x370] ss:$24 sps:$4 sm:$0xff]  }
 0x4da   : > { %11602 = vmatprep.mubr.bf16.mxu0 %v21644_v0  ;;  %v17167_v5 = vld [vmem:[%s18387_s7 + $0xeac] ss:$24 sps:$4 sm:$0xff]  }
 0x4db   : > { %12084 = vmatpush1.bf16.msra.mxu1 %v17135_v20  ;;  %11603 = vmatmul.mubr.bf16.gmra.mrb[92].mxu0 %v21641_v59  ;;  %v17170_v3 = vld [vmem:[%s18387_s7 + $0x3a4] ss:$24 sps:$4 sm:$0xff]   ;;  %v17165_v20 = vld [vmem:[%s18387_s7 + $0xea8] ss:$24 sps:$4 sm:$0xff]  }
 0x4dc   : > { %12085 = vmatprep.subr.bf16.mxu1 %v17143_v19  ;;  %12320 = vmatpush1.bf16.msra.mxu0 %v17138_v28  ;;  %v22340_v19 = vld [vmem:[#allocation17_spill] sm:$0xff] }
 0x4dd   : > { %12323 = vmatprep.mubr.bf16.mxu0 %v22337_v43  ;;  %12321 = vmatprep.subr.bf16.mxu0 %v17146_v51  ;;  %v17173_v28 = vld [vmem:[%s18387_s7 + $0xedc] ss:$24 sps:$4 sm:$0xff]   ;;  %v22341_v51 = vld [vmem:[#allocation22_spill] sm:$0xff]  ;;  %v17171_v43 = vld [vmem:[%s18387_s7 + $0xed8] ss:$24 sps:$4 sm:$0xff]  }
 0x4de   : > { %12035 = vmatmul.mubr.bf16.gmra.mrb[148].mxu1 %v21172_v39 }
 0x4df   : > { %12044 = vmatprep.mubr.bf16.mxu1 %v21195_v4  ;;  %12086 = vmatpush1.bf16.msra.mxu1 %v17141_v15  ;;  %v17168_v15 = vld [vmem:[%s18387_s7 + $0x3a0] ss:$24 sps:$4 sm:$0xff]  }
 0x4e0   : > { %12087 = vmatprep.subr.bf16.mxu1 %v17149_v29  ;;  %12322 = vmatpush1.bf16.msra.mxu0 %v17144_v36  ;;  %v17176_v29 = vld [vmem:[%s18387_s7 + $0x3d4] ss:$24 sps:$4 sm:$0xff]  }
 0x4e1   : > { %12404 = vmatprep.subr.bf16.mxu0 %v17152_v9  ;;  %v17179_v36 = vld [vmem:[%s18387_s7 + $0xf0c] ss:$24 sps:$4 sm:$0xff]   ;;  %v17174_v9 = vld [vmem:[%s18387_s7 + $0x3d0] ss:$24 sps:$4 sm:$0xff]  }
 0x4e3   : > { %12088 = vmatpush1.bf16.msra.mxu1 %v17147_v47  ;;  %12324 = vmatmul.mubr.bf16.vlgmr.msra.gmra.mrb[96].mxu0 %v22338_v45  ;;  %v17182_v47 = vld [vmem:[%s18387_s7 + $0x404] ss:$24 sps:$4 sm:$0xff]   ;;  %v17183_v45 = vld [vmem:[%s18387_s7 + $0xf38] ss:$24 sps:$4 sm:$0xff]  }
 0x4e4   : > { %12089 = vmatprep.subr.bf16.mxu1 %v17155_v26  ;;  %12333 = vmatprep.mubr.bf16.mxu0 %v22339_v48  ;;  %v17177_v26 = vld [vmem:[%s18387_s7 + $0xf08] ss:$24 sps:$4 sm:$0xff]  }
 0x4e5   : > { %12405 = vmatpush1.bf16.msra.mxu0 %v17150_v24  ;;  %v17185_v24 = vld [vmem:[%s18387_s7 + $0xf3c] ss:$24 sps:$4 sm:$0xff]   ;;  %v17189_v48 = vld [vmem:[%s18387_s7 + $0xf68] ss:$24 sps:$4 sm:$0xff]  }
 0x4e6   : > { %12045 = vmatmul.mubr.bf16.gmra.mrb[152].mxu1 %v21192_v31  ;;  %12406 = vmatprep.subr.bf16.mxu0 %v17158_v46  ;;  %v17180_v46 = vld [vmem:[%s18387_s7 + $0x400] ss:$24 sps:$4 sm:$0xff]  }
 0x4e7   : > { %12054 = vmatprep.mubr.bf16.mxu1 %v21215_v8  ;;  %12090 = vmatpush1.bf16.msra.mxu1 %v17153_v22  ;;  %v17188_v22 = vld [vmem:[%s18387_s7 + $0x434] ss:$24 sps:$4 sm:$0xff]  }
 0x4e8   : > { %12091 = vmatprep.subr.bf16.mxu1 %v17161_v34  ;;  %v17186_v34 = vld [vmem:[%s18387_s7 + $0x430] ss:$24 sps:$4 sm:$0xff]  }
 0x4e9   : > { %12407 = vmatpush1.bf16.msra.mxu0 %v17156_v55  ;;  %v17197_v55 = vld [vmem:[%s18387_s7 + $0xf9c] ss:$24 sps:$4 sm:$0xff]  }
 0x4ea   : > { %12408 = vmatprep.subr.bf16.mxu0 %v17164_v30  ;;  %v17192_v30 = vld [vmem:[%s18387_s7 + $0x460] ss:$24 sps:$4 sm:$0xff]  }
 0x4eb   : > { %12092 = vmatpush1.bf16.msra.mxu1 %v17159_v38  ;;  %12334 = vmatmul.mubr.bf16.gmra.mrb[100].mxu0 %v22340_v19  ;;  %v17200_v38 = vld [vmem:[%s18387_s7 + $0x494] ss:$24 sps:$4 sm:$0xff]   ;;  %v17204_v19 = vld [vmem:[%s18387_s7 + $0x4c0] ss:$24 sps:$4 sm:$0xff]  }
 0x4ec   : > { %12093 = vmatprep.subr.bf16.mxu1 %v17167_v5  ;;  %12343 = vmatprep.mubr.bf16.mxu0 %v22341_v51  ;;  %v17195_v5 = vld [vmem:[%s18387_s7 + $0xf98] ss:$24 sps:$4 sm:$0xff]  }
 0x4ed   : > { %12409 = vmatpush1.bf16.msra.mxu0 %v17162_v25  ;;  %v17198_v25 = vld [vmem:[%s18387_s7 + $0x490] ss:$24 sps:$4 sm:$0xff]  }
 0x4ee   : > { %12055 = vmatmul.mubr.bf16.gmra.mrb[156].mxu1 %v21212_v6  ;;  %12410 = vmatprep.subr.bf16.mxu0 %v17170_v3  ;;  %v17201_v3 = vld [vmem:[%s18387_s7 + $0xfc8] ss:$24 sps:$4 sm:$0xff]   ;;  %v17207_v51 = vld [vmem:[%s18387_s7 + $0xff8] ss:$24 sps:$4 sm:$0xff]  }
 0x4ef   : > { %12094 = vmatpush1.bf16.msra.mxu1 %v17165_v20  ;;  %12097 = vmatprep.mubr.bf16.mxu1 %v20700_v1  ;;  %v17209_v20 = vld [vmem:[%s18387_s7 + $0xffc] ss:$24 sps:$4 sm:$0xff]  }
 0x4f0   : > { %12095 = vmatprep.subr.bf16.mxu1 %v17173_v28  ;;  %v17212_v28 = vld [vmem:[%s18387_s7 + $0x4f4] ss:$24 sps:$4 sm:$0xff]  }
 0x4f1   : > { %12411 = vmatpush1.bf16.msra.mxu0 %v17168_v15  ;;  %v17210_v15 = vld [vmem:[%s18387_s7 + $0x4f0] ss:$24 sps:$4 sm:$0xff]  }
 0x4f2   : > { %12412 = vmatprep.subr.bf16.mxu0 %v17176_v29  ;;  %v17213_v29 = vld [vmem:[%s18387_s7 + $0x1028] ss:$24 sps:$4 sm:$0xff]  }
 0x4f3   : > { %12096 = vmatpush1.bf16.msra.mxu1 %v17171_v43  ;;  %12344 = vmatmul.mubr.bf16.gmra.mrb[104].mxu0 %v22287_v49  ;;  %v17191_v49 = vld [vmem:[%s18387_s7 + $0xf6c] ss:$24 sps:$4 sm:$0xff]   ;;  %v17221_v43 = vld [vmem:[%s18387_s7 + $0x105c] ss:$24 sps:$4 sm:$0xff]  }
 0x4f4   : > { %12178 = vmatprep.subr.bf16.mxu1 %v17179_v36  ;;  %12353 = vmatprep.mubr.bf16.mxu0 %v22288_v62  ;;  %v17194_v62 = vld [vmem:[%s18387_s7 + $0x464] ss:$24 sps:$4 sm:$0xff]   ;;  %v17216_v36 = vld [vmem:[%s18387_s7 + $0x520] ss:$24 sps:$4 sm:$0xff]  }
 0x4f5   : > { %12413 = vmatpush1.bf16.msra.mxu0 %v17174_v9  ;;  %v17224_v9 = vld [vmem:[%s18387_s7 + $0x554] ss:$24 sps:$4 sm:$0xff]  }
 0x4f6   : > { %12098 = vmatmul.mubr.bf16.vlgmr.msra.gmra.mrb[128].mxu1 %v22295_v2  ;;  %12414 = vmatprep.subr.bf16.mxu0 %v17182_v47  ;;  %v17219_v47 = vld [vmem:[%s18387_s7 + $0x1058] ss:$24 sps:$4 sm:$0xff]  }
 0x4f7   : > { %12107 = vmatprep.mubr.bf16.mxu1 %v20707_v27  ;;  %12179 = vmatpush1.bf16.msra.mxu1 %v17177_v26  ;;  %v17222_v26 = vld [vmem:[%s18387_s7 + $0x550] ss:$24 sps:$4 sm:$0xff]  }
 0x4f8   : > { %12180 = vmatprep.subr.bf16.mxu1 %v17185_v24  ;;  %v17225_v24 = vld [vmem:[%s18387_s7 + $0x1088] ss:$24 sps:$4 sm:$0xff]  }
 0x4f9   : > { %12415 = vmatpush1.bf16.msra.mxu0 %v17180_v46  ;;  %v17233_v46 = vld [vmem:[%s18387_s7 + $0x10bc] ss:$24 sps:$4 sm:$0xff]  }
 0x4fa   : > { %12416 = vmatprep.subr.bf16.mxu0 %v17188_v22  ;;  %v17228_v22 = vld [vmem:[%s18387_s7 + $0x580] ss:$24 sps:$4 sm:$0xff]  }
 0x4fb   : > { %12181 = vmatpush1.bf16.msra.mxu1 %v17183_v45  ;;  %12354 = vmatmul.mubr.bf16.gmra.mrb[108].mxu0 %v22289_v14  ;;  %v17203_v14 = vld [vmem:[%s18387_s7 + $0xfcc] ss:$24 sps:$4 sm:$0xff]  }
 0x4fc   : > { %12182 = vmatprep.subr.bf16.mxu1 %v17191_v49  ;;  %12363 = vmatprep.mubr.bf16.mxu0 %v22290_v7  ;;  %v17206_v7 = vld [vmem:[%s18387_s7 + $0x4c4] ss:$24 sps:$4 sm:$0xff]   ;;  %v17236_v45 = vld [vmem:[%s18387_s7 + $0x5b4] ss:$24 sps:$4 sm:$0xff]   ;;  %v17231_v49 = vld [vmem:[%s18387_s7 + $0x10b8] ss:$24 sps:$4 sm:$0xff]  }
 0x4fd   : > { %12417 = vmatpush1.bf16.msra.mxu0 %v17186_v34  ;;  %v17234_v34 = vld [vmem:[%s18387_s7 + $0x5b0] ss:$24 sps:$4 sm:$0xff]  }
 0x4fe   : > { %12108 = vmatmul.mubr.bf16.gmra.mrb[132].mxu1 %v20711_v41  ;;  %12418 = vmatprep.subr.bf16.mxu0 %v17194_v62  ;;  %v17237_v62 = vld [vmem:[%s18387_s7 + $0x10e8] ss:$24 sps:$4 sm:$0xff]  }
 0x4ff   : > { %12117 = vmatprep.mubr.bf16.mxu1 %v20722_v60  ;;  %12183 = vmatpush1.bf16.msra.mxu1 %v17189_v48  ;;  %v17245_v48 = vld [vmem:[%s18387_s7 + $0x111c] ss:$24 sps:$4 sm:$0xff]  }
 0x500   : > { %12184 = vmatprep.subr.bf16.mxu1 %v17197_v55  ;;  %v17240_v55 = vld [vmem:[%s18387_s7 + $0x5e0] ss:$24 sps:$4 sm:$0xff]  }
 0x501   : > { %12419 = vmatpush1.bf16.msra.mxu0 %v17192_v30  ;;  %v22342_v30 = vld [vmem:[#allocation62_spill] sm:$0xff] }
 0x502   : > { %12420 = vmatprep.subr.bf16.mxu0 %v17200_v38  ;;  %v17248_v38 = vld [vmem:[%s18387_s7 + $0x614] ss:$24 sps:$4 sm:$0xff]  }
 0x503   : > { %12185 = vmatpush1.bf16.msra.mxu1 %v17195_v5  ;;  %12364 = vmatmul.mubr.bf16.gmra.mrb[112].mxu0 %v22291_v44  ;;  %v17215_v44 = vld [vmem:[%s18387_s7 + $0x102c] ss:$24 sps:$4 sm:$0xff]  }
 0x504   : > { %12186 = vmatprep.subr.bf16.mxu1 %v17203_v14  ;;  %12373 = vmatprep.mubr.bf16.mxu0 %v22292_v52  ;;  %v17218_v52 = vld [vmem:[%s18387_s7 + $0x524] ss:$24 sps:$4 sm:$0xff]   ;;  %v22343_v5 = vld [vmem:[#allocation55_spill] sm:$0xff]  ;;  %v17243_v14 = vld [vmem:[%s18387_s7 + $0x1118] ss:$24 sps:$4 sm:$0xff]  }
 0x505   : > { %12421 = vmatpush1.bf16.msra.mxu0 %v17198_v25  ;;  %v17246_v25 = vld [vmem:[%s18387_s7 + $0x610] ss:$24 sps:$4 sm:$0xff]  }
 0x506   : > { %12118 = vmatmul.mubr.bf16.gmra.mrb[136].mxu1 %v20726_v33  ;;  %12422 = vmatprep.subr.bf16.mxu0 %v17206_v7  ;;  %v17254_v7 = vld [vmem:[%s18387_s7 + $0x644] ss:$24 sps:$4 sm:$0xff]  }
 0x507   : > { %12127 = vmatprep.mubr.bf16.mxu1 %v20735_v11  ;;  %12187 = vmatpush1.bf16.msra.mxu1 %v17201_v3  ;;  %v22344_v3 = vld [vmem:[#allocation47_spill] sm:$0xff] }
 0x508   : > { %12188 = vmatprep.subr.bf16.mxu1 %v17209_v20  ;;  %v17257_v20 = vld [vmem:[%s18387_s7 + $0x117c] ss:$24 sps:$4 sm:$0xff]  }
 0x509   : > { %12423 = vmatpush1.bf16.msra.mxu0 %v17204_v19  ;;  %v22345_v19 = vld [vmem:[#allocation50_spill] sm:$0xff] }
 0x50a   : > { %12424 = vmatprep.subr.bf16.mxu0 %v17212_v28  ;;  %v17252_v28 = vld [vmem:[%s18387_s7 + $0x640] ss:$24 sps:$4 sm:$0xff]  }
 0x50b   : > { %12189 = vmatpush1.bf16.msra.mxu1 %v17207_v51  ;;  %12374 = vmatmul.mubr.bf16.gmra.mrb[116].mxu0 %v22293_v12  ;;  %v17227_v12 = vld [vmem:[%s18387_s7 + $0x108c] ss:$24 sps:$4 sm:$0xff]   ;;  %v22346_v51 = vld [vmem:[#allocation52_spill] sm:$0xff] }
 0x50c   : > { %12190 = vmatprep.subr.bf16.mxu1 %v17215_v44  ;;  %12383 = vmatprep.mubr.bf16.mxu0 %v22294_v40  ;;  %v17230_v40 = vld [vmem:[%s18387_s7 + $0x584] ss:$24 sps:$4 sm:$0xff]   ;;  %v17260_v44 = vld [vmem:[%s18387_s7 + $0x674] ss:$24 sps:$4 sm:$0xff]  }
 0x50d   : > { %12425 = vmatpush1.bf16.msra.mxu0 %v17210_v15  ;;  %v22347_v15 = vld [vmem:[#allocation58_spill] sm:$0xff] }
 0x50e   : > { %12128 = vmatmul.mubr.bf16.gmra.mrb[140].mxu1 %v20738_v35  ;;  %12426 = vmatprep.subr.bf16.mxu0 %v17218_v52  ;;  %v17255_v52 = vld [vmem:[%s18387_s7 + $0x1178] ss:$24 sps:$4 sm:$0xff]  }
 0x50f   : > { %12137 = vmatprep.mubr.bf16.mxu1 %v20740_v63  ;;  %12191 = vmatpush1.bf16.msra.mxu1 %v17213_v29  ;;  %v17263_v29 = vld [vmem:[%s18387_s7 + $0x11ac] ss:$24 sps:$4 sm:$0xff]  }
 0x510   : > { %12192 = vmatprep.subr.bf16.mxu1 %v17221_v43  ;;  %v17258_v43 = vld [vmem:[%s18387_s7 + $0x670] ss:$24 sps:$4 sm:$0xff]  }
 0x511   : > { %12427 = vmatpush1.bf16.msra.mxu0 %v17216_v36  ;;  %v17266_v36 = vld [vmem:[%s18387_s7 + $0x6a4] ss:$24 sps:$4 sm:$0xff]  }
 0x512   : > { %12428 = vmatprep.subr.bf16.mxu0 %v17224_v9  ;;  %v17261_v9 = vld [vmem:[%s18387_s7 + $0x11a8] ss:$24 sps:$4 sm:$0xff]  }
 0x513   : > { %12193 = vmatpush1.bf16.msra.mxu1 %v17219_v47  ;;  %12384 = vmatmul.mubr.bf16.gmra.mrb[120].mxu0 %v22296_v10  ;;  %v17239_v10 = vld [vmem:[%s18387_s7 + $0x10ec] ss:$24 sps:$4 sm:$0xff]   ;;  %v22348_v47 = vld [vmem:[#allocation49_spill] sm:$0xff] }
 0x514   : > { %12194 = vmatprep.subr.bf16.mxu1 %v17227_v12  ;;  %12393 = vmatprep.mubr.bf16.mxu0 %v22297_v16  ;;  %v17242_v16 = vld [vmem:[%s18387_s7 + $0x5e4] ss:$24 sps:$4 sm:$0xff]  }
 0x515   : > { %12429 = vmatpush1.bf16.msra.mxu0 %v17222_v26  ;;  %v17269_v12 = vld [vmem:[%s18387_s7 + $0x11dc] ss:$24 sps:$4 sm:$0xff]   ;;  %v22349_v26 = vld [vmem:[#allocation54_spill] sm:$0xff] }
 0x516   : > { %12138 = vmatmul.mubr.bf16.gmra.mrb[144].mxu1 %v20742_v18  ;;  %12430 = vmatprep.subr.bf16.mxu0 %v17230_v40  ;;  %v17264_v40 = vld [vmem:[%s18387_s7 + $0x6a0] ss:$24 sps:$4 sm:$0xff]  }
 0x517   : > { %12147 = vmatprep.mubr.bf16.mxu1 %v20744_v57  ;;  %12195 = vmatpush1.bf16.msra.mxu1 %v17225_v24  ;;  %v22350_v24 = vld [vmem:[#allocation61_spill] sm:$0xff] }
 0x518   : > { %12196 = vmatprep.subr.bf16.mxu1 %v17233_v46  ;;  %v17272_v46 = vld [vmem:[%s18387_s7 + $0x6d4] ss:$24 sps:$4 sm:$0xff]  }
 0x519   : > { %12431 = vmatpush1.bf16.msra.mxu0 %v17228_v22  ;;  %v22351_v22 = vld [vmem:[#allocation26_spill] sm:$0xff] }
 0x51a   : > { %12432 = vmatprep.subr.bf16.mxu0 %v17236_v45  ;;  %v17267_v45 = vld [vmem:[%s18387_s7 + $0x11d8] ss:$24 sps:$4 sm:$0xff]  }
 0x51b   : > { %12197 = vmatpush1.bf16.msra.mxu1 %v17231_v49  ;;  %12394 = vmatmul.mubr.bf16.gmra.mrb[124].mxu0 %v22298_v54  ;;  %v17251_v54 = vld [vmem:[%s18387_s7 + $0x114c] ss:$24 sps:$4 sm:$0xff]   ;;  %v17270_v49 = vld [vmem:[%s18387_s7 + $0x6d0] ss:$24 sps:$4 sm:$0xff]  }
 0x51c   : > { %12198 = vmatprep.subr.bf16.mxu1 %v17239_v10  ;;  %12436 = vmatprep.mubr.bf16.mxu0 %v22299_v37  ;;  %v17249_v37 = vld [vmem:[%s18387_s7 + $0x1148] ss:$24 sps:$4 sm:$0xff]   ;;  %v17275_v10 = vld [vmem:[%s18387_s7 + $0x704] ss:$24 sps:$4 sm:$0xff]  }
 0x51d   : > { %12433 = vmatpush1.bf16.msra.mxu0 %v17234_v34  ;;  %v22352_v34 = vld [vmem:[#allocation53_spill] sm:$0xff] }
 0x51e   : > { %12148 = vmatmul.mubr.bf16.gmra.mrb[148].mxu1 %v22342_v30  ;;  %12434 = vmatprep.subr.bf16.mxu0 %v17242_v16  ;;  %v22353_v16 = vld [vmem:[#allocation57_spill] sm:$0xff] }
 0x51f   : > { %12157 = vmatprep.mubr.bf16.mxu1 %v22343_v5  ;;  %12199 = vmatpush1.bf16.msra.mxu1 %v17237_v62  ;;  %v17273_v62 = vld [vmem:[%s18387_s7 + $0x700] ss:$24 sps:$4 sm:$0xff]  }
 0x520   : > { %12200 = vmatprep.subr.bf16.mxu1 %v17245_v48  ;;  %v22354_v48 = vld [vmem:[#allocation21_spill] sm:$0xff] }
 0x521   : > { %12435 = vmatpush1.bf16.msra.mxu0 %v17240_v55  ;;  %v17278_v55 = vld [vmem:[%s18387_s7 + $0x734] ss:$24 sps:$4 sm:$0xff]  }
 0x522   : > { %12517 = vmatprep.subr.bf16.mxu0 %v17248_v38  ;;  %v22355_v38 = vld [vmem:[#allocation29_spill] sm:$0xff] }
 0x523   : > { %12201 = vmatpush1.bf16.msra.mxu1 %v17243_v14  ;;  %v17276_v14 = vld [vmem:[%s18387_s7 + $0x730] ss:$24 sps:$4 sm:$0xff]  }
 0x524   : > { %12437 = vmatmul.mubr.bf16.vlgmr.msra.gmra.mrb[96].mxu0 %v22344_v3  ;;  %12202 = vmatprep.subr.bf16.mxu1 %v17251_v54  ;;  %v17281_v54 = vld [vmem:[%s18387_s7 + $0x764] ss:$24 sps:$4 sm:$0xff]  }
 0x525   : > { %12446 = vmatprep.mubr.bf16.mxu0 %v22345_v19  ;;  %12518 = vmatpush1.bf16.msra.mxu0 %v17246_v25  ;;  %v22356_v25 = vld [vmem:[#allocation56_spill] sm:$0xff]  ;;  %v22358_v3 = vld [vmem:[#allocation25_spill] sm:$0xff] }
 0x526   : > { %12158 = vmatmul.mubr.bf16.gmra.mrb[152].mxu1 %v22346_v51  ;;  %12519 = vmatprep.subr.bf16.mxu0 %v17254_v7  ;;  %v22357_v7 = vld [vmem:[#allocation60_spill] sm:$0xff] }
 0x527   : > { %12167 = vmatprep.mubr.bf16.mxu1 %v22347_v15  ;;  %12203 = vmatpush1.bf16.msra.mxu1 %v17249_v37  ;;  %v17279_v37 = vld [vmem:[%s18387_s7 + $0x760] ss:$24 sps:$4 sm:$0xff]   ;;  %v22359_v19 = vld [vmem:[#allocation32_spill] sm:$0xff] }
 0x528   : > { %12204 = vmatprep.subr.bf16.mxu1 %v17257_v20  ;;  %v17284_v20 = vld [vmem:[%s18387_s7 + $0x794] ss:$24 sps:$4 sm:$0xff]  }
 0x529   : > { %12520 = vmatpush1.bf16.msra.mxu0 %v17252_v28  ;;  %v17282_v28 = vld [vmem:[%s18387_s7 + $0x790] ss:$24 sps:$4 sm:$0xff]  }
 0x52a   : > { %12521 = vmatprep.subr.bf16.mxu0 %v17260_v44  ;;  %v17287_v44 = vld [vmem:[%s18387_s7 + $0x7c4] ss:$24 sps:$4 sm:$0xff]  }
 0x52b   : > { %12205 = vmatpush1.bf16.msra.mxu1 %v17255_v52  ;;  %v22360_v52 = vld [vmem:[#allocation59_spill] sm:$0xff] }
 0x52c   : > { %12447 = vmatmul.mubr.bf16.gmra.mrb[100].mxu0 %v22348_v47  ;;  %12206 = vmatprep.subr.bf16.mxu1 %v17263_v29  ;;  %v22361_v29 = vld [vmem:[#allocation64_spill] sm:$0xff]  ;;  %v22363_v47 = vld [vmem:[#allocation34_spill] sm:$0xff] }
 0x52d   : > { %12456 = vmatprep.mubr.bf16.mxu0 %v22349_v26  ;;  %12522 = vmatpush1.bf16.msra.mxu0 %v17258_v43  ;;  %v17285_v43 = vld [vmem:[%s18387_s7 + $0x7c0] ss:$24 sps:$4 sm:$0xff]   ;;  %v17293_v26 = vld [vmem:[%s18387_s7 + $0x824] ss:$24 sps:$4 sm:$0xff]  }
 0x52e   : > { %12168 = vmatmul.mubr.bf16.gmra.mrb[156].mxu1 %v22350_v24  ;;  %12523 = vmatprep.subr.bf16.mxu0 %v17266_v36  ;;  %v22362_v36 = vld [vmem:[#allocation28_spill] sm:$0xff] }
 0x52f   : > { %12207 = vmatpush1.bf16.msra.mxu1 %v17261_v9  ;;  %12210 = vmatprep.mubr.bf16.mxu1 %v22351_v22  ;;  %v17290_v9 = vld [vmem:[%s18387_s7 + $0x7f4] ss:$24 sps:$4 sm:$0xff]  }
 0x530   : > { %12208 = vmatprep.subr.bf16.mxu1 %v17269_v12  ;;  %v17288_v12 = vld [vmem:[%s18387_s7 + $0x7f0] ss:$24 sps:$4 sm:$0xff]  }
 0x531   : > { %12524 = vmatpush1.bf16.msra.mxu0 %v17264_v40  ;;  %v22364_v40 = vld [vmem:[#allocation63_spill] sm:$0xff] }
 0x532   : > { %12525 = vmatprep.subr.bf16.mxu0 %v17272_v46  ;;  %v22365_v46 = vld [vmem:[#allocation66_spill] sm:$0xff] }
 0x533   : > { %12209 = vmatpush1.bf16.msra.mxu1 %v17267_v45  ;;  %v17291_v45 = vld [vmem:[%s18387_s7 + $0x820] ss:$24 sps:$4 sm:$0xff]  }
 0x534   : > { %12457 = vmatmul.mubr.bf16.gmra.mrb[104].mxu0 %v22352_v34  ;;  %v17294_v34 = vld [vmem:[%s18387_s7 + $0x850] ss:$24 sps:$4 sm:$0xff]  }
 0x535   : > { %12466 = vmatprep.mubr.bf16.mxu0 %v22353_v16  ;;  %12526 = vmatpush1.bf16.msra.mxu0 %v17270_v49  ;;  %v22366_v49 = vld [vmem:[#allocation31_spill] sm:$0xff]  ;;  %v17299_v16 = vld [vmem:[%s18387_s7 + $0x884] ss:$24 sps:$4 sm:$0xff]  }
 0x536   : > { %12211 = vmatmul.mubr.bf16.vlgmr.msra.gmra.mrb[128].mxu1 %v22354_v48  ;;  %12527 = vmatprep.subr.bf16.mxu0 %v17275_v10  ;;  %v17296_v10 = vld [vmem:[%s18387_s7 + $0x854] ss:$24 sps:$4 sm:$0xff]  }
 0x537   : > { %12220 = vmatprep.mubr.bf16.mxu1 %v22355_v38 }
 0x539   : > { %12528 = vmatpush1.bf16.msra.mxu0 %v17273_v62  ;;  %v22367_v62 = vld [vmem:[#allocation65_spill] sm:$0xff] }
 0x53a   : > { %12529 = vmatprep.subr.bf16.mxu0 %v17278_v55  ;;  %v22368_v55 = vld [vmem:[#allocation68_spill] sm:$0xff] }
 0x53c   : > { %12467 = vmatmul.mubr.bf16.gmra.mrb[108].mxu0 %v22356_v25  ;;  %v17302_v25 = vld [vmem:[%s18387_s7 + $0x8b4] ss:$24 sps:$4 sm:$0xff]  }
 0x53d   : > { %12476 = vmatprep.mubr.bf16.mxu0 %v22357_v7  ;;  %12530 = vmatpush1.bf16.msra.mxu0 %v17276_v14  ;;  %v17297_v14 = vld [vmem:[%s18387_s7 + $0x880] ss:$24 sps:$4 sm:$0xff]   ;;  %v17300_v7 = vld [vmem:[%s18387_s7 + $0x8b0] ss:$24 sps:$4 sm:$0xff]  }
 0x53e   : > { %12221 = vmatmul.mubr.bf16.gmra.mrb[132].mxu1 %v22358_v3  ;;  %12531 = vmatprep.subr.bf16.mxu0 %v17281_v54  ;;  %v22369_v54 = vld [vmem:[#allocation51_spill] sm:$0xff] }
 0x53f   : > { %12230 = vmatprep.mubr.bf16.mxu1 %v22359_v19 }
 0x541   : > { %12532 = vmatpush1.bf16.msra.mxu0 %v17279_v37  ;;  %v17305_v37 = vld [vmem:[%s18387_s7 + $0x8e4] ss:$24 sps:$4 sm:$0xff]  }
 0x542   : > { %12533 = vmatprep.subr.bf16.mxu0 %v17284_v20  ;;  %v22370_v20 = vld [vmem:[#allocation67_spill] sm:$0xff] }
 0x544   : > { %12477 = vmatmul.mubr.bf16.gmra.mrb[112].mxu0 %v22360_v52  ;;  %v17308_v52 = vld [vmem:[%s18387_s7 + $0x914] ss:$24 sps:$4 sm:$0xff]  }
 0x545   : > { %12486 = vmatprep.mubr.bf16.mxu0 %v22361_v29  ;;  %12534 = vmatpush1.bf16.msra.mxu0 %v17282_v28  ;;  %v22371_v28 = vld [vmem:[#allocation30_spill] sm:$0xff]  ;;  %v17306_v29 = vld [vmem:[%s18387_s7 + $0x910] ss:$24 sps:$4 sm:$0xff]  }
 0x546   : > { %12231 = vmatmul.mubr.bf16.gmra.mrb[136].mxu1 %v22362_v36  ;;  %12535 = vmatprep.subr.bf16.mxu0 %v17287_v44  ;;  %v17303_v44 = vld [vmem:[%s18387_s7 + $0x8e0] ss:$24 sps:$4 sm:$0xff]  }
 0x547   : > { %12240 = vmatprep.mubr.bf16.mxu1 %v22363_v47 }
 0x549   : > { %12536 = vmatpush1.bf16.msra.mxu0 %v17285_v43  ;;  %v17311_v43 = vld [vmem:[%s18387_s7 + $0x944] ss:$24 sps:$4 sm:$0xff]  }
 0x54a   : > { %12537 = vmatprep.subr.bf16.mxu0 %v17290_v9  ;;  %v22372_v9 = vld [vmem:[#allocation19_spill] sm:$0xff] }
 0x54c   : > { %12487 = vmatmul.mubr.bf16.gmra.mrb[116].mxu0 %v22364_v40  ;;  %v17314_v40 = vld [vmem:[%s18387_s7 + $0x974] ss:$24 sps:$4 sm:$0xff]  }
 0x54d   : > { %12496 = vmatprep.mubr.bf16.mxu0 %v22365_v46  ;;  %12538 = vmatpush1.bf16.msra.mxu0 %v17288_v12  ;;  %v22373_v12 = vld [vmem:[#allocation20_spill] sm:$0xff] }
 0x54e   : > { %12241 = vmatmul.mubr.bf16.gmra.mrb[140].mxu1 %v22366_v49  ;;  %12539 = vmatprep.subr.bf16.mxu0 %v17293_v26  ;;  %v17309_v26 = vld [vmem:[%s18387_s7 + $0x940] ss:$24 sps:$4 sm:$0xff]   ;;  %v17312_v46 = vld [vmem:[%s18387_s7 + $0x970] ss:$24 sps:$4 sm:$0xff]  }
 0x54f   : > { %12250 = vmatprep.mubr.bf16.mxu1 %v21568_v56 }
 0x551   : > { %12540 = vmatpush1.bf16.msra.mxu0 %v17291_v45  ;;  %v17317_v45 = vld [vmem:[%s18387_s7 + $0x9a4] ss:$24 sps:$4 sm:$0xff]  }
 0x552   : > { %12541 = vmatprep.subr.bf16.mxu0 %v17296_v10  ;;  %v22374_v10 = vld [vmem:[#allocation23_spill] sm:$0xff] }
 0x554   : > { %12497 = vmatmul.mubr.bf16.gmra.mrb[120].mxu0 %v22367_v62  ;;  %v17320_v62 = vld [vmem:[%s18387_s7 + $0x9d4] ss:$24 sps:$4 sm:$0xff]  }
 0x555   : > { %12506 = vmatprep.mubr.bf16.mxu0 %v22368_v55  ;;  %12542 = vmatpush1.bf16.msra.mxu0 %v17294_v34  ;;  %v22375_v34 = vld [vmem:[#allocation27_spill] sm:$0xff] }
 0x556   : > { %12251 = vmatmul.mubr.bf16.gmra.mrb[144].mxu1 %v22369_v54  ;;  %12543 = vmatprep.subr.bf16.mxu0 %v17299_v16  ;;  %v17315_v16 = vld [vmem:[%s18387_s7 + $0x9a0] ss:$24 sps:$4 sm:$0xff]   ;;  %v17318_v55 = vld [vmem:[%s18387_s7 + $0x9d0] ss:$24 sps:$4 sm:$0xff]  }
 0x557   : > { %12260 = vmatprep.mubr.bf16.mxu1 %v21604_v17 }
 0x559   : > { %12544 = vmatpush1.bf16.msra.mxu0 %v17297_v14  ;;  %v17323_v14 = vld [vmem:[%s18387_s7 + $0xa04] ss:$24 sps:$4 sm:$0xff]  }
 0x55a   : > { %12545 = vmatprep.subr.bf16.mxu0 %v17302_v25  ;;  %v22376_v25 = vld [vmem:[#allocation24_spill] sm:$0xff] }
 0x55c   : > { %12507 = vmatmul.mubr.bf16.gmra.mrb[124].mxu0 %v22370_v20  ;;  %v7288_v20 = vld [vmem:[#allocation8 + $0x8] sm:$0xff] }
 0x55d   : > { %12546 = vmatpush1.bf16.msra.mxu0 %v17300_v7  ;;  %12549 = vmatprep.mubr.bf16.mxu0 %v22371_v28  ;;  %v7287_v7 = vld [vmem:[#allocation8] sm:$0xff] }
 0x55e   : > { %12261 = vmatmul.mubr.bf16.gmra.mrb[148].mxu1 %v21601_v42  ;;  %12547 = vmatprep.subr.bf16.mxu0 %v17305_v37  ;;  %v22377_v37 = vld [vmem:[#allocation37_spill] sm:$0xff] }
 0x55f   : > { %12270 = vmatprep.mubr.bf16.mxu1 %v21624_v21  ;;  %v17321_v28 = vld [vmem:[%s18387_s7 + $0xa00] ss:$24 sps:$4 sm:$0xff]  }
 0x561   : > { %12548 = vmatpush1.bf16.msra.mxu0 %v17303_v44 }
 0x562   : > { %12630 = vmatprep.subr.bf16.mxu0 %v17308_v52  ;;  %v7293_v52 = vld [vmem:[#allocation8 + $0x30] sm:$0xff] }
 0x564   : > { %12550 = vmatmul.mubr.bf16.vlgmr.msra.gmra.mrb[96].mxu0 %v22372_v9 }
 0x565   : > { %12559 = vmatprep.mubr.bf16.mxu0 %v22373_v12  ;;  %12631 = vmatpush1.bf16.msra.mxu0 %v17306_v29  ;;  %v17326_v29 = vld [vmem:[%s18387_s7 + $0xa34] ss:$24 sps:$4 sm:$0xff]   ;;  %v7294_v12 = vld [vmem:[#allocation8 + $0x38] sm:$0xff] }
 0x566   : > { %12271 = vmatmul.mubr.bf16.gmra.mrb[152].mxu1 %v21621_v61  ;;  %12632 = vmatprep.subr.bf16.mxu0 %v17311_v43 }
 0x567   : > { %12280 = vmatprep.mubr.bf16.mxu1 %v21644_v0 }
 0x569   : > { %12633 = vmatpush1.bf16.msra.mxu0 %v17309_v26 }
 0x56a   : > { %12634 = vmatprep.subr.bf16.mxu0 %v17314_v40 }
 0x56c   : > { %12560 = vmatmul.mubr.bf16.gmra.mrb[100].mxu0 %v22374_v10  ;;  %v17324_v10 = vld [vmem:[%s18387_s7 + $0xa30] ss:$24 sps:$4 sm:$0xff]  }
 0x56d   : > { %12569 = vmatprep.mubr.bf16.mxu0 %v22375_v34  ;;  %12635 = vmatpush1.bf16.msra.mxu0 %v17312_v46 }
 0x56e   : > { %12281 = vmatmul.mubr.bf16.gmra.mrb[156].mxu1 %v21641_v59  ;;  %12636 = vmatprep.subr.bf16.mxu0 %v17317_v45 }
 0x571   : > { %12637 = vmatpush1.bf16.msra.mxu0 %v17315_v16  ;;  %v17329_v16 = vld [vmem:[%s18387_s7 + $0xa64] ss:$24 sps:$4 sm:$0xff]  }
 0x572   : > { %12638 = vmatprep.subr.bf16.mxu0 %v17320_v62  ;;  %v22378_v62 = vld [vmem:[#allocation38_spill] sm:$0xff] }
 0x574   : > { %12570 = vmatmul.mubr.bf16.gmra.mrb[104].mxu0 %v22376_v25  ;;  %v7300_v25 = vld [vmem:[#allocation8 + $0x68] sm:$0xff] }
 0x575   : > { %12579 = vmatprep.mubr.bf16.mxu0 %v22377_v37  ;;  %12639 = vmatpush1.bf16.msra.mxu0 %v17318_v55  ;;  %v7299_v55 = vld [vmem:[#allocation8 + $0x60] sm:$0xff] }
 0x576   : > { %v11534_v44 = vpop.f32.mrb[64].mxu0  ;;  %12640 = vmatprep.subr.bf16.mxu0 %v17323_v14  ;;  %v22379_v14 = vld [vmem:[#allocation39_spill] sm:$0xff] }
 0x577   : > { %v12969_v43 = vadd.f32 %v11534_v44, %v7287_v7  ;;  %v11536_v9 = vpop.f32.mrb[65].mxu0  ;;  %v17327_v7 = vld [vmem:[%s18387_s7 + $0xa60] ss:$24 sps:$4 sm:$0xff]  }
 0x578   : > { %v12970_v26 = vadd.f32 %v11536_v9, %v7288_v20  ;;  %v11538_v40 = vpop.f32.mrb[66].mxu0  ;;  %v7305_v20 = vld [vmem:[#allocation8 + $0x90] sm:$0xff] }
 0x579   : > { %13065 = vst [vmem:[#allocation8] sm:$0xff] %v12969_v43  ;;  %v12975_v46 = vadd.f32 %v11538_v40, %v7293_v52  ;;  %12641 = vmatpush1.bf16.msra.mxu0 %v17321_v28  ;;  %v11540_v45 = vpop.f32.mrb[67].mxu0  ;;  %v17332_v28 = vld [vmem:[%s18387_s7 + $0xa94] ss:$24 sps:$4 sm:$0xff]   ;;  %v17330_v40 = vld [vmem:[%s18387_s7 + $0xa90] ss:$24 sps:$4 sm:$0xff]  }
 0x57a   : > { %13066 = vst [vmem:[#allocation8 + $0x8] sm:$0xff] %v12970_v26  ;;  %v12976_v34 = vadd.f32 %v11540_v45, %v7294_v12  ;;  %12642 = vmatprep.subr.bf16.mxu0 %v17326_v29  ;;  %v7306_v29 = vld [vmem:[#allocation8 + $0x98] sm:$0xff] }
 0x57b   : > { %13071 = vst [vmem:[#allocation8 + $0x30] sm:$0xff] %v12975_v46  ;;  %v17335_v45 = vld [vmem:[%s18387_s7 + $0xac4] ss:$24 sps:$4 sm:$0xff]  }
 0x57c   : > { %13072 = vst [vmem:[#allocation8 + $0x38] sm:$0xff] %v12976_v34  ;;  %12580 = vmatmul.mubr.bf16.gmra.mrb[108].mxu0 %v22378_v62  ;;  %v22381_v34 = vld [vmem:[#allocation41_spill] sm:$0xff] }
 0x57d   : > { %12589 = vmatprep.mubr.bf16.mxu0 %v22379_v14  ;;  %12643 = vmatpush1.bf16.msra.mxu0 %v17324_v10  ;;  %v22380_v10 = vld [vmem:[#allocation40_spill] sm:$0xff]  ;;  %v17333_v62 = vld [vmem:[%s18387_s7 + $0xac0] ss:$24 sps:$4 sm:$0xff]  }
 0x57e   : > { %v11544_v37 = vpop.f32.mrb[68].mxu0  ;;  %12644 = vmatprep.subr.bf16.mxu0 %v17329_v16  ;;  %v7311_v16 = vld [vmem:[#allocation8 + $0xc0] sm:$0xff]  ;;  %v17338_v14 = vld [vmem:[%s18387_s7 + $0xaf4] ss:$24 sps:$4 sm:$0xff]  }
 0x57f   : > { %v12981_v44 = vadd.f32 %v11544_v37, %v7299_v55  ;;  %v11546_v52 = vpop.f32.mrb[69].mxu0  ;;  %v7312_v55 = vld [vmem:[#allocation8 + $0xc8] sm:$0xff] }
 0x580   : > { %v12982_v43 = vadd.f32 %v11546_v52, %v7300_v25  ;;  %v11548_v9 = vpop.f32.mrb[70].mxu0 }
 0x581   : > { %13077 = vst [vmem:[#allocation8 + $0x60] sm:$0xff] %v12981_v44  ;;  %v12987_v12 = vadd.f32 %v11548_v9, %v7305_v20  ;;  %12645 = vmatpush1.bf16.msra.mxu0 %v17327_v7  ;;  %v11550_v26 = vpop.f32.mrb[71].mxu0  ;;  %v7317_v7 = vld [vmem:[#allocation8 + $0xf0] sm:$0xff] }
 0x582   : > { %13078 = vst [vmem:[#allocation8 + $0x68] sm:$0xff] %v12982_v43  ;;  %v12988_v46 = vadd.f32 %v11550_v26, %v7306_v29  ;;  %12646 = vmatprep.subr.bf16.mxu0 %v17332_v28  ;;  %v7318_v28 = vld [vmem:[#allocation8 + $0xf8] sm:$0xff]  ;;  %v17336_v29 = vld [vmem:[%s18387_s7 + $0xaf0] ss:$24 sps:$4 sm:$0xff]  }
 0x583   : > { %13083 = vst [vmem:[#allocation8 + $0x90] sm:$0xff] %v12987_v12  ;;  %v17341_v12 = vld [vmem:[%s18387_s7 + $0xb24] ss:$24 sps:$4 sm:$0xff]  }
 0x584   : > { %13084 = vst [vmem:[#allocation8 + $0x98] sm:$0xff] %v12988_v46  ;;  %12590 = vmatmul.mubr.bf16.gmra.mrb[112].mxu0 %v22380_v10  ;;  %v22383_v46 = vld [vmem:[#allocation44_spill] sm:$0xff]  ;;  %v17339_v10 = vld [vmem:[%s18387_s7 + $0xb20] ss:$24 sps:$4 sm:$0xff]  }
 0x585   : > { %12599 = vmatprep.mubr.bf16.mxu0 %v22381_v34  ;;  %12647 = vmatpush1.bf16.msra.mxu0 %v17330_v40  ;;  %v22382_v40 = vld [vmem:[#allocation42_spill] sm:$0xff]  ;;  %v7324_v34 = vld [vmem:[#allocation8 + $0x128] sm:$0xff] }
 0x586   : > { %12648 = vmatprep.subr.bf16.mxu0 %v17335_v45  ;;  %v11554_v25 = vpop.f32.mrb[72].mxu0  ;;  %v7323_v45 = vld [vmem:[#allocation8 + $0x120] sm:$0xff] }
 0x587   : > { %v12993_v37 = vadd.f32 %v11554_v25, %v7311_v16  ;;  %v11556_v20 = vpop.f32.mrb[73].mxu0  ;;  %v17344_v16 = vld [vmem:[%s18387_s7 + $0xb54] ss:$24 sps:$4 sm:$0xff]  }
 0x588   : > { %v12994_v44 = vadd.f32 %v11556_v20, %v7312_v55  ;;  %v11558_v52 = vpop.f32.mrb[74].mxu0  ;;  %v7329_v55 = vld [vmem:[#allocation8 + $0x150] sm:$0xff] }
 0x589   : > { %12649 = vmatpush1.bf16.msra.mxu0 %v17333_v62  ;;  %13089 = vst [vmem:[#allocation8 + $0xc0] sm:$0xff] %v12993_v37  ;;  %v12999_v43 = vadd.f32 %v11558_v52, %v7317_v7  ;;  %v11560_v9 = vpop.f32.mrb[75].mxu0  ;;  %v7330_v7 = vld [vmem:[#allocation8 + $0x158] sm:$0xff] }
 0x58a   : > { %12650 = vmatprep.subr.bf16.mxu0 %v17338_v14  ;;  %13090 = vst [vmem:[#allocation8 + $0xc8] sm:$0xff] %v12994_v44  ;;  %v13000_v26 = vadd.f32 %v11560_v9, %v7318_v28  ;;  %v17342_v28 = vld [vmem:[%s18387_s7 + $0xb50] ss:$24 sps:$4 sm:$0xff]  }
 0x58b   : > { %13095 = vst [vmem:[#allocation8 + $0xf0] sm:$0xff] %v12999_v43  ;;  %v22384_v9 = vld [vmem:[#allocation43_spill] sm:$0xff] }
 0x58c   : > { %12600 = vmatmul.mubr.bf16.gmra.mrb[116].mxu0 %v22382_v40  ;;  %13096 = vst [vmem:[#allocation8 + $0xf8] sm:$0xff] %v13000_v26  ;;  %v7335_v26 = vld [vmem:[#allocation8 + $0x180] sm:$0xff] }
 0x58d   : > { %12609 = vmatprep.mubr.bf16.mxu0 %v22383_v46  ;;  %12651 = vmatpush1.bf16.msra.mxu0 %v17336_v29  ;;  %v17347_v29 = vld [vmem:[%s18387_s7 + $0xb84] ss:$24 sps:$4 sm:$0xff]   ;;  %v17345_v40 = vld [vmem:[%s18387_s7 + $0xb80] ss:$24 sps:$4 sm:$0xff]   ;;  %v7336_v46 = vld [vmem:[#allocation8 + $0x188] sm:$0xff] }
 0x58e   : > { %12652 = vmatprep.subr.bf16.mxu0 %v17341_v12  ;;  %v11564_v62 = vpop.f32.mrb[76].mxu0  ;;  %v22385_v12 = vld [vmem:[#allocation46_spill] sm:$0xff] }
 0x58f   : > { %v13005_v14 = vadd.f32 %v11564_v62, %v7323_v45  ;;  %v11566_v25 = vpop.f32.mrb[77].mxu0  ;;  %v17350_v45 = vld [vmem:[%s18387_s7 + $0xbb4] ss:$24 sps:$4 sm:$0xff]  }
 0x590   : > { %v13006_v37 = vadd.f32 %v11566_v25, %v7324_v34  ;;  %v11568_v20 = vpop.f32.mrb[78].mxu0  ;;  %v7341_v34 = vld [vmem:[#allocation8 + $0x1b0] sm:$0xff] }
 0x591   : > { %12653 = vmatpush1.bf16.msra.mxu0 %v17339_v10  ;;  %13101 = vst [vmem:[#allocation8 + $0x120] sm:$0xff] %v13005_v14  ;;  %v13011_v44 = vadd.f32 %v11568_v20, %v7329_v55  ;;  %v11570_v52 = vpop.f32.mrb[79].mxu0  ;;  %v7342_v55 = vld [vmem:[#allocation8 + $0x1b8] sm:$0xff] }
 0x592   : > { %12654 = vmatprep.subr.bf16.mxu0 %v17344_v16  ;;  %13102 = vst [vmem:[#allocation8 + $0x128] sm:$0xff] %v13006_v37  ;;  %v13012_v43 = vadd.f32 %v11570_v52, %v7330_v7  ;;  %v17348_v7 = vld [vmem:[%s18387_s7 + $0xbb0] ss:$24 sps:$4 sm:$0xff]   ;;  %v22386_v52 = vld [vmem:[#allocation45_spill] sm:$0xff] }
 0x593   : > { %13107 = vst [vmem:[#allocation8 + $0x150] sm:$0xff] %v13011_v44 }
 0x594   : > { %12610 = vmatmul.mubr.bf16.gmra.mrb[120].mxu0 %v22384_v9  ;;  %13108 = vst [vmem:[#allocation8 + $0x158] sm:$0xff] %v13012_v43  ;;  %v7347_v43 = vld [vmem:[#allocation8 + $0x1e0] sm:$0xff] }
 0x595   : > { %12619 = vmatprep.mubr.bf16.mxu0 %v22385_v12  ;;  %12655 = vmatpush1.bf16.msra.mxu0 %v17342_v28  ;;  %v17353_v28 = vld [vmem:[%s18387_s7 + $0xbe4] ss:$24 sps:$4 sm:$0xff]   ;;  %v17351_v9 = vld [vmem:[%s18387_s7 + $0xbe0] ss:$24 sps:$4 sm:$0xff]   ;;  %v7348_v12 = vld [vmem:[#allocation8 + $0x1e8] sm:$0xff] }
 0x596   : > { %12656 = vmatprep.subr.bf16.mxu0 %v17347_v29  ;;  %v11574_v10 = vpop.f32.mrb[80].mxu0  ;;  %v22387_v29 = vld [vmem:[#allocation69_spill] sm:$0xff] }
 0x597   : > { %v13017_v16 = vadd.f32 %v11574_v10, %v7335_v26  ;;  %v11576_v62 = vpop.f32.mrb[81].mxu0  ;;  %v17356_v26 = vld [vmem:[%s18387_s7 + $0xc14] ss:$24 sps:$4 sm:$0xff]  }
 0x598   : > { %v13018_v14 = vadd.f32 %v11576_v62, %v7336_v46  ;;  %v11578_v25 = vpop.f32.mrb[82].mxu0  ;;  %v7353_v46 = vld [vmem:[#allocation8 + $0x210] sm:$0xff] }
 0x599   : > { %12657 = vmatpush1.bf16.msra.mxu0 %v17345_v40  ;;  %13113 = vst [vmem:[#allocation8 + $0x180] sm:$0xff] %v13017_v16  ;;  %v13023_v37 = vadd.f32 %v11578_v25, %v7341_v34  ;;  %v11580_v20 = vpop.f32.mrb[83].mxu0  ;;  %v7354_v34 = vld [vmem:[#allocation8 + $0x218] sm:$0xff] }
 0x59a   : > { %12658 = vmatprep.subr.bf16.mxu0 %v17350_v45  ;;  %13114 = vst [vmem:[#allocation8 + $0x188] sm:$0xff] %v13018_v14  ;;  %v13024_v44 = vadd.f32 %v11580_v20, %v7342_v55  ;;  %v17354_v55 = vld [vmem:[%s18387_s7 + $0xc10] ss:$24 sps:$4 sm:$0xff]   ;;  %v22388_v20 = vld [vmem:[#allocation14_spill] sm:$0xff] }
 0x59b   : > { %13119 = vst [vmem:[#allocation8 + $0x1b0] sm:$0xff] %v13023_v37 }
 0x59c   : > { %12620 = vmatmul.mubr.bf16.gmra.mrb[124].mxu0 %v22386_v52  ;;  %13120 = vst [vmem:[#allocation8 + $0x1b8] sm:$0xff] %v13024_v44  ;;  %v7359_v44 = vld [vmem:[#allocation8 + $0x240] sm:$0xff] }
 0x59d   : > { %12659 = vmatpush1.bf16.msra.mxu0 %v17348_v7  ;;  %12662 = vmatprep.mubr.bf16.mxu0 %v22387_v29  ;;  %v17359_v7 = vld [vmem:[%s18387_s7 + $0xc44] ss:$24 sps:$4 sm:$0xff]   ;;  %v17357_v52 = vld [vmem:[%s18387_s7 + $0xc40] ss:$24 sps:$4 sm:$0xff]   ;;  %v7360_v29 = vld [vmem:[#allocation8 + $0x248] sm:$0xff] }
 0x59e   : > { %12660 = vmatprep.subr.bf16.mxu0 %v17353_v28  ;;  %v11584_v40 = vpop.f32.mrb[84].mxu0  ;;  %v22389_v28 = vld [vmem:[#allocation71_spill] sm:$0xff] }
 0x59f   : > { %v13029_v45 = vadd.f32 %v11584_v40, %v7347_v43  ;;  %v11586_v10 = vpop.f32.mrb[85].mxu0  ;;  %v17362_v43 = vld [vmem:[%s18387_s7 + $0xc74] ss:$24 sps:$4 sm:$0xff]  }
 0x5a0   : > { %v13030_v16 = vadd.f32 %v11586_v10, %v7348_v12  ;;  %v11588_v62 = vpop.f32.mrb[86].mxu0  ;;  %v7365_v12 = vld [vmem:[#allocation8 + $0x270] sm:$0xff] }
 0x5a1   : > { %12661 = vmatpush1.bf16.msra.mxu0 %v17351_v9  ;;  %13125 = vst [vmem:[#allocation8 + $0x1e0] sm:$0xff] %v13029_v45  ;;  %v13035_v14 = vadd.f32 %v11588_v62, %v7353_v46  ;;  %v11590_v25 = vpop.f32.mrb[87].mxu0  ;;  %v7366_v46 = vld [vmem:[#allocation8 + $0x278] sm:$0xff] }
 0x5a2   : > { %12743 = vmatprep.subr.bf16.mxu0 %v17356_v26  ;;  %13126 = vst [vmem:[#allocation8 + $0x1e8] sm:$0xff] %v13030_v16  ;;  %v13036_v37 = vadd.f32 %v11590_v25, %v7354_v34  ;;  %v17360_v34 = vld [vmem:[%s18387_s7 + $0xc70] ss:$24 sps:$4 sm:$0xff]   ;;  %v22390_v25 = vld [vmem:[#allocation70_spill] sm:$0xff] }
 0x5a3   : > { %13131 = vst [vmem:[#allocation8 + $0x210] sm:$0xff] %v13035_v14 }
 0x5a4   : > { %12663 = vmatmul.mubr.bf16.vlgmr.msra.gmra.mrb[96].mxu0 %v22388_v20  ;;  %13132 = vst [vmem:[#allocation8 + $0x218] sm:$0xff] %v13036_v37  ;;  %v7371_v37 = vld [vmem:[#allocation8 + $0x2a0] sm:$0xff] }
 0x5a5   : > { %12672 = vmatprep.mubr.bf16.mxu0 %v22389_v28  ;;  %12744 = vmatpush1.bf16.msra.mxu0 %v17354_v55  ;;  %v17365_v55 = vld [vmem:[%s18387_s7 + $0xca4] ss:$24 sps:$4 sm:$0xff]   ;;  %v17363_v20 = vld [vmem:[%s18387_s7 + $0xca0] ss:$24 sps:$4 sm:$0xff]   ;;  %v7372_v28 = vld [vmem:[#allocation8 + $0x2a8] sm:$0xff] }
 0x5a6   : > { %12745 = vmatprep.subr.bf16.mxu0 %v17359_v7  ;;  %v11594_v9 = vpop.f32.mrb[88].mxu0  ;;  %v22391_v7 = vld [vmem:[#allocation73_spill] sm:$0xff] }
 0x5a7   : > { %v13041_v26 = vadd.f32 %v11594_v9, %v7359_v44  ;;  %v11596_v40 = vpop.f32.mrb[89].mxu0  ;;  %v17368_v44 = vld [vmem:[%s18387_s7 + $0xcd4] ss:$24 sps:$4 sm:$0xff]  }
 0x5a8   : > { %v13042_v45 = vadd.f32 %v11596_v40, %v7360_v29  ;;  %v11598_v10 = vpop.f32.mrb[90].mxu0  ;;  %v7377_v29 = vld [vmem:[#allocation8 + $0x2d0] sm:$0xff] }
 0x5a9   : > { %12746 = vmatpush1.bf16.msra.mxu0 %v17357_v52  ;;  %13137 = vst [vmem:[#allocation8 + $0x240] sm:$0xff] %v13041_v26  ;;  %v13047_v16 = vadd.f32 %v11598_v10, %v7365_v12  ;;  %v11600_v62 = vpop.f32.mrb[91].mxu0  ;;  %v7378_v12 = vld [vmem:[#allocation8 + $0x2d8] sm:$0xff] }
 0x5aa   : > { %12747 = vmatprep.subr.bf16.mxu0 %v17362_v43  ;;  %13138 = vst [vmem:[#allocation8 + $0x248] sm:$0xff] %v13042_v45  ;;  %v13048_v14 = vadd.f32 %v11600_v62, %v7366_v46  ;;  %v17366_v46 = vld [vmem:[%s18387_s7 + $0xcd0] ss:$24 sps:$4 sm:$0xff]   ;;  %v17369_v62 = vld [vmem:[%s18387_s7 + $0xd00] ss:$24 sps:$4 sm:$0xff]  }
 0x5ab   : > { %13143 = vst [vmem:[#allocation8 + $0x270] sm:$0xff] %v13047_v16 }
 0x5ac   : > { %12673 = vmatmul.mubr.bf16.gmra.mrb[100].mxu0 %v22390_v25  ;;  %13144 = vst [vmem:[#allocation8 + $0x278] sm:$0xff] %v13048_v14  ;;  %v17372_v14 = vld [vmem:[%s18387_s7 + $0xd30] ss:$24 sps:$4 sm:$0xff]   ;;  %v17377_v25 = vld [vmem:[%s18387_s7 + $0xd64] ss:$24 sps:$4 sm:$0xff]  }
 0x5ad   : > { %12682 = vmatprep.mubr.bf16.mxu0 %v22391_v7  ;;  %12748 = vmatpush1.bf16.msra.mxu0 %v17360_v34  ;;  %v17371_v34 = vld [vmem:[%s18387_s7 + $0xd04] ss:$24 sps:$4 sm:$0xff]   ;;  %v17378_v7 = vld [vmem:[%s18387_s7 + $0xd90] ss:$24 sps:$4 sm:$0xff]  }
 0x5ae   : > { %12749 = vmatprep.subr.bf16.mxu0 %v17365_v55  ;;  %v11604_v52 = vpop.f32.mrb[92].mxu0  ;;  %v17374_v55 = vld [vmem:[%s18387_s7 + $0xd34] ss:$24 sps:$4 sm:$0xff]  }
 0x5af   : > { %v13053_v43 = vadd.f32 %v11604_v52, %v7371_v37  ;;  %v11606_v9 = vpop.f32.mrb[93].mxu0  ;;  %v17383_v37 = vld [vmem:[%s18387_s7 + $0xdc4] ss:$24 sps:$4 sm:$0xff]  }
 0x5b0   : > { %v13054_v26 = vadd.f32 %v11606_v9, %v7372_v28  ;;  %v11608_v40 = vpop.f32.mrb[94].mxu0  ;;  %v17389_v28 = vld [vmem:[%s18387_s7 + $0xe24] ss:$24 sps:$4 sm:$0xff]   ;;  %v17402_v9 = vld [vmem:[%s18387_s7 + $0xf10] ss:$24 sps:$4 sm:$0xff]  }
 0x5b1   : > { %12750 = vmatpush1.bf16.msra.mxu0 %v17363_v20  ;;  %13149 = vst [vmem:[#allocation8 + $0x2a0] sm:$0xff] %v13053_v43  ;;  %v13059_v45 = vadd.f32 %v11608_v40, %v7377_v29  ;;  %v11610_v10 = vpop.f32.mrb[95].mxu0  ;;  %v17384_v20 = vld [vmem:[%s18387_s7 + $0xdf0] ss:$24 sps:$4 sm:$0xff]   ;;  %v17395_v52 = vld [vmem:[%s18387_s7 + $0xe84] ss:$24 sps:$4 sm:$0xff]  }
 0x5b2   : > { %12751 = vmatprep.subr.bf16.mxu0 %v17368_v44  ;;  %13150 = vst [vmem:[#allocation8 + $0x2a8] sm:$0xff] %v13054_v26  ;;  %v13060_v16 = vadd.f32 %v11610_v10, %v7378_v12  ;;  %v17390_v44 = vld [vmem:[%s18387_s7 + $0xe50] ss:$24 sps:$4 sm:$0xff]   ;;  %v17401_v43 = vld [vmem:[%s18387_s7 + $0xee4] ss:$24 sps:$4 sm:$0xff]  }
 0x5b3   : > { %13155 = vst [vmem:[#allocation8 + $0x2d0] sm:$0xff] %v13059_v45  ;;  %v17396_v29 = vld [vmem:[%s18387_s7 + $0xeb0] ss:$24 sps:$4 sm:$0xff]   ;;  %v17407_v12 = vld [vmem:[%s18387_s7 + $0xf44] ss:$24 sps:$4 sm:$0xff]  }
 0x5b4   : > { %12683 = vmatmul.mubr.bf16.gmra.mrb[104].mxu0 %v22333_v58  ;;  %13156 = vst [vmem:[#allocation8 + $0x2d8] sm:$0xff] %v13060_v16  ;;  %v17375_v58 = vld [vmem:[%s18387_s7 + $0xd60] ss:$24 sps:$4 sm:$0xff]   ;;  %v17408_v26 = vld [vmem:[%s18387_s7 + $0xf70] ss:$24 sps:$4 sm:$0xff]  }
 0x5b5   : > { %12692 = vmatprep.mubr.bf16.mxu0 %v22334_v50  ;;  %12752 = vmatpush1.bf16.msra.mxu0 %v17366_v46  ;;  %v17380_v50 = vld [vmem:[%s18387_s7 + $0xd94] ss:$24 sps:$4 sm:$0xff]   ;;  %v17413_v40 = vld [vmem:[%s18387_s7 + $0xfa4] ss:$24 sps:$4 sm:$0xff]   ;;  %v17414_v46 = vld [vmem:[%s18387_s7 + $0xfd0] ss:$24 sps:$4 sm:$0xff]  }
 0x5b6   : > { %12753 = vmatprep.subr.bf16.mxu0 %v17371_v34  ;;  %v17419_v45 = vld [vmem:[%s18387_s7 + $0x1004] ss:$24 sps:$4 sm:$0xff]   ;;  %v17420_v10 = vld [vmem:[%s18387_s7 + $0x1030] ss:$24 sps:$4 sm:$0xff]  }
 0x5b7   : > { %v17425_v34 = vld [vmem:[%s18387_s7 + $0x1064] ss:$24 sps:$4 sm:$0xff]   ;;  %v17426_v16 = vld [vmem:[%s18387_s7 + $0x1090] ss:$24 sps:$4 sm:$0xff]  }
 0x5b9   : > { %12754 = vmatpush1.bf16.msra.mxu0 %v17369_v62  ;;  %v17431_v62 = vld [vmem:[%s18387_s7 + $0x10c4] ss:$24 sps:$4 sm:$0xff]  }
 0x5ba   : > { %12755 = vmatprep.subr.bf16.mxu0 %v17374_v55  ;;  %v17429_v55 = vld [vmem:[%s18387_s7 + $0x10c0] ss:$24 sps:$4 sm:$0xff]  }
 0x5bc   : > { %12693 = vmatmul.mubr.bf16.gmra.mrb[108].mxu0 %v22335_v23  ;;  %v17381_v23 = vld [vmem:[%s18387_s7 + $0xdc0] ss:$24 sps:$4 sm:$0xff]  }
 0x5bd   : > { %12702 = vmatprep.mubr.bf16.mxu0 %v21139_v53  ;;  %12756 = vmatpush1.bf16.msra.mxu0 %v17372_v14  ;;  %v17386_v53 = vld [vmem:[%s18387_s7 + $0xdf4] ss:$24 sps:$4 sm:$0xff]  }
 0x5be   : > { %12757 = vmatprep.subr.bf16.mxu0 %v17377_v25  ;;  %v7289_v14 = vld [vmem:[#allocation8 + $0x10] sm:$0xff] }
 0x5c1   : > { %12758 = vmatpush1.bf16.msra.mxu0 %v17375_v58  ;;  %v7295_v58 = vld [vmem:[#allocation8 + $0x40] sm:$0xff] }
 0x5c2   : > { %12759 = vmatprep.subr.bf16.mxu0 %v17380_v50  ;;  %v17432_v50 = vld [vmem:[%s18387_s7 + $0x10f0] ss:$24 sps:$4 sm:$0xff]  }
 0x5c4   : > { %12703 = vmatmul.mubr.bf16.gmra.mrb[112].mxu0 %v22336_v32  ;;  %v17387_v32 = vld [vmem:[%s18387_s7 + $0xe20] ss:$24 sps:$4 sm:$0xff]  }
 0x5c5   : > { %12712 = vmatprep.mubr.bf16.mxu0 %v21175_v13  ;;  %12760 = vmatpush1.bf16.msra.mxu0 %v17378_v7  ;;  %v17392_v13 = vld [vmem:[%s18387_s7 + $0xe54] ss:$24 sps:$4 sm:$0xff]  }
 0x5c6   : > { %12761 = vmatprep.subr.bf16.mxu0 %v17383_v37 }
 0x5c9   : > { %12762 = vmatpush1.bf16.msra.mxu0 %v17381_v23  ;;  %v7296_v23 = vld [vmem:[#allocation8 + $0x48] sm:$0xff] }
 0x5ca   : > { %12763 = vmatprep.subr.bf16.mxu0 %v17386_v53 }
 0x5cc   : > { %12713 = vmatmul.mubr.bf16.gmra.mrb[116].mxu0 %v21172_v39  ;;  %v17393_v39 = vld [vmem:[%s18387_s7 + $0xe80] ss:$24 sps:$4 sm:$0xff]  }
 0x5cd   : > { %12722 = vmatprep.mubr.bf16.mxu0 %v21195_v4  ;;  %12764 = vmatpush1.bf16.msra.mxu0 %v17384_v20  ;;  %v17398_v4 = vld [vmem:[%s18387_s7 + $0xeb4] ss:$24 sps:$4 sm:$0xff]  }
 0x5ce   : > { %12765 = vmatprep.subr.bf16.mxu0 %v17389_v28 }
 0x5d1   : > { %12766 = vmatpush1.bf16.msra.mxu0 %v17387_v32 }
 0x5d2   : > { %12767 = vmatprep.subr.bf16.mxu0 %v17392_v13  ;;  %v17435_v13 = vld [vmem:[%s18387_s7 + $0x1120] ss:$24 sps:$4 sm:$0xff]  }
 0x5d4   : > { %12723 = vmatmul.mubr.bf16.gmra.mrb[120].mxu0 %v21192_v31  ;;  %v17399_v31 = vld [vmem:[%s18387_s7 + $0xee0] ss:$24 sps:$4 sm:$0xff]  }
 0x5d5   : > { %12732 = vmatprep.mubr.bf16.mxu0 %v21215_v8  ;;  %12768 = vmatpush1.bf16.msra.mxu0 %v17390_v44  ;;  %v17404_v8 = vld [vmem:[%s18387_s7 + $0xf14] ss:$24 sps:$4 sm:$0xff]  }
 0x5d6   : > { %12769 = vmatprep.subr.bf16.mxu0 %v17395_v52  ;;  %v17440_v44 = vld [vmem:[%s18387_s7 + $0x1154] ss:$24 sps:$4 sm:$0xff]  }
 0x5d7   : > { %v7301_v52 = vld [vmem:[#allocation8 + $0x70] sm:$0xff] }
 0x5d9   : > { %12770 = vmatpush1.bf16.msra.mxu0 %v17393_v39  ;;  %v7302_v39 = vld [vmem:[#allocation8 + $0x78] sm:$0xff] }
 0x5da   : > { %12771 = vmatprep.subr.bf16.mxu0 %v17398_v4 }
 0x5dc   : > { %12733 = vmatmul.mubr.bf16.gmra.mrb[124].mxu0 %v21212_v6  ;;  %v17405_v6 = vld [vmem:[%s18387_s7 + $0xf40] ss:$24 sps:$4 sm:$0xff]  }
 0x5dd   : > { %12772 = vmatpush1.bf16.msra.mxu0 %v17396_v29  ;;  %12775 = vmatprep.mubr.bf16.mxu0 %v20700_v1  ;;  %v17410_v1 = vld [vmem:[%s18387_s7 + $0xf74] ss:$24 sps:$4 sm:$0xff]   ;;  %v7307_v29 = vld [vmem:[#allocation8 + $0xa0] sm:$0xff] }
 0x5de   : > { %12773 = vmatprep.subr.bf16.mxu0 %v17401_v43  ;;  %v17438_v43 = vld [vmem:[%s18387_s7 + $0x1150] ss:$24 sps:$4 sm:$0xff]  }
 0x5e1   : > { %12774 = vmatpush1.bf16.msra.mxu0 %v17399_v31 }
 0x5e2   : > { %12856 = vmatprep.subr.bf16.mxu0 %v17404_v8  ;;  %v7308_v8 = vld [vmem:[#allocation8 + $0xa8] sm:$0xff] }
 0x5e4   : > { %12776 = vmatmul.mubr.bf16.vlgmr.msra.gmra.mrb[96].mxu0 %v22295_v2  ;;  %v17411_v2 = vld [vmem:[%s18387_s7 + $0xfa0] ss:$24 sps:$4 sm:$0xff]  }
 0x5e5   : > { %12785 = vmatprep.mubr.bf16.mxu0 %v20707_v27  ;;  %12857 = vmatpush1.bf16.msra.mxu0 %v17402_v9  ;;  %v17416_v27 = vld [vmem:[%s18387_s7 + $0xfd4] ss:$24 sps:$4 sm:$0xff]  }
 0x5e6   : > { %12858 = vmatprep.subr.bf16.mxu0 %v17407_v12 }
 0x5e9   : > { %12859 = vmatpush1.bf16.msra.mxu0 %v17405_v6 }
 0x5ea   : > { %12860 = vmatprep.subr.bf16.mxu0 %v17410_v1 }
 0x5ec   : > { %12786 = vmatmul.mubr.bf16.gmra.mrb[100].mxu0 %v20711_v41  ;;  %v17417_v41 = vld [vmem:[%s18387_s7 + $0x1000] ss:$24 sps:$4 sm:$0xff]  }
 0x5ed   : > { %12795 = vmatprep.mubr.bf16.mxu0 %v20722_v60  ;;  %12861 = vmatpush1.bf16.msra.mxu0 %v17408_v26  ;;  %v17422_v60 = vld [vmem:[%s18387_s7 + $0x1034] ss:$24 sps:$4 sm:$0xff]  }
 0x5ee   : > { %12862 = vmatprep.subr.bf16.mxu0 %v17413_v40  ;;  %v17441_v40 = vld [vmem:[%s18387_s7 + $0x1180] ss:$24 sps:$4 sm:$0xff]  }
 0x5f1   : > { %12863 = vmatpush1.bf16.msra.mxu0 %v17411_v2  ;;  %v17446_v2 = vld [vmem:[%s18387_s7 + $0x11b4] ss:$24 sps:$4 sm:$0xff]  }
 0x5f2   : > { %12864 = vmatprep.subr.bf16.mxu0 %v17416_v27  ;;  %v7313_v27 = vld [vmem:[#allocation8 + $0xd0] sm:$0xff] }
 0x5f4   : > { %12796 = vmatmul.mubr.bf16.gmra.mrb[104].mxu0 %v20726_v33  ;;  %v17423_v33 = vld [vmem:[%s18387_s7 + $0x1060] ss:$24 sps:$4 sm:$0xff]  }
 0x5f5   : > { %12805 = vmatprep.mubr.bf16.mxu0 %v20735_v11  ;;  %12865 = vmatpush1.bf16.msra.mxu0 %v17414_v46  ;;  %v17428_v11 = vld [vmem:[%s18387_s7 + $0x1094] ss:$24 sps:$4 sm:$0xff]   ;;  %v7314_v46 = vld [vmem:[#allocation8 + $0xd8] sm:$0xff] }
 0x5f6   : > { %12866 = vmatprep.subr.bf16.mxu0 %v17419_v45 }
 0x5f9   : > { %12867 = vmatpush1.bf16.msra.mxu0 %v17417_v41  ;;  %v7319_v41 = vld [vmem:[#allocation8 + $0x100] sm:$0xff] }
 0x5fa   : > { %12868 = vmatprep.subr.bf16.mxu0 %v17422_v60  ;;  %v17444_v60 = vld [vmem:[%s18387_s7 + $0x11b0] ss:$24 sps:$4 sm:$0xff]  }
 0x5fc   : > { %12806 = vmatmul.mubr.bf16.gmra.mrb[108].mxu0 %v20738_v35  ;;  %v17434_v35 = vld [vmem:[%s18387_s7 + $0x10f4] ss:$24 sps:$4 sm:$0xff]  }
 0x5fd   : > { %12815 = vmatprep.mubr.bf16.mxu0 %v20740_v63  ;;  %12869 = vmatpush1.bf16.msra.mxu0 %v17420_v10  ;;  %v7290_v63 = vld [vmem:[#allocation8 + $0x18] sm:$0xff] }
 0x5fe   : > { %12870 = vmatprep.subr.bf16.mxu0 %v17425_v34  ;;  %v7320_v34 = vld [vmem:[#allocation8 + $0x108] sm:$0xff] }
 0x601   : > { %12871 = vmatpush1.bf16.msra.mxu0 %v17423_v33  ;;  %v17449_v33 = vld [vmem:[%s18387_s7 + $0x11e4] ss:$24 sps:$4 sm:$0xff]  }
 0x602   : > { %12872 = vmatprep.subr.bf16.mxu0 %v17428_v11 }
 0x604   : > { %12816 = vmatmul.mubr.bf16.gmra.mrb[112].mxu0 %v20742_v18  ;;  %v17437_v18 = vld [vmem:[%s18387_s7 + $0x1124] ss:$24 sps:$4 sm:$0xff]  }
 0x605   : > { %12825 = vmatprep.mubr.bf16.mxu0 %v20744_v57  ;;  %12873 = vmatpush1.bf16.msra.mxu0 %v17426_v16 }
 0x606   : > { %12874 = vmatprep.subr.bf16.mxu0 %v17431_v62 }
 0x609   : > { %12875 = vmatpush1.bf16.msra.mxu0 %v17429_v55  ;;  %v12212_v25 = vpop.f32.mrb[128].mxu1 }
 0x60a   : > { %v12971_v7 = vadd.f32 %v12212_v25, %v7289_v14  ;;  %v12214_v37 = vpop.f32.mrb[129].mxu1  ;;  %12876 = vmatprep.subr.bf16.mxu0 %v17434_v35  ;;  %v17447_v35 = vld [vmem:[%s18387_s7 + $0x11e0] ss:$24 sps:$4 sm:$0xff]   ;;  %v7325_v14 = vld [vmem:[#allocation8 + $0x130] sm:$0xff] }
 0x60b   : > { %v12972_v53 = vadd.f32 %v12214_v37, %v7290_v63  ;;  %v12216_v20 = vpop.f32.mrb[130].mxu1  ;;  %v7326_v63 = vld [vmem:[#allocation8 + $0x138] sm:$0xff]  ;;  %v7332_v37 = vld [vmem:[#allocation8 + $0x168] sm:$0xff] }
 0x60c   : > { %13067 = vst [vmem:[#allocation8 + $0x10] sm:$0xff] %v12971_v7  ;;  %v12977_v57 = vadd.f32 %v12216_v20, %v7295_v58  ;;  %12826 = vmatmul.mubr.bf16.gmra.mrb[116].mxu0 %v22342_v30  ;;  %v12218_v28 = vpop.f32.mrb[131].mxu1  ;;  %v7331_v58 = vld [vmem:[#allocation8 + $0x160] sm:$0xff]  ;;  %v7337_v20 = vld [vmem:[#allocation8 + $0x190] sm:$0xff] }
 0x60d   : > { %13068 = vst [vmem:[#allocation8 + $0x18] sm:$0xff] %v12972_v53  ;;  %v12978_v32 = vadd.f32 %v12218_v28, %v7296_v23  ;;  %12835 = vmatprep.mubr.bf16.mxu0 %v22343_v5  ;;  %12877 = vmatpush1.bf16.msra.mxu0 %v17432_v50  ;;  %v17443_v5 = vld [vmem:[%s18387_s7 + $0x1184] ss:$24 sps:$4 sm:$0xff]   ;;  %s13171_s7 = sshll.u32 %s18165_s27, 4  ;;  %s13172_s7 = int_to_ptr.vmem [resolvable:$true] %s13171_s7 }
 0x60e   : > { %13073 = vst [vmem:[#allocation8 + $0x40] sm:$0xff] %v12977_v57  ;;  %12878 = vmatprep.subr.bf16.mxu0 %v17437_v18  ;;  %v7338_v57 = vld [vmem:[#allocation8 + $0x198] sm:$0xff]  ;;  %s18071_s15 = scalar_lea.vmem %s13172_s7, 12288  ;;  %p18078_p4 = scmp.lt.s32.totalorder %s13172_s7, %s13172_s7 }
 0x60f   : > { %13074 = vst [vmem:[#allocation8 + $0x48] sm:$0xff] %v12978_v32  ;;  %v7343_v32 = vld [vmem:[#allocation8 + $0x1c0] sm:$0xff]  ;;  %p18072_p13 = scmp.ne.s32.totalorder %s13172_s7, %s18071_s15  ;;  %p18079_p6 = scmp.lt.s32.totalorder %s18071_s15, %s18071_s15 }
 0x611   : > { %12879 = vmatpush1.bf16.msra.mxu0 %v17435_v13  ;;  %v12222_v4 = vpop.f32.mrb[132].mxu1  ;;  %p18073_p7 = pnand %p18072_p13, %p15592_p1  ;;  %p18080_p8 = por %p18079_p6, %p18078_p4 }
 0x612   : > { %v12983_v30 = vadd.f32 %v12222_v4, %v7301_v52  ;;  %v12224_v31 = vpop.f32.mrb[133].mxu1  ;;  %12880 = vmatprep.subr.bf16.mxu0 %v17440_v44  ;;  %v7344_v52 = vld [vmem:[#allocation8 + $0x1c8] sm:$0xff] }
 0x613   : > { %v12984_v9 = vadd.f32 %v12224_v31, %v7302_v39  ;;  %v12226_v12 = vpop.f32.mrb[134].mxu1  ;;  %p18074_p3 = pneg %p18073_p7 }
 0x614   : > { %13079 = vst [vmem:[#allocation8 + $0x70] sm:$0xff] %v12983_v30  ;;  %v12989_v6 = vadd.f32 %v12226_v12, %v7307_v29  ;;  %12836 = vmatmul.mubr.bf16.gmra.mrb[120].mxu0 %v22346_v51  ;;  %v12228_v1 = vpop.f32.mrb[135].mxu1  ;;  %v7350_v30 = vld [vmem:[#allocation8 + $0x1f8] sm:$0xff]  ;;  %v7356_v12 = vld [vmem:[#allocation8 + $0x228] sm:$0xff] }
 0x615   : > { %13080 = vst [vmem:[#allocation8 + $0x78] sm:$0xff] %v12984_v9  ;;  %v12990_v26 = vadd.f32 %v12228_v1, %v7308_v8  ;;  %12845 = vmatprep.mubr.bf16.mxu0 %v22347_v15  ;;  %12881 = vmatpush1.bf16.msra.mxu0 %v17438_v43  ;;  %v7355_v8 = vld [vmem:[#allocation8 + $0x220] sm:$0xff]  ;;  %p18081_p2 = pnand %p18080_p8, %p18074_p3 }
 0x616   : > { %13085 = vst [vmem:[#allocation8 + $0xa0] sm:$0xff] %v12989_v6  ;;  %12882 = vmatprep.subr.bf16.mxu0 %v17443_v5 }
 0x617   : > { %13086 = vst [vmem:[#allocation8 + $0xa8] sm:$0xff] %v12990_v26 }
 0x619   : > { %12883 = vmatpush1.bf16.msra.mxu0 %v17441_v40  ;;  %v12232_v45 = vpop.f32.mrb[136].mxu1 }
 0x61a   : > { %v12995_v51 = vadd.f32 %v12232_v45, %v7313_v27  ;;  %v12234_v10 = vpop.f32.mrb[137].mxu1  ;;  %12884 = vmatprep.subr.bf16.mxu0 %v17446_v2  ;;  %v7362_v2 = vld [vmem:[#allocation8 + $0x258] sm:$0xff] }
 0x61b   : > { %v12996_v15 = vadd.f32 %v12234_v10, %v7314_v46  ;;  %v12236_v11 = vpop.f32.mrb[138].mxu1  ;;  %v7367_v46 = vld [vmem:[#allocation8 + $0x280] sm:$0xff] }
 0x61c   : > { %13091 = vst [vmem:[#allocation8 + $0xd0] sm:$0xff] %v12995_v51  ;;  %v13001_v16 = vadd.f32 %v12236_v11, %v7319_v41  ;;  %12846 = vmatmul.mubr.bf16.gmra.mrb[124].mxu0 %v22350_v24  ;;  %v12238_v62 = vpop.f32.mrb[139].mxu1 }
 0x61d   : > { %13092 = vst [vmem:[#allocation8 + $0xd8] sm:$0xff] %v12996_v15  ;;  %v13002_v55 = vadd.f32 %v12238_v62, %v7320_v34  ;;  %12885 = vmatpush1.bf16.msra.mxu0 %v17444_v60  ;;  %12888 = vmatprep.mubr.bf16.mxu0 %v22351_v22  ;;  %v7368_v60 = vld [vmem:[#allocation8 + $0x288] sm:$0xff]  ;;  %v7374_v15 = vld [vmem:[#allocation8 + $0x2b8] sm:$0xff] }
 0x61e   : > { %13097 = vst [vmem:[#allocation8 + $0x100] sm:$0xff] %v13001_v16  ;;  %12886 = vmatprep.subr.bf16.mxu0 %v17449_v33  ;;  %v7379_v16 = vld [vmem:[#allocation8 + $0x2e0] sm:$0xff] }
 0x61f   : > { %13098 = vst [vmem:[#allocation8 + $0x108] sm:$0xff] %v13002_v55 }
 0x621   : > { %12887 = vmatpush1.bf16.msra.mxu0 %v17447_v35  ;;  %v12242_v25 = vpop.f32.mrb[140].mxu1  ;;  %v7380_v35 = vld [vmem:[#allocation8 + $0x2e8] sm:$0xff] }
 0x622   : > { %v13007_v50 = vadd.f32 %v12242_v25, %v7325_v14  ;;  %v12244_v7 = vpop.f32.mrb[141].mxu1 }
 0x623   : > { %v13008_v23 = vadd.f32 %v12244_v7, %v7326_v63  ;;  %v12246_v24 = vpop.f32.mrb[142].mxu1  ;;  %v7297_v7 = vld [vmem:[#allocation8 + $0x50] sm:$0xff] }
 0x624   : > { %13103 = vst [vmem:[#allocation8 + $0x130] sm:$0xff] %v13007_v50  ;;  %v13013_v18 = vadd.f32 %v12246_v24, %v7331_v58  ;;  %12889 = vmatmul.mubr.bf16.vlgmr.msra.gmra.mrb[96].mxu0 %v22354_v48  ;;  %v12248_v53 = vpop.f32.mrb[143].mxu1  ;;  %v7292_v50 = vld [vmem:[#allocation8 + $0x28] sm:$0xff]  ;;  %v7298_v24 = vld [vmem:[#allocation8 + $0x58] sm:$0xff] }
 0x625   : > { %13104 = vst [vmem:[#allocation8 + $0x138] sm:$0xff] %v13008_v23  ;;  %v13014_v22 = vadd.f32 %v12248_v53, %v7332_v37  ;;  %12898 = vmatprep.mubr.bf16.mxu0 %v22355_v38  ;;  %v7349_v38 = vld [vmem:[#allocation8 + $0x1f0] sm:$0xff] }
 0x626   : > { %13109 = vst [vmem:[#allocation8 + $0x160] sm:$0xff] %v13013_v18 }
 0x627   : > { %13110 = vst [vmem:[#allocation8 + $0x168] sm:$0xff] %v13014_v22 }
 0x629   : > { %v12252_v28 = vpop.f32.mrb[144].mxu1 }
 0x62a   : > { %v13019_v13 = vadd.f32 %v12252_v28, %v7337_v20  ;;  %v12254_v44 = vpop.f32.mrb[145].mxu1  ;;  %v7310_v28 = vld [vmem:[#allocation8 + $0xb8] sm:$0xff] }
 0x62b   : > { %v13020_v39 = vadd.f32 %v12254_v44, %v7338_v57  ;;  %v12256_v4 = vpop.f32.mrb[146].mxu1 }
 0x62c   : > { %13115 = vst [vmem:[#allocation8 + $0x190] sm:$0xff] %v13019_v13  ;;  %v13025_v29 = vadd.f32 %v12256_v4, %v7343_v32  ;;  %12899 = vmatmul.mubr.bf16.gmra.mrb[100].mxu0 %v22358_v3  ;;  %v12258_v48 = vpop.f32.mrb[147].mxu1  ;;  %v7315_v4 = vld [vmem:[#allocation8 + $0xe0] sm:$0xff] }
 0x62d   : > { %13116 = vst [vmem:[#allocation8 + $0x198] sm:$0xff] %v13020_v39  ;;  %v13026_v43 = vadd.f32 %v12258_v48, %v7344_v52  ;;  %12908 = vmatprep.mubr.bf16.mxu0 %v22359_v19  ;;  %v7361_v19 = vld [vmem:[#allocation8 + $0x250] sm:$0xff] }
 0x62e   : > { %13121 = vst [vmem:[#allocation8 + $0x1c0] sm:$0xff] %v13025_v29  ;;  %v7316_v29 = vld [vmem:[#allocation8 + $0xe8] sm:$0xff] }
 0x62f   : > { %13122 = vst [vmem:[#allocation8 + $0x1c8] sm:$0xff] %v13026_v43  ;;  %v7321_v43 = vld [vmem:[#allocation8 + $0x110] sm:$0xff] }
 0x631   : > { %v12262_v31 = vpop.f32.mrb[148].mxu1 }
 0x632   : > { %v13031_v5 = vadd.f32 %v12262_v31, %v7349_v38  ;;  %v12264_v9 = vpop.f32.mrb[149].mxu1  ;;  %v7322_v31 = vld [vmem:[#allocation8 + $0x118] sm:$0xff] }
 0x633   : > { %v13032_v6 = vadd.f32 %v12264_v9, %v7350_v30  ;;  %v12266_v1 = vpop.f32.mrb[150].mxu1 }
 0x634   : > { %13127 = vst [vmem:[#allocation8 + $0x1f0] sm:$0xff] %v13031_v5  ;;  %v13037_v26 = vadd.f32 %v12266_v1, %v7355_v8  ;;  %12909 = vmatmul.mubr.bf16.gmra.mrb[104].mxu0 %v22362_v36  ;;  %v12268_v3 = vpop.f32.mrb[151].mxu1  ;;  %v7327_v1 = vld [vmem:[#allocation8 + $0x140] sm:$0xff] }
 0x635   : > { %13128 = vst [vmem:[#allocation8 + $0x1f8] sm:$0xff] %v13032_v6  ;;  %v13038_v40 = vadd.f32 %v12268_v3, %v7356_v12  ;;  %12918 = vmatprep.mubr.bf16.mxu0 %v22363_v47  ;;  %v7373_v47 = vld [vmem:[#allocation8 + $0x2b0] sm:$0xff] }
 0x636   : > { %13133 = vst [vmem:[#allocation8 + $0x220] sm:$0xff] %v13037_v26  ;;  %v7328_v26 = vld [vmem:[#allocation8 + $0x148] sm:$0xff] }
 0x637   : > { %13134 = vst [vmem:[#allocation8 + $0x228] sm:$0xff] %v13038_v40  ;;  %v7333_v40 = vld [vmem:[#allocation8 + $0x170] sm:$0xff] }
 0x639   : > { %v12272_v27 = vpop.f32.mrb[152].mxu1 }
 0x63a   : > { %v13043_v45 = vadd.f32 %v12272_v27, %v7361_v19  ;;  %v12274_v41 = vpop.f32.mrb[153].mxu1  ;;  %v7334_v27 = vld [vmem:[#allocation8 + $0x178] sm:$0xff] }
 0x63b   : > { %v13044_v51 = vadd.f32 %v12274_v41, %v7362_v2  ;;  %v12276_v10 = vpop.f32.mrb[154].mxu1 }
 0x63c   : > { %13139 = vst [vmem:[#allocation8 + $0x250] sm:$0xff] %v13043_v45  ;;  %v13049_v34 = vadd.f32 %v12276_v10, %v7367_v46  ;;  %12919 = vmatmul.mubr.bf16.gmra.mrb[108].mxu0 %v22366_v49  ;;  %v12278_v36 = vpop.f32.mrb[155].mxu1  ;;  %v7339_v10 = vld [vmem:[#allocation8 + $0x1a0] sm:$0xff] }
 0x63d   : > { %13140 = vst [vmem:[#allocation8 + $0x258] sm:$0xff] %v13044_v51  ;;  %v13050_v33 = vadd.f32 %v12278_v36, %v7368_v60  ;;  %12928 = vmatprep.mubr.bf16.mxu0 %v21568_v56  ;;  %v7291_v56 = vld [vmem:[#allocation8 + $0x20] sm:$0xff] }
 0x63e   : > { %13145 = vst [vmem:[#allocation8 + $0x280] sm:$0xff] %v13049_v34  ;;  %v7340_v34 = vld [vmem:[#allocation8 + $0x1a8] sm:$0xff] }
 0x63f   : > { %13146 = vst [vmem:[#allocation8 + $0x288] sm:$0xff] %v13050_v33  ;;  %v7345_v33 = vld [vmem:[#allocation8 + $0x1d0] sm:$0xff] }
 0x641   : > { %v12282_v11 = vpop.f32.mrb[156].mxu1 }
 0x642   : > { %v13055_v62 = vadd.f32 %v12282_v11, %v7373_v47  ;;  %v12284_v55 = vpop.f32.mrb[157].mxu1  ;;  %v7346_v11 = vld [vmem:[#allocation8 + $0x1d8] sm:$0xff] }
 0x643   : > { %v13056_v14 = vadd.f32 %v12284_v55, %v7374_v15  ;;  %v12286_v63 = vpop.f32.mrb[158].mxu1 }
 0x644   : > { %13151 = vst [vmem:[#allocation8 + $0x2b0] sm:$0xff] %v13055_v62  ;;  %v13061_v25 = vadd.f32 %v12286_v63, %v7379_v16  ;;  %12929 = vmatmul.mubr.bf16.gmra.mrb[112].mxu0 %v22369_v54  ;;  %v12288_v49 = vpop.f32.mrb[159].mxu1  ;;  %v7351_v63 = vld [vmem:[#allocation8 + $0x200] sm:$0xff] }
 0x645   : > { %13152 = vst [vmem:[#allocation8 + $0x2b8] sm:$0xff] %v13056_v14  ;;  %v13062_v58 = vadd.f32 %v12288_v49, %v7380_v35  ;;  %12938 = vmatprep.mubr.bf16.mxu0 %v21604_v17 }
 0x646   : > { %13157 = vst [vmem:[#allocation8 + $0x2e0] sm:$0xff] %v13061_v25  ;;  %v7352_v25 = vld [vmem:[#allocation8 + $0x208] sm:$0xff] }
 0x647   : > { %13158 = vst [vmem:[#allocation8 + $0x2e8] sm:$0xff] %v13062_v58  ;;  %v7357_v58 = vld [vmem:[#allocation8 + $0x230] sm:$0xff] }
 0x64c   : > { %12939 = vmatmul.mubr.bf16.gmra.mrb[116].mxu0 %v21601_v42 }
 0x64d   : > { %12948 = vmatprep.mubr.bf16.mxu0 %v21624_v21 }
 0x654   : > { %12949 = vmatmul.mubr.bf16.gmra.mrb[120].mxu0 %v21621_v61  ;;  %v7303_v61 = vld [vmem:[#allocation8 + $0x80] sm:$0xff] }
 0x655   : > { %12958 = vmatprep.mubr.bf16.mxu0 %v21644_v0  ;;  %v7304_v0 = vld [vmem:[#allocation8 + $0x88] sm:$0xff] }
 0x65c   : > { %12959 = vmatmul.mubr.bf16.gmra.mrb[124].mxu0 %v21641_v59  ;;  %v7309_v59 = vld [vmem:[#allocation8 + $0xb0] sm:$0xff] }
 0x6f7   : > { %v12890_v54 = vpop.f32.mrb[96].mxu0 }
 0x6f8   : > { %v12973_v37 = vadd.f32 %v12890_v54, %v7291_v56  ;;  %v12892_v23 = vpop.f32.mrb[97].mxu0  ;;  %v7358_v54 = vld [vmem:[#allocation8 + $0x238] sm:$0xff] }
 0x6f9   : > { %v12974_v17 = vadd.f32 %v12892_v23, %v7292_v50  ;;  %v12894_v18 = vpop.f32.mrb[98].mxu0 }
 0x6fa   : > { %13069 = vst [vmem:[#allocation8 + $0x20] sm:$0xff] %v12973_v37  ;;  %v12979_v53 = vadd.f32 %v12894_v18, %v7297_v7  ;;  %v12896_v42 = vpop.f32.mrb[99].mxu0  ;;  %v7363_v18 = vld [vmem:[#allocation8 + $0x260] sm:$0xff] }
 0x6fb   : > { %13070 = vst [vmem:[#allocation8 + $0x28] sm:$0xff] %v12974_v17  ;;  %v12980_v21 = vadd.f32 %v12896_v42, %v7298_v24 }
 0x6fc   : > { %13075 = vst [vmem:[#allocation8 + $0x50] sm:$0xff] %v12979_v53  ;;  %v7364_v53 = vld [vmem:[#allocation8 + $0x268] sm:$0xff] }
 0x6fd   : > { %13076 = vst [vmem:[#allocation8 + $0x58] sm:$0xff] %v12980_v21  ;;  %v7369_v21 = vld [vmem:[#allocation8 + $0x290] sm:$0xff] }
 0x6ff   : > { %v12900_v22 = vpop.f32.mrb[100].mxu0 }
 0x700   : > { %v12985_v20 = vadd.f32 %v12900_v22, %v7303_v61  ;;  %v12902_v57 = vpop.f32.mrb[101].mxu0  ;;  %v7370_v22 = vld [vmem:[#allocation8 + $0x298] sm:$0xff] }
 0x701   : > { %v12986_v32 = vadd.f32 %v12902_v57, %v7304_v0  ;;  %v12904_v13 = vpop.f32.mrb[102].mxu0 }
 0x702   : > { %13081 = vst [vmem:[#allocation8 + $0x80] sm:$0xff] %v12985_v20  ;;  %v12991_v44 = vadd.f32 %v12904_v13, %v7309_v59  ;;  %v12906_v52 = vpop.f32.mrb[103].mxu0  ;;  %v7375_v13 = vld [vmem:[#allocation8 + $0x2c0] sm:$0xff] }
 0x703   : > { %13082 = vst [vmem:[#allocation8 + $0x88] sm:$0xff] %v12986_v32  ;;  %v12992_v39 = vadd.f32 %v12906_v52, %v7310_v28 }
 0x704   : > { %13087 = vst [vmem:[#allocation8 + $0xb0] sm:$0xff] %v12991_v44  ;;  %v7376_v44 = vld [vmem:[#allocation8 + $0x2c8] sm:$0xff] }
 0x705   : > { %13088 = vst [vmem:[#allocation8 + $0xb8] sm:$0xff] %v12992_v39  ;;  %v7381_v39 = vld [vmem:[#allocation8 + $0x2f0] sm:$0xff] }
 0x707   : > { %v12910_v48 = vpop.f32.mrb[104].mxu0 }
 0x708   : > { %v12997_v38 = vadd.f32 %v12910_v48, %v7315_v4  ;;  %v12912_v30 = vpop.f32.mrb[105].mxu0  ;;  %v7382_v48 = vld [vmem:[#allocation8 + $0x2f8] sm:$0xff] }
 0x709   : > { %v12998_v8 = vadd.f32 %v12912_v30, %v7316_v29  ;;  %v12914_v5 = vpop.f32.mrb[106].mxu0 }
 0x70a   : > { %13093 = vst [vmem:[#allocation8 + $0xe0] sm:$0xff] %v12997_v38  ;;  %v13003_v9 = vadd.f32 %v12914_v5, %v7321_v43  ;;  %v12916_v12 = vpop.f32.mrb[107].mxu0 }
 0x70b   : > { %13094 = vst [vmem:[#allocation8 + $0xe8] sm:$0xff] %v12998_v8  ;;  %v13004_v6 = vadd.f32 %v12916_v12, %v7322_v31 }
 0x70c   : > { %13099 = vst [vmem:[#allocation8 + $0x110] sm:$0xff] %v13003_v9 }
 0x70d   : > { %13100 = vst [vmem:[#allocation8 + $0x118] sm:$0xff] %v13004_v6 }
 0x70f   : > { %v12920_v3 = vpop.f32.mrb[108].mxu0 }
 0x710   : > { %v13009_v19 = vadd.f32 %v12920_v3, %v7327_v1  ;;  %v12922_v2 = vpop.f32.mrb[109].mxu0 }
 0x711   : > { %v13010_v46 = vadd.f32 %v12922_v2, %v7328_v26  ;;  %v12924_v45 = vpop.f32.mrb[110].mxu0 }
 0x712   : > { %13105 = vst [vmem:[#allocation8 + $0x140] sm:$0xff] %v13009_v19  ;;  %v13015_v41 = vadd.f32 %v12924_v45, %v7333_v40  ;;  %v12926_v60 = vpop.f32.mrb[111].mxu0 }
 0x713   : > { %13106 = vst [vmem:[#allocation8 + $0x148] sm:$0xff] %v13010_v46  ;;  %v13016_v51 = vadd.f32 %v12926_v60, %v7334_v27 }
 0x714   : > { %13111 = vst [vmem:[#allocation8 + $0x170] sm:$0xff] %v13015_v41 }
 0x715   : > { %13112 = vst [vmem:[#allocation8 + $0x178] sm:$0xff] %v13016_v51 }
 0x717   : > { %v12930_v36 = vpop.f32.mrb[112].mxu0 }
 0x718   : > { %v13021_v47 = vadd.f32 %v12930_v36, %v7339_v10  ;;  %v12932_v15 = vpop.f32.mrb[113].mxu0 }
 0x719   : > { %v13022_v16 = vadd.f32 %v12932_v15, %v7340_v34  ;;  %v12934_v62 = vpop.f32.mrb[114].mxu0 }
 0x71a   : > { %13117 = vst [vmem:[#allocation8 + $0x1a0] sm:$0xff] %v13021_v47  ;;  %v13027_v55 = vadd.f32 %v12934_v62, %v7345_v33  ;;  %v12936_v35 = vpop.f32.mrb[115].mxu0 }
 0x71b   : > { %13118 = vst [vmem:[#allocation8 + $0x1a8] sm:$0xff] %v13022_v16  ;;  %v13028_v14 = vadd.f32 %v12936_v35, %v7346_v11 }
 0x71c   : > { %13123 = vst [vmem:[#allocation8 + $0x1d0] sm:$0xff] %v13027_v55 }
 0x71d   : > { %13124 = vst [vmem:[#allocation8 + $0x1d8] sm:$0xff] %v13028_v14 }
 0x71f   : > { %v12940_v49 = vpop.f32.mrb[116].mxu0 }
 0x720   : > { %v13033_v56 = vadd.f32 %v12940_v49, %v7351_v63  ;;  %v12942_v50 = vpop.f32.mrb[117].mxu0 }
 0x721   : > { %v13034_v7 = vadd.f32 %v12942_v50, %v7352_v25  ;;  %v12944_v37 = vpop.f32.mrb[118].mxu0 }
 0x722   : > { %13129 = vst [vmem:[#allocation8 + $0x200] sm:$0xff] %v13033_v56  ;;  %v13039_v23 = vadd.f32 %v12944_v37, %v7357_v58  ;;  %v12946_v24 = vpop.f32.mrb[119].mxu0 }
 0x723   : > { %13130 = vst [vmem:[#allocation8 + $0x208] sm:$0xff] %v13034_v7  ;;  %v13040_v17 = vadd.f32 %v12946_v24, %v7358_v54 }
 0x724   : > { %13135 = vst [vmem:[#allocation8 + $0x230] sm:$0xff] %v13039_v23 }
 0x725   : > { %13136 = vst [vmem:[#allocation8 + $0x238] sm:$0xff] %v13040_v17 }
 0x727   : > { %v12950_v42 = vpop.f32.mrb[120].mxu0 }
 0x728   : > { %v13045_v61 = vadd.f32 %v12950_v42, %v7363_v18  ;;  %v12952_v0 = vpop.f32.mrb[121].mxu0 }
 0x729   : > { %v13046_v59 = vadd.f32 %v12952_v0, %v7364_v53  ;;  %v12954_v20 = vpop.f32.mrb[122].mxu0 }
 0x72a   : > { %13141 = vst [vmem:[#allocation8 + $0x260] sm:$0xff] %v13045_v61  ;;  %v13051_v57 = vadd.f32 %v12954_v20, %v7369_v21  ;;  %v12956_v28 = vpop.f32.mrb[123].mxu0 }
 0x72b   : > { %13142 = vst [vmem:[#allocation8 + $0x268] sm:$0xff] %v13046_v59  ;;  %v13052_v32 = vadd.f32 %v12956_v28, %v7370_v22 }
 0x72c   : > { %13147 = vst [vmem:[#allocation8 + $0x290] sm:$0xff] %v13051_v57 }
 0x72d   : > { %13148 = vst [vmem:[#allocation8 + $0x298] sm:$0xff] %v13052_v32 }
 0x72f   : > { %v12960_v52 = vpop.f32.mrb[124].mxu0 }
 0x730   : > { %v13057_v4 = vadd.f32 %v12960_v52, %v7375_v13  ;;  %v12962_v29 = vpop.f32.mrb[125].mxu0 }
 0x731   : > { %v13058_v43 = vadd.f32 %v12962_v29, %v7376_v44  ;;  %v12964_v38 = vpop.f32.mrb[126].mxu0 }
 0x732   : > { %13153 = vst [vmem:[#allocation8 + $0x2c0] sm:$0xff] %v13057_v4  ;;  %v13063_v30 = vadd.f32 %v12964_v38, %v7381_v39  ;;  %v12966_v31 = vpop.f32.mrb[127].mxu0 }
 0x733   : > { %13154 = vst [vmem:[#allocation8 + $0x2c8] sm:$0xff] %v13058_v43  ;;  %v13064_v8 = vadd.f32 %v12966_v31, %v7382_v48 }
 0x734   : > { %13159 = vst [vmem:[#allocation8 + $0x2f0] sm:$0xff] %v13063_v30 }
 0x735   : > { %13160 = vst [vmem:[#allocation8 + $0x2f8] sm:$0xff] %v13064_v8 }
 0x736   : > { %18084 = shalt.err (!%p18081_p2)
}
 0x737   : > { %s18085_s29 = scalar_lea.hbm %s22033_s5, 12288 }
 0x738   : > { %p18086_p5 = scmp.ne.s32.totalorder %s22033_s5, %s18085_s29  ;;  %p18091_p11 = scmp.lt.u32.totalorder %s18085_s29, %s22033_s5 }
 0x73a   : > { %p18087_p12 = pnand %p18086_p5, %p15592_p1 }
 0x73c   : > { %p18088_p0 = pneg %p18087_p12 }
 0x73e   : > { %p18093_p10 = pnand %p18091_p11, %p18088_p0 }
 0x740   : > { %18096 = shalt.err (!%p18093_p10)
}
 0x741   : > { %s18166_s16 = smov 768   ;;  %s18167_s25 = smov 48  }
 0x742   : > { %15577 = dma.vmem_to_hbm [thread:$0]  (%p15592_p1), %s13172_s7, 12288, %s22033_s5, [#allocation4], %s18166_s16, %s18166_s16, %s18167_s25  }
 0x743   : > { %18130 = dma.done.wait (%p15592_p1), [#allocation4], 12288  }
 0x744   : > { %18132 = vsyncadd (%p15592_p1), [#allocation4], 4294955008 }
 0x745 PF: > { %s22_s23 = sadd.s32 1, %s18155_s23   ;;  %s22392_s26 = sld [smem:[#allocation13_spill]] }
 0x746   : > { %p19_p9 = scmp.ge.s32.totalorder %s22_s23, 4   ;;  %s22393_s9 = sld [smem:[#allocation12_spill]] }
 0x747   : > { %s22394_s18 = smov %s18139_s19  ;;  %s22395_s19 = smov %s18143_s20 }
 0x748   : > { %s22397_s21 = smov %s18151_s22  ;;  %21 = sbr.rel (!%p19_p9) target bundleno = 9 (0x9), region = 109 }
 0x74b   : > { %s22396_s20 = smov %s22392_s26 }
 0x74c   : > { %s22398_s22 = smov %s22393_s9 }
 0x74f   :  { %13187 = vsyncpa [#allocation3], 1 }
 0x750   :  { %13189 = vsyncpa [#allocation3 + $0x1], 1 }
 0x751   :  { %13190 = vsyncpa [#allocation6], 1 }
 0x752   :  { %13192 = vsyncpa [#allocation6 + $0x1], 1 }
 0x753   :  { %13193 = vsyncpa [#allocation4], 1 }
 0x754   :  { %13195 = vsyncpa [#allocation4 + $0x1], 1 }

</bundles_post_ra>
